<compile_context>
chip_gen: v7x
topology: tpu7x:2x2x1
jax: 0.10.0
libtpu: 0.0.40
codegen_flags: <defaults>
</compile_context>

<pallas_src>
import jax
import jax.numpy as jnp
from jax.experimental import pallas as pl
from jax.experimental.pallas import tpu as pltpu


def _pick_cout_tile(cout, max_tile=768):
    """Largest multiple of 8 that divides `cout` and is <= max_tile (else cout)."""
    best = None
    t = 8
    while t <= min(cout, max_tile):
        if cout % t == 0:
            best = t
        t += 8
    return best if best is not None else cout


def _sigmoid_mul_conv1x1_kernel(s_ref, x_ref, w_ref, o_ref):
    # s_ref : (1, 1, Cin)   f32   gate logits, lane-major (contiguous DMA)
    # x_ref : (1, Cin, HW)  f32   activations (block index constant across j)
    # w_ref : (TM, Cin)     bf16  weight tile (rows = Cout tile)
    # o_ref : (1, TM, HW)   f32   output tile
    gate = jax.nn.sigmoid(s_ref[0])                      # (1, Cin) f32, EUP

    # Fold the channel gate into the weight columns: (w*g) @ x == w @ (g*x).
    # (1, Cin) broadcasts over the weight's lane axis -> no transpose, no
    # scratch, no cross-step dependency (safe for megacore / parallel Cout).
    # Multiply runs in f32 (bf16 weight auto-promoted), result stored bf16.
    w_gated = (w_ref[...] * gate).astype(jnp.bfloat16)   # (TM, Cin) bf16
    x_bf = x_ref[0].astype(jnp.bfloat16)                 # (Cin, HW) bf16

    acc = jnp.dot(w_gated, x_bf, preferred_element_type=jnp.float32)  # MXU
    o_ref[0] = acc.astype(o_ref.dtype)


def prepare_conv_weight(weight):
    """One-time weight prep: (Cout, Cin, 1, 1) f32 -> (Cout, Cin) bf16.

    Call this at init and store/close over the result; doing the cast per
    forward call costs an extra full read+write pass over the weight in HBM.
    """
    cout, cin = weight.shape[0], weight.shape[1]
    return jnp.asarray(weight).reshape(cout, cin).astype(jnp.bfloat16)


def sigmoid_mul_conv1x1(x223, x227, w_bf16, *, max_cout_tile=768):
    """Equivalent of conv2d_1x1(sigmoid(x227) * x223, weight); NCHW in/out.

    x223  : (N, Cin, H, W) f32
    x227  : (N, Cin, 1, 1) f32
    w_bf16: (Cout, Cin)    bf16  (from prepare_conv_weight)
    """
    N, Cin, H, W = x223.shape
    Cout = w_bf16.shape[0]
    HW = H * W

    # Pure (contiguous) reshapes — no transposes in the wrapper.
    x_mat = x223.reshape(N, Cin, HW)
    s_mat = x227.reshape(N, 1, Cin)                # lane-major gate logits

    tm = _pick_cout_tile(Cout, max_cout_tile)      # 1392 -> 696 (2 grid steps)
    nj = Cout // tm

    itemsize = jnp.dtype(x223.dtype).itemsize
    cost = pl.CostEstimate(
        flops=2 * N * HW * Cin * Cout,
        transcendentals=N * Cin * nj,
        bytes_accessed=(x_mat.size * itemsize
                        + s_mat.size * itemsize
                        + w_bf16.size * 2
                        + N * Cout * HW * itemsize),
    )

    out_mat = pl.pallas_call(
        _sigmoid_mul_conv1x1_kernel,
        out_shape=jax.ShapeDtypeStruct((N, Cout, HW), x223.dtype),
        grid=(N, nj),
        in_specs=[
            # Gate logits and activations: constant block across the Cout axis.
            pl.BlockSpec((1, 1, Cin), lambda n, j: (n, 0, 0)),
            pl.BlockSpec((1, Cin, HW), lambda n, j: (n, 0, 0)),
            # Weight tiled over Cout -> double-buffered DMA overlaps the MXU.
            pl.BlockSpec((tm, Cin), lambda n, j: (j, 0)),
        ],
        out_specs=pl.BlockSpec((1, tm, HW), lambda n, j: (n, j, 0)),
        compiler_params=pltpu.CompilerParams(
            # No cross-step state -> both axes parallel (v7x uses both cores).
            dimension_semantics=("parallel", "parallel"),
            # Headroom above the v5e 16 MiB default; well under v7x's 64 MiB.
            vmem_limit_bytes=48 * 1024 * 1024,
        ),
        cost_estimate=cost,
    )(s_mat, x_mat, w_bf16)

    return out_mat.reshape(N, Cout, H, W)


if __name__ == "__main__":
    # Shapes implied by the module's forward pass.
    N, C, H, W = 1, 1392, 14, 14

    key = jax.random.PRNGKey(0)
    k1, k2, k3 = jax.random.split(key, 3)
    x223 = jax.random.normal(k1, (N, C, H, W), dtype=jnp.float32)
    x227 = jax.random.normal(k2, (N, C, 1, 1), dtype=jnp.float32)
    # Deterministic weight init for Conv2d(1392, 1392, 1, 1, bias=False),
    # kaiming-uniform-like scale (fan_in = C).
    bound = 1.0 / jnp.sqrt(jnp.float32(C))
    weight = jax.random.uniform(k3, (C, C, 1, 1), dtype=jnp.float32,
                                minval=-bound, maxval=bound)

    # One-time weight preparation (kept out of the per-call hot path).
    w_bf16 = jax.block_until_ready(prepare_conv_weight(weight))

    fwd = jax.jit(sigmoid_mul_conv1x1)
    out = jax.block_until_ready(fwd(x223, x227, w_bf16))

    # Reference in plain JAX f32 (sigmoid * x, then 1x1 conv as einsum).
    gated = jax.nn.sigmoid(x227) * x223                          # (N, C, H, W)
    ref = jnp.einsum("oi,nihw->nohw", weight.reshape(C, C), gated)
    assert out.shape == (N, C, H, W)
    assert out.dtype == x223.dtype
    # bf16 MXU operands with f32 accumulation: tolerance loosened vs f32 ref.
    assert jnp.allclose(out, ref, atol=2e-2, rtol=2e-2), "mismatch vs reference"

    print("KERNEL_OK")
</pallas_src>

<mosaic_0001>
module attributes {stable_mosaic.version = 11 : i64} {
  func.func @_sigmoid_mul_conv1x1_kernel(%arg0: i32, %arg1: i32, %arg2: memref<1x1x1392xf32, #tpu.memory_space<vmem>>, %arg3: memref<1x1392x196xf32, #tpu.memory_space<vmem>>, %arg4: memref<696x1392xbf16, #tpu.memory_space<vmem>>, %arg5: memref<1x696x196xf32, #tpu.memory_space<vmem>>) attributes {dimension_semantics = [#tpu.dimension_semantics<parallel>, #tpu.dimension_semantics<parallel>], iteration_bounds = array<i64: 1, 2>, scalar_prefetch = 0 : i64, scratch_operands = 0 : i64, tpu.core_type = #tpu.core_type<tc>, window_params = [{transform_indices = @transform_0, window_bounds = array<i64: 1, 1, 1392>}, {transform_indices = @transform_1, window_bounds = array<i64: 1, 1392, 196>}, {transform_indices = @transform_2, window_bounds = array<i64: 696, 1392>}, {transform_indices = @transform_3, window_bounds = array<i64: 1, 696, 196>}]} {
    %c0 = arith.constant 0 : index
    %c0_0 = arith.constant 0 : index
    %c0_1 = arith.constant 0 : index
    %0 = vector.load %arg2[%c0, %c0_0, %c0_1] : memref<1x1x1392xf32, #tpu.memory_space<vmem>>, vector<1x1x1392xf32>
    %1 = vector.shape_cast %0 : vector<1x1x1392xf32> to vector<1x1392xf32>
    %2 = arith.negf %1 : vector<1x1392xf32>
    %3 = math.exp %2 : vector<1x1392xf32>
    %cst = arith.constant 1.000000e+00 : f32
    %4 = vector.broadcast %cst : f32 to vector<1x1392xf32>
    %5 = arith.addf %4, %3 : vector<1x1392xf32>
    %6 = arith.divf %4, %5 : vector<1x1392xf32>
    %c0_2 = arith.constant 0 : index
    %c0_3 = arith.constant 0 : index
    %7 = vector.load %arg4[%c0_2, %c0_3] : memref<696x1392xbf16, #tpu.memory_space<vmem>>, vector<696x1392xbf16>
    %8 = arith.extf %7 : vector<696x1392xbf16> to vector<696x1392xf32>
    %9 = vector.broadcast %6 : vector<1x1392xf32> to vector<696x1392xf32>
    %10 = arith.mulf %8, %9 : vector<696x1392xf32>
    %11 = arith.truncf %10 : vector<696x1392xf32> to vector<696x1392xbf16>
    %c0_4 = arith.constant 0 : index
    %c0_5 = arith.constant 0 : index
    %c0_6 = arith.constant 0 : index
    %12 = vector.load %arg3[%c0_4, %c0_5, %c0_6] : memref<1x1392x196xf32, #tpu.memory_space<vmem>>, vector<1x1392x196xf32>
    %13 = vector.shape_cast %12 : vector<1x1392x196xf32> to vector<1392x196xf32>
    %14 = arith.truncf %13 : vector<1392x196xf32> to vector<1392x196xbf16>
    %cst_7 = arith.constant dense<0.000000e+00> : vector<696x196xf32>
    %15 = tpu.matmul %11, %14, %cst_7 {dimension_numbers = #tpu.dot_dimension_numbers<[1], [0], [0], [1], [0, 0, 1, 1], [], []>} : vector<696x1392xbf16>, vector<1392x196xbf16>, vector<696x196xf32> -> vector<696x196xf32>
    %c0_8 = arith.constant 0 : index
    %c0_9 = arith.constant 0 : index
    %c0_10 = arith.constant 0 : index
    %16 = vector.load %arg5[%c0_8, %c0_9, %c0_10] : memref<1x696x196xf32, #tpu.memory_space<vmem>>, vector<1x696x196xf32>
    %17 = vector.shape_cast %16 : vector<1x696x196xf32> to vector<696x196xf32>
    %18 = vector.shape_cast %15 : vector<696x196xf32> to vector<1x696x196xf32>
    tpu.vector_store %arg5[%c0_8, %c0_9, %c0_10], %18 {strides = array<i32>} : memref<1x696x196xf32, #tpu.memory_space<vmem>>, vector<1x696x196xf32>,
    return
  }
  func.func @transform_0(%arg0: i32, %arg1: i32) -> (i32, i32, i32) {
    %c0_i32 = arith.constant 0 : i32
    %c0_i32_0 = arith.constant 0 : i32
    %c0_i32_1 = arith.constant 0 : i32
    return %arg0, %c0_i32, %c0_i32_0 : i32, i32, i32
  }
  func.func @transform_1(%arg0: i32, %arg1: i32) -> (i32, i32, i32) {
    %c0_i32 = arith.constant 0 : i32
    %c0_i32_0 = arith.constant 0 : i32
    %c0_i32_1 = arith.constant 0 : i32
    return %arg0, %c0_i32, %c0_i32_0 : i32, i32, i32
  }
  func.func @transform_2(%arg0: i32, %arg1: i32) -> (i32, i32) {
    %c0_i32 = arith.constant 0 : i32
    %c0_i32_0 = arith.constant 0 : i32
    return %arg1, %c0_i32 : i32, i32
  }
  func.func @transform_3(%arg0: i32, %arg1: i32) -> (i32, i32, i32) {
    %c0_i32 = arith.constant 0 : i32
    %c0_i32_0 = arith.constant 0 : i32
    return %arg0, %arg1, %c0_i32 : i32, i32, i32
  }
}

</mosaic_0001>

<bundles_post_ra>
// kernel: sigmoid_mul_conv1x1.1
= control target key start
LH: loop header
LB: loop body
LE: loop exit
PB: predicated region body
PF: predicated region fallthrough
CT: control target
= control target key end

     0   :  { %8 = vsyncpa [#allocation3], 0  ;;  %s11474_s0 = inlined_call_operand.vmem [shape: f32[1,1,1392], index: 0, kind: input, shape index: {}]   ;;  %s11475_s1 = inlined_call_operand.vmem [shape: f32[1,1392,196], index: 1, kind: input, shape index: {}]   ;;  %s11476_s2 = inlined_call_operand.hbm [shape: bf16[1392,1392], index: 2, kind: input, shape index: {}]   ;;  %s11477_s3 = inlined_call_operand.vmem [shape: f32[1,1392,196], index: 3, kind: output, shape index: {}]  }
   0x1   :  { %10 = vsyncpa [#allocation3 + $0x1], 0  ;;  %s8144_s12 = smov 0   ;;  %s8146_s13 = smov 0  }
   0x2   :  { %s8148_s14 = smov 0   ;;  %s8150_s15 = smov 0  }
   0x3   :  { %s8152_s16 = smov 0   ;;  %s8154_s17 = smov 0  }
   0x4 LB: > { %s7031_s18 = sadd.s32 4294967295, %s8118_s17   ;;  %s25_s19 = sadd.s32 1, %s8114_s16  ;;  %s8118_s17 = sphi %s8154_s17, %s16_s17   ;;  %s8114_s16 = sphi %s8152_s16, %s11485_s16   ;;  %s8110_s15 = sphi %s8150_s15, %s11484_s15   ;;  %s8106_s14 = sphi %s8148_s14, %s11483_s14   ;;  %s8102_s13 = sphi %s8146_s13, %s11482_s13   ;;  %s8098_s12 = sphi %s8144_s12, %s11481_s12  }
   0x5   : > { %p26_p0 = scmp.ge.s32.totalorder %s25_s19, 2  ;;  %s87_s20 = sadd.s32 1, %s8106_s14 }
   0x6   : > { %p94_p1 = scmp.ne.s32.totalorder %s8106_s14, %s8102_s13  ;;  %p95_p2 = scmp.eq.s32.totalorder %s8118_s17, 0 }
   0x7   : > { %s11487_s19 = smov (%p26_p0, %s25_s19), 0  ;;  %p100_p4 = scmp.ne.s32.totalorder %s8102_s13, %s8098_s12 }
   0x8   : > { %p96_p3 = por %p95_p2, %p94_p1  ;;  %s84_s21 = ssub.s32 %s8114_s16, %s11487_s19 }
   0x9   : > { %p101_p5 = scmp.eq.s32.totalorder %s7031_s18, 0  ;;  %p85_p6 = scmp.eq.s32.totalorder %s84_s21, 0 }
   0xa   : > { %p7977_p8 = scmp.lt.s32.totalorder %s8118_s17, 2  ;;  %s167_s24 = sand.u32 1, %s8106_s14  }
   0xb   : > { %p8183_p7 = por %p101_p5, %p100_p4  ;;  %s7968_s25 = smul.u32 3828, %s167_s24 }
   0xc   : > { %s8189_s23 = scalar_select %p85_p6, %s8106_s14, %s87_s20  }
   0xd   : > { %s7978_s26 = smul.u32 61248, %s8114_s16  ;;  %p8193_p9 = pnand %p7977_p8, %p96_p3 }
   0xe   : > { %s171_s4 = scalar_lea.vmem [#allocation2], %s7968_s25  ;;  %s8205_s6 = scalar_lea.sflag [#allocation3], %s167_s24 }
   0xf   : > { %s8200_s30 = scalar_lea.hbm %s11476_s2, %s7978_s26  ;;  %s179_s5 = sshll.u32 %s171_s4, 4  ;;  %s8202_s5 = int_to_ptr.vmem [resolvable:$true] %s179_s5 }
  0x10   : > { %s8038_s7 = scalar_lea.hbm %s8200_s30, 61248  ;;  %p8040_p12 = pneg %p8193_p9 }
  0x11   : > { %p8039_p11 = scmp.ne.s32.totalorder %s8200_s30, %s8038_s7  ;;  %s8043_s10 = scalar_lea.hbm %s11476_s2, 122496 }
  0x12   : > { %p8044_p1 = scmp.lt.u32.totalorder %s8200_s30, %s11476_s2  ;;  %p8045_p2 = scmp.lt.u32.totalorder %s8043_s10, %s8038_s7 }
  0x13   : > { %p8041_p13 = pnand %p8040_p12, %p8039_p11  ;;  %p8047_p4 = scmp.lt.u32.totalorder %s8038_s7, %s8200_s30 }
  0x14   : > { %p8046_p3 = por %p8045_p2, %p8044_p1 }
  0x15   : > { %p8042_p0 = pneg %p8041_p13 }
  0x16   : > { %p8048_p5 = por %p8047_p4, %p8046_p3 }
  0x18   : > { %p8049_p6 = pnand %p8048_p5, %p8042_p0 }
  0x1a   : > { %8052 = shalt.err (!%p8049_p6)
}
  0x1b   : > { %s8053_s18 = scalar_lea.vmem %s8202_s5, 61248  ;;  %s8120_s20 = smov [#allocation2]  }
  0x1c   : > { %p8054_p8 = scmp.ne.s32.totalorder %s8202_s5, %s8053_s18  ;;  %s8058_s21 = sshll.u32 %s8120_s20, 4  ;;  %s8059_s21 = int_to_ptr.vmem [resolvable:$false] %s8058_s21 }
  0x1d   : > { %s8060_s24 = scalar_lea.vmem %s8059_s21, 122496  ;;  %p8061_p10 = scmp.lt.s32.totalorder %s8202_s5, %s8059_s21 }
  0x1e   : > { %p8056_p11 = pnand %p8054_p8, %p8040_p12  ;;  %p8062_p1 = scmp.lt.s32.totalorder %s8060_s24, %s8053_s18 }
  0x20   : > { %p8057_p13 = pneg %p8056_p11  ;;  %p8063_p2 = por %p8062_p1, %p8061_p10 }
  0x22   : > { %p8064_p3 = pnand %p8063_p2, %p8057_p13 }
  0x24   : > { %8067 = shalt.err (!%p8064_p3)
}
  0x25   : > { %s8121_s25 = smov 704   ;;  %s8122_s26 = smov 44  }
  0x26   : > { %7976 = dma.hbm_to_vmem [thread:$0]  (!%p8193_p9), %s8200_s30, 61248, %s8202_s5, %s8205_s6, %s8121_s25, %s8121_s25, %s8122_s26  }
  0x27   : > { %p187_p12 = scmp.lt.s32.totalorder %s8118_s17, 3  ;;  %p11480_p0 = scmp.ge.s32.totalorder %s8118_s17, 1 }
  0x29   : > { %p188_p4 = pnand %p11480_p0, %p187_p12 }
  0x2a   : > { %s193_s28 = sand.u32 (!%p188_p4), 1, %s8102_s13  }
  0x2b   : > { %191 = sbr.rel (%p188_p4) target bundleno = 1385 (0x569), region = 32  ;;  %s194_s4 = scalar_lea.sflag (!%p188_p4), [#allocation3], %s193_s28 }
  0x2c   : > { %s7970_s29 = smul.u32 (!%p188_p4), 3828, %s193_s28 }
  0x2e   : > { %s8237_s7 = scalar_lea.vmem (!%p188_p4), [#allocation2], %s7970_s29 }
  0x32   : > { %8093 = dma.done.wait (%p8183_p7), %s194_s4, 61248  }
  0x33   : > { %8095 = vsyncadd (%p8183_p7), %s194_s4, 4294906048  ;;  %v3248_v0 = vld [vmem:[%s11475_s1 + $0x8] sm:$0xff]  ;;  %v3250_v1 = vld [vmem:[%s11475_s1 + $0x18] sm:$0xff]  ;;  %vm3769_vm0 = vcmask 916480   ;;  %s244_s28 = smul.u32 87, %s8110_s15  ;;  %vm6729_vm1 = vcmask 556032  }
  0x34   : > { %v3440_v2 = vld [vmem:[%s11475_s1 + $0x608] sm:$0xff]  ;;  %v3596_v3 = vpack.c.bf16 %v3250_v1, %v3248_v0  ;;  %v3442_v4 = vld [vmem:[%s11475_s1 + $0x618] sm:$0xff]  ;;  %v3247_v5 = vld [vmem:[%s11475_s1] sm:$0xff] }
  0x35   : > { %v3249_v6 = vld [vmem:[%s11475_s1 + $0x10] sm:$0xff]  ;;  %v3692_v7 = vpack.c.bf16 %v3442_v4, %v3440_v2  ;;  %v3439_v9 = vld [vmem:[%s11475_s1 + $0x600] sm:$0xff]  ;;  %v3252_v11 = vld [vmem:[%s11475_s1 + $0x28] sm:$0xff]  ;;  %p247_p7 = scmp.lt.s32.totalorder %s244_s28, 173 }
  0x36   : > { %v3595_v8 = vpack.c.bf16 %v3249_v6, %v3247_v5  ;;  %v3441_v10 = vld [vmem:[%s11475_s1 + $0x610] sm:$0xff]  ;;  %3902 = vmatprep.subr.bf16.mxu1 %v3596_v3  ;;  %v3254_v13 = vld [vmem:[%s11475_s1 + $0x38] sm:$0xff]  ;;  %v3444_v14 = vld [vmem:[%s11475_s1 + $0x628] sm:$0xff] }
  0x37   : > { %v3691_v12 = vpack.c.bf16 %v3441_v10, %v3439_v9  ;;  %v3446_v15 = vld [vmem:[%s11475_s1 + $0x638] sm:$0xff]  ;;  %5315 = vmatprep.subr.bf16.mxu0 %v3692_v7  ;;  %v3598_v16 = vpack.c.bf16 %v3254_v13, %v3252_v11  ;;  %v3251_v18 = vld [vmem:[%s11475_s1 + $0x20] sm:$0xff]  ;;  %v3253_v19 = vld [vmem:[%s11475_s1 + $0x30] sm:$0xff]  ;;  %s11489_s28 = smov (!%p247_p7, %s244_s28), 173 }
  0x38   : > { %3903 = vmatpush1.bf16.msra.mxu1 %v3595_v8  ;;  %v3694_v17 = vpack.c.bf16 %v3446_v15, %v3444_v14  ;;  %v3443_v20 = vld [vmem:[%s11475_s1 + $0x620] sm:$0xff]  ;;  %v3597_v21 = vpack.c.bf16 %v3253_v19, %v3251_v18  ;;  %v3445_v22 = vld [vmem:[%s11475_s1 + $0x630] sm:$0xff]  ;;  %v3256_v23 = vld [vmem:[%s11475_s1 + $0x48] sm:$0xff]  ;;  %s7089_s15 = sshll.u32 %s11489_s28, 4 }
  0x39   : > { %5316 = vmatpush1.bf16.msra.mxu0 %v3691_v12  ;;  %v3258_v24 = vld [vmem:[%s11475_s1 + $0x58] sm:$0xff]  ;;  %3904 = vmatprep.subr.bf16.mxu1 %v3598_v16  ;;  %v3693_v25 = vpack.c.bf16 %v3445_v22, %v3443_v20  ;;  %v3448_v27 = vld [vmem:[%s11475_s1 + $0x648] sm:$0xff]  ;;  %v3255_v29 = vld [vmem:[%s11475_s1 + $0x40] sm:$0xff]  ;;  %s10991_s8 = scalar_lea.vmem %s11477_s3, %s7089_s15 }
  0x3a   : > { %5317 = vmatprep.subr.bf16.mxu0 %v3694_v17  ;;  %v3600_v26 = vpack.c.bf16 %v3258_v24, %v3256_v23  ;;  %v3450_v28 = vld [vmem:[%s11475_s1 + $0x658] sm:$0xff]  ;;  %v3257_v31 = vld [vmem:[%s11475_s1 + $0x50] sm:$0xff]  ;;  %v3447_v32 = vld [vmem:[%s11475_s1 + $0x640] sm:$0xff] }
  0x3b   : > { %v3696_v30 = vpack.c.bf16 %v3450_v28, %v3448_v27  ;;  %v3449_v33 = vld [vmem:[%s11475_s1 + $0x650] sm:$0xff]  ;;  %v3599_v34 = vpack.c.bf16 %v3257_v31, %v3255_v29  ;;  %v3260_v35 = vld [vmem:[%s11475_s1 + $0x68] sm:$0xff]  ;;  %v3262_v36 = vld [vmem:[%s11475_s1 + $0x78] sm:$0xff] }
  0x3c   : > { %3905 = vmatpush1.bf16.msra.mxu1 %v3597_v21  ;;  %v3452_v37 = vld [vmem:[%s11475_s1 + $0x668] sm:$0xff]  ;;  %v3695_v38 = vpack.c.bf16 %v3449_v33, %v3447_v32  ;;  %v3602_v39 = vpack.c.bf16 %v3262_v36, %v3260_v35  ;;  %v3454_v40 = vld [vmem:[%s11475_s1 + $0x678] sm:$0xff]  ;;  %v3259_v41 = vld [vmem:[%s11475_s1 + $0x60] sm:$0xff] }
  0x3d   : > { %5318 = vmatpush1.bf16.msra.mxu0 %v3693_v25  ;;  %3906 = vmatprep.subr.bf16.mxu1 %v3600_v26  ;;  %v3261_v42 = vld [vmem:[%s11475_s1 + $0x70] sm:$0xff]  ;;  %v3698_v43 = vpack.c.bf16 %v3454_v40, %v3452_v37  ;;  %v3451_v44 = vld [vmem:[%s11475_s1 + $0x660] sm:$0xff]  ;;  %v3264_v46 = vld [vmem:[%s11475_s1 + $0x88] sm:$0xff] }
  0x3e   : > { %5319 = vmatprep.subr.bf16.mxu0 %v3696_v30  ;;  %v3453_v45 = vld [vmem:[%s11475_s1 + $0x670] sm:$0xff]  ;;  %v3266_v47 = vld [vmem:[%s11475_s1 + $0x98] sm:$0xff]  ;;  %v3456_v48 = vld [vmem:[%s11475_s1 + $0x688] sm:$0xff]  ;;  %v3601_v50 = vpack.c.bf16 %v3261_v42, %v3259_v41 }
  0x3f   : > { %v3458_v49 = vld [vmem:[%s11475_s1 + $0x698] sm:$0xff]  ;;  %v3697_v51 = vpack.c.bf16 %v3453_v45, %v3451_v44  ;;  %v3604_v52 = vpack.c.bf16 %v3266_v47, %v3264_v46  ;;  %v3263_v53 = vld [vmem:[%s11475_s1 + $0x80] sm:$0xff]  ;;  %v3265_v54 = vld [vmem:[%s11475_s1 + $0x90] sm:$0xff] }
  0x40   : > { %3907 = vmatpush1.bf16.msra.mxu1 %v3599_v34  ;;  %v3455_v55 = vld [vmem:[%s11475_s1 + $0x680] sm:$0xff]  ;;  %v3700_v56 = vpack.c.bf16 %v3458_v49, %v3456_v48  ;;  %v3457_v57 = vld [vmem:[%s11475_s1 + $0x690] sm:$0xff]  ;;  %v3268_v58 = vld [vmem:[%s11475_s1 + $0xa8] sm:$0xff]  ;;  %v3603_v62 = vpack.c.bf16 %v3265_v54, %v3263_v53 }
  0x41   : > { %5320 = vmatpush1.bf16.msra.mxu0 %v3695_v38  ;;  %3908 = vmatprep.subr.bf16.mxu1 %v3602_v39  ;;  %v3270_v59 = vld [vmem:[%s11475_s1 + $0xb8] sm:$0xff]  ;;  %v3460_v60 = vld [vmem:[%s11475_s1 + $0x6a8] sm:$0xff]  ;;  %v3699_v63 = vpack.c.bf16 %v3457_v57, %v3455_v55  ;;  %v3267_v1 = vld [vmem:[%s11475_s1 + $0xa0] sm:$0xff] }
  0x42   : > { %5321 = vmatprep.subr.bf16.mxu0 %v3698_v43  ;;  %v3462_v61 = vld [vmem:[%s11475_s1 + $0x6b8] sm:$0xff]  ;;  %v3606_v0 = vpack.c.bf16 %v3270_v59, %v3268_v58  ;;  %v3269_v2 = vld [vmem:[%s11475_s1 + $0xb0] sm:$0xff]  ;;  %v3459_v3 = vld [vmem:[%s11475_s1 + $0x6a0] sm:$0xff] }
  0x43   : > { %v3702_v4 = vpack.c.bf16 %v3462_v61, %v3460_v60  ;;  %v3461_v5 = vld [vmem:[%s11475_s1 + $0x6b0] sm:$0xff]  ;;  %v3272_v6 = vld [vmem:[%s11475_s1 + $0xc8] sm:$0xff]  ;;  %v3274_v7 = vld [vmem:[%s11475_s1 + $0xd8] sm:$0xff]  ;;  %v3605_v10 = vpack.c.bf16 %v3269_v2, %v3267_v1 }
  0x44   : > { %3909 = vmatpush1.bf16.msra.mxu1 %v3601_v50  ;;  %v3464_v8 = vld [vmem:[%s11475_s1 + $0x6c8] sm:$0xff]  ;;  %v3466_v9 = vld [vmem:[%s11475_s1 + $0x6d8] sm:$0xff]  ;;  %v3701_v11 = vpack.c.bf16 %v3461_v5, %v3459_v3  ;;  %v3608_v12 = vpack.c.bf16 %v3274_v7, %v3272_v6  ;;  %v3271_v13 = vld [vmem:[%s11475_s1 + $0xc0] sm:$0xff] }
  0x45   : > { %5322 = vmatpush1.bf16.msra.mxu0 %v3697_v51  ;;  %3910 = vmatprep.subr.bf16.mxu1 %v3604_v52  ;;  %v3273_v14 = vld [vmem:[%s11475_s1 + $0xd0] sm:$0xff]  ;;  %v3463_v15 = vld [vmem:[%s11475_s1 + $0x6c0] sm:$0xff]  ;;  %v3704_v16 = vpack.c.bf16 %v3466_v9, %v3464_v8  ;;  %v3276_v18 = vld [vmem:[%s11475_s1 + $0xe8] sm:$0xff] }
  0x46   : > { %5323 = vmatprep.subr.bf16.mxu0 %v3700_v56  ;;  %v3465_v17 = vld [vmem:[%s11475_s1 + $0x6d0] sm:$0xff]  ;;  %v3278_v19 = vld [vmem:[%s11475_s1 + $0xf8] sm:$0xff]  ;;  %v3468_v20 = vld [vmem:[%s11475_s1 + $0x6e8] sm:$0xff]  ;;  %v3607_v22 = vpack.c.bf16 %v3273_v14, %v3271_v13 }
  0x47   : > { %v3470_v21 = vld [vmem:[%s11475_s1 + $0x6f8] sm:$0xff]  ;;  %v3703_v23 = vpack.c.bf16 %v3465_v17, %v3463_v15  ;;  %v3610_v24 = vpack.c.bf16 %v3278_v19, %v3276_v18  ;;  %v3275_v25 = vld [vmem:[%s11475_s1 + $0xe0] sm:$0xff]  ;;  %v3277_v26 = vld [vmem:[%s11475_s1 + $0xf0] sm:$0xff] }
  0x48   : > { %3911 = vmatpush1.bf16.msra.mxu1 %v3603_v62  ;;  %v3467_v27 = vld [vmem:[%s11475_s1 + $0x6e0] sm:$0xff]  ;;  %v3706_v28 = vpack.c.bf16 %v3470_v21, %v3468_v20  ;;  %v3469_v29 = vld [vmem:[%s11475_s1 + $0x6f0] sm:$0xff]  ;;  %v3280_v30 = vld [vmem:[%s11475_s1 + $0x108] sm:$0xff]  ;;  %v3609_v34 = vpack.c.bf16 %v3277_v26, %v3275_v25 }
  0x49   : > { %5324 = vmatpush1.bf16.msra.mxu0 %v3699_v63  ;;  %3912 = vmatprep.subr.bf16.mxu1 %v3606_v0  ;;  %v3282_v31 = vld [vmem:[%s11475_s1 + $0x118] sm:$0xff]  ;;  %v3472_v32 = vld [vmem:[%s11475_s1 + $0x708] sm:$0xff]  ;;  %v3705_v35 = vpack.c.bf16 %v3469_v29, %v3467_v27  ;;  %v3279_v37 = vld [vmem:[%s11475_s1 + $0x100] sm:$0xff] }
  0x4a   : > { %5325 = vmatprep.subr.bf16.mxu0 %v3702_v4  ;;  %v3474_v33 = vld [vmem:[%s11475_s1 + $0x718] sm:$0xff]  ;;  %v3612_v36 = vpack.c.bf16 %v3282_v31, %v3280_v30  ;;  %v3281_v38 = vld [vmem:[%s11475_s1 + $0x110] sm:$0xff]  ;;  %v3471_v39 = vld [vmem:[%s11475_s1 + $0x700] sm:$0xff] }
  0x4b   : > { %v3708_v40 = vpack.c.bf16 %v3474_v33, %v3472_v32  ;;  %v3473_v41 = vld [vmem:[%s11475_s1 + $0x710] sm:$0xff]  ;;  %v3284_v42 = vld [vmem:[%s11475_s1 + $0x128] sm:$0xff]  ;;  %v3286_v43 = vld [vmem:[%s11475_s1 + $0x138] sm:$0xff]  ;;  %v3611_v46 = vpack.c.bf16 %v3281_v38, %v3279_v37 }
  0x4c   : > { %3913 = vmatpush1.bf16.msra.mxu1 %v3605_v10  ;;  %v3476_v44 = vld [vmem:[%s11475_s1 + $0x728] sm:$0xff]  ;;  %v3478_v45 = vld [vmem:[%s11475_s1 + $0x738] sm:$0xff]  ;;  %v3707_v47 = vpack.c.bf16 %v3473_v41, %v3471_v39  ;;  %v3614_v48 = vpack.c.bf16 %v3286_v43, %v3284_v42  ;;  %v3283_v49 = vld [vmem:[%s11475_s1 + $0x120] sm:$0xff] }
  0x4d   : > { %5326 = vmatpush1.bf16.msra.mxu0 %v3701_v11  ;;  %3914 = vmatprep.subr.bf16.mxu1 %v3608_v12  ;;  %v3285_v50 = vld [vmem:[%s11475_s1 + $0x130] sm:$0xff]  ;;  %v3475_v51 = vld [vmem:[%s11475_s1 + $0x720] sm:$0xff]  ;;  %v3710_v52 = vpack.c.bf16 %v3478_v45, %v3476_v44  ;;  %v3288_v54 = vld [vmem:[%s11475_s1 + $0x148] sm:$0xff] }
  0x4e   : > { %5327 = vmatprep.subr.bf16.mxu0 %v3704_v16  ;;  %v3477_v53 = vld [vmem:[%s11475_s1 + $0x730] sm:$0xff]  ;;  %v3290_v55 = vld [vmem:[%s11475_s1 + $0x158] sm:$0xff]  ;;  %v3480_v56 = vld [vmem:[%s11475_s1 + $0x748] sm:$0xff]  ;;  %v3613_v58 = vpack.c.bf16 %v3285_v50, %v3283_v49 }
  0x4f   : > { %v3482_v57 = vld [vmem:[%s11475_s1 + $0x758] sm:$0xff]  ;;  %v3709_v59 = vpack.c.bf16 %v3477_v53, %v3475_v51  ;;  %v3616_v60 = vpack.c.bf16 %v3290_v55, %v3288_v54  ;;  %v3287_v61 = vld [vmem:[%s11475_s1 + $0x140] sm:$0xff]  ;;  %v3289_v62 = vld [vmem:[%s11475_s1 + $0x150] sm:$0xff] }
  0x50   : > { %3915 = vmatpush1.bf16.msra.mxu1 %v3607_v22  ;;  %v3479_v63 = vld [vmem:[%s11475_s1 + $0x740] sm:$0xff]  ;;  %v3712_v0 = vpack.c.bf16 %v3482_v57, %v3480_v56  ;;  %v3481_v1 = vld [vmem:[%s11475_s1 + $0x750] sm:$0xff]  ;;  %v3292_v2 = vld [vmem:[%s11475_s1 + $0x168] sm:$0xff]  ;;  %v3615_v6 = vpack.c.bf16 %v3289_v62, %v3287_v61  ;;  %v1751_v57 = vlaneseq }
  0x51   : > { %5328 = vmatpush1.bf16.msra.mxu0 %v3703_v23  ;;  %3916 = vmatprep.subr.bf16.mxu1 %v3610_v24  ;;  %v3294_v3 = vld [vmem:[%s11475_s1 + $0x178] sm:$0xff]  ;;  %v3484_v4 = vld [vmem:[%s11475_s1 + $0x768] sm:$0xff]  ;;  %v3291_v7 = vld [vmem:[%s11475_s1 + $0x160] sm:$0xff]  ;;  %v3711_v8 = vpack.c.bf16 %v3481_v1, %v3479_v63 }
  0x52   : > { %5329 = vmatprep.subr.bf16.mxu0 %v3706_v28  ;;  %v3486_v5 = vld [vmem:[%s11475_s1 + $0x778] sm:$0xff]  ;;  %v3618_v9 = vpack.c.bf16 %v3294_v3, %v3292_v2  ;;  %v3293_v10 = vld [vmem:[%s11475_s1 + $0x170] sm:$0xff]  ;;  %v3483_v11 = vld [vmem:[%s11475_s1 + $0x760] sm:$0xff] }
  0x53   : > { %v3485_v12 = vld [vmem:[%s11475_s1 + $0x770] sm:$0xff]  ;;  %v3714_v13 = vpack.c.bf16 %v3486_v5, %v3484_v4  ;;  %v3296_v14 = vld [vmem:[%s11475_s1 + $0x188] sm:$0xff]  ;;  %v3298_v15 = vld [vmem:[%s11475_s1 + $0x198] sm:$0xff]  ;;  %v3617_v20 = vpack.c.bf16 %v3293_v10, %v3291_v7  ;;  %v8636_v5 = vshrl.u32 %v1751_v57, 7 }
  0x54   : > { %3917 = vmatpush1.bf16.msra.mxu1 %v3609_v34  ;;  %v256_v16 = vld [vmem:[%s11474_s0] sm:$0xff]  ;;  %v3488_v17 = vld [vmem:[%s11475_s1 + $0x788] sm:$0xff]  ;;  %v3490_v18 = vld [vmem:[%s11475_s1 + $0x798] sm:$0xff]  ;;  %v3713_v21 = vpack.c.bf16 %v3485_v12, %v3483_v11  ;;  %v3620_v22 = vpack.c.bf16 %v3298_v15, %v3296_v14 }
  0x55   : > { %5330 = vmatpush1.bf16.msra.mxu0 %v3705_v35  ;;  %3918 = vmatprep.subr.bf16.mxu1 %v3612_v36  ;;  %v7041_v19 = vmul.f32 -1.442695, %v256_v16  ;;  %v3295_v23 = vld [vmem:[%s11475_s1 + $0x180] sm:$0xff]  ;;  %v3297_v24 = vld [vmem:[%s11475_s1 + $0x190] sm:$0xff]  ;;  %v3716_v26 = vpack.c.bf16 %v3490_v18, %v3488_v17  ;;  %v3300_v28 = vld [vmem:[%s11475_s1 + $0x1a8] sm:$0xff]  ;;  %v1757_v18 = vsub.s32 1, %v8636_v5 }
  0x56   : > { %5331 = vmatprep.subr.bf16.mxu0 %v3708_v40  ;;  %v3487_v25 = vld [vmem:[%s11475_s1 + $0x780] sm:$0xff]  ;;  %v3489_v27 = vld [vmem:[%s11475_s1 + $0x790] sm:$0xff]  ;;  %v3302_v29 = vld [vmem:[%s11475_s1 + $0x1b8] sm:$0xff]  ;;  %v3619_v32 = vpack.c.bf16 %v3297_v24, %v3295_v23 }
  0x57   : > { %8030 = vpow2.f32 %v7041_v19  ;;  %v3492_v30 = vld [vmem:[%s11475_s1 + $0x7a8] sm:$0xff]  ;;  %v3494_v31 = vld [vmem:[%s11475_s1 + $0x7b8] sm:$0xff]  ;;  %v3715_v33 = vpack.c.bf16 %v3489_v27, %v3487_v25  ;;  %v3622_v34 = vpack.c.bf16 %v3302_v29, %v3300_v28  ;;  %v3299_v35 = vld [vmem:[%s11475_s1 + $0x1a0] sm:$0xff]  ;;  %v1781_v19 = vsub.s32 7, %v8636_v5 }
  0x58   : > { %3919 = vmatpush1.bf16.msra.mxu1 %v3611_v46  ;;  %v3301_v36 = vld [vmem:[%s11475_s1 + $0x1b0] sm:$0xff]  ;;  %v3491_v37 = vld [vmem:[%s11475_s1 + $0x7a0] sm:$0xff]  ;;  %v3718_v38 = vpack.c.bf16 %v3494_v31, %v3492_v30  ;;  %v3304_v40 = vld [vmem:[%s11475_s1 + $0x1c8] sm:$0xff]  ;;  %v1777_v27 = vsub.s32 6, %v8636_v5 }
  0x59   : > { %5332 = vmatpush1.bf16.msra.mxu0 %v3707_v47  ;;  %3920 = vmatprep.subr.bf16.mxu1 %v3614_v48  ;;  %v3493_v39 = vld [vmem:[%s11475_s1 + $0x7b0] sm:$0xff]  ;;  %v3306_v41 = vld [vmem:[%s11475_s1 + $0x1d8] sm:$0xff]  ;;  %v3496_v42 = vld [vmem:[%s11475_s1 + $0x7c8] sm:$0xff]  ;;  %v3621_v44 = vpack.c.bf16 %v3301_v36, %v3299_v35 }
  0x5a   : > { %5333 = vmatprep.subr.bf16.mxu0 %v3710_v52  ;;  %v3498_v43 = vld [vmem:[%s11475_s1 + $0x7d8] sm:$0xff]  ;;  %v3717_v45 = vpack.c.bf16 %v3493_v39, %v3491_v37  ;;  %v3624_v46 = vpack.c.bf16 %v3306_v41, %v3304_v40  ;;  %v3303_v47 = vld [vmem:[%s11475_s1 + $0x1c0] sm:$0xff]  ;;  %v3305_v48 = vld [vmem:[%s11475_s1 + $0x1d0] sm:$0xff] }
  0x5b   : > { %v3495_v49 = vld [vmem:[%s11475_s1 + $0x7c0] sm:$0xff]  ;;  %v3720_v50 = vpack.c.bf16 %v3498_v43, %v3496_v42  ;;  %v3497_v51 = vld [vmem:[%s11475_s1 + $0x7d0] sm:$0xff]  ;;  %v3308_v52 = vld [vmem:[%s11475_s1 + $0x1e8] sm:$0xff] }
  0x5c   : > { %3921 = vmatpush1.bf16.msra.mxu1 %v3613_v58  ;;  %v3310_v53 = vld [vmem:[%s11475_s1 + $0x1f8] sm:$0xff]  ;;  %v3500_v55 = vld [vmem:[%s11475_s1 + $0x7e8] sm:$0xff]  ;;  %v3623_v58 = vpack.c.bf16 %v3305_v48, %v3303_v47  ;;  %v3307_v62 = vld [vmem:[%s11475_s1 + $0x1e0] sm:$0xff] }
  0x5d   : > { %5334 = vmatpush1.bf16.msra.mxu0 %v3709_v59  ;;  %3922 = vmatprep.subr.bf16.mxu1 %v3616_v60  ;;  %v3502_v56 = vld [vmem:[%s11475_s1 + $0x7f8] sm:$0xff]  ;;  %v3719_v60 = vpack.c.bf16 %v3497_v51, %v3495_v49  ;;  %v3626_v61 = vpack.c.bf16 %v3310_v53, %v3308_v52  ;;  %v3309_v63 = vld [vmem:[%s11475_s1 + $0x1f0] sm:$0xff]  ;;  %v3312_v3 = vld [vmem:[%s11475_s1 + $0x208] sm:$0xff] }
  0x5e   : > { %5335 = vmatprep.subr.bf16.mxu0 %v3712_v0  ;;  %v3499_v0 = vld [vmem:[%s11475_s1 + $0x7e0] sm:$0xff]  ;;  %v3722_v1 = vpack.c.bf16 %v3502_v56, %v3500_v55  ;;  %v3501_v2 = vld [vmem:[%s11475_s1 + $0x7f0] sm:$0xff]  ;;  %v3314_v4 = vld [vmem:[%s11475_s1 + $0x218] sm:$0xff] }
  0x5f   : > { %v3506_v7 = vld [vmem:[%s11475_s1 + $0x818] sm:$0xff]  ;;  %v8648_v11 = vld [vmem:[%s8237_s7 + $0x2c] sm:$0xff] }
  0x60   : > { %3923 = vmatpush1.bf16.msra.mxu1 %v3615_v6  ;;  %v3504_v6 = vld [vmem:[%s11475_s1 + $0x808] sm:$0xff]  ;;  %v8645_v10 = vld [vmem:[%s8237_s7] sm:$0xff]  ;;  %v804_v31 = vunpack.c.h.bf16 %v8648_v11 }
  0x61   : > { %5336 = vmatpush1.bf16.msra.mxu0 %v3711_v8  ;;  %3924 = vmatprep.subr.bf16.mxu1 %v3618_v9  ;;  %v8031_v54 = vpop.eup %8030  ;;  %v3625_v8 = vpack.c.bf16 %v3309_v63, %v3307_v62  ;;  %v3721_v9 = vpack.c.bf16 %v3501_v2, %v3499_v0  ;;  %v8651_v12 = vld [vmem:[%s8237_s7 + $0x18] sm:$0xff]  ;;  %v8654_v14 = vld [vmem:[%s8237_s7 + $0x44] sm:$0xff]  ;;  %v3724_v15 = vpack.c.bf16 %v3506_v7, %v3504_v6  ;;  %v792_v24 = vunpack.c.l.bf16 %v8645_v10  ;;  %v8690_v29 = vld [vmem:[%s8237_s7 + $0x70] sm:$0xff] }
  0x62   : > { %5337 = vmatprep.subr.bf16.mxu0 %v3714_v13  ;;  %v264_v59 = vadd.f32 1.0, %v8031_v54  ;;  %v3628_v13 = vpack.c.bf16 %v3314_v4, %v3312_v3  ;;  %v8659_v16 = vld [vmem:[%s11475_s1 + $0x200] sm:$0xff]  ;;  %v8664_v17 = vld [vmem:[%s11475_s1 + $0x210] sm:$0xff]  ;;  %v793_v25 = vunpack.c.h.bf16 %v8645_v10  ;;  %v810_v36 = vunpack.c.h.bf16 %v8654_v14  ;;  %v8724_v47 = vld [vmem:[%s11475_s1 + $0x228] sm:$0xff] }
  0x63   : > { %v8680_v23 = vld [vmem:[%s8237_s7 + $0x58] sm:$0xff]  ;;  %v8687_v28 = vld [vmem:[%s8237_s7 + $0x84] sm:$0xff]  ;;  %v8700_v35 = vld [vmem:[%s8237_s7 + $0xb0] sm:$0xff]  ;;  %v3627_v37 = vpack.c.bf16 %v8664_v17, %v8659_v16  ;;  %v821_v43 = vunpack.c.h.bf16 %v8690_v29  ;;  %v820_v51 = vunpack.c.l.bf16 %v8690_v29 }
  0x64   : > { %3925 = vmatpush1.bf16.msra.mxu1 %v3617_v20  ;;  %8032 = vrcp.f32 %v264_v59  ;;  %v1753_v20 = vsub.s32 0, %v8636_v5  ;;  %v8693_v30 = vld [vmem:[%s8237_s7 + $0x9c] sm:$0xff]  ;;  %v815_v39 = vunpack.c.h.bf16 %v8680_v23  ;;  %v8712_v41 = vld [vmem:[%s8237_s7 + $0xc8] sm:$0xff]  ;;  %v826_v42 = vunpack.c.h.bf16 %v8687_v28 }
  0x65   : > { %5338 = vmatpush1.bf16.msra.mxu0 %v3713_v21  ;;  %3926 = vmatprep.subr.bf16.mxu1 %v3620_v22  ;;  %v8672_v21 = vld [vmem:[%s11475_s1 + $0x800] sm:$0xff]  ;;  %v8677_v22 = vld [vmem:[%s11475_s1 + $0x810] sm:$0xff]  ;;  %v8729_v48 = vld [vmem:[%s11475_s1 + $0x238] sm:$0xff]  ;;  %v831_v52 = vunpack.c.l.bf16 %v8693_v30  ;;  %v837_v53 = vunpack.c.h.bf16 %v8700_v35 }
  0x66   : > { %5339 = vmatprep.subr.bf16.mxu0 %v3716_v26  ;;  %v803_v26 = vunpack.c.l.bf16 %v8648_v11  ;;  %v8709_v40 = vld [vmem:[%s8237_s7 + $0xdc] sm:$0xff]  ;;  %v3630_v63 = vpack.c.bf16 %v8729_v48, %v8724_v47  ;;  %v836_v47 = vunpack.c.l.bf16 %v8700_v35 }
  0x67   : > { %v3510_v59 = vld [vmem:[%s11475_s1 + $0x838] sm:$0xff]  ;;  %v3317_v10 = vld [vmem:[%s11475_s1 + $0x230] sm:$0xff] }
  0x68   : > { %3927 = vmatpush1.bf16.msra.mxu1 %v3619_v32  ;;  %v798_v32 = vunpack.c.l.bf16 %v8651_v12  ;;  %v8813_v48 = vld [vmem:[%s8237_s7 + $0x120] sm:$0xff] }
  0x69   : > { %5340 = vmatpush1.bf16.msra.mxu0 %v3715_v33  ;;  %3928 = vmatprep.subr.bf16.mxu1 %v3622_v34  ;;  %v799_v33 = vunpack.c.h.bf16 %v8651_v12  ;;  %v809_v34 = vunpack.c.l.bf16 %v8654_v14  ;;  %v3514_v35 = vld [vmem:[%s11475_s1 + $0x858] sm:$0xff] }
  0x6a   : > { %5341 = vmatprep.subr.bf16.mxu0 %v3718_v38  ;;  %v3723_v38 = vpack.c.bf16 %v8677_v22, %v8672_v21  ;;  %v3512_v21 = vld [vmem:[%s11475_s1 + $0x848] sm:$0xff] }
  0x6c   : > { %3929 = vmatpush1.bf16.msra.mxu1 %v3621_v44  ;;  %v832_v44 = vunpack.c.h.bf16 %v8693_v30 }
  0x6d   : > { %5342 = vmatpush1.bf16.msra.mxu0 %v3717_v45  ;;  %3930 = vmatprep.subr.bf16.mxu1 %v3624_v46  ;;  %v814_v45 = vunpack.c.l.bf16 %v8680_v23  ;;  %v8719_v46 = vld [vmem:[%s8237_s7 + $0xf4] sm:$0xff] }
  0x6e   : > { %5343 = vmatprep.subr.bf16.mxu0 %v3720_v50  ;;  %v8731_v49 = vpop.eup %8032  ;;  %v825_v50 = vunpack.c.l.bf16 %v8687_v28  ;;  %v854_v62 = vunpack.c.h.bf16 %v8719_v46 }
  0x6f   : > { %v8740_v54 = vrot.slane %v8731_v49, %v1757_v18  ;;  %v8743_v55 = vrot.slane %v8731_v49, %v1781_v19  ;;  %v8748_v56 = vrot.slane %v8731_v49, %v1753_v20  ;;  %v8751_v57 = vrot.slane %v8731_v49, %v1777_v27  ;;  %v3509_v27 = vld [vmem:[%s11475_s1 + $0x830] sm:$0xff] }
  0x70   : > { %3931 = vmatpush1.bf16.msra.mxu1 %v3623_v58  ;;  %v3508_v58 = vld [vmem:[%s11475_s1 + $0x828] sm:$0xff] }
  0x71   : > { %5344 = vmatpush1.bf16.msra.mxu0 %v3719_v60  ;;  %3932 = vmatprep.subr.bf16.mxu1 %v3626_v61  ;;  %v848_v60 = vunpack.c.h.bf16 %v8709_v40  ;;  %v843_v61 = vunpack.c.h.bf16 %v8712_v41  ;;  %v1807_v0 = vmul.f32 %v8740_v54, %v793_v25  ;;  %v1813_v2 = vmul.f32 %v8743_v55, %v799_v33  ;;  %v3322_v33 = vld [vmem:[%s11475_s1 + $0x258] sm:$0xff] }
  0x72   : > { %5345 = vmatprep.subr.bf16.mxu0 %v3722_v1  ;;  %v1818_v1 = vmul.f32 %v8740_v54, %v804_v31  ;;  %v1824_v3 = vmul.f32 %v8743_v55, %v810_v36  ;;  %v1806_v4 = vmul.f32 %v8748_v56, %v792_v24  ;;  %v1817_v6 = vmul.f32 %v8748_v56, %v803_v26  ;;  %v3507_v26 = vld [vmem:[%s11475_s1 + $0x820] sm:$0xff] }
  0x73   : > { %v1812_v7 = vmul.f32 %v8751_v57, %v798_v32  ;;  %v1829_v14 = vmul.f32 %v8740_v54, %v815_v39  ;;  %v1840_v16 = vmul.f32 %v8740_v54, %v826_v42  ;;  %v1835_v17 = vmul.f32 %v8743_v55, %v821_v43  ;;  %v3320_v32 = vld [vmem:[%s11475_s1 + $0x248] sm:$0xff] }
  0x74   : > { %3933 = vmatpush1.bf16.msra.mxu1 %v3625_v8  ;;  %v3726_v8 = vpack.c.bf16 %v3510_v59, %v3508_v58  ;;  %v2764_v11 = vpack.c.bf16 %v1818_v1, %v1807_v0  ;;  %v2770_v12 = vpack.c.bf16 %v1824_v3, %v1813_v2  ;;  %v1846_v19 = vmul.f32 %v8743_v55, %v832_v44  ;;  %v8806_v44 = vld [vmem:[%s8237_s7 + $0x108] sm:$0xff]  ;;  %v3321_v59 = vld [vmem:[%s11475_s1 + $0x250] sm:$0xff] }
  0x75   : > { %5346 = vmatpush1.bf16.msra.mxu0 %v3721_v9  ;;  %4373 = vmatprep.subr.bf16.mxu1 %v3628_v13  ;;  %v3315_v9 = vld [vmem:[%s11475_s1 + $0x220] sm:$0xff]  ;;  %v1823_v13 = vmul.f32 %v8751_v57, %v809_v34  ;;  %v1828_v24 = vmul.f32 %v8748_v56, %v814_v45  ;;  %v2775_v28 = vpack.c.bf16 %v1840_v16, %v1829_v14  ;;  %v8809_v45 = vld [vmem:[%s8237_s7 + $0x134] sm:$0xff]  ;;  %v865_v0 = vunpack.c.h.bf16 %v8813_v48 }
  0x76   : > { %5786 = vmatprep.subr.bf16.mxu0 %v3724_v15  ;;  %v2763_v15 = vpack.c.bf16 %v1817_v6, %v1806_v4  ;;  %3934 = vmatprep.mubr.bf16.mxu1 %v2764_v11  ;;  %v3629_v25 = vpack.c.bf16 %v3317_v10, %v3315_v9  ;;  %v2781_v29 = vpack.c.bf16 %v1846_v19, %v1835_v17  ;;  %v3319_v58 = vld [vmem:[%s11475_s1 + $0x240] sm:$0xff]  ;;  %v3324_v4 = vld [vmem:[%s11475_s1 + $0x268] sm:$0xff]  ;;  %v3326_v6 = vld [vmem:[%s11475_s1 + $0x278] sm:$0xff] }
  0x77   : > { %5347 = vmatprep.mubr.bf16.mxu0 %v2770_v12  ;;  %v2769_v23 = vpack.c.bf16 %v1823_v13, %v1812_v7  ;;  %v1839_v30 = vmul.f32 %v8748_v56, %v825_v50  ;;  %v1834_v31 = vmul.f32 %v8751_v57, %v820_v51  ;;  %v1845_v34 = vmul.f32 %v8751_v57, %v831_v52  ;;  %v8816_v50 = vld [vmem:[%s8237_s7 + $0x14c] sm:$0xff]  ;;  %v3518_v12 = vld [vmem:[%s11475_s1 + $0x878] sm:$0xff] }
  0x78   : > { %3935 = vmatmul.mubr.bf16.vlgmr.msra.gmra.mrb[0].mxu1 %v2763_v15  ;;  %v1851_v36 = vmul.f32 %v8740_v54, %v837_v53  ;;  %v1862_v39 = vmul.f32 %v8740_v54, %v848_v60  ;;  %v1857_v42 = vmul.f32 %v8743_v55, %v843_v61  ;;  %v1868_v43 = vmul.f32 %v8743_v55, %v854_v62  ;;  %v3511_v61 = vld [vmem:[%s11475_s1 + $0x840] sm:$0xff]  ;;  %v3513_v62 = vld [vmem:[%s11475_s1 + $0x850] sm:$0xff]  ;;  %v3516_v11 = vld [vmem:[%s11475_s1 + $0x868] sm:$0xff] }
  0x79   : > { %5348 = vmatmul.mubr.bf16.vlgmr.msra.gmra.mrb[0].mxu0 %v2769_v23  ;;  %4374 = vmatpush1.bf16.msra.mxu1 %v3627_v37  ;;  %v3725_v37 = vpack.c.bf16 %v3509_v27, %v3507_v26  ;;  %v3632_v51 = vpack.c.bf16 %v3322_v33, %v3320_v32  ;;  %v2774_v22 = vpack.c.bf16 %v1839_v30, %v1828_v24  ;;  %v842_v52 = vunpack.c.l.bf16 %v8712_v41  ;;  %v318_v19 = vld [vmem:[%s8237_s7 + $0x160] sm:$0xff]  ;;  %v324_v23 = vld [vmem:[%s8237_s7 + $0x18c] sm:$0xff]  ;;  %v321_v26 = vld [vmem:[%s8237_s7 + $0x178] sm:$0xff] }
  0x7a   : > { %5787 = vmatpush1.bf16.msra.mxu0 %v3723_v38  ;;  %3944 = vmatprep.mubr.bf16.mxu1 %v2775_v28  ;;  %v847_v38 = vunpack.c.l.bf16 %v8709_v40  ;;  %v853_v53 = vunpack.c.l.bf16 %v8719_v46  ;;  %v2780_v60 = vpack.c.bf16 %v1845_v34, %v1834_v31  ;;  %v2786_v40 = vpack.c.bf16 %v1862_v39, %v1851_v36  ;;  %v327_v27 = vld [vmem:[%s8237_s7 + $0x1a4] sm:$0xff]  ;;  %v3325_v34 = vld [vmem:[%s11475_s1 + $0x270] sm:$0xff] }
  0x7b   : > { %5357 = vmatprep.mubr.bf16.mxu0 %v2781_v29  ;;  %4375 = vmatprep.subr.bf16.mxu1 %v3630_v63  ;;  %v859_v41 = vunpack.c.h.bf16 %v8806_v44  ;;  %v870_v46 = vunpack.c.h.bf16 %v8809_v45  ;;  %v2792_v63 = vpack.c.bf16 %v1868_v43, %v1857_v42  ;;  %v876_v1 = vunpack.c.h.bf16 %v8816_v50  ;;  %v3323_v33 = vld [vmem:[%s11475_s1 + $0x260] sm:$0xff] }
  0x7c   : > { %5788 = vmatprep.subr.bf16.mxu0 %v3726_v8  ;;  %v3728_v2 = vpack.c.bf16 %v3514_v35, %v3512_v21  ;;  %v3631_v3 = vpack.c.bf16 %v3321_v59, %v3319_v58  ;;  %v1850_v7 = vmul.f32 %v8748_v56, %v836_v47  ;;  %v1861_v8 = vmul.f32 %v8748_v56, %v847_v38 }
  0x7d   : > { %4376 = vmatpush1.bf16.msra.mxu1 %v3629_v25  ;;  %v1856_v9 = vmul.f32 %v8751_v57, %v842_v52  ;;  %v3727_v10 = vpack.c.bf16 %v3513_v62, %v3511_v61  ;;  %v1867_v13 = vmul.f32 %v8751_v57, %v853_v53  ;;  %v1873_v14 = vmul.f32 %v8740_v54, %v859_v41  ;;  %v339_v61 = vld [vmem:[%s8237_s7 + $0x1fc] sm:$0xff] }
  0x7e   : > { %5789 = vmatpush1.bf16.msra.mxu0 %v3725_v37  ;;  %4377 = vmatprep.subr.bf16.mxu1 %v3632_v51  ;;  %v1884_v15 = vmul.f32 %v8740_v54, %v870_v46  ;;  %v1879_v16 = vmul.f32 %v8743_v55, %v865_v0  ;;  %v1890_v17 = vmul.f32 %v8743_v55, %v876_v1  ;;  %v858_v25 = vunpack.c.l.bf16 %v8806_v44  ;;  %v3515_v44 = vld [vmem:[%s11475_s1 + $0x860] sm:$0xff] }
  0x7f   : > { %v3634_v24 = vpack.c.bf16 %v3326_v6, %v3324_v4  ;;  %5790 = vmatprep.subr.bf16.mxu0 %v3728_v2  ;;  %v3730_v28 = vpack.c.bf16 %v3518_v12, %v3516_v11  ;;  %v2785_v29 = vpack.c.bf16 %v1861_v8, %v1850_v7  ;;  %v869_v30 = vunpack.c.l.bf16 %v8809_v45  ;;  %v3517_v45 = vld [vmem:[%s11475_s1 + $0x870] sm:$0xff] }
  0x80   : > { %3945 = vmatmul.mubr.bf16.gmra.mrb[4].mxu1 %v2774_v22  ;;  %v864_v31 = vunpack.c.l.bf16 %v8813_v48  ;;  %v875_v32 = vunpack.c.l.bf16 %v8816_v50  ;;  %v2791_v36 = vpack.c.bf16 %v1867_v13, %v1856_v9  ;;  %v2797_v39 = vpack.c.bf16 %v1884_v15, %v1873_v14  ;;  %v333_v46 = vld [vmem:[%s8237_s7 + $0x1d0] sm:$0xff] }
  0x81   : > { %5358 = vmatmul.mubr.bf16.gmra.mrb[4].mxu0 %v2780_v60  ;;  %3954 = vmatprep.mubr.bf16.mxu1 %v2786_v40  ;;  %v881_v42 = vunpack.c.h.bf16 %v318_v19  ;;  %v892_v43 = vunpack.c.h.bf16 %v324_v23  ;;  %v2803_v37 = vpack.c.bf16 %v1890_v17, %v1879_v16  ;;  %v887_v47 = vunpack.c.h.bf16 %v321_v26  ;;  %v330_v60 = vld [vmem:[%s8237_s7 + $0x1b8] sm:$0xff]  ;;  %v336_v40 = vld [vmem:[%s8237_s7 + $0x1e4] sm:$0xff] }
  0x82   : > { %5367 = vmatprep.mubr.bf16.mxu0 %v2792_v63  ;;  %4378 = vmatpush1.bf16.msra.mxu1 %v3631_v3  ;;  %v898_v48 = vunpack.c.h.bf16 %v327_v27  ;;  %v3633_v50 = vpack.c.bf16 %v3325_v34, %v3323_v33  ;;  %v1872_v51 = vmul.f32 %v8748_v56, %v858_v25  ;;  %v1883_v21 = vmul.f32 %v8748_v56, %v869_v30  ;;  %v345_v25 = vld [vmem:[%s8237_s7 + $0x228] sm:$0xff] }
  0x83   : > { %5791 = vmatpush1.bf16.msra.mxu0 %v3727_v10  ;;  %4379 = vmatprep.subr.bf16.mxu1 %v3634_v24  ;;  %v1878_v22 = vmul.f32 %v8751_v57, %v864_v31  ;;  %v3729_v38 = vpack.c.bf16 %v3517_v45, %v3515_v44  ;;  %v1889_v52 = vmul.f32 %v8751_v57, %v875_v32  ;;  %v880_v41 = vunpack.c.l.bf16 %v318_v19  ;;  %v342_v19 = vld [vmem:[%s8237_s7 + $0x210] sm:$0xff]  ;;  %v3330_v44 = vld [vmem:[%s11475_s1 + $0x298] sm:$0xff] }
  0x84   : > { %5792 = vmatprep.subr.bf16.mxu0 %v3730_v28  ;;  %v1895_v53 = vmul.f32 %v8740_v54, %v881_v42  ;;  %v1906_v35 = vmul.f32 %v8740_v54, %v892_v43  ;;  %v1901_v58 = vmul.f32 %v8743_v55, %v887_v47  ;;  %v1912_v59 = vmul.f32 %v8743_v55, %v898_v48  ;;  %v3328_v43 = vld [vmem:[%s11475_s1 + $0x288] sm:$0xff]  ;;  %v3327_v47 = vld [vmem:[%s11475_s1 + $0x280] sm:$0xff] }
  0x85   : > { %v2796_v62 = vpack.c.bf16 %v1883_v21, %v1872_v51  ;;  %v891_v63 = vunpack.c.l.bf16 %v324_v23  ;;  %v886_v0 = vunpack.c.l.bf16 %v321_v26  ;;  %v897_v1 = vunpack.c.l.bf16 %v327_v27  ;;  %v348_v23 = vld [vmem:[%s8237_s7 + $0x23c] sm:$0xff]  ;;  %v8907_v26 = vld [vmem:[%s8237_s7 + $0x254] sm:$0xff] }
  0x86   : > { %4380 = vmatpush1.bf16.msra.mxu1 %v3633_v50  ;;  %v2802_v2 = vpack.c.bf16 %v1889_v52, %v1878_v22  ;;  %v2808_v3 = vpack.c.bf16 %v1906_v35, %v1895_v53  ;;  %v903_v4 = vunpack.c.h.bf16 %v330_v60  ;;  %v914_v6 = vunpack.c.h.bf16 %v336_v40  ;;  %v3520_v45 = vld [vmem:[%s11475_s1 + $0x888] sm:$0xff]  ;;  %v3329_v22 = vld [vmem:[%s11475_s1 + $0x290] sm:$0xff] }
  0x87   : > { %5793 = vmatpush1.bf16.msra.mxu0 %v3729_v38  ;;  %v2814_v7 = vpack.c.bf16 %v1912_v59, %v1901_v58  ;;  %v909_v8 = vunpack.c.h.bf16 %v333_v46  ;;  %v920_v9 = vunpack.c.h.bf16 %v339_v61  ;;  %v1894_v10 = vmul.f32 %v8748_v56, %v880_v41  ;;  %v3519_v38 = vld [vmem:[%s11475_s1 + $0x880] sm:$0xff]  ;;  %v3521_v52 = vld [vmem:[%s11475_s1 + $0x890] sm:$0xff] }
  0x88   : > { %3955 = vmatmul.mubr.bf16.gmra.mrb[8].mxu1 %v2785_v29  ;;  %v1905_v11 = vmul.f32 %v8748_v56, %v891_v63  ;;  %v1900_v12 = vmul.f32 %v8751_v57, %v886_v0  ;;  %v1911_v13 = vmul.f32 %v8751_v57, %v897_v1  ;;  %v1917_v14 = vmul.f32 %v8740_v54, %v903_v4  ;;  %v8944_v41 = vld [vmem:[%s8237_s7 + $0x294] sm:$0xff] }
  0x89   : > { %5368 = vmatmul.mubr.bf16.gmra.mrb[8].mxu0 %v2791_v36  ;;  %3964 = vmatprep.mubr.bf16.mxu1 %v2797_v39  ;;  %v1928_v15 = vmul.f32 %v8740_v54, %v914_v6  ;;  %v1923_v16 = vmul.f32 %v8743_v55, %v909_v8  ;;  %v1934_v17 = vmul.f32 %v8743_v55, %v920_v9  ;;  %v902_v24 = vunpack.c.l.bf16 %v330_v60 }
  0x8a   : > { %5377 = vmatprep.mubr.bf16.mxu0 %v2803_v37  ;;  %v2807_v27 = vpack.c.bf16 %v1905_v11, %v1894_v10  ;;  %v913_v28 = vunpack.c.l.bf16 %v336_v40  ;;  %v908_v29 = vunpack.c.l.bf16 %v333_v46  ;;  %v919_v30 = vunpack.c.l.bf16 %v339_v61  ;;  %v3522_v37 = vld [vmem:[%s11475_s1 + $0x898] sm:$0xff] }
  0x8b   : > { %v2813_v31 = vpack.c.bf16 %v1911_v13, %v1900_v12  ;;  %v2819_v32 = vpack.c.bf16 %v1928_v15, %v1917_v14  ;;  %v925_v33 = vunpack.c.h.bf16 %v342_v19  ;;  %v936_v34 = vunpack.c.h.bf16 %v348_v23  ;;  %v354_v40 = vld [vmem:[%s8237_s7 + $0x268] sm:$0xff]  ;;  %v8947_v61 = vld [vmem:[%s8237_s7 + $0x280] sm:$0xff] }
  0x8c   : > { %v2825_v36 = vpack.c.bf16 %v1934_v17, %v1923_v16  ;;  %v931_v39 = vunpack.c.h.bf16 %v345_v25  ;;  %v942_v42 = vunpack.c.h.bf16 %v8907_v26  ;;  %v1916_v48 = vmul.f32 %v8748_v56, %v902_v24  ;;  %v8963_v24 = vld [vmem:[%s8237_s7 + $0x2c0] sm:$0xff] }
  0x8d   : > { %v1927_v50 = vmul.f32 %v8748_v56, %v913_v28  ;;  %v1922_v51 = vmul.f32 %v8751_v57, %v908_v29  ;;  %v1933_v21 = vmul.f32 %v8751_v57, %v919_v30  ;;  %v1939_v53 = vmul.f32 %v8740_v54, %v925_v33  ;;  %v369_v28 = vld [vmem:[%s8237_s7 + $0x2d8] sm:$0xff]  ;;  %v375_v33 = vld [vmem:[%s8237_s7 + $0x304] sm:$0xff] }
  0x8e   : > { %v1950_v35 = vmul.f32 %v8740_v54, %v936_v34  ;;  %v3636_v58 = vpack.c.bf16 %v3330_v44, %v3328_v43  ;;  %v1945_v59 = vmul.f32 %v8743_v55, %v931_v39  ;;  %v1956_v60 = vmul.f32 %v8743_v55, %v942_v42  ;;  %v3332_v29 = vld [vmem:[%s11475_s1 + $0x2a8] sm:$0xff]  ;;  %v3334_v30 = vld [vmem:[%s11475_s1 + $0x2b8] sm:$0xff] }
  0x8f   : > { %v924_v46 = vunpack.c.l.bf16 %v342_v19  ;;  %v3732_v63 = vpack.c.bf16 %v3522_v37, %v3520_v45  ;;  %v3635_v0 = vpack.c.bf16 %v3329_v22, %v3327_v47  ;;  %v3731_v1 = vpack.c.bf16 %v3521_v52, %v3519_v38  ;;  %v3524_v34 = vld [vmem:[%s11475_s1 + $0x8a8] sm:$0xff]  ;;  %v3331_v45 = vld [vmem:[%s11475_s1 + $0x2a0] sm:$0xff]  ;;  %v3333_v37 = vld [vmem:[%s11475_s1 + $0x2b0] sm:$0xff] }
  0x90   : > { %3965 = vmatmul.mubr.bf16.gmra.mrb[12].mxu1 %v2796_v62  ;;  %v8950_v62 = vld [vmem:[%s8237_s7 + $0x2ac] sm:$0xff]  ;;  %4381 = vmatprep.subr.bf16.mxu1 %v3636_v58  ;;  %v930_v4 = vunpack.c.l.bf16 %v345_v25  ;;  %v941_v6 = vunpack.c.l.bf16 %v8907_v26  ;;  %v2830_v8 = vpack.c.bf16 %v1950_v35, %v1939_v53  ;;  %v947_v9 = vunpack.c.h.bf16 %v354_v40 }
  0x91   : > { %5378 = vmatmul.mubr.bf16.gmra.mrb[12].mxu0 %v2802_v2  ;;  %3974 = vmatprep.mubr.bf16.mxu1 %v2808_v3  ;;  %v2818_v2 = vpack.c.bf16 %v1927_v50, %v1916_v48  ;;  %v935_v3 = vunpack.c.l.bf16 %v348_v23  ;;  %v958_v10 = vunpack.c.h.bf16 %v8944_v41  ;;  %v2836_v11 = vpack.c.bf16 %v1956_v60, %v1945_v59  ;;  %v8966_v25 = vld [vmem:[%s8237_s7 + $0x2ec] sm:$0xff] }
  0x92   : > { %5387 = vmatprep.mubr.bf16.mxu0 %v2814_v7  ;;  %v2824_v7 = vpack.c.bf16 %v1933_v21, %v1922_v51  ;;  %5794 = vmatprep.subr.bf16.mxu0 %v3732_v63  ;;  %v953_v12 = vunpack.c.h.bf16 %v8947_v61  ;;  %v964_v13 = vunpack.c.h.bf16 %v8950_v62  ;;  %v1938_v14 = vmul.f32 %v8748_v56, %v924_v46  ;;  %v3523_v21 = vld [vmem:[%s11475_s1 + $0x8a0] sm:$0xff]  ;;  %v3525_v22 = vld [vmem:[%s11475_s1 + $0x8b0] sm:$0xff] }
  0x93   : > { %4382 = vmatpush1.bf16.msra.mxu1 %v3635_v0  ;;  %5795 = vmatpush1.bf16.msra.mxu0 %v3731_v1  ;;  %v1949_v15 = vmul.f32 %v8748_v56, %v935_v3  ;;  %v1944_v16 = vmul.f32 %v8751_v57, %v930_v4  ;;  %v1955_v17 = vmul.f32 %v8751_v57, %v941_v6  ;;  %v952_v42 = vunpack.c.l.bf16 %v8947_v61  ;;  %v378_v1 = vld [vmem:[%s8237_s7 + $0x318] sm:$0xff]  ;;  %v381_v4 = vld [vmem:[%s8237_s7 + $0x330] sm:$0xff] }
  0x94   : > { %v1961_v19 = vmul.f32 %v8740_v54, %v947_v9  ;;  %v1972_v23 = vmul.f32 %v8740_v54, %v958_v10  ;;  %v1967_v26 = vmul.f32 %v8743_v55, %v953_v12  ;;  %v963_v43 = vunpack.c.l.bf16 %v8950_v62  ;;  %v387_v6 = vld [vmem:[%s8237_s7 + $0x35c] sm:$0xff] }
  0x95   : > { %v2829_v39 = vpack.c.bf16 %v1949_v15, %v1938_v14  ;;  %v969_v44 = vunpack.c.h.bf16 %v8963_v24  ;;  %v2835_v47 = vpack.c.bf16 %v1955_v17, %v1944_v16  ;;  %v980_v50 = vunpack.c.h.bf16 %v8966_v25 }
  0x96   : > { %v2841_v48 = vpack.c.bf16 %v1972_v23, %v1961_v19  ;;  %v3638_v51 = vpack.c.bf16 %v3334_v30, %v3332_v29  ;;  %v975_v52 = vunpack.c.h.bf16 %v369_v28  ;;  %v986_v53 = vunpack.c.h.bf16 %v375_v33  ;;  %v9025_v29 = vld [vmem:[%s8237_s7 + $0x39c] sm:$0xff]  ;;  %v9028_v30 = vld [vmem:[%s8237_s7 + $0x388] sm:$0xff] }
  0x97   : > { %v3637_v59 = vpack.c.bf16 %v3333_v37, %v3331_v45  ;;  %v1977_v46 = vmul.f32 %v8751_v57, %v963_v43  ;;  %v1983_v61 = vmul.f32 %v8740_v54, %v969_v44  ;;  %v1994_v62 = vmul.f32 %v8740_v54, %v980_v50  ;;  %v399_v45 = vld [vmem:[%s8237_s7 + $0x3b4] sm:$0xff]  ;;  %v3335_v37 = vld [vmem:[%s11475_s1 + $0x2c0] sm:$0xff] }
  0x98   : > { %3975 = vmatmul.mubr.bf16.gmra.mrb[16].mxu1 %v2807_v27  ;;  %v1978_v27 = vmul.f32 %v8743_v55, %v964_v13  ;;  %4383 = vmatprep.subr.bf16.mxu1 %v3638_v51  ;;  %v1989_v63 = vmul.f32 %v8743_v55, %v975_v52  ;;  %v2000_v0 = vmul.f32 %v8743_v55, %v986_v53  ;;  %v968_v3 = vunpack.c.l.bf16 %v8963_v24 }
  0x99   : > { %5388 = vmatmul.mubr.bf16.gmra.mrb[16].mxu0 %v2813_v31  ;;  %3984 = vmatprep.mubr.bf16.mxu1 %v2819_v32  ;;  %v946_v31 = vunpack.c.l.bf16 %v354_v40  ;;  %v957_v32 = vunpack.c.l.bf16 %v8944_v41  ;;  %v1966_v40 = vmul.f32 %v8751_v57, %v952_v42  ;;  %v3733_v41 = vpack.c.bf16 %v3525_v22, %v3523_v21  ;;  %v3527_v22 = vld [vmem:[%s11475_s1 + $0x8c0] sm:$0xff] }
  0x9a   : > { %5397 = vmatprep.mubr.bf16.mxu0 %v2825_v36  ;;  %v3526_v36 = vld [vmem:[%s11475_s1 + $0x8b8] sm:$0xff]  ;;  %v2847_v38 = vpack.c.bf16 %v1978_v27, %v1967_v26  ;;  %4384 = vmatpush1.bf16.msra.mxu1 %v3637_v59  ;;  %v974_v9 = vunpack.c.l.bf16 %v369_v28  ;;  %v985_v10 = vunpack.c.l.bf16 %v375_v33  ;;  %v2852_v12 = vpack.c.bf16 %v1994_v62, %v1983_v61  ;;  %v9019_v26 = vld [vmem:[%s8237_s7 + $0x370] sm:$0xff] }
  0x9b   : > { %v3734_v35 = vpack.c.bf16 %v3526_v36, %v3524_v34  ;;  %v1960_v58 = vmul.f32 %v8748_v56, %v946_v31  ;;  %v1971_v60 = vmul.f32 %v8748_v56, %v957_v32  ;;  %v991_v13 = vunpack.c.h.bf16 %v378_v1  ;;  %v3336_v31 = vld [vmem:[%s11475_s1 + $0x2c8] sm:$0xff]  ;;  %v3338_v34 = vld [vmem:[%s11475_s1 + $0x2d8] sm:$0xff] }
  0x9c   : > { %v2858_v15 = vpack.c.bf16 %v2000_v0, %v1989_v63  ;;  %v997_v16 = vunpack.c.h.bf16 %v381_v4  ;;  %v1008_v17 = vunpack.c.h.bf16 %v387_v6  ;;  %v1982_v19 = vmul.f32 %v8748_v56, %v968_v3  ;;  %v3528_v36 = vld [vmem:[%s11475_s1 + $0x8c8] sm:$0xff] }
  0x9d   : > { %5796 = vmatprep.subr.bf16.mxu0 %v3734_v35  ;;  %v1988_v24 = vmul.f32 %v8751_v57, %v974_v9  ;;  %v2005_v27 = vmul.f32 %v8740_v54, %v991_v13  ;;  %v990_v42 = vunpack.c.l.bf16 %v378_v1  ;;  %v996_v44 = vunpack.c.l.bf16 %v381_v4  ;;  %v402_v3 = vld [vmem:[%s8237_s7 + $0x3c8] sm:$0xff]  ;;  %v408_v4 = vld [vmem:[%s8237_s7 + $0x3f4] sm:$0xff] }
  0x9e   : > { %5797 = vmatpush1.bf16.msra.mxu0 %v3733_v41  ;;  %v2011_v32 = vmul.f32 %v8743_v55, %v997_v16  ;;  %v2022_v33 = vmul.f32 %v8743_v55, %v1008_v17  ;;  %v1007_v50 = vunpack.c.l.bf16 %v387_v6  ;;  %v1013_v51 = vunpack.c.h.bf16 %v9019_v26 }
  0x9f   : > { %v1024_v21 = vunpack.c.h.bf16 %v9025_v29  ;;  %v3640_v35 = vpack.c.bf16 %v3338_v34, %v3336_v31  ;;  %v2010_v63 = vmul.f32 %v8751_v57, %v996_v44  ;;  %v1012_v9 = vunpack.c.l.bf16 %v9019_v26  ;;  %v9088_v34 = vld [vmem:[%s8237_s7 + $0x438] sm:$0xff] }
  0xa0   : > { %3985 = vmatmul.mubr.bf16.gmra.mrb[20].mxu1 %v2818_v2  ;;  %v384_v2 = vld [vmem:[%s8237_s7 + $0x344] sm:$0xff]  ;;  %v2869_v59 = vpack.c.bf16 %v2022_v33, %v2011_v32  ;;  %v2021_v0 = vmul.f32 %v8751_v57, %v1007_v50  ;;  %v2027_v1 = vmul.f32 %v8740_v54, %v1013_v51  ;;  %v1018_v13 = vunpack.c.l.bf16 %v9028_v30  ;;  %v9085_v33 = vld [vmem:[%s8237_s7 + $0x44c] sm:$0xff] }
  0xa1   : > { %5398 = vmatmul.mubr.bf16.gmra.mrb[20].mxu0 %v2824_v7  ;;  %3994 = vmatprep.mubr.bf16.mxu1 %v2830_v8  ;;  %v2840_v7 = vpack.c.bf16 %v1971_v60, %v1960_v58  ;;  %v979_v8 = vunpack.c.l.bf16 %v8966_v25  ;;  %v1002_v14 = vunpack.c.h.bf16 %v384_v2  ;;  %v1999_v25 = vmul.f32 %v8751_v57, %v985_v10  ;;  %v9082_v32 = vld [vmem:[%s8237_s7 + $0x420] sm:$0xff]  ;;  %v3532_v44 = vld [vmem:[%s11475_s1 + $0x8e8] sm:$0xff] }
  0xa2   : > { %5407 = vmatprep.mubr.bf16.mxu0 %v2836_v11  ;;  %v2846_v11 = vpack.c.bf16 %v1977_v46, %v1966_v40  ;;  %v1001_v43 = vunpack.c.l.bf16 %v384_v2  ;;  %v1019_v60 = vunpack.c.h.bf16 %v9028_v30  ;;  %v1030_v40 = vunpack.c.h.bf16 %v399_v45  ;;  %4385 = vmatprep.subr.bf16.mxu1 %v3640_v35  ;;  %v423_v50 = vld [vmem:[%s8237_s7 + $0x464] sm:$0xff] }
  0xa3   : > { %v1993_v23 = vmul.f32 %v8748_v56, %v979_v8  ;;  %v2016_v28 = vmul.f32 %v8740_v54, %v1002_v14  ;;  %v2857_v52 = vpack.c.bf16 %v1999_v25, %v1988_v24  ;;  %v2004_v46 = vmul.f32 %v8748_v56, %v990_v42  ;;  %v3339_v51 = vld [vmem:[%s11475_s1 + $0x2e0] sm:$0xff] }
  0xa4   : > { %v2015_v61 = vmul.f32 %v8748_v56, %v1001_v43  ;;  %v2038_v2 = vmul.f32 %v8740_v54, %v1024_v21  ;;  %v2033_v6 = vmul.f32 %v8743_v55, %v1019_v60  ;;  %v1023_v10 = vunpack.c.l.bf16 %v9025_v29  ;;  %v3342_v43 = vld [vmem:[%s11475_s1 + $0x2f8] sm:$0xff]  ;;  %v3341_v21 = vld [vmem:[%s11475_s1 + $0x2f0] sm:$0xff]  ;;  %v3531_v35 = vld [vmem:[%s11475_s1 + $0x8e0] sm:$0xff] }
  0xa5   : > { %v2863_v53 = vpack.c.bf16 %v2016_v28, %v2005_v27  ;;  %v1029_v14 = vunpack.c.l.bf16 %v399_v45  ;;  %v1046_v16 = vunpack.c.h.bf16 %v408_v4  ;;  %v2868_v17 = vpack.c.bf16 %v2021_v0, %v2010_v63  ;;  %v3534_v45 = vld [vmem:[%s11475_s1 + $0x8f8] sm:$0xff] }
  0xa6   : > { %v2862_v8 = vpack.c.bf16 %v2015_v61, %v2004_v46  ;;  %v2026_v26 = vmul.f32 %v8748_v56, %v1012_v9  ;;  %v2037_v27 = vmul.f32 %v8748_v56, %v1023_v10  ;;  %v2032_v28 = vmul.f32 %v8751_v57, %v1018_v13  ;;  %v9130_v9 = vld [vmem:[%s8237_s7 + $0x4a4] sm:$0xff]  ;;  %v435_v13 = vld [vmem:[%s8237_s7 + $0x4bc] sm:$0xff] }
  0xa7   : > { %v2043_v29 = vmul.f32 %v8751_v57, %v1029_v14  ;;  %v2060_v31 = vmul.f32 %v8740_v54, %v1046_v16  ;;  %v1068_v60 = vunpack.c.h.bf16 %v9085_v33  ;;  %v1063_v61 = vunpack.c.h.bf16 %v9088_v34 }
  0xa8   : > { %3995 = vmatmul.mubr.bf16.gmra.mrb[24].mxu1 %v2829_v39  ;;  %v3530_v39 = vld [vmem:[%s11475_s1 + $0x8d8] sm:$0xff]  ;;  %v3641_v63 = vpack.c.bf16 %v3341_v21, %v3339_v51  ;;  %v1067_v16 = vunpack.c.l.bf16 %v9085_v33  ;;  %v3343_v21 = vld [vmem:[%s11475_s1 + $0x300] sm:$0xff] }
  0xa9   : > { %5408 = vmatmul.mubr.bf16.gmra.mrb[24].mxu0 %v2835_v47  ;;  %4004 = vmatprep.mubr.bf16.mxu1 %v2841_v48  ;;  %v3337_v47 = vld [vmem:[%s11475_s1 + $0x2d0] sm:$0xff]  ;;  %v2851_v48 = vpack.c.bf16 %v1993_v23, %v1982_v19  ;;  %v3736_v58 = vpack.c.bf16 %v3530_v39, %v3528_v36  ;;  %v2874_v19 = vpack.c.bf16 %v2038_v2, %v2027_v1  ;;  %v3340_v36 = vld [vmem:[%s11475_s1 + $0x2e8] sm:$0xff]  ;;  %v3538_v51 = vld [vmem:[%s11475_s1 + $0x918] sm:$0xff] }
  0xaa   : > { %5417 = vmatprep.mubr.bf16.mxu0 %v2847_v38  ;;  %v3529_v38 = vld [vmem:[%s11475_s1 + $0x8d0] sm:$0xff]  ;;  %v3639_v41 = vpack.c.bf16 %v3337_v47, %v3335_v37  ;;  %v2873_v37 = vpack.c.bf16 %v2037_v27, %v2026_v26  ;;  %v1034_v47 = vunpack.c.l.bf16 %v402_v3  ;;  %v2077_v10 = vmul.f32 %v8743_v55, %v1063_v61 }
  0xab   : > { %5798 = vmatprep.subr.bf16.mxu0 %v3736_v58  ;;  %v3735_v62 = vpack.c.bf16 %v3529_v38, %v3527_v22  ;;  %v2879_v22 = vpack.c.bf16 %v2043_v29, %v2032_v28  ;;  %v3533_v58 = vld [vmem:[%s11475_s1 + $0x8f0] sm:$0xff]  ;;  %v1096_v28 = vunpack.c.h.bf16 %v435_v13 }
  0xac   : > { %4386 = vmatpush1.bf16.msra.mxu1 %v3639_v41  ;;  %v3738_v41 = vpack.c.bf16 %v3534_v45, %v3532_v44  ;;  %v2048_v0 = vmul.f32 %v8748_v56, %v1034_v47  ;;  %v3737_v2 = vpack.c.bf16 %v3533_v58, %v3531_v35  ;;  %v9156_v45 = vld [vmem:[%s8237_s7 + $0x4e8] sm:$0xff]  ;;  %v3345_v35 = vld [vmem:[%s11475_s1 + $0x310] sm:$0xff] }
  0xad   : > { %5799 = vmatpush1.bf16.msra.mxu0 %v3735_v62  ;;  %v1074_v62 = vunpack.c.h.bf16 %v423_v50  ;;  %v2110_v44 = vmul.f32 %v8743_v55, %v1096_v28  ;;  %v3344_v47 = vld [vmem:[%s11475_s1 + $0x308] sm:$0xff]  ;;  %v3535_v58 = vld [vmem:[%s11475_s1 + $0x900] sm:$0xff] }
  0xae   : > { %5800 = vmatprep.subr.bf16.mxu0 %v3738_v41  ;;  %v1095_v41 = vunpack.c.l.bf16 %v435_v13 }
  0xb0   : > { %4005 = vmatmul.mubr.bf16.gmra.mrb[28].mxu1 %v2840_v7  ;;  %v2044_v7 = vmul.f32 %v8743_v55, %v1030_v40  ;;  %v3642_v40 = vpack.c.bf16 %v3342_v43, %v3340_v36 }
  0xb1   : > { %5418 = vmatmul.mubr.bf16.gmra.mrb[28].mxu0 %v2846_v11  ;;  %4014 = vmatprep.mubr.bf16.mxu1 %v2852_v12  ;;  %v405_v11 = vld [vmem:[%s8237_s7 + $0x3e0] sm:$0xff]  ;;  %v411_v12 = vld [vmem:[%s8237_s7 + $0x40c] sm:$0xff] }
  0xb2   : > { %5427 = vmatprep.mubr.bf16.mxu0 %v2858_v15  ;;  %v1035_v15 = vunpack.c.h.bf16 %v402_v3  ;;  %v2880_v23 = vpack.c.bf16 %v2044_v7, %v2033_v6  ;;  %v1041_v24 = vunpack.c.h.bf16 %v405_v11  ;;  %v1052_v25 = vunpack.c.h.bf16 %v411_v12  ;;  %4387 = vmatprep.subr.bf16.mxu1 %v3642_v40 }
  0xb3   : > { %v2082_v7 = vmul.f32 %v8740_v54, %v1068_v60  ;;  %4388 = vmatpush1.bf16.msra.mxu1 %v3641_v63  ;;  %5801 = vmatpush1.bf16.msra.mxu0 %v3737_v2 }
  0xb4   : > { %v2049_v30 = vmul.f32 %v8740_v54, %v1035_v15  ;;  %v2055_v39 = vmul.f32 %v8743_v55, %v1041_v24  ;;  %v2066_v42 = vmul.f32 %v8743_v55, %v1052_v25  ;;  %v1056_v15 = vunpack.c.l.bf16 %v9082_v32 }
  0xb5   : > { %v1090_v24 = vunpack.c.h.bf16 %v9130_v9 }
  0xb6   : > { %v2885_v38 = vpack.c.bf16 %v2060_v31, %v2049_v30  ;;  %v2891_v46 = vpack.c.bf16 %v2066_v42, %v2055_v39  ;;  %v2070_v30 = vmul.f32 %v8748_v56, %v1056_v15  ;;  %v2081_v31 = vmul.f32 %v8748_v56, %v1067_v16  ;;  %v9148_v39 = vld [vmem:[%s8237_s7 + $0x4d0] sm:$0xff]  ;;  %v9151_v42 = vld [vmem:[%s8237_s7 + $0x4fc] sm:$0xff] }
  0xb7   : > { %v2104_v36 = vmul.f32 %v8740_v54, %v1090_v24  ;;  %v1112_v63 = vunpack.c.h.bf16 %v9151_v42  ;;  %v9203_v15 = vld [vmem:[%s8237_s7 + $0x554] sm:$0xff]  ;;  %v1100_v16 = vunpack.c.l.bf16 %v9148_v39 }
  0xb8   : > { %4015 = vmatmul.mubr.bf16.gmra.mrb[32].mxu1 %v2851_v48  ;;  %v1045_v48 = vunpack.c.l.bf16 %v408_v4 }
  0xb9   : > { %5428 = vmatmul.mubr.bf16.gmra.mrb[32].mxu0 %v2857_v52  ;;  %4024 = vmatprep.mubr.bf16.mxu1 %v2863_v53  ;;  %v1040_v52 = vunpack.c.l.bf16 %v405_v11  ;;  %v1051_v53 = vunpack.c.l.bf16 %v411_v12  ;;  %v2088_v11 = vmul.f32 %v8743_v55, %v1074_v62  ;;  %v429_v12 = vld [vmem:[%s8237_s7 + $0x490] sm:$0xff]  ;;  %v1101_v62 = vunpack.c.h.bf16 %v9148_v39 }
  0xba   : > { %5437 = vmatprep.mubr.bf16.mxu0 %v2869_v59  ;;  %v1057_v59 = vunpack.c.h.bf16 %v9082_v32  ;;  %v2059_v1 = vmul.f32 %v8748_v56, %v1045_v48  ;;  %v1085_v27 = vunpack.c.h.bf16 %v429_v12  ;;  %v3346_v48 = vld [vmem:[%s11475_s1 + $0x318] sm:$0xff] }
  0xbb   : > { %v2054_v3 = vmul.f32 %v8751_v57, %v1040_v52  ;;  %v2065_v4 = vmul.f32 %v8751_v57, %v1051_v53  ;;  %v2902_v29 = vpack.c.bf16 %v2088_v11, %v2077_v10  ;;  %v1089_v52 = vunpack.c.l.bf16 %v9130_v9 }
  0xbc   : > { %v2071_v6 = vmul.f32 %v8740_v54, %v1057_v59  ;;  %v2884_v14 = vpack.c.bf16 %v2059_v1, %v2048_v0  ;;  %v2099_v43 = vmul.f32 %v8743_v55, %v1085_v27  ;;  %v1084_v53 = vunpack.c.l.bf16 %v429_v12  ;;  %v3537_v59 = vld [vmem:[%s11475_s1 + $0x910] sm:$0xff]  ;;  %v3348_v27 = vld [vmem:[%s11475_s1 + $0x328] sm:$0xff] }
  0xbd   : > { %v2890_v25 = vpack.c.bf16 %v2065_v4, %v2054_v3  ;;  %v1107_v1 = vunpack.c.h.bf16 %v9156_v45  ;;  %v3643_v3 = vpack.c.bf16 %v3345_v35, %v3343_v21  ;;  %v3739_v4 = vpack.c.bf16 %v3537_v59, %v3535_v58  ;;  %v3541_v21 = vld [vmem:[%s11475_s1 + $0x930] sm:$0xff] }
  0xbe   : > { %v2896_v26 = vpack.c.bf16 %v2082_v7, %v2071_v6  ;;  %v2913_v61 = vpack.c.bf16 %v2110_v44, %v2099_v43  ;;  %v2103_v7 = vmul.f32 %v8748_v56, %v1089_v52  ;;  %v2109_v9 = vmul.f32 %v8751_v57, %v1095_v41  ;;  %v462_v58 = vld [vmem:[%s8237_s7 + $0x580] sm:$0xff]  ;;  %v468_v59 = vld [vmem:[%s8237_s7 + $0x5ac] sm:$0xff]  ;;  %v465_v41 = vld [vmem:[%s8237_s7 + $0x598] sm:$0xff] }
  0xbf   : > { %v2115_v10 = vmul.f32 %v8740_v54, %v1101_v62  ;;  %v2126_v11 = vmul.f32 %v8740_v54, %v1112_v63  ;;  %v2121_v12 = vmul.f32 %v8743_v55, %v1107_v1  ;;  %v2114_v43 = vmul.f32 %v8748_v56, %v1100_v16 }
  0xc0   : > { %4025 = vmatmul.mubr.bf16.gmra.mrb[36].mxu1 %v2862_v8  ;;  %v9127_v8 = vld [vmem:[%s8237_s7 + $0x478] sm:$0xff]  ;;  %v1133_v63 = vunpack.c.l.bf16 %v9203_v15 }
  0xc1   : > { %5438 = vmatmul.mubr.bf16.gmra.mrb[36].mxu0 %v2868_v17  ;;  %4034 = vmatprep.mubr.bf16.mxu1 %v2874_v19  ;;  %v1062_v17 = vunpack.c.l.bf16 %v9088_v34  ;;  %v1073_v19 = vunpack.c.l.bf16 %v423_v50  ;;  %v3536_v50 = vld [vmem:[%s11475_s1 + $0x908] sm:$0xff]  ;;  %v2918_v28 = vpack.c.bf16 %v2126_v11, %v2115_v10 }
  0xc2   : > { %5447 = vmatprep.mubr.bf16.mxu0 %v2880_v23  ;;  %v1079_v23 = vunpack.c.h.bf16 %v9127_v8  ;;  %v3740_v0 = vpack.c.bf16 %v3538_v51, %v3536_v50  ;;  %v3539_v51 = vld [vmem:[%s11475_s1 + $0x920] sm:$0xff]  ;;  %v2147_v11 = vmul.f32 %v8748_v56, %v1133_v63 }
  0xc3   : > { %v2076_v32 = vmul.f32 %v8751_v57, %v1062_v17  ;;  %v2087_v33 = vmul.f32 %v8751_v57, %v1073_v19  ;;  %v1111_v17 = vunpack.c.l.bf16 %v9151_v42  ;;  %v453_v19 = vld [vmem:[%s8237_s7 + $0x540] sm:$0xff] }
  0xc4   : > { %v2093_v34 = vmul.f32 %v8740_v54, %v1079_v23  ;;  %5802 = vmatprep.subr.bf16.mxu0 %v3740_v0  ;;  %v459_v23 = vld [vmem:[%s8237_s7 + $0x56c] sm:$0xff]  ;;  %v1129_v39 = vunpack.c.h.bf16 %v453_v19  ;;  %v1128_v0 = vunpack.c.l.bf16 %v453_v19  ;;  %v474_v19 = vld [vmem:[%s8237_s7 + $0x5d8] sm:$0xff] }
  0xc5   : > { %v2901_v60 = vpack.c.bf16 %v2087_v33, %v2076_v32  ;;  %5803 = vmatpush1.bf16.msra.mxu0 %v3739_v4  ;;  %v3350_v32 = vld [vmem:[%s11475_s1 + $0x338] sm:$0xff]  ;;  %v3540_v33 = vld [vmem:[%s11475_s1 + $0x928] sm:$0xff]  ;;  %v1140_v42 = vunpack.c.h.bf16 %v459_v23  ;;  %v2125_v44 = vmul.f32 %v8748_v56, %v1111_v17  ;;  %v1139_v1 = vunpack.c.l.bf16 %v459_v23 }
  0xc6   : > { %v2907_v40 = vpack.c.bf16 %v2104_v36, %v2093_v34  ;;  %v3542_v34 = vld [vmem:[%s11475_s1 + $0x938] sm:$0xff]  ;;  %v1145_v4 = vunpack.c.h.bf16 %v462_v58 }
  0xc7   : > { %v3742_v50 = vpack.c.bf16 %v3542_v34, %v3540_v33  ;;  %v2154_v35 = vmul.f32 %v8743_v55, %v1140_v42  ;;  %v480_v23 = vld [vmem:[%s8237_s7 + $0x604] sm:$0xff]  ;;  %v1167_v34 = vunpack.c.h.bf16 %v474_v19 }
  0xc8   : > { %4035 = vmatmul.mubr.bf16.gmra.mrb[40].mxu1 %v2873_v37  ;;  %v9159_v37 = vld [vmem:[%s8237_s7 + $0x514] sm:$0xff] }
  0xc9   : > { %5448 = vmatmul.mubr.bf16.gmra.mrb[40].mxu0 %v2879_v22  ;;  %4044 = vmatprep.mubr.bf16.mxu1 %v2885_v38  ;;  %v2895_v22 = vpack.c.bf16 %v2081_v31, %v2070_v30  ;;  %v1078_v38 = vunpack.c.l.bf16 %v9127_v8  ;;  %v1118_v2 = vunpack.c.h.bf16 %v9159_v37  ;;  %v2098_v8 = vmul.f32 %v8751_v57, %v1084_v53  ;;  %v3354_v42 = vld [vmem:[%s11475_s1 + $0x358] sm:$0xff] }
  0xca   : > { %5457 = vmatprep.mubr.bf16.mxu0 %v2891_v46  ;;  %v3644_v46 = vpack.c.bf16 %v3346_v48, %v3344_v47  ;;  %v1134_v31 = vunpack.c.h.bf16 %v9203_v15  ;;  %v3646_v48 = vpack.c.bf16 %v3350_v32, %v3348_v27  ;;  %v2143_v53 = vmul.f32 %v8743_v55, %v1129_v39  ;;  %5804 = vmatprep.subr.bf16.mxu0 %v3742_v50  ;;  %v483_v27 = vld [vmem:[%s8237_s7 + $0x61c] sm:$0xff]  ;;  %v3352_v32 = vld [vmem:[%s11475_s1 + $0x348] sm:$0xff] }
  0xcb   : > { %v2092_v6 = vmul.f32 %v8748_v56, %v1078_v38  ;;  %v2132_v13 = vmul.f32 %v8743_v55, %v1118_v2 }
  0xcc   : > { %4389 = vmatprep.subr.bf16.mxu1 %v3644_v46  ;;  %v2148_v52 = vmul.f32 %v8740_v54, %v1134_v31  ;;  %v471_v46 = vld [vmem:[%s8237_s7 + $0x5c4] sm:$0xff] }
  0xcd   : > { %4390 = vmatpush1.bf16.msra.mxu1 %v3643_v3  ;;  %v2906_v24 = vpack.c.bf16 %v2103_v7, %v2092_v6  ;;  %v2924_v36 = vpack.c.bf16 %v2132_v13, %v2121_v12  ;;  %v1156_v6 = vunpack.c.h.bf16 %v468_v59  ;;  %v2935_v7 = vpack.c.bf16 %v2154_v35, %v2143_v53 }
  0xce   : > { %4391 = vmatprep.subr.bf16.mxu1 %v3646_v48  ;;  %v2142_v12 = vmul.f32 %v8751_v57, %v1128_v0  ;;  %v2153_v13 = vmul.f32 %v8751_v57, %v1139_v1  ;;  %v1161_v31 = vunpack.c.l.bf16 %v471_v46  ;;  %v3648_v53 = vpack.c.bf16 %v3354_v42, %v3352_v32  ;;  %v489_v0 = vld [vmem:[%s8237_s7 + $0x648] sm:$0xff]  ;;  %v495_v1 = vld [vmem:[%s8237_s7 + $0x674] sm:$0xff] }
  0xcf   : > { %v2170_v15 = vmul.f32 %v8740_v54, %v1156_v6  ;;  %v1183_v6 = vunpack.c.l.bf16 %v483_v27 }
  0xd0   : > { %4045 = vmatmul.mubr.bf16.gmra.mrb[44].mxu1 %v2884_v14  ;;  %v9200_v14 = vld [vmem:[%s8237_s7 + $0x528] sm:$0xff] }
  0xd1   : > { %5458 = vmatmul.mubr.bf16.gmra.mrb[44].mxu0 %v2890_v25  ;;  %4054 = vmatprep.mubr.bf16.mxu1 %v2896_v26  ;;  %v2912_v25 = vpack.c.bf16 %v2109_v9, %v2098_v8  ;;  %v1106_v26 = vunpack.c.l.bf16 %v9156_v45  ;;  %v1123_v30 = vunpack.c.h.bf16 %v9200_v14  ;;  %v3347_v45 = vld [vmem:[%s11475_s1 + $0x320] sm:$0xff]  ;;  %v1122_v62 = vunpack.c.l.bf16 %v9200_v14 }
  0xd2   : > { %5467 = vmatprep.mubr.bf16.mxu0 %v2902_v29  ;;  %v1117_v29 = vunpack.c.l.bf16 %v9159_v37  ;;  %v3349_v37 = vld [vmem:[%s11475_s1 + $0x330] sm:$0xff]  ;;  %v1151_v8 = vunpack.c.h.bf16 %v465_v41  ;;  %v1162_v9 = vunpack.c.h.bf16 %v471_v46  ;;  %v2159_v14 = vmul.f32 %v8740_v54, %v1145_v4 }
  0xd3   : > { %v2120_v47 = vmul.f32 %v8751_v57, %v1106_v26  ;;  %v2137_v38 = vmul.f32 %v8740_v54, %v1123_v30  ;;  %v2136_v10 = vmul.f32 %v8748_v56, %v1122_v62  ;;  %v1155_v26 = vunpack.c.l.bf16 %v468_v59  ;;  %v492_v46 = vld [vmem:[%s8237_s7 + $0x65c] sm:$0xff] }
  0xd4   : > { %v2165_v16 = vmul.f32 %v8743_v55, %v1151_v8  ;;  %v2176_v17 = vmul.f32 %v8743_v55, %v1162_v9  ;;  %v1150_v30 = vunpack.c.l.bf16 %v465_v41  ;;  %v2940_v33 = vpack.c.bf16 %v2170_v15, %v2159_v14  ;;  %v486_v41 = vld [vmem:[%s8237_s7 + $0x630] sm:$0xff] }
  0xd5   : > { %v2929_v3 = vpack.c.bf16 %v2148_v52, %v2137_v38  ;;  %v2169_v50 = vmul.f32 %v8748_v56, %v1155_v26  ;;  %v2175_v52 = vmul.f32 %v8751_v57, %v1161_v31  ;;  %v1189_v9 = vunpack.c.h.bf16 %v486_v41  ;;  %v498_v26 = vld [vmem:[%s8237_s7 + $0x688] sm:$0xff] }
  0xd6   : > { %v2164_v38 = vmul.f32 %v8751_v57, %v1150_v30  ;;  %v1199_v30 = vunpack.c.l.bf16 %v492_v46  ;;  %v507_v31 = vld [vmem:[%s8237_s7 + $0x6cc] sm:$0xff] }
  0xd8   : > { %4055 = vmatmul.mubr.bf16.gmra.mrb[48].mxu1 %v2895_v22  ;;  %v2131_v22 = vmul.f32 %v8751_v57, %v1117_v29  ;;  %v2934_v29 = vpack.c.bf16 %v2153_v13, %v2142_v12  ;;  %v1195_v12 = vunpack.c.h.bf16 %v489_v0  ;;  %v1206_v13 = vunpack.c.h.bf16 %v495_v1 }
  0xd9   : > { %5468 = vmatmul.mubr.bf16.gmra.mrb[48].mxu0 %v2901_v60  ;;  %4064 = vmatprep.mubr.bf16.mxu1 %v2907_v40  ;;  %v3645_v60 = vpack.c.bf16 %v3349_v37, %v3347_v45  ;;  %v2917_v40 = vpack.c.bf16 %v2125_v44, %v2114_v43  ;;  %v3544_v43 = vld [vmem:[%s11475_s1 + $0x948] sm:$0xff]  ;;  %v3546_v44 = vld [vmem:[%s11475_s1 + $0x958] sm:$0xff]  ;;  %v2946_v45 = vpack.c.bf16 %v2176_v17, %v2165_v16  ;;  %v1184_v37 = vunpack.c.h.bf16 %v483_v27 }
  0xda   : > { %5477 = vmatprep.mubr.bf16.mxu0 %v2913_v61  ;;  %v3741_v61 = vpack.c.bf16 %v3541_v21, %v3539_v51  ;;  %v2923_v2 = vpack.c.bf16 %v2131_v22, %v2120_v47  ;;  %v3351_v47 = vld [vmem:[%s11475_s1 + $0x340] sm:$0xff]  ;;  %v3353_v51 = vld [vmem:[%s11475_s1 + $0x350] sm:$0xff]  ;;  %v3744_v35 = vpack.c.bf16 %v3546_v44, %v3544_v43  ;;  %v2197_v17 = vmul.f32 %v8751_v57, %v1183_v6 }
  0xdb   : > { %4392 = vmatpush1.bf16.msra.mxu1 %v3645_v60  ;;  %v3543_v21 = vld [vmem:[%s11475_s1 + $0x940] sm:$0xff]  ;;  %v3545_v22 = vld [vmem:[%s11475_s1 + $0x950] sm:$0xff]  ;;  %v1211_v43 = vunpack.c.h.bf16 %v498_v26 }
  0xdc   : > { %5805 = vmatpush1.bf16.msra.mxu0 %v3741_v61  ;;  %4393 = vmatprep.subr.bf16.mxu1 %v3648_v53  ;;  %v3647_v61 = vpack.c.bf16 %v3353_v51, %v3351_v47  ;;  %v3743_v62 = vpack.c.bf16 %v3545_v22, %v3543_v21  ;;  %v504_v27 = vld [vmem:[%s8237_s7 + $0x6b4] sm:$0xff]  ;;  %v1228_v51 = vunpack.c.h.bf16 %v507_v31  ;;  %v3355_v21 = vld [vmem:[%s11475_s1 + $0x360] sm:$0xff] }
  0xdd   : > { %5806 = vmatprep.subr.bf16.mxu0 %v3744_v35  ;;  %v1222_v44 = vunpack.c.h.bf16 %v504_v27  ;;  %v3548_v47 = vld [vmem:[%s11475_s1 + $0x968] sm:$0xff]  ;;  %v3547_v53 = vld [vmem:[%s11475_s1 + $0x960] sm:$0xff]  ;;  %v3549_v35 = vld [vmem:[%s11475_s1 + $0x970] sm:$0xff] }
  0xde   : > { %v519_v6 = vld [vmem:[%s8237_s7 + $0x724] sm:$0xff] }
  0xdf   : > { %4394 = vmatpush1.bf16.msra.mxu1 %v3647_v61 }
  0xe0   : > { %4065 = vmatmul.mubr.bf16.gmra.mrb[52].mxu1 %v2906_v24  ;;  %v477_v24 = vld [vmem:[%s8237_s7 + $0x5f0] sm:$0xff]  ;;  %5807 = vmatpush1.bf16.msra.mxu0 %v3743_v62  ;;  %v2242_v62 = vmul.f32 %v8743_v55, %v1228_v51 }
  0xe1   : > { %5478 = vmatmul.mubr.bf16.gmra.mrb[52].mxu0 %v2912_v25  ;;  %4074 = vmatprep.mubr.bf16.mxu1 %v2918_v28  ;;  %v1144_v25 = vunpack.c.l.bf16 %v462_v58  ;;  %v2928_v28 = vpack.c.bf16 %v2147_v11, %v2136_v10  ;;  %v1173_v39 = vunpack.c.h.bf16 %v477_v24  ;;  %v2181_v58 = vmul.f32 %v8740_v54, %v1167_v34  ;;  %v3552_v51 = vld [vmem:[%s11475_s1 + $0x988] sm:$0xff] }
  0xe2   : > { %5487 = vmatprep.mubr.bf16.mxu0 %v2924_v36  ;;  %v1178_v36 = vunpack.c.h.bf16 %v480_v23  ;;  %v1172_v4 = vunpack.c.l.bf16 %v477_v24  ;;  %v1200_v10 = vunpack.c.h.bf16 %v492_v46  ;;  %v2209_v24 = vmul.f32 %v8743_v55, %v1195_v12 }
  0xe3   : > { %v2158_v48 = vmul.f32 %v8748_v56, %v1144_v25  ;;  %v2187_v60 = vmul.f32 %v8743_v55, %v1173_v39  ;;  %v2220_v25 = vmul.f32 %v8743_v55, %v1206_v13  ;;  %v1194_v34 = vunpack.c.l.bf16 %v489_v0  ;;  %v3356_v39 = vld [vmem:[%s11475_s1 + $0x368] sm:$0xff] }
  0xe4   : > { %v2192_v59 = vmul.f32 %v8740_v54, %v1178_v36  ;;  %v2186_v16 = vmul.f32 %v8751_v57, %v1172_v4  ;;  %v1205_v36 = vunpack.c.l.bf16 %v495_v1  ;;  %v2236_v46 = vmul.f32 %v8740_v54, %v1222_v44  ;;  %v516_v0 = vld [vmem:[%s8237_s7 + $0x70c] sm:$0xff]  ;;  %v513_v4 = vld [vmem:[%s8237_s7 + $0x6f8] sm:$0xff] }
  0xe5   : > { %v2939_v63 = vpack.c.bf16 %v2169_v50, %v2158_v48  ;;  %v3550_v48 = vld [vmem:[%s11475_s1 + $0x978] sm:$0xff]  ;;  %v2968_v50 = vpack.c.bf16 %v2220_v25, %v2209_v24  ;;  %v1227_v12 = vunpack.c.l.bf16 %v507_v31  ;;  %v3360_v44 = vld [vmem:[%s11475_s1 + $0x388] sm:$0xff] }
  0xe6   : > { %v2951_v8 = vpack.c.bf16 %v2192_v59, %v2181_v58  ;;  %v2208_v58 = vmul.f32 %v8751_v57, %v1194_v34  ;;  %v2219_v59 = vmul.f32 %v8751_v57, %v1205_v36  ;;  %v528_v31 = vld [vmem:[%s8237_s7 + $0x764] sm:$0xff]  ;;  %v531_v34 = vld [vmem:[%s8237_s7 + $0x77c] sm:$0xff] }
  0xe7   : > { %v2241_v25 = vmul.f32 %v8751_v57, %v1227_v12 }
  0xe8   : > { %4075 = vmatmul.mubr.bf16.gmra.mrb[56].mxu1 %v2917_v40  ;;  %v2198_v40 = vmul.f32 %v8743_v55, %v1184_v37  ;;  %v3358_v37 = vld [vmem:[%s11475_s1 + $0x378] sm:$0xff] }
  0xe9   : > { %5488 = vmatmul.mubr.bf16.gmra.mrb[56].mxu0 %v2923_v2  ;;  %4084 = vmatprep.mubr.bf16.mxu1 %v2929_v3  ;;  %v1166_v2 = vunpack.c.l.bf16 %v474_v19  ;;  %v1177_v3 = vunpack.c.l.bf16 %v480_v23  ;;  %v2203_v19 = vmul.f32 %v8740_v54, %v1189_v9  ;;  %v2214_v23 = vmul.f32 %v8740_v54, %v1200_v10 }
  0xea   : > { %5497 = vmatprep.mubr.bf16.mxu0 %v2935_v7  ;;  %v2945_v7 = vpack.c.bf16 %v2175_v52, %v2164_v38  ;;  %v2957_v11 = vpack.c.bf16 %v2198_v40, %v2187_v60  ;;  %v2213_v38 = vmul.f32 %v8748_v56, %v1199_v30  ;;  %v3357_v52 = vld [vmem:[%s11475_s1 + $0x370] sm:$0xff]  ;;  %v3650_v60 = vpack.c.bf16 %v3358_v37, %v3356_v39 }
  0xeb   : > { %v2180_v14 = vmul.f32 %v8748_v56, %v1166_v2  ;;  %v2191_v15 = vmul.f32 %v8748_v56, %v1177_v3  ;;  %v2962_v42 = vpack.c.bf16 %v2214_v23, %v2203_v19  ;;  %v3746_v40 = vpack.c.bf16 %v3550_v48, %v3548_v47  ;;  %v522_v30 = vld [vmem:[%s8237_s7 + $0x738] sm:$0xff] }
  0xec   : > { %4395 = vmatprep.subr.bf16.mxu1 %v3650_v60  ;;  %v3649_v1 = vpack.c.bf16 %v3357_v52, %v3355_v21  ;;  %v3745_v2 = vpack.c.bf16 %v3549_v35, %v3547_v53  ;;  %v1221_v9 = vunpack.c.l.bf16 %v504_v27  ;;  %v1243_v39 = vunpack.c.l.bf16 %v516_v0  ;;  %v3554_v21 = vld [vmem:[%s11475_s1 + $0x998] sm:$0xff]  ;;  %v3359_v53 = vld [vmem:[%s11475_s1 + $0x380] sm:$0xff]  ;;  %v3361_v35 = vld [vmem:[%s11475_s1 + $0x390] sm:$0xff] }
  0xed   : > { %v2950_v32 = vpack.c.bf16 %v2191_v15, %v2180_v14  ;;  %5808 = vmatprep.subr.bf16.mxu0 %v3746_v40  ;;  %v1244_v14 = vunpack.c.h.bf16 %v516_v0  ;;  %v1255_v48 = vunpack.c.h.bf16 %v522_v30  ;;  %v1272_v52 = vunpack.c.h.bf16 %v531_v34  ;;  %v3551_v60 = vld [vmem:[%s11475_s1 + $0x980] sm:$0xff]  ;;  %v3553_v40 = vld [vmem:[%s11475_s1 + $0x990] sm:$0xff] }
  0xee   : > { %4396 = vmatpush1.bf16.msra.mxu1 %v3649_v1  ;;  %5809 = vmatpush1.bf16.msra.mxu0 %v3745_v2  ;;  %v2235_v23 = vmul.f32 %v8748_v56, %v1221_v9  ;;  %v3651_v1 = vpack.c.bf16 %v3361_v35, %v3359_v53  ;;  %v1265_v9 = vunpack.c.l.bf16 %v528_v31 }
  0xef   : > { %v2258_v27 = vmul.f32 %v8740_v54, %v1244_v14  ;;  %v1271_v14 = vunpack.c.l.bf16 %v531_v34 }
  0xf0   : > { %4085 = vmatmul.mubr.bf16.gmra.mrb[60].mxu1 %v2928_v28  ;;  %v501_v28 = vld [vmem:[%s8237_s7 + $0x6a0] sm:$0xff] }
  0xf1   : > { %5498 = vmatmul.mubr.bf16.gmra.mrb[60].mxu0 %v2934_v29  ;;  %4094 = vmatprep.mubr.bf16.mxu1 %v2940_v33  ;;  %v1188_v29 = vunpack.c.l.bf16 %v486_v41  ;;  %v2956_v33 = vpack.c.bf16 %v2197_v17, %v2186_v16  ;;  %v2225_v41 = vmul.f32 %v8740_v54, %v1211_v43  ;;  %v1216_v10 = vunpack.c.l.bf16 %v501_v28 }
  0xf2   : > { %5507 = vmatprep.mubr.bf16.mxu0 %v2946_v45  ;;  %v1217_v45 = vunpack.c.h.bf16 %v501_v28  ;;  %v1239_v16 = vunpack.c.h.bf16 %v513_v4  ;;  %v1250_v17 = vunpack.c.h.bf16 %v519_v6  ;;  %v1249_v43 = vunpack.c.l.bf16 %v519_v6  ;;  %v9395_v6 = vld [vmem:[%s8237_s7 + $0x7bc] sm:$0xff] }
  0xf3   : > { %v2202_v22 = vmul.f32 %v8748_v56, %v1188_v29  ;;  %v2230_v24 = vmul.f32 %v8751_v57, %v1216_v10  ;;  %v537_v10 = vld [vmem:[%s8237_s7 + $0x7a8] sm:$0xff]  ;;  %v1287_v35 = vunpack.c.l.bf16 %v9395_v6 }
  0xf4   : > { %v2231_v61 = vmul.f32 %v8743_v55, %v1217_v45  ;;  %v2253_v28 = vmul.f32 %v8743_v55, %v1239_v16  ;;  %v2264_v29 = vmul.f32 %v8743_v55, %v1250_v17  ;;  %v3362_v45 = vld [vmem:[%s11475_s1 + $0x398] sm:$0xff] }
  0xf5   : > { %v2961_v3 = vpack.c.bf16 %v2213_v38, %v2202_v22  ;;  %v2978_v37 = vpack.c.bf16 %v2241_v25, %v2230_v24  ;;  %v1283_v24 = vunpack.c.h.bf16 %v537_v10 }
  0xf6   : > { %v2979_v15 = vpack.c.bf16 %v2242_v62, %v2231_v61  ;;  %v2990_v22 = vpack.c.bf16 %v2264_v29, %v2253_v28  ;;  %v2263_v61 = vmul.f32 %v8751_v57, %v1249_v43  ;;  %v3748_v62 = vpack.c.bf16 %v3554_v21, %v3552_v51  ;;  %v3364_v28 = vld [vmem:[%s11475_s1 + $0x3a8] sm:$0xff] }
  0xf7   : > { %v2297_v43 = vmul.f32 %v8743_v55, %v1283_v24  ;;  %v555_v51 = vld [vmem:[%s8237_s7 + $0x82c] sm:$0xff] }
  0xf8   : > { %4095 = vmatmul.mubr.bf16.gmra.mrb[64].mxu1 %v2939_v63  ;;  %v510_v63 = vld [vmem:[%s8237_s7 + $0x6e0] sm:$0xff]  ;;  %5810 = vmatprep.subr.bf16.mxu0 %v3748_v62 }
  0xf9   : > { %5508 = vmatmul.mubr.bf16.gmra.mrb[64].mxu0 %v2945_v7  ;;  %4104 = vmatprep.mubr.bf16.mxu1 %v2951_v8  ;;  %v2967_v7 = vpack.c.bf16 %v2219_v59, %v2208_v58  ;;  %v1210_v8 = vunpack.c.l.bf16 %v498_v26  ;;  %v1233_v13 = vunpack.c.h.bf16 %v510_v63  ;;  %v3652_v59 = vpack.c.bf16 %v3362_v45, %v3360_v44  ;;  %v549_v45 = vld [vmem:[%s8237_s7 + $0x800] sm:$0xff] }
  0xfa   : > { %5517 = vmatprep.mubr.bf16.mxu0 %v2957_v11  ;;  %v2973_v11 = vpack.c.bf16 %v2236_v46, %v2225_v41  ;;  %v2257_v41 = vmul.f32 %v8748_v56, %v1243_v39  ;;  %v546_v39 = vld [vmem:[%s8237_s7 + $0x7e8] sm:$0xff]  ;;  %v1305_v62 = vunpack.c.h.bf16 %v549_v45 }
  0xfb   : > { %v2224_v19 = vmul.f32 %v8748_v56, %v1210_v8  ;;  %v2247_v26 = vmul.f32 %v8740_v54, %v1233_v13  ;;  %4397 = vmatprep.subr.bf16.mxu1 %v3652_v59  ;;  %v1254_v8 = vunpack.c.l.bf16 %v522_v30  ;;  %v2285_v30 = vmul.f32 %v8751_v57, %v1271_v14 }
  0xfc   : > { %4398 = vmatpush1.bf16.msra.mxu1 %v3651_v1  ;;  %v1304_v14 = vunpack.c.l.bf16 %v549_v45  ;;  %v3370_v45 = vld [vmem:[%s11475_s1 + $0x3d8] sm:$0xff] }
  0xfd   : > { %v2972_v36 = vpack.c.bf16 %v2235_v23, %v2224_v19  ;;  %v2984_v47 = vpack.c.bf16 %v2258_v27, %v2247_v26  ;;  %v1288_v19 = vunpack.c.h.bf16 %v9395_v6  ;;  %v2268_v26 = vmul.f32 %v8748_v56, %v1254_v8 }
  0xfe   : > { %v2279_v27 = vmul.f32 %v8748_v56, %v1265_v9  ;;  %v1298_v8 = vunpack.c.l.bf16 %v546_v39  ;;  %v2319_v9 = vmul.f32 %v8743_v55, %v1305_v62 }
 0x100   : > { %4105 = vmatmul.mubr.bf16.gmra.mrb[68].mxu1 %v2950_v32  ;;  %v1232_v32 = vunpack.c.l.bf16 %v510_v63  ;;  %v2269_v63 = vmul.f32 %v8740_v54, %v1255_v48  ;;  %v2994_v48 = vpack.c.bf16 %v2279_v27, %v2268_v26 }
 0x101   : > { %5518 = vmatmul.mubr.bf16.gmra.mrb[68].mxu0 %v2956_v33  ;;  %4114 = vmatprep.mubr.bf16.mxu1 %v2962_v42  ;;  %v525_v33 = vld [vmem:[%s8237_s7 + $0x750] sm:$0xff]  ;;  %v1238_v42 = vunpack.c.l.bf16 %v513_v4 }
 0x102   : > { %5527 = vmatprep.mubr.bf16.mxu0 %v2968_v50  ;;  %v1266_v50 = vunpack.c.h.bf16 %v528_v31  ;;  %v1261_v38 = vunpack.c.h.bf16 %v525_v33  ;;  %v2246_v58 = vmul.f32 %v8748_v56, %v1232_v32  ;;  %v9392_v4 = vld [vmem:[%s8237_s7 + $0x790] sm:$0xff]  ;;  %v1260_v13 = vunpack.c.l.bf16 %v525_v33  ;;  %v3366_v31 = vld [vmem:[%s11475_s1 + $0x3b8] sm:$0xff] }
 0x103   : > { %v2252_v46 = vmul.f32 %v8751_v57, %v1238_v42  ;;  %v1277_v17 = vunpack.c.h.bf16 %v9392_v4  ;;  %v3556_v32 = vld [vmem:[%s11475_s1 + $0x9a8] sm:$0xff]  ;;  %v3558_v33 = vld [vmem:[%s11475_s1 + $0x9b8] sm:$0xff]  ;;  %v3654_v21 = vpack.c.bf16 %v3366_v31, %v3364_v28 }
 0x104   : > { %v2280_v0 = vmul.f32 %v8740_v54, %v1266_v50  ;;  %v2275_v2 = vmul.f32 %v8743_v55, %v1261_v38  ;;  %v2983_v12 = vpack.c.bf16 %v2257_v41, %v2246_v58  ;;  %v2274_v29 = vmul.f32 %v8751_v57, %v1260_v13  ;;  %v552_v42 = vld [vmem:[%s8237_s7 + $0x814] sm:$0xff]  ;;  %v3555_v38 = vld [vmem:[%s11475_s1 + $0x9a0] sm:$0xff] }
 0x105   : > { %v2291_v34 = vmul.f32 %v8740_v54, %v1277_v17  ;;  %v1276_v50 = vunpack.c.l.bf16 %v9392_v4  ;;  %v1282_v58 = vunpack.c.l.bf16 %v537_v10  ;;  %v1310_v41 = vunpack.c.h.bf16 %v552_v42  ;;  %4399 = vmatprep.subr.bf16.mxu1 %v3654_v21  ;;  %v564_v13 = vld [vmem:[%s8237_s7 + $0x86c] sm:$0xff]  ;;  %v567_v17 = vld [vmem:[%s8237_s7 + $0x884] sm:$0xff] }
 0x106   : > { %v2995_v16 = vpack.c.bf16 %v2280_v0, %v2269_v63  ;;  %v3000_v53 = vpack.c.bf16 %v2285_v30, %v2274_v29  ;;  %v1316_v63 = vunpack.c.h.bf16 %v555_v51  ;;  %v1332_v27 = vunpack.c.h.bf16 %v564_v13  ;;  %v3367_v21 = vld [vmem:[%s11475_s1 + $0x3c0] sm:$0xff] }
 0x107   : > { %v2290_v1 = vmul.f32 %v8748_v56, %v1276_v50  ;;  %v1338_v31 = vunpack.c.h.bf16 %v567_v17 }
 0x108   : > { %4115 = vmatmul.mubr.bf16.gmra.mrb[72].mxu1 %v2961_v3  ;;  %v2286_v3 = vmul.f32 %v8743_v55, %v1272_v52  ;;  %v3557_v52 = vld [vmem:[%s11475_s1 + $0x9b0] sm:$0xff]  ;;  %v2330_v10 = vmul.f32 %v8743_v55, %v1316_v63 }
 0x109   : > { %5528 = vmatmul.mubr.bf16.gmra.mrb[72].mxu0 %v2967_v7  ;;  %4124 = vmatprep.mubr.bf16.mxu1 %v2973_v11  ;;  %v3747_v7 = vpack.c.bf16 %v3553_v40, %v3551_v60  ;;  %v543_v11 = vld [vmem:[%s8237_s7 + $0x7d4] sm:$0xff]  ;;  %v1299_v40 = vunpack.c.h.bf16 %v546_v39  ;;  %v3749_v0 = vpack.c.bf16 %v3557_v52, %v3555_v38  ;;  %v2352_v50 = vmul.f32 %v8743_v55, %v1338_v31 }
 0x10a   : > { %5537 = vmatprep.mubr.bf16.mxu0 %v2979_v15  ;;  %v2989_v15 = vpack.c.bf16 %v2263_v61, %v2252_v46  ;;  %v3001_v23 = vpack.c.bf16 %v2286_v3, %v2275_v2  ;;  %v1294_v25 = vunpack.c.h.bf16 %v543_v11  ;;  %v1293_v59 = vunpack.c.l.bf16 %v543_v11 }
 0x10b   : > { %5811 = vmatpush1.bf16.msra.mxu0 %v3747_v7  ;;  %v2301_v2 = vmul.f32 %v8748_v56, %v1287_v35  ;;  %v2296_v3 = vmul.f32 %v8751_v57, %v1282_v58  ;;  %v2313_v6 = vmul.f32 %v8740_v54, %v1299_v40  ;;  %v2324_v7 = vmul.f32 %v8740_v54, %v1310_v41 }
 0x10c   : > { %v2308_v44 = vmul.f32 %v8743_v55, %v1294_v25  ;;  %v2307_v4 = vmul.f32 %v8751_v57, %v1293_v59  ;;  %v1309_v11 = vunpack.c.l.bf16 %v552_v42  ;;  %v2312_v25 = vmul.f32 %v8748_v56, %v1298_v8  ;;  %v3559_v59 = vld [vmem:[%s11475_s1 + $0x9c0] sm:$0xff] }
 0x10d   : > { %v3017_v24 = vpack.c.bf16 %v2324_v7, %v2313_v6  ;;  %v3023_v28 = vpack.c.bf16 %v2330_v10, %v2319_v9  ;;  %v2346_v42 = vmul.f32 %v8740_v54, %v1332_v27  ;;  %v1331_v40 = vunpack.c.l.bf16 %v564_v13 }
 0x10e   : > { %v3012_v61 = vpack.c.bf16 %v2308_v44, %v2297_v43  ;;  %v2323_v29 = vmul.f32 %v8748_v56, %v1309_v11  ;;  %v9464_v43 = vld [vmem:[%s8237_s7 + $0x8b0] sm:$0xff] }
 0x10f   : > { %v3368_v44 = vld [vmem:[%s11475_s1 + $0x3c8] sm:$0xff]  ;;  %v2345_v7 = vmul.f32 %v8748_v56, %v1331_v40 }
 0x110   : > { %4125 = vmatmul.mubr.bf16.gmra.mrb[76].mxu1 %v2972_v36  ;;  %v2302_v36 = vmul.f32 %v8740_v54, %v1288_v19  ;;  %v3005_v19 = vpack.c.bf16 %v2301_v2, %v2290_v1  ;;  %v3656_v35 = vpack.c.bf16 %v3370_v45, %v3368_v44 }
 0x111   : > { %5538 = vmatmul.mubr.bf16.gmra.mrb[76].mxu0 %v2978_v37  ;;  %4134 = vmatprep.mubr.bf16.mxu1 %v2984_v47  ;;  %v3363_v37 = vld [vmem:[%s11475_s1 + $0x3a0] sm:$0xff]  ;;  %v3365_v47 = vld [vmem:[%s11475_s1 + $0x3b0] sm:$0xff] }
 0x112   : > { %5547 = vmatprep.mubr.bf16.mxu0 %v2990_v22  ;;  %v3750_v22 = vpack.c.bf16 %v3558_v33, %v3556_v32  ;;  %v3006_v60 = vpack.c.bf16 %v2302_v36, %v2291_v34  ;;  %v3653_v46 = vpack.c.bf16 %v3365_v47, %v3363_v37  ;;  %v2318_v32 = vmul.f32 %v8751_v57, %v1304_v14  ;;  %v9456_v34 = vld [vmem:[%s8237_s7 + $0x898] sm:$0xff]  ;;  %v9459_v36 = vld [vmem:[%s8237_s7 + $0x8c4] sm:$0xff]  ;;  %v582_v14 = vld [vmem:[%s8237_s7 + $0x8f0] sm:$0xff] }
 0x113   : > { %v3560_v37 = vld [vmem:[%s11475_s1 + $0x9c8] sm:$0xff]  ;;  %v3016_v47 = vpack.c.bf16 %v2323_v29, %v2312_v25  ;;  %v1343_v63 = vunpack.c.h.bf16 %v9456_v34  ;;  %v1348_v25 = vunpack.c.l.bf16 %v9464_v43  ;;  %v1365_v29 = vunpack.c.h.bf16 %v582_v14 }
 0x114   : > { %5812 = vmatprep.subr.bf16.mxu0 %v3750_v22  ;;  %4400 = vmatpush1.bf16.msra.mxu1 %v3653_v46  ;;  %v3369_v22 = vld [vmem:[%s11475_s1 + $0x3d0] sm:$0xff]  ;;  %v1337_v46 = vunpack.c.l.bf16 %v567_v17  ;;  %v1353_v17 = vunpack.c.l.bf16 %v9459_v36 }
 0x115   : > { %5813 = vmatpush1.bf16.msra.mxu0 %v3749_v0  ;;  %v1354_v0 = vunpack.c.h.bf16 %v9459_v36  ;;  %4401 = vmatprep.subr.bf16.mxu1 %v3656_v35  ;;  %v2357_v10 = vmul.f32 %v8740_v54, %v1343_v63 }
 0x116   : > { %v2351_v9 = vmul.f32 %v8751_v57, %v1337_v46  ;;  %v2367_v36 = vmul.f32 %v8748_v56, %v1353_v17 }
 0x117   : > { %v2368_v11 = vmul.f32 %v8740_v54, %v1354_v0  ;;  %v9527_v0 = vld [vmem:[%s8237_s7 + $0x9a0] sm:$0xff] }
 0x118   : > { %4135 = vmatmul.mubr.bf16.gmra.mrb[80].mxu1 %v2983_v12  ;;  %v558_v12 = vld [vmem:[%s8237_s7 + $0x840] sm:$0xff] }
 0x119   : > { %5548 = vmatmul.mubr.bf16.gmra.mrb[80].mxu0 %v2989_v15  ;;  %4144 = vmatprep.mubr.bf16.mxu1 %v2995_v16  ;;  %v1315_v15 = vunpack.c.l.bf16 %v555_v51  ;;  %v561_v16 = vld [vmem:[%s8237_s7 + $0x858] sm:$0xff]  ;;  %v1321_v26 = vunpack.c.h.bf16 %v558_v12  ;;  %v1320_v52 = vunpack.c.l.bf16 %v558_v12 }
 0x11a   : > { %5557 = vmatprep.mubr.bf16.mxu0 %v3001_v23  ;;  %v3011_v23 = vpack.c.bf16 %v2307_v4, %v2296_v3  ;;  %v1327_v30 = vunpack.c.h.bf16 %v561_v16  ;;  %v3562_v51 = vld [vmem:[%s11475_s1 + $0x9d8] sm:$0xff]  ;;  %v1326_v41 = vunpack.c.l.bf16 %v561_v16  ;;  %v1349_v3 = vunpack.c.h.bf16 %v9464_v43 }
 0x11b   : > { %v2329_v33 = vmul.f32 %v8751_v57, %v1315_v15  ;;  %v2335_v39 = vmul.f32 %v8740_v54, %v1321_v26  ;;  %v3752_v58 = vpack.c.bf16 %v3562_v51, %v3560_v37  ;;  %v2334_v6 = vmul.f32 %v8748_v56, %v1320_v52  ;;  %v588_v15 = vld [vmem:[%s8237_s7 + $0x91c] sm:$0xff] }
 0x11c   : > { %v2340_v8 = vmul.f32 %v8751_v57, %v1326_v41  ;;  %v2363_v12 = vmul.f32 %v8743_v55, %v1349_v3  ;;  %v1342_v16 = vunpack.c.l.bf16 %v9456_v34  ;;  %v2379_v43 = vmul.f32 %v8740_v54, %v1365_v29  ;;  %v597_v51 = vld [vmem:[%s8237_s7 + $0x960] sm:$0xff] }
 0x11d   : > { %v3022_v38 = vpack.c.bf16 %v2329_v33, %v2318_v32  ;;  %v3028_v62 = vpack.c.bf16 %v2346_v42, %v2335_v39  ;;  %5814 = vmatprep.subr.bf16.mxu0 %v3752_v58  ;;  %v2362_v39 = vmul.f32 %v8751_v57, %v1348_v25  ;;  %v1375_v52 = vunpack.c.l.bf16 %v588_v15  ;;  %v3563_v25 = vld [vmem:[%s11475_s1 + $0x9e0] sm:$0xff] }
 0x11e   : > { %v3033_v27 = vpack.c.bf16 %v2351_v9, %v2340_v8  ;;  %v2356_v34 = vmul.f32 %v8748_v56, %v1342_v16  ;;  %v1393_v41 = vunpack.c.h.bf16 %v597_v51  ;;  %v3374_v8 = vld [vmem:[%s11475_s1 + $0x3f8] sm:$0xff]  ;;  %v3564_v9 = vld [vmem:[%s11475_s1 + $0x9e8] sm:$0xff] }
 0x120   : > { %4145 = vmatmul.mubr.bf16.gmra.mrb[84].mxu1 %v2994_v48  ;;  %v2341_v48 = vmul.f32 %v8743_v55, %v1327_v30  ;;  %v1376_v30 = vunpack.c.h.bf16 %v588_v15  ;;  %v3373_v15 = vld [vmem:[%s11475_s1 + $0x3f0] sm:$0xff] }
 0x121   : > { %5558 = vmatmul.mubr.bf16.gmra.mrb[84].mxu0 %v3000_v53  ;;  %4154 = vmatprep.mubr.bf16.mxu1 %v3006_v60  ;;  %v579_v53 = vld [vmem:[%s8237_s7 + $0x8dc] sm:$0xff] }
 0x122   : > { %5567 = vmatprep.mubr.bf16.mxu0 %v3012_v61  ;;  %v3561_v60 = vld [vmem:[%s11475_s1 + $0x9d0] sm:$0xff]  ;;  %v3655_v61 = vpack.c.bf16 %v3369_v22, %v3367_v21  ;;  %v3034_v2 = vpack.c.bf16 %v2352_v50, %v2341_v48  ;;  %v1360_v4 = vunpack.c.h.bf16 %v579_v53  ;;  %v1359_v26 = vunpack.c.l.bf16 %v579_v53 }
 0x123   : > { %v3751_v1 = vpack.c.bf16 %v3561_v60, %v3559_v59  ;;  %v2390_v44 = vmul.f32 %v8740_v54, %v1376_v30  ;;  %v600_v48 = vld [vmem:[%s8237_s7 + $0x974] sm:$0xff]  ;;  %v3038_v50 = vpack.c.bf16 %v2367_v36, %v2356_v34  ;;  %v603_v21 = vld [vmem:[%s8237_s7 + $0x98c] sm:$0xff] }
 0x124   : > { %4402 = vmatpush1.bf16.msra.mxu1 %v3655_v61  ;;  %v2374_v13 = vmul.f32 %v8743_v55, %v1360_v4  ;;  %v2373_v42 = vmul.f32 %v8751_v57, %v1359_v26  ;;  %v1398_v60 = vunpack.c.h.bf16 %v600_v48  ;;  %v1404_v46 = vunpack.c.h.bf16 %v603_v21  ;;  %v3565_v26 = vld [vmem:[%s11475_s1 + $0x9f0] sm:$0xff] }
 0x125   : > { %5815 = vmatpush1.bf16.msra.mxu0 %v3751_v1  ;;  %v3050_v35 = vpack.c.bf16 %v2390_v44, %v2379_v43  ;;  %v9530_v1 = vld [vmem:[%s8237_s7 + $0x9cc] sm:$0xff]  ;;  %v1397_v17 = vunpack.c.l.bf16 %v600_v48  ;;  %v1403_v29 = vunpack.c.l.bf16 %v603_v21  ;;  %v3753_v30 = vpack.c.bf16 %v3565_v26, %v3563_v25  ;;  %v618_v21 = vld [vmem:[%s8237_s7 + $0x9f8] sm:$0xff] }
 0x126   : > { %v3045_v31 = vpack.c.bf16 %v2374_v13, %v2363_v12  ;;  %v3044_v22 = vpack.c.bf16 %v2373_v42, %v2362_v39  ;;  %v2412_v4 = vmul.f32 %v8740_v54, %v1398_v60  ;;  %v3566_v13 = vld [vmem:[%s11475_s1 + $0x9f8] sm:$0xff]  ;;  %v1420_v34 = vunpack.c.h.bf16 %v9530_v1 }
 0x127   : > { %v2411_v44 = vmul.f32 %v8748_v56, %v1397_v17 }
 0x128   : > { %4155 = vmatmul.mubr.bf16.gmra.mrb[88].mxu1 %v3005_v19  ;;  %v585_v19 = vld [vmem:[%s8237_s7 + $0x908] sm:$0xff]  ;;  %v2434_v48 = vmul.f32 %v8740_v54, %v1420_v34 }
 0x129   : > { %5568 = vmatmul.mubr.bf16.gmra.mrb[88].mxu0 %v3011_v23  ;;  %4164 = vmatprep.mubr.bf16.mxu1 %v3017_v24  ;;  %v591_v23 = vld [vmem:[%s8237_s7 + $0x934] sm:$0xff]  ;;  %v3027_v24 = vpack.c.bf16 %v2345_v7, %v2334_v6  ;;  %v1371_v32 = vunpack.c.h.bf16 %v585_v19  ;;  %v1370_v53 = vunpack.c.l.bf16 %v585_v19  ;;  %v615_v19 = vld [vmem:[%s8237_s7 + $0x9e4] sm:$0xff] }
 0x12a   : > { %5577 = vmatprep.mubr.bf16.mxu0 %v3023_v28  ;;  %v3039_v28 = vpack.c.bf16 %v2368_v11, %v2357_v10  ;;  %v1382_v33 = vunpack.c.h.bf16 %v591_v23  ;;  %v1381_v58 = vunpack.c.l.bf16 %v591_v23  ;;  %v9536_v6 = vld [vmem:[%s8237_s7 + $0x9b8] sm:$0xff]  ;;  %v2407_v10 = vmul.f32 %v8743_v55, %v1393_v41 }
 0x12b   : > { %v2385_v45 = vmul.f32 %v8743_v55, %v1371_v32  ;;  %v2384_v63 = vmul.f32 %v8751_v57, %v1370_v53  ;;  %v3372_v7 = vld [vmem:[%s11475_s1 + $0x3e8] sm:$0xff]  ;;  %v2418_v11 = vmul.f32 %v8743_v55, %v1404_v46  ;;  %v3754_v23 = vpack.c.bf16 %v3566_v13, %v3564_v9  ;;  %v627_v53 = vld [vmem:[%s8237_s7 + $0xa3c] sm:$0xff] }
 0x12c   : > { %v2396_v37 = vmul.f32 %v8743_v55, %v1382_v33  ;;  %v3658_v12 = vpack.c.bf16 %v3374_v8, %v3372_v7  ;;  %v1409_v33 = vunpack.c.h.bf16 %v9527_v0  ;;  %v1415_v39 = vunpack.c.h.bf16 %v9536_v6  ;;  %v3376_v34 = vld [vmem:[%s11475_s1 + $0x408] sm:$0xff] }
 0x12d   : > { %5816 = vmatprep.subr.bf16.mxu0 %v3754_v23  ;;  %v3067_v36 = vpack.c.bf16 %v2418_v11, %v2407_v10  ;;  %v1426_v42 = vunpack.c.h.bf16 %v615_v19  ;;  %v1414_v60 = vunpack.c.l.bf16 %v9536_v6  ;;  %v1425_v41 = vunpack.c.l.bf16 %v615_v19  ;;  %v630_v10 = vld [vmem:[%s8237_s7 + $0xa50] sm:$0xff]  ;;  %v636_v11 = vld [vmem:[%s8237_s7 + $0xa7c] sm:$0xff] }
 0x12e   : > { %v3056_v40 = vpack.c.bf16 %v2396_v37, %v2385_v45  ;;  %4403 = vmatprep.subr.bf16.mxu1 %v3658_v12  ;;  %5817 = vmatpush1.bf16.msra.mxu0 %v3753_v30  ;;  %v2417_v37 = vmul.f32 %v8751_v57, %v1403_v29  ;;  %v1431_v46 = vunpack.c.h.bf16 %v618_v21  ;;  %v1430_v12 = vunpack.c.l.bf16 %v618_v21 }
 0x12f   : > { %v1447_v19 = vunpack.c.l.bf16 %v627_v53  ;;  %v1453_v25 = vunpack.c.h.bf16 %v630_v10  ;;  %v1464_v26 = vunpack.c.h.bf16 %v636_v11 }
 0x130   : > { %4165 = vmatmul.mubr.bf16.gmra.mrb[92].mxu1 %v3016_v47  ;;  %v594_v47 = vld [vmem:[%s8237_s7 + $0x948] sm:$0xff]  ;;  %v2445_v6 = vmul.f32 %v8740_v54, %v1431_v46  ;;  %v2444_v30 = vmul.f32 %v8748_v56, %v1430_v12  ;;  %v657_v12 = vld [vmem:[%s8237_s7 + $0xb18] sm:$0xff] }
 0x131   : > { %5578 = vmatmul.mubr.bf16.gmra.mrb[92].mxu0 %v3022_v38  ;;  %4174 = vmatprep.mubr.bf16.mxu1 %v3028_v62  ;;  %v1364_v38 = vunpack.c.l.bf16 %v582_v14  ;;  %v1387_v59 = vunpack.c.h.bf16 %v594_v47  ;;  %v2389_v62 = vmul.f32 %v8748_v56, %v1375_v52  ;;  %v3371_v14 = vld [vmem:[%s11475_s1 + $0x3e0] sm:$0xff]  ;;  %v1386_v16 = vunpack.c.l.bf16 %v594_v47 }
 0x132   : > { %5587 = vmatprep.mubr.bf16.mxu0 %v3034_v2  ;;  %v2395_v2 = vmul.f32 %v8751_v57, %v1381_v58  ;;  %v2423_v47 = vmul.f32 %v8740_v54, %v1409_v33  ;;  %v621_v52 = vld [vmem:[%s8237_s7 + $0xa10] sm:$0xff]  ;;  %v1408_v58 = vunpack.c.l.bf16 %v9527_v0  ;;  %v2461_v33 = vmul.f32 %v8751_v57, %v1447_v19 }
 0x133   : > { %v2378_v61 = vmul.f32 %v8748_v56, %v1364_v38  ;;  %v2401_v3 = vmul.f32 %v8740_v54, %v1387_v59  ;;  %v2400_v43 = vmul.f32 %v8748_v56, %v1386_v16  ;;  %v1419_v59 = vunpack.c.l.bf16 %v9530_v1 }
 0x134   : > { %v2428_v1 = vmul.f32 %v8751_v57, %v1414_v60  ;;  %v1436_v17 = vunpack.c.l.bf16 %v621_v52 }
 0x135   : > { %v3061_v32 = vpack.c.bf16 %v2412_v4, %v2401_v3  ;;  %v3060_v38 = vpack.c.bf16 %v2411_v44, %v2400_v43  ;;  %v2422_v3 = vmul.f32 %v8748_v56, %v1408_v58  ;;  %v2433_v0 = vmul.f32 %v8748_v56, %v1419_v59  ;;  %v3568_v44 = vld [vmem:[%s11475_s1 + $0xa08] sm:$0xff] }
 0x136   : > { %v2439_v4 = vmul.f32 %v8751_v57, %v1425_v41 }
 0x137   : > { %v3071_v16 = vpack.c.bf16 %v2433_v0, %v2422_v3 }
 0x138   : > { %4175 = vmatmul.mubr.bf16.gmra.mrb[96].mxu1 %v3027_v24  ;;  %v3657_v24 = vpack.c.bf16 %v3373_v15, %v3371_v14  ;;  %v633_v14 = vld [vmem:[%s8237_s7 + $0xa68] sm:$0xff]  ;;  %v639_v15 = vld [vmem:[%s8237_s7 + $0xa94] sm:$0xff]  ;;  %v3077_v23 = vpack.c.bf16 %v2439_v4, %v2428_v1 }
 0x139   : > { %5588 = vmatmul.mubr.bf16.gmra.mrb[96].mxu0 %v3033_v27  ;;  %4184 = vmatprep.mubr.bf16.mxu1 %v3039_v28  ;;  %v3049_v27 = vpack.c.bf16 %v2389_v62, %v2378_v61  ;;  %v1392_v28 = vunpack.c.l.bf16 %v597_v51  ;;  %v2440_v51 = vmul.f32 %v8743_v55, %v1426_v42  ;;  %v1470_v29 = vunpack.c.h.bf16 %v639_v15 }
 0x13a   : > { %5597 = vmatprep.mubr.bf16.mxu0 %v3045_v31  ;;  %v3055_v31 = vpack.c.bf16 %v2395_v2, %v2384_v63  ;;  %4404 = vmatpush1.bf16.msra.mxu1 %v3657_v24  ;;  %v1437_v63 = vunpack.c.h.bf16 %v621_v52  ;;  %v1448_v2 = vunpack.c.h.bf16 %v627_v53  ;;  %v2478_v42 = vmul.f32 %v8740_v54, %v1464_v26 }
 0x13b   : > { %v2406_v45 = vmul.f32 %v8751_v57, %v1392_v28  ;;  %v1459_v28 = vunpack.c.h.bf16 %v633_v14  ;;  %v1452_v52 = vunpack.c.l.bf16 %v630_v10  ;;  %v1463_v53 = vunpack.c.l.bf16 %v636_v11 }
 0x13c   : > { %v2451_v8 = vmul.f32 %v8743_v55, %v1437_v63  ;;  %v2462_v9 = vmul.f32 %v8743_v55, %v1448_v2  ;;  %v1469_v58 = vunpack.c.l.bf16 %v639_v15  ;;  %v1503_v26 = vunpack.c.h.bf16 %v657_v12 }
 0x13d   : > { %v2466_v63 = vmul.f32 %v8748_v56, %v1452_v52  ;;  %v2477_v2 = vmul.f32 %v8748_v56, %v1463_v53 }
 0x13e   : > { %v2483_v0 = vmul.f32 %v8751_v57, %v1469_v58 }
 0x140   : > { %4185 = vmatmul.mubr.bf16.gmra.mrb[100].mxu1 %v3038_v50  ;;  %v2429_v50 = vmul.f32 %v8743_v55, %v1415_v39  ;;  %v2467_v39 = vmul.f32 %v8740_v54, %v1453_v25 }
 0x141   : > { %5598 = vmatmul.mubr.bf16.gmra.mrb[100].mxu0 %v3044_v22  ;;  %4194 = vmatprep.mubr.bf16.mxu1 %v3050_v35  ;;  %v624_v22 = vld [vmem:[%s8237_s7 + $0xa24] sm:$0xff]  ;;  %v3066_v35 = vpack.c.bf16 %v2417_v37, %v2406_v45  ;;  %v2473_v37 = vmul.f32 %v8743_v55, %v1459_v28 }
 0x142   : > { %5607 = vmatprep.mubr.bf16.mxu0 %v3056_v40  ;;  %v3072_v40 = vpack.c.bf16 %v2434_v48, %v2423_v47  ;;  %v1442_v61 = vunpack.c.h.bf16 %v624_v22  ;;  %v3078_v62 = vpack.c.bf16 %v2440_v51, %v2429_v50  ;;  %v1441_v13 = vunpack.c.l.bf16 %v624_v22  ;;  %v3570_v45 = vld [vmem:[%s11475_s1 + $0xa18] sm:$0xff] }
 0x143   : > { %v2484_v47 = vmul.f32 %v8743_v55, %v1470_v29  ;;  %v642_v48 = vld [vmem:[%s8237_s7 + $0xaa8] sm:$0xff]  ;;  %v648_v50 = vld [vmem:[%s8237_s7 + $0xad4] sm:$0xff]  ;;  %v3756_v51 = vpack.c.bf16 %v3570_v45, %v3568_v44  ;;  %v645_v22 = vld [vmem:[%s8237_s7 + $0xac0] sm:$0xff]  ;;  %v3094_v60 = vpack.c.bf16 %v2478_v42, %v2467_v39 }
 0x144   : > { %v2456_v7 = vmul.f32 %v8740_v54, %v1442_v61  ;;  %v1486_v41 = vunpack.c.h.bf16 %v648_v50  ;;  %v1481_v61 = vunpack.c.h.bf16 %v645_v22  ;;  %v1474_v10 = vunpack.c.l.bf16 %v642_v48  ;;  %v666_v39 = vld [vmem:[%s8237_s7 + $0xb58] sm:$0xff]  ;;  %v672_v42 = vld [vmem:[%s8237_s7 + $0xb84] sm:$0xff]  ;;  %v669_v44 = vld [vmem:[%s8237_s7 + $0xb70] sm:$0xff] }
 0x145   : > { %6257 = vmatprep.subr.bf16.mxu0 %v3756_v51  ;;  %v3100_v46 = vpack.c.bf16 %v2484_v47, %v2473_v37  ;;  %v1485_v11 = vunpack.c.l.bf16 %v648_v50  ;;  %v675_v45 = vld [vmem:[%s8237_s7 + $0xb9c] sm:$0xff]  ;;  %v1525_v53 = vunpack.c.h.bf16 %v669_v44 }
 0x146   : > { %v3083_v24 = vpack.c.bf16 %v2456_v7, %v2445_v6  ;;  %v2500_v4 = vmul.f32 %v8740_v54, %v1486_v41  ;;  %v2495_v6 = vmul.f32 %v8743_v55, %v1481_v61  ;;  %v2488_v28 = vmul.f32 %v8748_v56, %v1474_v10 }
 0x147   : > { %v2499_v29 = vmul.f32 %v8748_v56, %v1485_v11  ;;  %v2539_v61 = vmul.f32 %v8743_v55, %v1525_v53  ;;  %v1535_v10 = vunpack.c.l.bf16 %v675_v45 }
 0x148   : > { %4195 = vmatmul.mubr.bf16.gmra.mrb[104].mxu1 %v3049_v27  ;;  %v3089_v27 = vpack.c.bf16 %v2462_v9, %v2451_v8  ;;  %v654_v8 = vld [vmem:[%s8237_s7 + $0xb00] sm:$0xff]  ;;  %v660_v9 = vld [vmem:[%s8237_s7 + $0xb2c] sm:$0xff] }
 0x149   : > { %5608 = vmatmul.mubr.bf16.gmra.mrb[104].mxu0 %v3055_v31  ;;  %4204 = vmatprep.mubr.bf16.mxu1 %v3061_v32  ;;  %v2455_v31 = vmul.f32 %v8748_v56, %v1441_v13  ;;  %v2450_v32 = vmul.f32 %v8751_v57, %v1436_v17  ;;  %v663_v13 = vld [vmem:[%s8237_s7 + $0xb44] sm:$0xff]  ;;  %v1496_v37 = vunpack.c.l.bf16 %v654_v8  ;;  %v1507_v47 = vunpack.c.l.bf16 %v660_v9 }
 0x14a   : > { %5617 = vmatprep.mubr.bf16.mxu0 %v3067_v36  ;;  %v3378_v36 = vld [vmem:[%s11475_s1 + $0x418] sm:$0xff]  ;;  %v1513_v50 = vunpack.c.l.bf16 %v663_v13 }
 0x14b   : > { %v3660_v43 = vpack.c.bf16 %v3378_v36, %v3376_v34  ;;  %v3082_v21 = vpack.c.bf16 %v2455_v31, %v2444_v30  ;;  %v3088_v59 = vpack.c.bf16 %v2461_v33, %v2450_v32  ;;  %v2517_v34 = vmul.f32 %v8743_v55, %v1503_v26 }
 0x14c   : > { %v2510_v58 = vmul.f32 %v8748_v56, %v1496_v37 }
 0x14d   : > { %4844 = vmatprep.subr.bf16.mxu1 %v3660_v43  ;;  %v3104_v43 = vpack.c.bf16 %v2499_v29, %v2488_v28  ;;  %v690_v28 = vld [vmem:[%s8237_s7 + $0xc08] sm:$0xff]  ;;  %v696_v29 = vld [vmem:[%s8237_s7 + $0xc34] sm:$0xff] }
 0x150   : > { %4205 = vmatmul.mubr.bf16.gmra.mrb[108].mxu1 %v3060_v38  ;;  %v651_v38 = vld [vmem:[%s8237_s7 + $0xaec] sm:$0xff] }
 0x151   : > { %5618 = vmatmul.mubr.bf16.gmra.mrb[108].mxu0 %v3066_v35  ;;  %4214 = vmatprep.mubr.bf16.mxu1 %v3072_v40  ;;  %v1458_v35 = vunpack.c.l.bf16 %v633_v14  ;;  %v1475_v40 = vunpack.c.h.bf16 %v642_v48  ;;  %v3093_v14 = vpack.c.bf16 %v2477_v2, %v2466_v63  ;;  %v1491_v19 = vunpack.c.l.bf16 %v651_v38  ;;  %v678_v63 = vld [vmem:[%s8237_s7 + $0xbb0] sm:$0xff]  ;;  %v684_v2 = vld [vmem:[%s8237_s7 + $0xbdc] sm:$0xff] }
 0x152   : > { %5627 = vmatprep.mubr.bf16.mxu0 %v3078_v62  ;;  %v1492_v62 = vunpack.c.h.bf16 %v651_v38  ;;  %v1502_v48 = vunpack.c.l.bf16 %v657_v12  ;;  %v1530_v38 = vunpack.c.h.bf16 %v672_v42  ;;  %v1541_v11 = vunpack.c.h.bf16 %v678_v63 }
 0x153   : > { %v2472_v3 = vmul.f32 %v8751_v57, %v1458_v35  ;;  %v2489_v1 = vmul.f32 %v8740_v54, %v1475_v40  ;;  %v2505_v31 = vmul.f32 %v8751_v57, %v1491_v19  ;;  %v1536_v35 = vunpack.c.h.bf16 %v675_v45 }
 0x154   : > { %v2506_v7 = vmul.f32 %v8743_v55, %v1492_v62  ;;  %v2527_v40 = vmul.f32 %v8751_v57, %v1513_v50  ;;  %v1552_v12 = vunpack.c.h.bf16 %v684_v2  ;;  %v1574_v45 = vunpack.c.h.bf16 %v696_v29 }
 0x155   : > { %v3099_v15 = vpack.c.bf16 %v2483_v0, %v2472_v3  ;;  %v3105_v17 = vpack.c.bf16 %v2500_v4, %v2489_v1  ;;  %v2550_v62 = vmul.f32 %v8743_v55, %v1536_v35  ;;  %v1518_v3 = vunpack.c.l.bf16 %v666_v39  ;;  %v681_v1 = vld [vmem:[%s8237_s7 + $0xbc8] sm:$0xff]  ;;  %v687_v4 = vld [vmem:[%s8237_s7 + $0xbf4] sm:$0xff] }
 0x156   : > { %v3111_v25 = vpack.c.bf16 %v2506_v7, %v2495_v6  ;;  %v1529_v0 = vunpack.c.l.bf16 %v672_v42 }
 0x158   : > { %4215 = vmatmul.mubr.bf16.gmra.mrb[112].mxu1 %v3071_v16  ;;  %v1480_v16 = vunpack.c.l.bf16 %v645_v22  ;;  %v1519_v22 = vunpack.c.h.bf16 %v666_v39  ;;  %v1557_v39 = vunpack.c.l.bf16 %v687_v4 }
 0x159   : > { %5628 = vmatmul.mubr.bf16.gmra.mrb[112].mxu0 %v3077_v23  ;;  %4224 = vmatprep.mubr.bf16.mxu1 %v3083_v24  ;;  %v1497_v23 = vunpack.c.h.bf16 %v654_v8  ;;  %v1508_v24 = vunpack.c.h.bf16 %v660_v9  ;;  %v1524_v8 = vunpack.c.l.bf16 %v669_v44  ;;  %v1563_v44 = vunpack.c.h.bf16 %v690_v28 }
 0x15a   : > { %5637 = vmatprep.mubr.bf16.mxu0 %v3089_v27  ;;  %v1514_v27 = vunpack.c.h.bf16 %v663_v13  ;;  %v2494_v30 = vmul.f32 %v8751_v57, %v1480_v16  ;;  %v2533_v41 = vmul.f32 %v8740_v54, %v1519_v22  ;;  %v3133_v13 = vpack.c.bf16 %v2550_v62, %v2539_v61 }
 0x15b   : > { %v2511_v32 = vmul.f32 %v8740_v54, %v1497_v23  ;;  %v2522_v33 = vmul.f32 %v8740_v54, %v1508_v24  ;;  %v2532_v16 = vmul.f32 %v8748_v56, %v1518_v3  ;;  %v2538_v19 = vmul.f32 %v8751_v57, %v1524_v8 }
 0x15c   : > { %v2528_v36 = vmul.f32 %v8743_v55, %v1514_v27  ;;  %v3110_v51 = vpack.c.bf16 %v2505_v31, %v2494_v30  ;;  %v2549_v23 = vmul.f32 %v8751_v57, %v1535_v10  ;;  %v2555_v24 = vmul.f32 %v8740_v54, %v1541_v11  ;;  %v693_v31 = vld [vmem:[%s8237_s7 + $0xc20] sm:$0xff] }
 0x15d   : > { %v2571_v22 = vmul.f32 %v8751_v57, %v1557_v39 }
 0x15e   : > { %v3122_v52 = vpack.c.bf16 %v2528_v36, %v2517_v34  ;;  %v1551_v34 = vunpack.c.l.bf16 %v684_v2  ;;  %v1546_v36 = vunpack.c.l.bf16 %v681_v1  ;;  %v3132_v42 = vpack.c.bf16 %v2549_v23, %v2538_v19  ;;  %v717_v23 = vld [vmem:[%s8237_s7 + $0xcd0] sm:$0xff] }
 0x160   : > { %4225 = vmatmul.mubr.bf16.gmra.mrb[116].mxu1 %v3082_v21  ;;  %v3116_v21 = vpack.c.bf16 %v2522_v33, %v2511_v32  ;;  %v699_v32 = vld [vmem:[%s8237_s7 + $0xc4c] sm:$0xff]  ;;  %v1540_v33 = vunpack.c.l.bf16 %v678_v63  ;;  %v1568_v63 = vunpack.c.l.bf16 %v693_v31 }
 0x161   : > { %5638 = vmatmul.mubr.bf16.gmra.mrb[116].mxu0 %v3088_v59  ;;  %4234 = vmatprep.mubr.bf16.mxu1 %v3094_v60  ;;  %v2521_v59 = vmul.f32 %v8748_v56, %v1507_v47  ;;  %v2516_v60 = vmul.f32 %v8751_v57, %v1502_v48  ;;  %v1569_v47 = vunpack.c.h.bf16 %v693_v31  ;;  %v1580_v48 = vunpack.c.h.bf16 %v699_v32 }
 0x162   : > { %5647 = vmatprep.mubr.bf16.mxu0 %v3100_v46  ;;  %v2544_v46 = vmul.f32 %v8740_v54, %v1530_v38  ;;  %v2554_v50 = vmul.f32 %v8748_v56, %v1540_v33  ;;  %v2577_v38 = vmul.f32 %v8740_v54, %v1563_v44  ;;  %v1579_v3 = vunpack.c.l.bf16 %v699_v32 }
 0x163   : > { %v3115_v6 = vpack.c.bf16 %v2521_v59, %v2510_v58  ;;  %v3121_v7 = vpack.c.bf16 %v2527_v40, %v2516_v60  ;;  %v2583_v53 = vmul.f32 %v8743_v55, %v1569_v47  ;;  %v2594_v35 = vmul.f32 %v8743_v55, %v1580_v48  ;;  %v702_v58 = vld [vmem:[%s8237_s7 + $0xc60] sm:$0xff]  ;;  %v708_v59 = vld [vmem:[%s8237_s7 + $0xc8c] sm:$0xff] }
 0x164   : > { %v3127_v9 = vpack.c.bf16 %v2544_v46, %v2533_v41  ;;  %v1562_v60 = vunpack.c.l.bf16 %v690_v28  ;;  %v1573_v40 = vunpack.c.l.bf16 %v696_v29  ;;  %v705_v41 = vld [vmem:[%s8237_s7 + $0xc78] sm:$0xff]  ;;  %v711_v46 = vld [vmem:[%s8237_s7 + $0xca4] sm:$0xff]  ;;  %v2582_v10 = vmul.f32 %v8751_v57, %v1568_v63 }
 0x165   : > { %v2593_v11 = vmul.f32 %v8751_v57, %v1579_v3  ;;  %v1601_v28 = vunpack.c.l.bf16 %v711_v46 }
 0x166   : > { %v2576_v8 = vmul.f32 %v8748_v56, %v1562_v60 }
 0x167   : > { %v3154_v29 = vpack.c.bf16 %v2593_v11, %v2582_v10  ;;  %v2615_v44 = vmul.f32 %v8751_v57, %v1601_v28  ;;  %v741_v11 = vld [vmem:[%s8237_s7 + $0xd80] sm:$0xff]  ;;  %v257_v28 = vld [vmem:[%s11474_s0 + $0x8] sm:$0x7] }
 0x168   : > { %4235 = vmatmul.mubr.bf16.gmra.mrb[120].mxu1 %v3093_v14  ;;  %v1547_v14 = vunpack.c.h.bf16 %v681_v1  ;;  %v1596_v1 = vunpack.c.h.bf16 %v708_v59 }
 0x169   : > { %5648 = vmatmul.mubr.bf16.gmra.mrb[120].mxu0 %v3099_v15  ;;  %4244 = vmatprep.mubr.bf16.mxu1 %v3105_v17  ;;  %v1558_v15 = vunpack.c.h.bf16 %v687_v4  ;;  %v2543_v17 = vmul.f32 %v8748_v56, %v1529_v0  ;;  %v1585_v0 = vunpack.c.h.bf16 %v702_v58  ;;  %v3155_v4 = vpack.c.bf16 %v2594_v35, %v2583_v53 }
 0x16a   : > { %5657 = vmatprep.mubr.bf16.mxu0 %v3111_v25  ;;  %v2566_v25 = vmul.f32 %v8740_v54, %v1552_v12  ;;  %v2561_v26 = vmul.f32 %v8743_v55, %v1547_v14 }
 0x16b   : > { %v2572_v27 = vmul.f32 %v8743_v55, %v1558_v15  ;;  %v3126_v30 = vpack.c.bf16 %v2543_v17, %v2532_v16  ;;  %v2599_v12 = vmul.f32 %v8740_v54, %v1585_v0  ;;  %v714_v16 = vld [vmem:[%s8237_s7 + $0xcb8] sm:$0xff]  ;;  %v720_v17 = vld [vmem:[%s8237_s7 + $0xce4] sm:$0xff] }
 0x16c   : > { %v1607_v31 = vunpack.c.h.bf16 %v714_v16  ;;  %v1618_v32 = vunpack.c.h.bf16 %v720_v17 }
 0x16d   : > { %v3144_v37 = vpack.c.bf16 %v2572_v27, %v2561_v26  ;;  %v1595_v26 = vunpack.c.l.bf16 %v708_v59  ;;  %v1590_v27 = vunpack.c.l.bf16 %v705_v41 }
 0x170   : > { %4245 = vmatmul.mubr.bf16.gmra.mrb[124].mxu1 %v3104_v43  ;;  %v3138_v43 = vpack.c.bf16 %v2566_v25, %v2555_v24  ;;  %v723_v24 = vld [vmem:[%s8237_s7 + $0xcfc] sm:$0xff]  ;;  %v1584_v25 = vunpack.c.l.bf16 %v702_v58  ;;  %v1612_v58 = vunpack.c.l.bf16 %v717_v23 }
 0x171   : > { %5658 = vmatmul.mubr.bf16.gmra.mrb[124].mxu0 %v3110_v51  ;;  %4254 = vmatprep.mubr.bf16.mxu1 %v3116_v21  ;;  %v2565_v51 = vmul.f32 %v8748_v56, %v1551_v34  ;;  %v2560_v21 = vmul.f32 %v8751_v57, %v1546_v36  ;;  %v1613_v34 = vunpack.c.h.bf16 %v717_v23  ;;  %v1624_v36 = vunpack.c.h.bf16 %v723_v24 }
 0x172   : > { %5667 = vmatprep.mubr.bf16.mxu0 %v3122_v52  ;;  %v2588_v52 = vmul.f32 %v8740_v54, %v1574_v45  ;;  %v2598_v39 = vmul.f32 %v8748_v56, %v1584_v25  ;;  %v2621_v45 = vmul.f32 %v8740_v54, %v1607_v31  ;;  %v1623_v60 = vunpack.c.l.bf16 %v723_v24 }
 0x173   : > { %v3137_v61 = vpack.c.bf16 %v2565_v51, %v2554_v50  ;;  %v3143_v62 = vpack.c.bf16 %v2571_v22, %v2560_v21  ;;  %v2627_v47 = vmul.f32 %v8743_v55, %v1613_v34  ;;  %v2638_v48 = vmul.f32 %v8743_v55, %v1624_v36  ;;  %v726_v50 = vld [vmem:[%s8237_s7 + $0xd10] sm:$0xff]  ;;  %v732_v51 = vld [vmem:[%s8237_s7 + $0xd3c] sm:$0xff] }
 0x174   : > { %v3149_v2 = vpack.c.bf16 %v2588_v52, %v2577_v38  ;;  %v1606_v21 = vunpack.c.l.bf16 %v714_v16  ;;  %v1617_v22 = vunpack.c.l.bf16 %v720_v17  ;;  %v729_v38 = vld [vmem:[%s8237_s7 + $0xd28] sm:$0xff]  ;;  %v735_v52 = vld [vmem:[%s8237_s7 + $0xd54] sm:$0xff]  ;;  %v2626_v3 = vmul.f32 %v8751_v57, %v1612_v58 }
 0x175   : > { %v2637_v0 = vmul.f32 %v8751_v57, %v1623_v60  ;;  %v1645_v16 = vunpack.c.l.bf16 %v735_v52 }
 0x176   : > { %v2620_v63 = vmul.f32 %v8748_v56, %v1606_v21  ;;  %v1656_v21 = vunpack.c.l.bf16 %v741_v11 }
 0x177   : > { %v3176_v17 = vpack.c.bf16 %v2637_v0, %v2626_v3  ;;  %v762_v3 = vld [vmem:[%s8237_s7 + $0xe18] sm:$0xff]  ;;  %v768_v0 = vld [vmem:[%s8237_s7 + $0xe44] sm:$0xff] }
 0x178   : > { %4255 = vmatmul.mubr.bf16.gmra.mrb[128].mxu1 %v3115_v6  ;;  %v1591_v6 = vunpack.c.h.bf16 %v705_v41  ;;  %v1640_v41 = vunpack.c.h.bf16 %v732_v51 }
 0x179   : > { %5668 = vmatmul.mubr.bf16.gmra.mrb[128].mxu0 %v3121_v7  ;;  %4264 = vmatprep.mubr.bf16.mxu1 %v3127_v9  ;;  %v1602_v7 = vunpack.c.h.bf16 %v711_v46  ;;  %v2587_v9 = vmul.f32 %v8748_v56, %v1573_v40  ;;  %v1629_v40 = vunpack.c.h.bf16 %v726_v50  ;;  %v3177_v46 = vpack.c.bf16 %v2638_v48, %v2627_v47  ;;  %v753_v47 = vld [vmem:[%s8237_s7 + $0xdd8] sm:$0xff]  ;;  %v759_v48 = vld [vmem:[%s8237_s7 + $0xe04] sm:$0xff] }
 0x17a   : > { %5677 = vmatprep.mubr.bf16.mxu0 %v3133_v13  ;;  %v2610_v13 = vmul.f32 %v8740_v54, %v1596_v1  ;;  %v2605_v14 = vmul.f32 %v8743_v55, %v1591_v6  ;;  %v1679_v58 = vunpack.c.h.bf16 %v753_v47 }
 0x17b   : > { %v2616_v15 = vmul.f32 %v8743_v55, %v1602_v7  ;;  %v3148_v19 = vpack.c.bf16 %v2587_v9, %v2576_v8  ;;  %v2643_v1 = vmul.f32 %v8740_v54, %v1629_v40  ;;  %v738_v8 = vld [vmem:[%s8237_s7 + $0xd68] sm:$0xff]  ;;  %v744_v9 = vld [vmem:[%s8237_s7 + $0xd94] sm:$0xff] }
 0x17c   : > { %v1651_v23 = vunpack.c.h.bf16 %v738_v8  ;;  %v1662_v24 = vunpack.c.h.bf16 %v744_v9 }
 0x17d   : > { %v3166_v33 = vpack.c.bf16 %v2616_v15, %v2605_v14  ;;  %v1639_v14 = vunpack.c.l.bf16 %v732_v51  ;;  %v1634_v15 = vunpack.c.l.bf16 %v729_v38 }
 0x17e   : > { %v2676_v34 = vmul.f32 %v8740_v54, %v1662_v24 }
 0x17f   : > { %v2648_v31 = vmul.f32 %v8751_v57, %v1634_v15 }
 0x180   : > { %4265 = vmatmul.mubr.bf16.gmra.mrb[132].mxu1 %v3126_v30  ;;  %v3160_v30 = vpack.c.bf16 %v2610_v13, %v2599_v12  ;;  %v747_v12 = vld [vmem:[%s8237_s7 + $0xdac] sm:$0xff]  ;;  %v1628_v13 = vunpack.c.l.bf16 %v726_v50 }
 0x181   : > { %5678 = vmatmul.mubr.bf16.gmra.mrb[132].mxu0 %v3132_v42  ;;  %4274 = vmatprep.mubr.bf16.mxu1 %v3138_v43  ;;  %v2609_v42 = vmul.f32 %v8748_v56, %v1595_v26  ;;  %v2604_v43 = vmul.f32 %v8751_v57, %v1590_v27  ;;  %v1657_v26 = vunpack.c.h.bf16 %v741_v11  ;;  %v1668_v27 = vunpack.c.h.bf16 %v747_v12 }
 0x182   : > { %5687 = vmatprep.mubr.bf16.mxu0 %v3144_v37  ;;  %v2632_v37 = vmul.f32 %v8740_v54, %v1618_v32  ;;  %v2659_v32 = vmul.f32 %v8751_v57, %v1645_v16 }
 0x183   : > { %v3159_v53 = vpack.c.bf16 %v2609_v42, %v2598_v39  ;;  %v3165_v35 = vpack.c.bf16 %v2615_v44, %v2604_v43  ;;  %v2671_v36 = vmul.f32 %v8743_v55, %v1657_v26  ;;  %v2682_v39 = vmul.f32 %v8743_v55, %v1668_v27  ;;  %v750_v42 = vld [vmem:[%s8237_s7 + $0xdc0] sm:$0xff]  ;;  %v756_v43 = vld [vmem:[%s8237_s7 + $0xdec] sm:$0xff] }
 0x184   : > { %v3171_v59 = vpack.c.bf16 %v2632_v37, %v2621_v45  ;;  %v7042_v44 = vmul.f32 -1.442695, %v257_v28  ;;  %v1650_v45 = vunpack.c.l.bf16 %v738_v8  ;;  %v1661_v37 = vunpack.c.l.bf16 %v744_v9 }
 0x185   : > { %v3187_v51 = vpack.c.bf16 %v2659_v32, %v2648_v31  ;;  %v1683_v8 = vunpack.c.l.bf16 %v756_v43  ;;  %v1678_v9 = vunpack.c.l.bf16 %v753_v47  ;;  %v774_v31 = vld [vmem:[%s8237_s7 + $0xe70] sm:$0xff]  ;;  %v780_v32 = vld [vmem:[%s8237_s7 + $0xe9c] sm:$0xff] }
 0x186   : > { %8034 = vpow2.f32 %v7042_v44  ;;  %v2664_v60 = vmul.f32 %v8748_v56, %v1650_v45  ;;  %v2675_v40 = vmul.f32 %v8748_v56, %v1661_v37 }
 0x187   : > { %v2692_v24 = vmul.f32 %v8751_v57, %v1678_v9 }
 0x188   : > { %4275 = vmatmul.mubr.bf16.gmra.mrb[136].mxu1 %v3137_v61  ;;  %v1635_v61 = vunpack.c.h.bf16 %v729_v38  ;;  %v1667_v38 = vunpack.c.l.bf16 %v747_v12 }
 0x189   : > { %5688 = vmatmul.mubr.bf16.gmra.mrb[136].mxu0 %v3143_v62  ;;  %4284 = vmatprep.mubr.bf16.mxu1 %v3149_v2  ;;  %v1646_v62 = vunpack.c.h.bf16 %v735_v52  ;;  %v2631_v2 = vmul.f32 %v8748_v56, %v1617_v22  ;;  %v1673_v52 = vunpack.c.h.bf16 %v750_v42 }
 0x18a   : > { %5697 = vmatprep.mubr.bf16.mxu0 %v3155_v4  ;;  %v2654_v4 = vmul.f32 %v8740_v54, %v1640_v41  ;;  %v2649_v6 = vmul.f32 %v8743_v55, %v1635_v61  ;;  %v2670_v41 = vmul.f32 %v8751_v57, %v1656_v21 }
 0x18b   : > { %v2660_v7 = vmul.f32 %v8743_v55, %v1646_v62  ;;  %v3170_v10 = vpack.c.bf16 %v2631_v2, %v2620_v63  ;;  %v2687_v61 = vmul.f32 %v8740_v54, %v1673_v52  ;;  %v2693_v63 = vmul.f32 %v8743_v55, %v1679_v58 }
 0x18d   : > { %v3188_v25 = vpack.c.bf16 %v2660_v7, %v2649_v6  ;;  %v771_v6 = vld [vmem:[%s8237_s7 + $0xe5c] sm:$0xff]  ;;  %v1672_v7 = vunpack.c.l.bf16 %v750_v42 }
 0x18e   : > { %v1711_v47 = vunpack.c.l.bf16 %v771_v6 }
 0x190   : > { %4285 = vmatmul.mubr.bf16.gmra.mrb[140].mxu1 %v3148_v19  ;;  %v3182_v19 = vpack.c.bf16 %v2654_v4, %v2643_v1  ;;  %v3192_v1 = vpack.c.bf16 %v2675_v40, %v2664_v60  ;;  %v765_v4 = vld [vmem:[%s8237_s7 + $0xe30] sm:$0xff]  ;;  %v8035_v26 = vpop.eup %8034 }
 0x191   : > { %5698 = vmatmul.mubr.bf16.gmra.mrb[140].mxu0 %v3154_v29  ;;  %4294 = vmatprep.mubr.bf16.mxu1 %v3160_v30  ;;  %v2642_v29 = vmul.f32 %v8748_v56, %v1628_v13  ;;  %v2653_v30 = vmul.f32 %v8748_v56, %v1639_v14  ;;  %v1695_v13 = vunpack.c.h.bf16 %v762_v3  ;;  %v1706_v14 = vunpack.c.h.bf16 %v768_v0 }
 0x192   : > { %5707 = vmatprep.mubr.bf16.mxu0 %v3166_v33  ;;  %v2665_v33 = vmul.f32 %v8740_v54, %v1651_v23  ;;  %v1701_v16 = vunpack.c.h.bf16 %v765_v4  ;;  %v2697_v23 = vmul.f32 %v8748_v56, %v1683_v8  ;;  %v265_v42 = vadd.f32 1.0, %v8035_v26 }
 0x193   : > { %v3181_v50 = vpack.c.bf16 %v2653_v30, %v2642_v29  ;;  %v2709_v27 = vmul.f32 %v8740_v54, %v1695_v13  ;;  %v2720_v28 = vmul.f32 %v8740_v54, %v1706_v14  ;;  %v1700_v45 = vunpack.c.l.bf16 %v765_v4 }
 0x194   : > { %v3193_v22 = vpack.c.bf16 %v2676_v34, %v2665_v33  ;;  %v2715_v29 = vmul.f32 %v8743_v55, %v1701_v16  ;;  %v1694_v33 = vunpack.c.l.bf16 %v762_v3  ;;  %v1705_v34 = vunpack.c.l.bf16 %v768_v0  ;;  %v277_v16 = vld [vmem:[%s8237_s7 + $0x34] sm:$0xff] }
 0x195   : > { %v3215_v37 = vpack.c.bf16 %v2720_v28, %v2709_v27  ;;  %8036 = vrcp.f32 %v265_v42  ;;  %v1765_v13 = vsub.s32 3, %v8636_v5 }
 0x196   : > { %v2719_v52 = vmul.f32 %v8748_v56, %v1705_v34 }
 0x198   : > { %4295 = vmatmul.mubr.bf16.gmra.mrb[144].mxu1 %v3159_v53  ;;  %v1684_v53 = vunpack.c.h.bf16 %v756_v43 }
 0x199   : > { %5708 = vmatmul.mubr.bf16.gmra.mrb[144].mxu0 %v3165_v35  ;;  %4304 = vmatprep.mubr.bf16.mxu1 %v3171_v59  ;;  %v3199_v35 = vpack.c.bf16 %v2682_v39, %v2671_v36  ;;  %v1690_v59 = vunpack.c.h.bf16 %v759_v48  ;;  %v777_v36 = vld [vmem:[%s8237_s7 + $0xe88] sm:$0xff]  ;;  %v783_v39 = vld [vmem:[%s8237_s7 + $0xeb4] sm:$0xff] }
 0x19a   : > { %5717 = vmatprep.mubr.bf16.mxu0 %v3177_v46  ;;  %v2681_v46 = vmul.f32 %v8751_v57, %v1667_v38  ;;  %v2698_v62 = vmul.f32 %v8740_v54, %v1684_v53  ;;  %v1723_v21 = vunpack.c.h.bf16 %v777_v36  ;;  %v2708_v38 = vmul.f32 %v8748_v56, %v1694_v33 }
 0x19b   : > { %v2704_v2 = vmul.f32 %v8743_v55, %v1690_v59  ;;  %v2714_v53 = vmul.f32 %v8751_v57, %v1700_v45  ;;  %v1733_v3 = vunpack.c.l.bf16 %v783_v39  ;;  %v283_v45 = vld [vmem:[%s8237_s7 + $0x60] sm:$0xff] }
 0x19c   : > { %v3198_v11 = vpack.c.bf16 %v2681_v46, %v2670_v41  ;;  %v3204_v12 = vpack.c.bf16 %v2698_v62, %v2687_v61  ;;  %v2737_v60 = vmul.f32 %v8743_v55, %v1723_v21  ;;  %v786_v41 = vld [vmem:[%s8237_s7 + $0xec8] sm:$0xff]  ;;  %v3214_v46 = vpack.c.bf16 %v2719_v52, %v2708_v38  ;;  %v789_v61 = vld [vmem:[%s8237_s7 + $0xee0] sm:$0xff] }
 0x19d   : > { %v3210_v15 = vpack.c.bf16 %v2704_v2, %v2693_v63  ;;  %v1716_v62 = vunpack.c.l.bf16 %v774_v31  ;;  %v1727_v63 = vunpack.c.l.bf16 %v780_v32  ;;  %v1722_v2 = vunpack.c.l.bf16 %v777_v36  ;;  %v292_v21 = vld [vmem:[%s8237_s7 + $0xa4] sm:$0xff] }
 0x19e   : > { %v1739_v4 = vunpack.c.h.bf16 %v786_v41  ;;  %v1738_v26 = vunpack.c.l.bf16 %v786_v41  ;;  %v1744_v27 = vunpack.c.l.bf16 %v789_v61  ;;  %v1761_v36 = vsub.s32 2, %v8636_v5 }
 0x19f   : > { %v2730_v8 = vmul.f32 %v8748_v56, %v1716_v62  ;;  %v2741_v9 = vmul.f32 %v8748_v56, %v1727_v63  ;;  %v3375_v62 = vld [vmem:[%s11475_s1 + $0x400] sm:$0xff]  ;;  %v9814_v63 = vld [vmem:[%s8237_s7 + $0xb8] sm:$0xff] }
 0x1a0   : > { %4305 = vmatmul.mubr.bf16.gmra.mrb[148].mxu1 %v3170_v10  ;;  %v1689_v10 = vunpack.c.l.bf16 %v759_v48  ;;  %v1717_v48 = vunpack.c.h.bf16 %v774_v31  ;;  %v2752_v34 = vmul.f32 %v8748_v56, %v1738_v26 }
 0x1a1   : > { %5718 = vmatmul.mubr.bf16.gmra.mrb[148].mxu0 %v3176_v17  ;;  %4314 = vmatprep.mubr.bf16.mxu1 %v3182_v19  ;;  %v1712_v17 = vunpack.c.h.bf16 %v771_v6  ;;  %v2686_v19 = vmul.f32 %v8748_v56, %v1672_v7  ;;  %v1745_v7 = vunpack.c.h.bf16 %v789_v61 }
 0x1a2   : > { %5727 = vmatprep.mubr.bf16.mxu0 %v3188_v25  ;;  %v2703_v25 = vmul.f32 %v8751_v57, %v1689_v10  ;;  %v2731_v58 = vmul.f32 %v8740_v54, %v1717_v48  ;;  %v2736_v10 = vmul.f32 %v8751_v57, %v1722_v2  ;;  %v3377_v2 = vld [vmem:[%s11475_s1 + $0x410] sm:$0xff] }
 0x1a3   : > { %v2726_v30 = vmul.f32 %v8743_v55, %v1712_v17  ;;  %v3203_v43 = vpack.c.bf16 %v2697_v23, %v2686_v19  ;;  %v2759_v14 = vmul.f32 %v8743_v55, %v1745_v7  ;;  %v9773_v17 = vpop.eup %8036  ;;  %v274_v19 = vld [vmem:[%s8237_s7 + $0x20] sm:$0xff]  ;;  %v280_v23 = vld [vmem:[%s8237_s7 + $0x4c] sm:$0xff] }
 0x1a4   : > { %v3209_v44 = vpack.c.bf16 %v2703_v25, %v2692_v24  ;;  %v3225_v24 = vpack.c.bf16 %v2741_v9, %v2730_v8  ;;  %v9783_v33 = vrot.slane %v9773_v17, %v1757_v18  ;;  %v9795_v56 = vrot.slane %v9773_v17, %v1753_v20  ;;  %v3569_v7 = vld [vmem:[%s11475_s1 + $0xa10] sm:$0xff] }
 0x1a5   : > { %v3243_v31 = vpack.c.bf16 %v2759_v14, %v2759_v14  ;;  %v800_v52 = vunpack.c.l.bf16 %v274_v19  ;;  %v817_v20 = vunpack.c.h.bf16 %v283_v45 }
 0x1a8   : > { %4315 = vmatmul.mubr.bf16.gmra.mrb[152].mxu1 %v3181_v50  ;;  %v1728_v50 = vunpack.c.h.bf16 %v780_v32  ;;  %v801_v32 = vunpack.c.h.bf16 %v274_v19  ;;  %v3380_v19 = vld [vmem:[%s11475_s1 + $0x428] sm:$0xff] }
 0x1a9   : > { %5728 = vmatmul.mubr.bf16.gmra.mrb[152].mxu0 %v3187_v51  ;;  %4324 = vmatprep.mubr.bf16.mxu1 %v3193_v22  ;;  %v3221_v51 = vpack.c.bf16 %v2726_v30, %v2715_v29  ;;  %v1734_v22 = vunpack.c.h.bf16 %v783_v39  ;;  %v806_v30 = vunpack.c.h.bf16 %v277_v16  ;;  %v2758_v39 = vmul.f32 %v8751_v57, %v1744_v27 }
 0x1aa   : > { %5737 = vmatprep.mubr.bf16.mxu0 %v3199_v35  ;;  %v2725_v35 = vmul.f32 %v8751_v57, %v1711_v47  ;;  %v2742_v59 = vmul.f32 %v8740_v54, %v1728_v50  ;;  %v3236_v47 = vpack.c.bf16 %v2752_v34, %v2752_v34  ;;  %v805_v50 = vunpack.c.l.bf16 %v277_v16  ;;  %v3381_v34 = vld [vmem:[%s11475_s1 + $0x430] sm:$0xff] }
 0x1ab   : > { %v2748_v40 = vmul.f32 %v8743_v55, %v1734_v22  ;;  %v812_v55 = vunpack.c.h.bf16 %v280_v23  ;;  %v3242_v22 = vpack.c.bf16 %v2758_v39, %v2758_v39  ;;  %v839_v16 = vunpack.c.h.bf16 %v9814_v63  ;;  %v3384_v39 = vld [vmem:[%s11475_s1 + $0x448] sm:$0xff] }
 0x1ac   : > { %v3220_v0 = vpack.c.bf16 %v2725_v35, %v2714_v53  ;;  %v811_v53 = vunpack.c.l.bf16 %v280_v23  ;;  %v3382_v23 = vld [vmem:[%s11475_s1 + $0x438] sm:$0xff] }
 0x1ad   : > { %v3232_v6 = vpack.c.bf16 %v2748_v40, %v2737_v60  ;;  %v1826_v18 = vmul.f32 %v9783_v33, %v812_v55  ;;  %v834_v60 = vunpack.c.h.bf16 %v292_v21  ;;  %v3379_v55 = vld [vmem:[%s11475_s1 + $0x420] sm:$0xff] }
 0x1ae   : > { %v1825_v61 = vmul.f32 %v9795_v56, %v811_v53 }
 0x1af   : > { %v1848_v9 = vmul.f32 %v9783_v33, %v834_v60  ;;  %v9893_v60 = vld [vmem:[%s8237_s7 + $0x128] sm:$0xff] }
 0x1b0   : > { %4325 = vmatmul.mubr.bf16.gmra.mrb[156].mxu1 %v3192_v1  ;;  %v3226_v1 = vpack.c.bf16 %v2742_v59, %v2731_v58 }
 0x1b1   : > { %5738 = vmatmul.mubr.bf16.gmra.mrb[156].mxu0 %v3198_v11  ;;  %4334 = vmatprep.mubr.bf16.mxu1 %v3204_v12  ;;  %v2747_v11 = vmul.f32 %v8751_v57, %v1733_v3  ;;  %v2753_v12 = vmul.f32 %v8740_v54, %v1739_v4  ;;  %v9778_v54 = vrot.slane %v8731_v49, %v1765_v13  ;;  %v9825_v4 = vld [vmem:[%s8237_s7 + $0xd0] sm:$0xff] }
 0x1b2   : > { %5747 = vmatprep.mubr.bf16.mxu0 %v3210_v15  ;;  %v271_v15 = vld [vmem:[%s8237_s7 + $0x8] sm:$0xff]  ;;  %v9802_v57 = vrot.slane %v8731_v49, %v1761_v36  ;;  %v845_v27 = vunpack.c.h.bf16 %v9825_v4 }
 0x1b3   : > { %v3231_v25 = vpack.c.bf16 %v2747_v11, %v2736_v10  ;;  %v3237_v28 = vpack.c.bf16 %v2753_v12, %v2753_v12  ;;  %v795_v29 = vunpack.c.h.bf16 %v271_v15  ;;  %v794_v48 = vunpack.c.l.bf16 %v271_v15  ;;  %v9836_v12 = vld [vmem:[%s8237_s7 + $0xfc] sm:$0xff] }
 0x1b4   : > { %v1819_v41 = vmul.f32 %v9802_v57, %v805_v50  ;;  %v1831_v3 = vmul.f32 %v9778_v54, %v817_v20  ;;  %v816_v10 = vunpack.c.l.bf16 %v283_v45  ;;  %v833_v15 = vunpack.c.l.bf16 %v292_v21  ;;  %v3386_v45 = vld [vmem:[%s11475_s1 + $0x458] sm:$0xff] }
 0x1b5   : > { %v1809_v42 = vmul.f32 %v9778_v54, %v795_v29  ;;  %v1808_v40 = vmul.f32 %v9802_v57, %v794_v48  ;;  %v3574_v29 = vld [vmem:[%s11475_s1 + $0xa38] sm:$0xff]  ;;  %v1859_v53 = vmul.f32 %v9783_v33, %v845_v27  ;;  %v3661_v20 = vpack.c.bf16 %v3381_v34, %v3379_v55 }
 0x1b6   : > { %v1847_v50 = vmul.f32 %v9795_v56, %v833_v15 }
 0x1b7   : > { %v2765_v13 = vpack.c.bf16 %v1819_v41, %v1808_v40  ;;  %v9896_v40 = vld [vmem:[%s8237_s7 + $0x154] sm:$0xff]  ;;  %v3664_v41 = vpack.c.bf16 %v3386_v45, %v3384_v39 }
 0x1b8   : > { %4335 = vmatmul.mubr.bf16.gmra.mrb[160].mxu1 %v3203_v43  ;;  %v1820_v43 = vmul.f32 %v9778_v54, %v806_v30 }
 0x1b9   : > { %5748 = vmatmul.mubr.bf16.gmra.mrb[160].mxu0 %v3209_v44  ;;  %4344 = vmatprep.mubr.bf16.mxu1 %v3215_v37  ;;  %v1815_v44 = vmul.f32 %v9783_v33, %v801_v32  ;;  %v289_v37 = vld [vmem:[%s8237_s7 + $0x8c] sm:$0xff]  ;;  %v856_v32 = vunpack.c.h.bf16 %v9836_v12 }
 0x1ba   : > { %5757 = vmatprep.mubr.bf16.mxu0 %v3221_v51  ;;  %v286_v51 = vld [vmem:[%s8237_s7 + $0x78] sm:$0xff]  ;;  %v2766_v38 = vpack.c.bf16 %v1820_v43, %v1809_v42  ;;  %v828_v58 = vunpack.c.h.bf16 %v289_v37  ;;  %v827_v11 = vunpack.c.l.bf16 %v289_v37  ;;  %v1830_v43 = vmul.f32 %v9802_v57, %v816_v10  ;;  %v3571_v37 = vld [vmem:[%s11475_s1 + $0xa20] sm:$0xff] }
 0x1bb   : > { %v2772_v35 = vpack.c.bf16 %v1826_v18, %v1815_v44  ;;  %v823_v59 = vunpack.c.h.bf16 %v286_v51  ;;  %v822_v14 = vunpack.c.l.bf16 %v286_v51  ;;  %v3662_v18 = vpack.c.bf16 %v3382_v23, %v3380_v19  ;;  %v3390_v10 = vld [vmem:[%s11475_s1 + $0x478] sm:$0xff] }
 0x1bc   : > { %v1841_v44 = vmul.f32 %v9802_v57, %v827_v11  ;;  %v1853_v51 = vmul.f32 %v9778_v54, %v839_v16  ;;  %v3575_v11 = vld [vmem:[%s11475_s1 + $0xa40] sm:$0xff]  ;;  %v867_v16 = vunpack.c.h.bf16 %v9893_v60  ;;  %v878_v19 = vunpack.c.h.bf16 %v9896_v40 }
 0x1bd   : > { %v1837_v8 = vmul.f32 %v9783_v33, %v823_v59  ;;  %v1836_v48 = vmul.f32 %v9795_v56, %v822_v14  ;;  %v9890_v59 = vld [vmem:[%s8237_s7 + $0x13c] sm:$0xff] }
 0x1be   : > { %v1881_v39 = vmul.f32 %v9783_v33, %v867_v16 }
 0x1bf   : > { %v2783_v42 = vpack.c.bf16 %v1848_v9, %v1837_v8  ;;  %v844_v9 = vunpack.c.l.bf16 %v9825_v4  ;;  %v872_v4 = vunpack.c.h.bf16 %v9890_v59 }
 0x1c0   : > { %4345 = vmatmul.mubr.bf16.gmra.mrb[164].mxu1 %v3214_v46  ;;  %v1814_v46 = vmul.f32 %v9795_v56, %v800_v52 }
 0x1c1   : > { %5758 = vmatmul.mubr.bf16.gmra.mrb[164].mxu0 %v3220_v0  ;;  %4354 = vmatprep.mubr.bf16.mxu1 %v3226_v1  ;;  %v1842_v0 = vmul.f32 %v9778_v54, %v828_v58  ;;  %v9822_v1 = vld [vmem:[%s8237_s7 + $0xe4] sm:$0xff]  ;;  %v1870_v58 = vmul.f32 %v9783_v33, %v856_v32  ;;  %v1886_v34 = vmul.f32 %v9778_v54, %v872_v4 }
 0x1c2   : > { %5767 = vmatprep.mubr.bf16.mxu0 %v3232_v6  ;;  %v3567_v6 = vld [vmem:[%s11475_s1 + $0xa00] sm:$0xff]  ;;  %v850_v26 = vunpack.c.h.bf16 %v9822_v1  ;;  %v849_v8 = vunpack.c.l.bf16 %v9822_v1 }
 0x1c3   : > { %v3755_v30 = vpack.c.bf16 %v3569_v7, %v3567_v6  ;;  %v2782_v6 = vpack.c.bf16 %v1847_v50, %v1836_v48  ;;  %v838_v7 = vunpack.c.l.bf16 %v9814_v63  ;;  %v855_v63 = vunpack.c.l.bf16 %v9836_v12  ;;  %v3389_v12 = vld [vmem:[%s11475_s1 + $0x470] sm:$0xff] }
 0x1c4   : > { %v1864_v52 = vmul.f32 %v9778_v54, %v850_v26  ;;  %v2794_v15 = vpack.c.bf16 %v1870_v58, %v1859_v53  ;;  %v9956_v48 = vld [vmem:[%s8237_s7 + $0x1ac] sm:$0xff] }
 0x1c5   : > { %v1852_v27 = vmul.f32 %v9802_v57, %v838_v7  ;;  %v1869_v32 = vmul.f32 %v9795_v56, %v855_v63  ;;  %v3396_v53 = vld [vmem:[%s11475_s1 + $0x4a8] sm:$0xff] }
 0x1c6   : > { %v2788_v14 = vpack.c.bf16 %v1864_v52, %v1853_v51  ;;  %v3391_v51 = vld [vmem:[%s11475_s1 + $0x480] sm:$0xff]  ;;  %v877_v52 = vunpack.c.l.bf16 %v9896_v40 }
 0x1c7   : > { %v9998_v63 = vld [vmem:[%s8237_s7 + $0x1ec] sm:$0xff] }
 0x1c8   : > { %4355 = vmatmul.mubr.bf16.gmra.mrb[168].mxu1 %v3225_v24  ;;  %v2771_v24 = vpack.c.bf16 %v1825_v61, %v1814_v46  ;;  %v2776_v61 = vpack.c.bf16 %v1841_v44, %v1830_v43  ;;  %v9945_v43 = vld [vmem:[%s8237_s7 + $0x168] sm:$0xff]  ;;  %v9948_v44 = vld [vmem:[%s8237_s7 + $0x194] sm:$0xff] }
 0x1c9   : > { %5768 = vmatmul.mubr.bf16.gmra.mrb[168].mxu0 %v3231_v25  ;;  %4364 = vmatprep.mubr.bf16.mxu1 %v3237_v28  ;;  %v3659_v25 = vpack.c.bf16 %v3377_v2, %v3375_v62  ;;  %v3572_v28 = vld [vmem:[%s11475_s1 + $0xa28] sm:$0xff]  ;;  %v3383_v62 = vld [vmem:[%s11475_s1 + $0x440] sm:$0xff]  ;;  %v3385_v2 = vld [vmem:[%s11475_s1 + $0x450] sm:$0xff] }
 0x1ca   : > { %5777 = vmatprep.mubr.bf16.mxu0 %v3243_v31  ;;  %v2777_v31 = vpack.c.bf16 %v1842_v0, %v1831_v3  ;;  %v3758_v21 = vpack.c.bf16 %v3574_v29, %v3572_v28  ;;  %v3388_v3 = vld [vmem:[%s11475_s1 + $0x468] sm:$0xff]  ;;  %v3663_v23 = vpack.c.bf16 %v3385_v2, %v3383_v62  ;;  %v1863_v28 = vmul.f32 %v9802_v57, %v849_v8 }
 0x1cb   : > { %v1858_v29 = vmul.f32 %v9795_v56, %v844_v9  ;;  %v1891_v8 = vmul.f32 %v9795_v56, %v877_v52  ;;  %v3400_v9 = vld [vmem:[%s11475_s1 + $0x4c8] sm:$0xff]  ;;  %v3579_v52 = vld [vmem:[%s11475_s1 + $0xa60] sm:$0xff] }
 0x1d0   : > { %4365 = vmatmul.mubr.bf16.gmra.mrb[172].mxu1 %v3236_v47  ;;  %v3573_v47 = vld [vmem:[%s11475_s1 + $0xa30] sm:$0xff] }
 0x1d1   : > { %5778 = vmatmul.mubr.bf16.gmra.mrb[172].mxu0 %v3242_v22  ;;  %4405 = vmatprep.mubr.bf16.mxu1 %v2766_v38  ;;  %v3576_v22 = vld [vmem:[%s11475_s1 + $0xa48] sm:$0xff]  ;;  %v3578_v38 = vld [vmem:[%s11475_s1 + $0xa58] sm:$0xff]  ;;  %v3757_v46 = vpack.c.bf16 %v3573_v47, %v3571_v37  ;;  %v871_v47 = vunpack.c.l.bf16 %v9890_v59  ;;  %v883_v59 = vunpack.c.h.bf16 %v9945_v43 }
 0x1d2   : > { %5818 = vmatprep.mubr.bf16.mxu0 %v2772_v35  ;;  %v9886_v35 = vld [vmem:[%s8237_s7 + $0x110] sm:$0xff]  ;;  %v3760_v0 = vpack.c.bf16 %v3578_v38, %v3576_v22  ;;  %v2787_v22 = vpack.c.bf16 %v1863_v28, %v1852_v27  ;;  %v866_v38 = vunpack.c.l.bf16 %v9893_v60  ;;  %v900_v60 = vunpack.c.h.bf16 %v9956_v48 }
 0x1d3   : > { %v861_v1 = vunpack.c.h.bf16 %v9886_v35  ;;  %v860_v37 = vunpack.c.l.bf16 %v9886_v35  ;;  %v3398_v35 = vld [vmem:[%s11475_s1 + $0x4b8] sm:$0xff]  ;;  %v1885_v2 = vmul.f32 %v9802_v57, %v871_v47  ;;  %v3401_v27 = vld [vmem:[%s11475_s1 + $0x4d0] sm:$0xff] }
 0x1d4   : > { %v1880_v7 = vmul.f32 %v9795_v56, %v866_v38  ;;  %v1914_v4 = vmul.f32 %v9783_v33, %v900_v60 }
 0x1d5   : > { %v1875_v55 = vmul.f32 %v9778_v54, %v861_v1  ;;  %v1874_v62 = vmul.f32 %v9802_v57, %v860_v37 }
 0x1d7   : > { %v2799_v58 = vpack.c.bf16 %v1886_v34, %v1875_v55  ;;  %v899_v34 = vunpack.c.l.bf16 %v9956_v48 }
 0x1d8   : > { %4406 = vmatmul.mubr.bf16.vlgmr.msra.gmra.mrb[0].mxu1 %v2765_v13  ;;  %v3577_v13 = vld [vmem:[%s11475_s1 + $0xa50] sm:$0xff] }
 0x1d9   : > { %5819 = vmatmul.mubr.bf16.vlgmr.msra.gmra.mrb[0].mxu0 %v2771_v24  ;;  %4845 = vmatpush1.bf16.msra.mxu1 %v3659_v25  ;;  %v3666_v24 = vpack.c.bf16 %v3390_v10, %v3388_v3  ;;  %v3387_v25 = vld [vmem:[%s11475_s1 + $0x460] sm:$0xff]  ;;  %v3759_v26 = vpack.c.bf16 %v3577_v13, %v3575_v11  ;;  %v3670_v3 = vpack.c.bf16 %v3398_v35, %v3396_v53  ;;  %v3402_v10 = vld [vmem:[%s11475_s1 + $0x4d8] sm:$0xff]  ;;  %v3581_v53 = vld [vmem:[%s11475_s1 + $0xa70] sm:$0xff] }
 0x1da   : > { %6258 = vmatpush1.bf16.msra.mxu0 %v3755_v30  ;;  %4415 = vmatprep.mubr.bf16.mxu1 %v2777_v31  ;;  %v3392_v30 = vld [vmem:[%s11475_s1 + $0x488] sm:$0xff]  ;;  %v3394_v31 = vld [vmem:[%s11475_s1 + $0x498] sm:$0xff]  ;;  %v3665_v45 = vpack.c.bf16 %v3389_v12, %v3387_v25  ;;  %v1897_v11 = vmul.f32 %v9778_v54, %v883_v59  ;;  %v3672_v12 = vpack.c.bf16 %v3402_v10, %v3400_v9 }
 0x1db   : > { %5828 = vmatprep.mubr.bf16.mxu0 %v2783_v42  ;;  %4846 = vmatprep.subr.bf16.mxu1 %v3662_v18  ;;  %v1892_v42 = vmul.f32 %v9783_v33, %v878_v19  ;;  %v9951_v18 = vld [vmem:[%s8237_s7 + $0x180] sm:$0xff]  ;;  %v3668_v50 = vpack.c.bf16 %v3394_v31, %v3392_v30  ;;  %v3580_v19 = vld [vmem:[%s11475_s1 + $0xa68] sm:$0xff]  ;;  %v882_v30 = vunpack.c.l.bf16 %v9945_v43  ;;  %v893_v31 = vunpack.c.l.bf16 %v9948_v44 }
 0x1dc   : > { %6259 = vmatprep.subr.bf16.mxu0 %v3758_v21  ;;  %v3393_v21 = vld [vmem:[%s11475_s1 + $0x490] sm:$0xff]  ;;  %v10012_v25 = vld [vmem:[%s8237_s7 + $0x204] sm:$0xff]  ;;  %v3761_v59 = vpack.c.bf16 %v3581_v53, %v3579_v52 }
 0x1dd   : > { %4847 = vmatpush1.bf16.msra.mxu1 %v3661_v20  ;;  %v2793_v20 = vpack.c.bf16 %v1869_v32, %v1858_v29  ;;  %v3667_v40 = vpack.c.bf16 %v3393_v21, %v3391_v51  ;;  %v2804_v29 = vpack.c.bf16 %v1891_v8, %v1880_v7  ;;  %v888_v32 = vunpack.c.l.bf16 %v9951_v18  ;;  %v10035_v51 = vld [vmem:[%s8237_s7 + $0x244] sm:$0xff] }
 0x1de   : > { %4848 = vmatprep.subr.bf16.mxu1 %v3664_v41  ;;  %6260 = vmatpush1.bf16.msra.mxu0 %v3757_v46  ;;  %v894_v41 = vunpack.c.h.bf16 %v9948_v44  ;;  %v2805_v46 = vpack.c.bf16 %v1892_v42, %v1881_v39  ;;  %v916_v42 = vunpack.c.h.bf16 %v9998_v63  ;;  %v922_v47 = vunpack.c.h.bf16 %v10012_v25  ;;  %v3404_v35 = vld [vmem:[%s11475_s1 + $0x4e8] sm:$0xff] }
 0x1df   : > { %6261 = vmatprep.subr.bf16.mxu0 %v3760_v0  ;;  %v3395_v0 = vld [vmem:[%s11475_s1 + $0x4a0] sm:$0xff]  ;;  %v1896_v44 = vmul.f32 %v9802_v57, %v882_v30  ;;  %v1902_v48 = vmul.f32 %v9795_v56, %v888_v32  ;;  %v1913_v21 = vmul.f32 %v9795_v56, %v899_v34  ;;  %v921_v8 = vunpack.c.l.bf16 %v10012_v25  ;;  %v364_v30 = vld [vmem:[%s8237_s7 + $0x2b4] sm:$0xff] }
 0x1e0   : > { %4416 = vmatmul.mubr.bf16.gmra.mrb[4].mxu1 %v2776_v61  ;;  %v889_v61 = vunpack.c.h.bf16 %v9951_v18  ;;  %v1908_v13 = vmul.f32 %v9778_v54, %v894_v41  ;;  %v1907_v18 = vmul.f32 %v9802_v57, %v893_v31  ;;  %v1930_v38 = vmul.f32 %v9778_v54, %v916_v42  ;;  %v3406_v41 = vld [vmem:[%s11475_s1 + $0x4f8] sm:$0xff] }
 0x1e1   : > { %5829 = vmatmul.mubr.bf16.gmra.mrb[4].mxu0 %v2782_v6  ;;  %4425 = vmatprep.mubr.bf16.mxu1 %v2788_v14  ;;  %v3397_v6 = vld [vmem:[%s11475_s1 + $0x4b0] sm:$0xff]  ;;  %v2815_v9 = vpack.c.bf16 %v1913_v21, %v1902_v48  ;;  %v367_v53 = vld [vmem:[%s8237_s7 + $0x2c8] sm:$0xff] }
 0x1e2   : > { %5838 = vmatprep.mubr.bf16.mxu0 %v2794_v15  ;;  %4849 = vmatpush1.bf16.msra.mxu1 %v3663_v23  ;;  %v9995_v14 = vld [vmem:[%s8237_s7 + $0x1c0] sm:$0xff]  ;;  %v1903_v1 = vmul.f32 %v9783_v33, %v889_v61  ;;  %v10003_v15 = vld [vmem:[%s8237_s7 + $0x1d8] sm:$0xff]  ;;  %v3669_v16 = vpack.c.bf16 %v3397_v6, %v3395_v0  ;;  %v2810_v55 = vpack.c.bf16 %v1908_v13, %v1897_v11  ;;  %v938_v13 = vunpack.c.h.bf16 %v10035_v51 }
 0x1e3   : > { %4850 = vmatprep.subr.bf16.mxu1 %v3666_v24  ;;  %6262 = vmatpush1.bf16.msra.mxu0 %v3759_v26  ;;  %v3582_v23 = vld [vmem:[%s11475_s1 + $0xa78] sm:$0xff]  ;;  %v2798_v24 = vpack.c.bf16 %v1885_v2, %v1874_v62  ;;  %v3399_v26 = vld [vmem:[%s11475_s1 + $0x4c0] sm:$0xff]  ;;  %v905_v39 = vunpack.c.h.bf16 %v9995_v14  ;;  %v911_v37 = vunpack.c.h.bf16 %v10003_v15  ;;  %v3405_v61 = vld [vmem:[%s11475_s1 + $0x4f0] sm:$0xff]  ;;  %v904_v60 = vunpack.c.l.bf16 %v9995_v14 }
 0x1e4   : > { %v3762_v28 = vpack.c.bf16 %v3582_v23, %v3580_v19  ;;  %v3671_v43 = vpack.c.bf16 %v3401_v27, %v3399_v26  ;;  %v346_v62 = vld [vmem:[%s8237_s7 + $0x230] sm:$0xff]  ;;  %v352_v2 = vld [vmem:[%s8237_s7 + $0x25c] sm:$0xff]  ;;  %v2809_v6 = vpack.c.bf16 %v1907_v18, %v1896_v44  ;;  %v910_v7 = vunpack.c.l.bf16 %v10003_v15 }
 0x1e5   : > { %v1935_v19 = vmul.f32 %v9795_v56, %v921_v8  ;;  %v355_v26 = vld [vmem:[%s8237_s7 + $0x270] sm:$0xff]  ;;  %v361_v27 = vld [vmem:[%s8237_s7 + $0x29c] sm:$0xff]  ;;  %v932_v34 = vunpack.c.l.bf16 %v346_v62  ;;  %v943_v42 = vunpack.c.l.bf16 %v352_v2  ;;  %v966_v44 = vunpack.c.h.bf16 %v364_v30 }
 0x1e6   : > { %4851 = vmatpush1.bf16.msra.mxu1 %v3665_v45  ;;  %6263 = vmatprep.subr.bf16.mxu0 %v3762_v28  ;;  %v2816_v45 = vpack.c.bf16 %v1914_v4, %v1903_v1  ;;  %v944_v1 = vunpack.c.h.bf16 %v352_v2  ;;  %v1918_v4 = vmul.f32 %v9802_v57, %v904_v60  ;;  %v965_v60 = vunpack.c.l.bf16 %v364_v30 }
 0x1e7   : > { %4852 = vmatprep.subr.bf16.mxu1 %v3668_v50  ;;  %v10032_v50 = vld [vmem:[%s8237_s7 + $0x218] sm:$0xff]  ;;  %6264 = vmatpush1.bf16.msra.mxu0 %v3761_v59  ;;  %v1980_v52 = vmul.f32 %v9783_v33, %v966_v44  ;;  %v370_v59 = vld [vmem:[%s8237_s7 + $0x2e0] sm:$0xff]  ;;  %v971_v2 = vunpack.c.h.bf16 %v367_v53 }
 0x1e8   : > { %4426 = vmatmul.mubr.bf16.gmra.mrb[8].mxu1 %v2787_v22  ;;  %v1919_v22 = vmul.f32 %v9778_v54, %v905_v39  ;;  %v927_v11 = vunpack.c.h.bf16 %v10032_v50  ;;  %v926_v32 = vunpack.c.l.bf16 %v10032_v50  ;;  %v1946_v50 = vmul.f32 %v9795_v56, %v932_v34 }
 0x1e9   : > { %5839 = vmatmul.mubr.bf16.gmra.mrb[8].mxu0 %v2793_v20  ;;  %4435 = vmatprep.mubr.bf16.mxu1 %v2799_v58  ;;  %v1925_v20 = vmul.f32 %v9783_v33, %v911_v37  ;;  %v1936_v58 = vmul.f32 %v9783_v33, %v922_v47  ;;  %v960_v37 = vunpack.c.h.bf16 %v361_v27 }
 0x1ea   : > { %5848 = vmatprep.mubr.bf16.mxu0 %v2805_v46  ;;  %4853 = vmatpush1.bf16.msra.mxu1 %v3667_v40  ;;  %v3403_v46 = vld [vmem:[%s11475_s1 + $0x4e0] sm:$0xff]  ;;  %v915_v40 = vunpack.c.l.bf16 %v9998_v63  ;;  %v2821_v10 = vpack.c.bf16 %v1930_v38, %v1919_v22  ;;  %v933_v63 = vunpack.c.h.bf16 %v346_v62  ;;  %v1941_v23 = vmul.f32 %v9778_v54, %v927_v11 }
 0x1eb   : > { %4854 = vmatprep.subr.bf16.mxu1 %v3670_v3  ;;  %v3674_v3 = vpack.c.bf16 %v3406_v41, %v3404_v35  ;;  %v3673_v0 = vpack.c.bf16 %v3405_v61, %v3403_v46  ;;  %v2827_v14 = vpack.c.bf16 %v1936_v58, %v1925_v20  ;;  %v1940_v18 = vmul.f32 %v9802_v57, %v926_v32  ;;  %v373_v35 = vld [vmem:[%s8237_s7 + $0x2f4] sm:$0xff]  ;;  %v376_v41 = vld [vmem:[%s8237_s7 + $0x30c] sm:$0xff] }
 0x1ec   : > { %v1929_v15 = vmul.f32 %v9802_v57, %v915_v40  ;;  %v1947_v25 = vmul.f32 %v9783_v33, %v933_v63  ;;  %v1974_v22 = vmul.f32 %v9778_v54, %v960_v37  ;;  %v948_v20 = vunpack.c.l.bf16 %v355_v26 }
 0x1ed   : > { %v959_v58 = vunpack.c.l.bf16 %v361_v27  ;;  %v1979_v11 = vmul.f32 %v9795_v56, %v965_v60  ;;  %v1985_v63 = vmul.f32 %v9778_v54, %v971_v2  ;;  %v382_v27 = vld [vmem:[%s8237_s7 + $0x338] sm:$0xff]  ;;  %v981_v30 = vunpack.c.l.bf16 %v373_v35 }
 0x1ee   : > { %4855 = vmatpush1.bf16.msra.mxu1 %v3669_v16  ;;  %v1924_v16 = vmul.f32 %v9795_v56, %v910_v7  ;;  %v2820_v28 = vpack.c.bf16 %v1929_v15, %v1918_v4  ;;  %v988_v7 = vunpack.c.h.bf16 %v376_v41  ;;  %v1962_v8 = vmul.f32 %v9802_v57, %v948_v20  ;;  %v3407_v15 = vld [vmem:[%s11475_s1 + $0x500] sm:$0xff] }
 0x1ef   : > { %4856 = vmatprep.subr.bf16.mxu1 %v3672_v12  ;;  %v1958_v12 = vmul.f32 %v9783_v33, %v944_v1  ;;  %v987_v32 = vunpack.c.l.bf16 %v376_v41  ;;  %v999_v37 = vunpack.c.h.bf16 %v382_v27  ;;  %v1995_v44 = vmul.f32 %v9802_v57, %v981_v30  ;;  %v394_v20 = vld [vmem:[%s8237_s7 + $0x390] sm:$0xff] }
 0x1f0   : > { %4436 = vmatmul.mubr.bf16.gmra.mrb[12].mxu1 %v2798_v24  ;;  %v1952_v24 = vmul.f32 %v9778_v54, %v938_v13  ;;  %v2826_v31 = vpack.c.bf16 %v1935_v19, %v1924_v16  ;;  %v3408_v13 = vld [vmem:[%s11475_s1 + $0x508] sm:$0xff]  ;;  %v3409_v16 = vld [vmem:[%s11475_s1 + $0x510] sm:$0xff] }
 0x1f1   : > { %5849 = vmatmul.mubr.bf16.gmra.mrb[12].mxu0 %v2804_v29  ;;  %4445 = vmatprep.mubr.bf16.mxu1 %v2810_v55  ;;  %v358_v29 = vld [vmem:[%s8237_s7 + $0x288] sm:$0xff]  ;;  %v937_v55 = vunpack.c.l.bf16 %v10035_v51  ;;  %v2838_v47 = vpack.c.bf16 %v1958_v12, %v1947_v25  ;;  %v1957_v51 = vmul.f32 %v9795_v56, %v943_v42  ;;  %v3675_v12 = vpack.c.bf16 %v3409_v16, %v3407_v15  ;;  %v409_v15 = vld [vmem:[%s8237_s7 + $0x3fc] sm:$0xff] }
 0x1f2   : > { %5858 = vmatprep.mubr.bf16.mxu0 %v2816_v45  ;;  %4857 = vmatpush1.bf16.msra.mxu1 %v3671_v43  ;;  %v2832_v39 = vpack.c.bf16 %v1952_v24, %v1941_v23  ;;  %v949_v45 = vunpack.c.h.bf16 %v355_v26  ;;  %v955_v43 = vunpack.c.h.bf16 %v358_v29  ;;  %v954_v61 = vunpack.c.l.bf16 %v358_v29  ;;  %v379_v24 = vld [vmem:[%s8237_s7 + $0x320] sm:$0xff]  ;;  %v385_v25 = vld [vmem:[%s8237_s7 + $0x34c] sm:$0xff] }
 0x1f3   : > { %4858 = vmatprep.subr.bf16.mxu1 %v3674_v3  ;;  %v1951_v48 = vmul.f32 %v9802_v57, %v937_v55  ;;  %v2837_v40 = vpack.c.bf16 %v1957_v51, %v1946_v50  ;;  %v982_v3 = vunpack.c.h.bf16 %v373_v35  ;;  %v2002_v23 = vmul.f32 %v9783_v33, %v988_v7 }
 0x1f4   : > { %v1963_v21 = vmul.f32 %v9778_v54, %v949_v45  ;;  %v1969_v38 = vmul.f32 %v9783_v33, %v955_v43  ;;  %v970_v29 = vunpack.c.l.bf16 %v367_v53  ;;  %v1004_v42 = vunpack.c.h.bf16 %v385_v25 }
 0x1f5   : > { %v2831_v46 = vpack.c.bf16 %v1951_v48, %v1940_v18  ;;  %v1996_v1 = vmul.f32 %v9778_v54, %v982_v3  ;;  %v2001_v48 = vmul.f32 %v9795_v56, %v987_v32  ;;  %v992_v53 = vunpack.c.l.bf16 %v379_v24 }
 0x1f6   : > { %4859 = vmatpush1.bf16.msra.mxu1 %v3673_v0  ;;  %v2843_v62 = vpack.c.bf16 %v1974_v22, %v1963_v21  ;;  %v2849_v0 = vpack.c.bf16 %v1980_v52, %v1969_v38  ;;  %v1984_v43 = vmul.f32 %v9802_v57, %v970_v29  ;;  %v2018_v51 = vmul.f32 %v9778_v54, %v1004_v42  ;;  %v391_v38 = vld [vmem:[%s8237_s7 + $0x378] sm:$0xff]  ;;  %v397_v52 = vld [vmem:[%s8237_s7 + $0x3a4] sm:$0xff] }
 0x1f7   : > { %v2854_v34 = vpack.c.bf16 %v1996_v1, %v1985_v63  ;;  %v2013_v21 = vmul.f32 %v9783_v33, %v999_v37  ;;  %v1003_v35 = vunpack.c.l.bf16 %v385_v25  ;;  %v1021_v3 = vunpack.c.h.bf16 %v394_v20  ;;  %v3414_v63 = vld [vmem:[%s11475_s1 + $0x538] sm:$0xff] }
 0x1f8   : > { %4446 = vmatmul.mubr.bf16.gmra.mrb[16].mxu1 %v2809_v6  ;;  %v977_v6 = vunpack.c.h.bf16 %v370_v59  ;;  %v406_v25 = vld [vmem:[%s8237_s7 + $0x3e8] sm:$0xff]  ;;  %v1020_v29 = vunpack.c.l.bf16 %v394_v20  ;;  %v3585_v20 = vld [vmem:[%s11475_s1 + $0xa90] sm:$0xff] }
 0x1f9   : > { %5859 = vmatmul.mubr.bf16.gmra.mrb[16].mxu0 %v2815_v9  ;;  %4455 = vmatprep.mubr.bf16.mxu1 %v2821_v10  ;;  %v1973_v9 = vmul.f32 %v9802_v57, %v959_v58  ;;  %v1968_v10 = vmul.f32 %v9795_v56, %v954_v61  ;;  %v400_v58 = vld [vmem:[%s8237_s7 + $0x3bc] sm:$0xff]  ;;  %v2017_v7 = vmul.f32 %v9802_v57, %v1003_v35  ;;  %v1043_v42 = vunpack.c.h.bf16 %v406_v25 }
 0x1fa   : > { %5868 = vmatprep.mubr.bf16.mxu0 %v2827_v14  ;;  %v3410_v14 = vld [vmem:[%s11475_s1 + $0x518] sm:$0xff]  ;;  %v1991_v19 = vmul.f32 %v9783_v33, %v977_v6  ;;  %v2006_v6 = vmul.f32 %v9802_v57, %v992_v53  ;;  %v2035_v1 = vmul.f32 %v9783_v33, %v1021_v3  ;;  %v1031_v30 = vunpack.c.l.bf16 %v400_v58 }
 0x1fb   : > { %v3676_v4 = vpack.c.bf16 %v3410_v14, %v3408_v13  ;;  %v2842_v26 = vpack.c.bf16 %v1973_v9, %v1962_v8  ;;  %v2848_v55 = vpack.c.bf16 %v1979_v11, %v1968_v10  ;;  %v10137_v13 = vld [vmem:[%s8237_s7 + $0x3d0] sm:$0xff] }
 0x1fc   : > { %v2860_v45 = vpack.c.bf16 %v2002_v23, %v1991_v19  ;;  %v3412_v14 = vld [vmem:[%s11475_s1 + $0x528] sm:$0xff]  ;;  %v3411_v19 = vld [vmem:[%s11475_s1 + $0x520] sm:$0xff]  ;;  %v3413_v23 = vld [vmem:[%s11475_s1 + $0x530] sm:$0xff] }
 0x1fd   : > { %4860 = vmatprep.subr.bf16.mxu1 %v3676_v4  ;;  %v3678_v16 = vpack.c.bf16 %v3414_v63, %v3412_v14  ;;  %v421_v53 = vld [vmem:[%s8237_s7 + $0x454] sm:$0xff] }
 0x1fe   : > { %4861 = vmatpush1.bf16.msra.mxu1 %v3675_v12  ;;  %v412_v12 = vld [vmem:[%s8237_s7 + $0x414] sm:$0xff] }
 0x1ff   : > { %4862 = vmatprep.subr.bf16.mxu1 %v3678_v16  ;;  %v1053_v3 = vunpack.c.l.bf16 %v412_v12  ;;  %v427_v16 = vld [vmem:[%s8237_s7 + $0x480] sm:$0xff] }
 0x200   : > { %4456 = vmatmul.mubr.bf16.gmra.mrb[20].mxu1 %v2820_v28  ;;  %v388_v28 = vld [vmem:[%s8237_s7 + $0x364] sm:$0xff] }
 0x201   : > { %5869 = vmatmul.mubr.bf16.gmra.mrb[20].mxu0 %v2826_v31  ;;  %4465 = vmatprep.mubr.bf16.mxu1 %v2832_v39  ;;  %v976_v31 = vunpack.c.l.bf16 %v370_v59  ;;  %v993_v39 = vunpack.c.h.bf16 %v379_v24  ;;  %v2853_v59 = vpack.c.bf16 %v1995_v44, %v1984_v43  ;;  %v1009_v60 = vunpack.c.l.bf16 %v388_v28 }
 0x202   : > { %5878 = vmatprep.mubr.bf16.mxu0 %v2838_v47  ;;  %v1010_v47 = vunpack.c.h.bf16 %v388_v28  ;;  %v2864_v24 = vpack.c.bf16 %v2017_v7, %v2006_v6  ;;  %v1025_v28 = vunpack.c.l.bf16 %v397_v52  ;;  %v2034_v43 = vmul.f32 %v9795_v56, %v1020_v29 }
 0x203   : > { %v1990_v18 = vmul.f32 %v9795_v56, %v976_v31  ;;  %v2007_v50 = vmul.f32 %v9778_v54, %v993_v39  ;;  %v2023_v9 = vmul.f32 %v9795_v56, %v1009_v60  ;;  %v2045_v44 = vmul.f32 %v9795_v56, %v1031_v30 }
 0x204   : > { %v2024_v22 = vmul.f32 %v9783_v33, %v1010_v47  ;;  %v2039_v47 = vmul.f32 %v9802_v57, %v1025_v28  ;;  %v1070_v6 = vunpack.c.h.bf16 %v421_v53  ;;  %v2067_v14 = vmul.f32 %v9795_v56, %v1053_v3 }
 0x205   : > { %v2859_v41 = vpack.c.bf16 %v2001_v48, %v1990_v18  ;;  %v2865_v61 = vpack.c.bf16 %v2018_v51, %v2007_v50  ;;  %v3584_v50 = vld [vmem:[%s11475_s1 + $0xa88] sm:$0xff]  ;;  %v3586_v51 = vld [vmem:[%s11475_s1 + $0xa98] sm:$0xff] }
 0x206   : > { %v2871_v2 = vpack.c.bf16 %v2024_v22, %v2013_v21  ;;  %v3583_v21 = vld [vmem:[%s11475_s1 + $0xa80] sm:$0xff]  ;;  %v2057_v22 = vmul.f32 %v9783_v33, %v1043_v42  ;;  %v3764_v35 = vpack.c.bf16 %v3586_v51, %v3584_v50 }
 0x207   : > { %v3415_v50 = vld [vmem:[%s11475_s1 + $0x540] sm:$0xff] }
 0x208   : > { %4466 = vmatmul.mubr.bf16.gmra.mrb[24].mxu1 %v2831_v46  ;;  %v998_v46 = vunpack.c.l.bf16 %v382_v27  ;;  %v1014_v27 = vunpack.c.l.bf16 %v391_v38  ;;  %6265 = vmatprep.subr.bf16.mxu0 %v3764_v35  ;;  %v1080_v35 = vunpack.c.l.bf16 %v427_v16 }
 0x209   : > { %5879 = vmatmul.mubr.bf16.gmra.mrb[24].mxu0 %v2837_v40  ;;  %4475 = vmatprep.mubr.bf16.mxu1 %v2843_v62  ;;  %v1015_v40 = vunpack.c.h.bf16 %v391_v38  ;;  %v1026_v62 = vunpack.c.h.bf16 %v397_v52  ;;  %v415_v52 = vld [vmem:[%s8237_s7 + $0x428] sm:$0xff] }
 0x20a   : > { %5888 = vmatprep.mubr.bf16.mxu0 %v2849_v0  ;;  %v1032_v0 = vunpack.c.h.bf16 %v400_v58  ;;  %v2012_v8 = vmul.f32 %v9795_v56, %v998_v46  ;;  %v2028_v37 = vmul.f32 %v9802_v57, %v1014_v27  ;;  %v1036_v58 = vunpack.c.l.bf16 %v10137_v13  ;;  %v424_v46 = vld [vmem:[%s8237_s7 + $0x46c] sm:$0xff] }
 0x20b   : > { %v2029_v10 = vmul.f32 %v9778_v54, %v1015_v40  ;;  %v2040_v11 = vmul.f32 %v9778_v54, %v1026_v62  ;;  %v2881_v40 = vpack.c.bf16 %v2045_v44, %v2034_v43  ;;  %v1042_v62 = vunpack.c.l.bf16 %v406_v25  ;;  %v436_v25 = vld [vmem:[%s8237_s7 + $0x4c4] sm:$0xff] }
 0x20c   : > { %v2046_v4 = vmul.f32 %v9783_v33, %v1032_v0  ;;  %v2870_v31 = vpack.c.bf16 %v2023_v9, %v2012_v8  ;;  %v2875_v60 = vpack.c.bf16 %v2039_v47, %v2028_v37  ;;  %v1059_v0 = vunpack.c.h.bf16 %v415_v52 }
 0x20d   : > { %v2876_v32 = vpack.c.bf16 %v2040_v11, %v2029_v10  ;;  %v1076_v9 = vunpack.c.h.bf16 %v424_v46  ;;  %v2050_v10 = vmul.f32 %v9802_v57, %v1036_v58  ;;  %v1075_v28 = vunpack.c.l.bf16 %v424_v46  ;;  %v442_v58 = vld [vmem:[%s8237_s7 + $0x4f0] sm:$0xff] }
 0x20e   : > { %v2882_v39 = vpack.c.bf16 %v2046_v4, %v2035_v1  ;;  %v2073_v63 = vmul.f32 %v9778_v54, %v1059_v0  ;;  %v2084_v1 = vmul.f32 %v9778_v54, %v1070_v6  ;;  %v1109_v6 = vunpack.c.h.bf16 %v442_v58 }
 0x20f   : > { %v2089_v47 = vmul.f32 %v9795_v56, %v1075_v28 }
 0x210   : > { %4476 = vmatmul.mubr.bf16.gmra.mrb[28].mxu1 %v2842_v26  ;;  %v3677_v26 = vpack.c.bf16 %v3413_v23, %v3411_v19  ;;  %v433_v19 = vld [vmem:[%s8237_s7 + $0x4ac] sm:$0xff]  ;;  %v2898_v30 = vpack.c.bf16 %v2084_v1, %v2073_v63  ;;  %v2123_v63 = vmul.f32 %v9783_v33, %v1109_v6 }
 0x211   : > { %5889 = vmatmul.mubr.bf16.gmra.mrb[28].mxu0 %v2848_v55  ;;  %4485 = vmatprep.mubr.bf16.mxu1 %v2854_v34  ;;  %v1037_v55 = vunpack.c.h.bf16 %v10137_v13  ;;  %v1048_v34 = vunpack.c.h.bf16 %v409_v15  ;;  %v2056_v13 = vmul.f32 %v9795_v56, %v1042_v62  ;;  %v1097_v62 = vunpack.c.l.bf16 %v436_v25  ;;  %v3420_v6 = vld [vmem:[%s11475_s1 + $0x568] sm:$0xff] }
 0x212   : > { %5898 = vmatprep.mubr.bf16.mxu0 %v2860_v45  ;;  %4863 = vmatpush1.bf16.msra.mxu1 %v3677_v26  ;;  %v1054_v45 = vunpack.c.h.bf16 %v412_v12  ;;  %v1058_v12 = vunpack.c.l.bf16 %v415_v52  ;;  %v1069_v26 = vunpack.c.l.bf16 %v421_v53  ;;  %v3417_v53 = vld [vmem:[%s11475_s1 + $0x550] sm:$0xff] }
 0x213   : > { %v2051_v18 = vmul.f32 %v9778_v54, %v1037_v55  ;;  %v2062_v48 = vmul.f32 %v9778_v54, %v1048_v34  ;;  %v2892_v29 = vpack.c.bf16 %v2067_v14, %v2056_v13 }
 0x214   : > { %v2068_v38 = vmul.f32 %v9783_v33, %v1054_v45  ;;  %v2072_v42 = vmul.f32 %v9802_v57, %v1058_v12  ;;  %v2083_v45 = vmul.f32 %v9802_v57, %v1069_v26  ;;  %v1108_v12 = vunpack.c.l.bf16 %v442_v58 }
 0x216   : > { %v2893_v7 = vpack.c.bf16 %v2068_v38, %v2057_v22  ;;  %v439_v22 = vld [vmem:[%s8237_s7 + $0x4d8] sm:$0xff]  ;;  %v445_v38 = vld [vmem:[%s8237_s7 + $0x504] sm:$0xff]  ;;  %v2897_v46 = vpack.c.bf16 %v2083_v45, %v2072_v42  ;;  %v2122_v42 = vmul.f32 %v9795_v56, %v1108_v12 }
 0x217   : > { %v1114_v3 = vunpack.c.h.bf16 %v445_v38 }
 0x218   : > { %4486 = vmatmul.mubr.bf16.gmra.mrb[32].mxu1 %v2853_v59  ;;  %v1047_v59 = vunpack.c.l.bf16 %v409_v15  ;;  %v2090_v15 = vmul.f32 %v9783_v33, %v1076_v9 }
 0x219   : > { %5899 = vmatmul.mubr.bf16.gmra.mrb[32].mxu0 %v2859_v41  ;;  %4495 = vmatprep.mubr.bf16.mxu1 %v2865_v61  ;;  %v418_v41 = vld [vmem:[%s8237_s7 + $0x440] sm:$0xff]  ;;  %v3763_v61 = vpack.c.bf16 %v3585_v20, %v3583_v21  ;;  %v1091_v20 = vunpack.c.l.bf16 %v433_v19  ;;  %v2128_v14 = vmul.f32 %v9778_v54, %v1114_v3 }
 0x21a   : > { %5908 = vmatprep.mubr.bf16.mxu0 %v2871_v2  ;;  %v2887_v2 = vpack.c.bf16 %v2062_v48, %v2051_v18  ;;  %v1065_v8 = vunpack.c.h.bf16 %v418_v41  ;;  %v2061_v11 = vmul.f32 %v9802_v57, %v1047_v59  ;;  %v1064_v27 = vunpack.c.l.bf16 %v418_v41  ;;  %v3416_v18 = vld [vmem:[%s11475_s1 + $0x548] sm:$0xff]  ;;  %v3418_v48 = vld [vmem:[%s11475_s1 + $0x558] sm:$0xff] }
 0x21b   : > { %6266 = vmatpush1.bf16.msra.mxu0 %v3763_v61  ;;  %v3680_v52 = vpack.c.bf16 %v3418_v48, %v3416_v18  ;;  %v448_v59 = vld [vmem:[%s8237_s7 + $0x51c] sm:$0xff]  ;;  %v3679_v41 = vpack.c.bf16 %v3417_v53, %v3415_v50  ;;  %v2105_v9 = vmul.f32 %v9802_v57, %v1091_v20  ;;  %v463_v18 = vld [vmem:[%s8237_s7 + $0x588] sm:$0xff]  ;;  %v469_v48 = vld [vmem:[%s8237_s7 + $0x5b4] sm:$0xff] }
 0x21c   : > { %v2079_v4 = vmul.f32 %v9783_v33, %v1065_v8  ;;  %v2886_v23 = vpack.c.bf16 %v2061_v11, %v2050_v10  ;;  %v2078_v37 = vmul.f32 %v9795_v56, %v1064_v27  ;;  %v2094_v8 = vmul.f32 %v9802_v57, %v1080_v35 }
 0x21d   : > { %4864 = vmatprep.subr.bf16.mxu1 %v3680_v52  ;;  %v2111_v11 = vmul.f32 %v9795_v56, %v1097_v62  ;;  %v1119_v26 = vunpack.c.l.bf16 %v448_v59  ;;  %v1147_v58 = vunpack.c.h.bf16 %v463_v18 }
 0x21e   : > { %v2904_v55 = vpack.c.bf16 %v2090_v15, %v2079_v4  ;;  %v2903_v61 = vpack.c.bf16 %v2089_v47, %v2078_v37  ;;  %4865 = vmatpush1.bf16.msra.mxu1 %v3679_v41  ;;  %v451_v4 = vld [vmem:[%s8237_s7 + $0x530] sm:$0xff]  ;;  %v457_v15 = vld [vmem:[%s8237_s7 + $0x55c] sm:$0xff] }
 0x21f   : > { %v2133_v45 = vmul.f32 %v9795_v56, %v1119_v26  ;;  %v1124_v50 = vunpack.c.l.bf16 %v451_v4  ;;  %v2161_v3 = vmul.f32 %v9778_v54, %v1147_v58 }
 0x220   : > { %4496 = vmatmul.mubr.bf16.gmra.mrb[36].mxu1 %v2864_v24  ;;  %v430_v24 = vld [vmem:[%s8237_s7 + $0x498] sm:$0xff] }
 0x221   : > { %5909 = vmatmul.mubr.bf16.gmra.mrb[36].mxu0 %v2870_v31  ;;  %4505 = vmatprep.mubr.bf16.mxu1 %v2876_v32  ;;  %v1081_v31 = vunpack.c.h.bf16 %v427_v16  ;;  %v1092_v32 = vunpack.c.h.bf16 %v433_v19  ;;  %v1087_v34 = vunpack.c.h.bf16 %v430_v24  ;;  %v2908_v16 = vpack.c.bf16 %v2105_v9, %v2094_v8  ;;  %v454_v19 = vld [vmem:[%s8237_s7 + $0x548] sm:$0xff] }
 0x222   : > { %5918 = vmatprep.mubr.bf16.mxu0 %v2882_v39  ;;  %v1098_v39 = vunpack.c.h.bf16 %v436_v25  ;;  %v1113_v25 = vunpack.c.l.bf16 %v445_v38  ;;  %v2925_v52 = vpack.c.bf16 %v2133_v45, %v2122_v42  ;;  %v1130_v53 = vunpack.c.l.bf16 %v454_v19  ;;  %v3419_v8 = vld [vmem:[%s11475_s1 + $0x560] sm:$0xff] }
 0x223   : > { %v2095_v43 = vmul.f32 %v9778_v54, %v1081_v31  ;;  %v2106_v44 = vmul.f32 %v9778_v54, %v1092_v32  ;;  %v2101_v51 = vmul.f32 %v9783_v33, %v1087_v34  ;;  %v1131_v32 = vunpack.c.h.bf16 %v454_v19 }
 0x224   : > { %v2112_v21 = vmul.f32 %v9783_v33, %v1098_v39  ;;  %v2127_v39 = vmul.f32 %v9802_v57, %v1113_v25  ;;  %v2144_v62 = vmul.f32 %v9795_v56, %v1130_v53  ;;  %v1146_v19 = vunpack.c.l.bf16 %v463_v18  ;;  %v496_v53 = vld [vmem:[%s8237_s7 + $0x67c] sm:$0xff] }
 0x226   : > { %v2915_v0 = vpack.c.bf16 %v2112_v21, %v2101_v51  ;;  %v1135_v51 = vunpack.c.l.bf16 %v457_v15  ;;  %v466_v21 = vld [vmem:[%s8237_s7 + $0x5a0] sm:$0xff] }
 0x228   : > { %4506 = vmatmul.mubr.bf16.gmra.mrb[40].mxu1 %v2875_v60  ;;  %v1086_v60 = vunpack.c.l.bf16 %v430_v24  ;;  %v1102_v24 = vunpack.c.l.bf16 %v439_v22 }
 0x229   : > { %5919 = vmatmul.mubr.bf16.gmra.mrb[40].mxu0 %v2881_v40  ;;  %4515 = vmatprep.mubr.bf16.mxu1 %v2887_v2  ;;  %v2909_v40 = vpack.c.bf16 %v2106_v44, %v2095_v43  ;;  %v1103_v2 = vunpack.c.h.bf16 %v439_v22  ;;  %v2145_v43 = vmul.f32 %v9783_v33, %v1131_v32  ;;  %v472_v22 = vld [vmem:[%s8237_s7 + $0x5cc] sm:$0xff]  ;;  %v2160_v32 = vmul.f32 %v9802_v57, %v1146_v19 }
 0x22a   : > { %5928 = vmatprep.mubr.bf16.mxu0 %v2893_v7  ;;  %v1120_v7 = vunpack.c.h.bf16 %v448_v59  ;;  %v2100_v10 = vmul.f32 %v9795_v56, %v1086_v60  ;;  %v2116_v34 = vmul.f32 %v9802_v57, %v1102_v24  ;;  %v1158_v59 = vunpack.c.h.bf16 %v469_v48 }
 0x22b   : > { %v2117_v13 = vmul.f32 %v9778_v54, %v1103_v2  ;;  %v2138_v60 = vmul.f32 %v9802_v57, %v1124_v50  ;;  %v1152_v24 = vunpack.c.l.bf16 %v466_v21  ;;  %v1163_v25 = vunpack.c.l.bf16 %v472_v22  ;;  %v493_v50 = vld [vmem:[%s8237_s7 + $0x664] sm:$0xff] }
 0x22c   : > { %v2134_v1 = vmul.f32 %v9783_v33, %v1120_v7  ;;  %v2914_v27 = vpack.c.bf16 %v2111_v11, %v2100_v10  ;;  %v2919_v38 = vpack.c.bf16 %v2127_v39, %v2116_v34  ;;  %v3422_v7 = vld [vmem:[%s11475_s1 + $0x578] sm:$0xff] }
 0x22d   : > { %v2920_v28 = vpack.c.bf16 %v2128_v14, %v2117_v13  ;;  %v475_v11 = vld [vmem:[%s8237_s7 + $0x5e0] sm:$0xff]  ;;  %v481_v13 = vld [vmem:[%s8237_s7 + $0x60c] sm:$0xff]  ;;  %v3682_v14 = vpack.c.bf16 %v3422_v7, %v3420_v6  ;;  %v2166_v34 = vmul.f32 %v9795_v56, %v1152_v24  ;;  %v2177_v39 = vmul.f32 %v9795_v56, %v1163_v25 }
 0x22e   : > { %v2926_v31 = vpack.c.bf16 %v2134_v1, %v2123_v63  ;;  %v3421_v63 = vld [vmem:[%s11475_s1 + $0x570] sm:$0xff] }
 0x22f   : > { %4866 = vmatprep.subr.bf16.mxu1 %v3682_v14  ;;  %v2947_v58 = vpack.c.bf16 %v2177_v39, %v2166_v34  ;;  %v505_v14 = vld [vmem:[%s8237_s7 + $0x6bc] sm:$0xff]  ;;  %v3424_v34 = vld [vmem:[%s11475_s1 + $0x588] sm:$0xff] }
 0x230   : > { %4516 = vmatmul.mubr.bf16.gmra.mrb[44].mxu1 %v2886_v23  ;;  %v460_v23 = vld [vmem:[%s8237_s7 + $0x574] sm:$0xff] }
 0x231   : > { %5929 = vmatmul.mubr.bf16.gmra.mrb[44].mxu0 %v2892_v29  ;;  %4525 = vmatprep.mubr.bf16.mxu1 %v2898_v30  ;;  %v1125_v29 = vunpack.c.h.bf16 %v451_v4  ;;  %v1136_v30 = vunpack.c.h.bf16 %v457_v15  ;;  %v1141_v20 = vunpack.c.l.bf16 %v460_v23  ;;  %v478_v4 = vld [vmem:[%s8237_s7 + $0x5f8] sm:$0xff]  ;;  %v484_v15 = vld [vmem:[%s8237_s7 + $0x624] sm:$0xff] }
 0x232   : > { %5938 = vmatprep.mubr.bf16.mxu0 %v2904_v55  ;;  %v1142_v55 = vunpack.c.h.bf16 %v460_v23  ;;  %v1157_v23 = vunpack.c.l.bf16 %v469_v48  ;;  %v487_v48 = vld [vmem:[%s8237_s7 + $0x638] sm:$0xff] }
 0x233   : > { %v2139_v37 = vmul.f32 %v9778_v54, %v1125_v29  ;;  %v2150_v47 = vmul.f32 %v9778_v54, %v1136_v30  ;;  %v2155_v2 = vmul.f32 %v9795_v56, %v1141_v20  ;;  %v1175_v30 = vunpack.c.h.bf16 %v478_v4  ;;  %v3426_v39 = vld [vmem:[%s11475_s1 + $0x598] sm:$0xff] }
 0x234   : > { %v2156_v44 = vmul.f32 %v9783_v33, %v1142_v55  ;;  %v2171_v55 = vmul.f32 %v9802_v57, %v1157_v23  ;;  %v1207_v23 = vunpack.c.l.bf16 %v496_v53 }
 0x235   : > { %v2931_v35 = vpack.c.bf16 %v2150_v47, %v2139_v37  ;;  %v2936_v12 = vpack.c.bf16 %v2155_v2, %v2144_v62  ;;  %v3588_v37 = vld [vmem:[%s11475_s1 + $0xaa8] sm:$0xff]  ;;  %v3590_v47 = vld [vmem:[%s11475_s1 + $0xab8] sm:$0xff]  ;;  %v1208_v2 = vunpack.c.h.bf16 %v496_v53 }
 0x236   : > { %v2937_v41 = vpack.c.bf16 %v2156_v44, %v2145_v43  ;;  %v3587_v43 = vld [vmem:[%s11475_s1 + $0xaa0] sm:$0xff]  ;;  %v2189_v44 = vmul.f32 %v9783_v33, %v1175_v30  ;;  %v2941_v20 = vpack.c.bf16 %v2171_v55, %v2160_v32  ;;  %v2221_v55 = vmul.f32 %v9795_v56, %v1207_v23 }
 0x238   : > { %4526 = vmatmul.mubr.bf16.gmra.mrb[48].mxu1 %v2897_v46  ;;  %v1153_v46 = vunpack.c.h.bf16 %v466_v21  ;;  %v3589_v21 = vld [vmem:[%s11475_s1 + $0xab0] sm:$0xff] }
 0x239   : > { %5939 = vmatmul.mubr.bf16.gmra.mrb[48].mxu0 %v2903_v61  ;;  %4535 = vmatprep.mubr.bf16.mxu1 %v2909_v40  ;;  %v1164_v61 = vunpack.c.h.bf16 %v472_v22  ;;  %v2149_v40 = vmul.f32 %v9802_v57, %v1135_v51  ;;  %v3766_v51 = vpack.c.bf16 %v3590_v47, %v3588_v37  ;;  %v1168_v22 = vunpack.c.l.bf16 %v475_v11  ;;  %v3423_v47 = vld [vmem:[%s11475_s1 + $0x580] sm:$0xff] }
 0x23a   : > { %5948 = vmatprep.mubr.bf16.mxu0 %v2915_v0  ;;  %v2172_v0 = vmul.f32 %v9778_v54, %v1158_v59  ;;  %v2167_v9 = vmul.f32 %v9783_v33, %v1153_v46  ;;  %v1174_v59 = vunpack.c.l.bf16 %v478_v4  ;;  %v1185_v46 = vunpack.c.l.bf16 %v484_v15  ;;  %v508_v4 = vld [vmem:[%s8237_s7 + $0x6d4] sm:$0xff] }
 0x23b   : > { %v2178_v10 = vmul.f32 %v9783_v33, %v1164_v61  ;;  %v2930_v1 = vpack.c.bf16 %v2149_v40, %v2138_v60  ;;  %6267 = vmatprep.subr.bf16.mxu0 %v3766_v51  ;;  %v1191_v61 = vunpack.c.h.bf16 %v487_v48  ;;  %v1202_v60 = vunpack.c.h.bf16 %v493_v50 }
 0x23c   : > { %v2942_v26 = vpack.c.bf16 %v2172_v0, %v2161_v3  ;;  %v2182_v3 = vmul.f32 %v9802_v57, %v1168_v22  ;;  %v2188_v6 = vmul.f32 %v9795_v56, %v1174_v59  ;;  %v2199_v7 = vmul.f32 %v9795_v56, %v1185_v46 }
 0x23d   : > { %v2948_v29 = vpack.c.bf16 %v2178_v10, %v2167_v9  ;;  %v2216_v9 = vmul.f32 %v9778_v54, %v1202_v60  ;;  %v3684_v37 = vpack.c.bf16 %v3426_v39, %v3424_v34  ;;  %v1223_v22 = vunpack.c.l.bf16 %v505_v14  ;;  %v535_v34 = vld [vmem:[%s8237_s7 + $0x798] sm:$0xff] }
 0x23e   : > { %v2958_v24 = vpack.c.bf16 %v2199_v7, %v2188_v6  ;;  %v1229_v59 = vunpack.c.l.bf16 %v508_v4  ;;  %v3428_v39 = vld [vmem:[%s11475_s1 + $0x5a8] sm:$0xff] }
 0x240   : > { %4536 = vmatmul.mubr.bf16.gmra.mrb[52].mxu1 %v2908_v16  ;;  %v3681_v16 = vpack.c.bf16 %v3421_v63, %v3419_v8  ;;  %v2205_v8 = vmul.f32 %v9778_v54, %v1191_v61 }
 0x241   : > { %5949 = vmatmul.mubr.bf16.gmra.mrb[52].mxu0 %v2914_v27  ;;  %4545 = vmatprep.mubr.bf16.mxu1 %v2920_v28  ;;  %v1169_v27 = vunpack.c.h.bf16 %v475_v11  ;;  %v1180_v28 = vunpack.c.h.bf16 %v481_v13  ;;  %v2222_v11 = vmul.f32 %v9783_v33, %v1208_v2  ;;  %v2237_v2 = vmul.f32 %v9802_v57, %v1223_v22 }
 0x242   : > { %5958 = vmatprep.mubr.bf16.mxu0 %v2926_v31  ;;  %4867 = vmatpush1.bf16.msra.mxu1 %v3681_v16  ;;  %v1186_v31 = vunpack.c.h.bf16 %v484_v15  ;;  %v1190_v15 = vunpack.c.l.bf16 %v487_v48  ;;  %v1201_v16 = vunpack.c.l.bf16 %v493_v50  ;;  %v2964_v25 = vpack.c.bf16 %v2216_v9, %v2205_v8  ;;  %v511_v48 = vld [vmem:[%s8237_s7 + $0x6e8] sm:$0xff]  ;;  %v517_v50 = vld [vmem:[%s8237_s7 + $0x714] sm:$0xff] }
 0x243   : > { %v2183_v42 = vmul.f32 %v9778_v54, %v1169_v27  ;;  %v2194_v45 = vmul.f32 %v9778_v54, %v1180_v28  ;;  %4868 = vmatprep.subr.bf16.mxu1 %v3684_v37  ;;  %v1246_v46 = vunpack.c.h.bf16 %v517_v50 }
 0x244   : > { %v2200_v18 = vmul.f32 %v9783_v33, %v1186_v31  ;;  %v2204_v30 = vmul.f32 %v9802_v57, %v1190_v15  ;;  %v2215_v31 = vmul.f32 %v9802_v57, %v1201_v16 }
 0x245   : > { %v2260_v7 = vmul.f32 %v9778_v54, %v1246_v46 }
 0x246   : > { %v2959_v40 = vpack.c.bf16 %v2200_v18, %v2189_v44  ;;  %v2963_v53 = vpack.c.bf16 %v2215_v31, %v2204_v30 }
 0x248   : > { %4546 = vmatmul.mubr.bf16.gmra.mrb[56].mxu1 %v2919_v38  ;;  %v1179_v38 = vunpack.c.l.bf16 %v481_v13  ;;  %v499_v13 = vld [vmem:[%s8237_s7 + $0x690] sm:$0xff] }
 0x249   : > { %5959 = vmatmul.mubr.bf16.gmra.mrb[56].mxu0 %v2925_v52  ;;  %4555 = vmatprep.mubr.bf16.mxu1 %v2931_v35  ;;  %v490_v52 = vld [vmem:[%s8237_s7 + $0x650] sm:$0xff]  ;;  %v3765_v35 = vpack.c.bf16 %v3589_v21, %v3587_v43  ;;  %v1212_v21 = vunpack.c.l.bf16 %v499_v13 }
 0x24a   : > { %5968 = vmatprep.mubr.bf16.mxu0 %v2937_v41  ;;  %v2953_v41 = vpack.c.bf16 %v2194_v45, %v2183_v42  ;;  %v1197_v62 = vunpack.c.h.bf16 %v490_v52  ;;  %v2193_v0 = vmul.f32 %v9802_v57, %v1179_v38  ;;  %v1196_v19 = vunpack.c.l.bf16 %v490_v52  ;;  %v3425_v43 = vld [vmem:[%s11475_s1 + $0x590] sm:$0xff] }
 0x24b   : > { %6268 = vmatpush1.bf16.msra.mxu0 %v3765_v35  ;;  %v3683_v51 = vpack.c.bf16 %v3425_v43, %v3423_v47  ;;  %v514_v38 = vld [vmem:[%s8237_s7 + $0x700] sm:$0xff]  ;;  %v520_v52 = vld [vmem:[%s8237_s7 + $0x72c] sm:$0xff] }
 0x24c   : > { %v2211_v10 = vmul.f32 %v9783_v33, %v1197_v62  ;;  %v2952_v63 = vpack.c.bf16 %v2193_v0, %v2182_v3  ;;  %v2210_v32 = vmul.f32 %v9795_v56, %v1196_v19  ;;  %v1241_v60 = vunpack.c.h.bf16 %v514_v38  ;;  %v541_v47 = vld [vmem:[%s8237_s7 + $0x7c4] sm:$0xff] }
 0x24d   : > { %4869 = vmatpush1.bf16.msra.mxu1 %v3683_v51  ;;  %v2226_v62 = vmul.f32 %v9802_v57, %v1212_v21  ;;  %v2243_v0 = vmul.f32 %v9795_v56, %v1229_v59  ;;  %v1240_v15 = vunpack.c.l.bf16 %v514_v38  ;;  %v1251_v16 = vunpack.c.l.bf16 %v520_v52  ;;  %v538_v51 = vld [vmem:[%s8237_s7 + $0x7b0] sm:$0xff]  ;;  %v544_v21 = vld [vmem:[%s8237_s7 + $0x7dc] sm:$0xff] }
 0x24e   : > { %v2970_v27 = vpack.c.bf16 %v2222_v11, %v2211_v10  ;;  %v2969_v35 = vpack.c.bf16 %v2221_v55, %v2210_v32  ;;  %v2255_v8 = vmul.f32 %v9783_v33, %v1241_v60  ;;  %v523_v10 = vld [vmem:[%s8237_s7 + $0x740] sm:$0xff]  ;;  %v529_v11 = vld [vmem:[%s8237_s7 + $0x76c] sm:$0xff]  ;;  %v1290_v59 = vunpack.c.h.bf16 %v541_v47 }
 0x24f   : > { %v2254_v30 = vmul.f32 %v9795_v56, %v1240_v15  ;;  %v2265_v31 = vmul.f32 %v9795_v56, %v1251_v16  ;;  %v1285_v46 = vunpack.c.h.bf16 %v538_v51 }
 0x250   : > { %4556 = vmatmul.mubr.bf16.gmra.mrb[60].mxu1 %v2930_v1  ;;  %v502_v1 = vld [vmem:[%s8237_s7 + $0x6a8] sm:$0xff] }
 0x251   : > { %5969 = vmatmul.mubr.bf16.gmra.mrb[60].mxu0 %v2936_v12  ;;  %4565 = vmatprep.mubr.bf16.mxu1 %v2942_v26  ;;  %v1213_v12 = vunpack.c.h.bf16 %v499_v13  ;;  %v1224_v26 = vunpack.c.h.bf16 %v505_v14  ;;  %v1219_v28 = vunpack.c.h.bf16 %v502_v1  ;;  %v2974_v13 = vpack.c.bf16 %v2237_v2, %v2226_v62  ;;  %v526_v14 = vld [vmem:[%s8237_s7 + $0x758] sm:$0xff] }
 0x252   : > { %5978 = vmatprep.mubr.bf16.mxu0 %v2948_v29  ;;  %v1230_v29 = vunpack.c.h.bf16 %v508_v4  ;;  %v1245_v4 = vunpack.c.l.bf16 %v517_v50  ;;  %v1267_v50 = vunpack.c.l.bf16 %v529_v11 }
 0x253   : > { %v2227_v42 = vmul.f32 %v9778_v54, %v1213_v12  ;;  %v2238_v45 = vmul.f32 %v9778_v54, %v1224_v26  ;;  %v2233_v44 = vmul.f32 %v9783_v33, %v1219_v28  ;;  %v1263_v26 = vunpack.c.h.bf16 %v526_v14 }
 0x254   : > { %v2244_v18 = vmul.f32 %v9783_v33, %v1230_v29  ;;  %v2259_v29 = vmul.f32 %v9802_v57, %v1245_v4  ;;  %v1295_v4 = vunpack.c.l.bf16 %v544_v21 }
 0x256   : > { %v2981_v61 = vpack.c.bf16 %v2244_v18, %v2233_v44  ;;  %v3427_v44 = vld [vmem:[%s11475_s1 + $0x5a0] sm:$0xff]  ;;  %v3429_v18 = vld [vmem:[%s11475_s1 + $0x5b0] sm:$0xff] }
 0x257   : > { %v3685_v22 = vpack.c.bf16 %v3429_v18, %v3427_v44  ;;  %v568_v18 = vld [vmem:[%s8237_s7 + $0x88c] sm:$0xff] }
 0x258   : > { %4566 = vmatmul.mubr.bf16.gmra.mrb[64].mxu1 %v2941_v20  ;;  %v1218_v20 = vunpack.c.l.bf16 %v502_v1  ;;  %v1234_v1 = vunpack.c.l.bf16 %v511_v48 }
 0x259   : > { %5979 = vmatmul.mubr.bf16.gmra.mrb[64].mxu0 %v2947_v58  ;;  %4575 = vmatprep.mubr.bf16.mxu1 %v2953_v41  ;;  %v2975_v58 = vpack.c.bf16 %v2238_v45, %v2227_v42  ;;  %v1235_v41 = vunpack.c.h.bf16 %v511_v48  ;;  %v3430_v42 = vld [vmem:[%s11475_s1 + $0x5b8] sm:$0xff]  ;;  %v2277_v45 = vmul.f32 %v9783_v33, %v1263_v26  ;;  %v1256_v48 = vunpack.c.l.bf16 %v523_v10 }
 0x25a   : > { %5988 = vmatprep.mubr.bf16.mxu0 %v2959_v40  ;;  %v1252_v40 = vunpack.c.h.bf16 %v520_v52  ;;  %v2232_v3 = vmul.f32 %v9795_v56, %v1218_v20  ;;  %v2248_v28 = vmul.f32 %v9802_v57, %v1234_v1  ;;  %v3686_v43 = vpack.c.bf16 %v3430_v42, %v3428_v39  ;;  %v559_v42 = vld [vmem:[%s8237_s7 + $0x848] sm:$0xff] }
 0x25b   : > { %v2249_v6 = vmul.f32 %v9778_v54, %v1235_v41  ;;  %v2991_v52 = vpack.c.bf16 %v2265_v31, %v2254_v30  ;;  %v2270_v60 = vmul.f32 %v9802_v57, %v1256_v48  ;;  %v1284_v1 = vunpack.c.l.bf16 %v538_v51  ;;  %v3591_v48 = vld [vmem:[%s11475_s1 + $0xac0] sm:$0xff] }
 0x25c   : > { %v2266_v9 = vmul.f32 %v9783_v33, %v1252_v40  ;;  %v2980_v19 = vpack.c.bf16 %v2243_v0, %v2232_v3  ;;  %v2985_v38 = vpack.c.bf16 %v2259_v29, %v2248_v28  ;;  %4870 = vmatprep.subr.bf16.mxu1 %v3686_v43  ;;  %v2281_v40 = vmul.f32 %v9802_v57, %v1267_v50  ;;  %v3593_v50 = vld [vmem:[%s11475_s1 + $0xad0] sm:$0xff] }
 0x25d   : > { %v2986_v23 = vpack.c.bf16 %v2260_v7, %v2249_v6  ;;  %4871 = vmatpush1.bf16.msra.mxu1 %v3685_v22  ;;  %v2304_v0 = vmul.f32 %v9778_v54, %v1290_v59  ;;  %v2299_v6 = vmul.f32 %v9783_v33, %v1285_v46  ;;  %v2298_v28 = vmul.f32 %v9795_v56, %v1284_v1  ;;  %v580_v1 = vld [vmem:[%s8237_s7 + $0x8e4] sm:$0xff] }
 0x25e   : > { %v2992_v12 = vpack.c.bf16 %v2266_v9, %v2255_v8  ;;  %v547_v8 = vld [vmem:[%s8237_s7 + $0x7f0] sm:$0xff]  ;;  %v553_v9 = vld [vmem:[%s8237_s7 + $0x81c] sm:$0xff]  ;;  %v2309_v29 = vmul.f32 %v9795_v56, %v1295_v4 }
 0x25f   : > { %v1300_v43 = vunpack.c.l.bf16 %v547_v8  ;;  %v1311_v44 = vunpack.c.l.bf16 %v553_v9 }
 0x260   : > { %4576 = vmatmul.mubr.bf16.gmra.mrb[68].mxu1 %v2952_v63  ;;  %v532_v63 = vld [vmem:[%s8237_s7 + $0x784] sm:$0xff] }
 0x261   : > { %5989 = vmatmul.mubr.bf16.gmra.mrb[68].mxu0 %v2958_v24  ;;  %4585 = vmatprep.mubr.bf16.mxu1 %v2964_v25  ;;  %v1257_v24 = vunpack.c.h.bf16 %v523_v10  ;;  %v1268_v25 = vunpack.c.h.bf16 %v529_v11  ;;  %v1273_v20 = vunpack.c.l.bf16 %v532_v63  ;;  %v2996_v10 = vpack.c.bf16 %v2281_v40, %v2270_v60  ;;  %v550_v11 = vld [vmem:[%s8237_s7 + $0x808] sm:$0xff] }
 0x262   : > { %5998 = vmatprep.mubr.bf16.mxu0 %v2970_v27  ;;  %v1274_v27 = vunpack.c.h.bf16 %v532_v63  ;;  %v1289_v63 = vunpack.c.l.bf16 %v541_v47  ;;  %v1306_v22 = vunpack.c.l.bf16 %v550_v11  ;;  %v2314_v46 = vmul.f32 %v9802_v57, %v1300_v43 }
 0x263   : > { %v2271_v32 = vmul.f32 %v9778_v54, %v1257_v24  ;;  %v2282_v55 = vmul.f32 %v9778_v54, %v1268_v25  ;;  %v2287_v2 = vmul.f32 %v9795_v56, %v1273_v20  ;;  %v1307_v25 = vunpack.c.h.bf16 %v550_v11 }
 0x264   : > { %v2288_v37 = vmul.f32 %v9783_v33, %v1274_v27  ;;  %v2303_v27 = vmul.f32 %v9802_v57, %v1289_v63  ;;  %v2320_v60 = vmul.f32 %v9795_v56, %v1306_v22  ;;  %v574_v63 = vld [vmem:[%s8237_s7 + $0x8b8] sm:$0xff] }
 0x266   : > { %v3003_v41 = vpack.c.bf16 %v2288_v37, %v2277_v45  ;;  %v565_v45 = vld [vmem:[%s8237_s7 + $0x874] sm:$0xff]  ;;  %v562_v37 = vld [vmem:[%s8237_s7 + $0x860] sm:$0xff] }
 0x267   : > { %v1334_v20 = vunpack.c.h.bf16 %v565_v45  ;;  %v1329_v59 = vunpack.c.h.bf16 %v562_v37 }
 0x268   : > { %4586 = vmatmul.mubr.bf16.gmra.mrb[72].mxu1 %v2963_v53  ;;  %v1262_v53 = vunpack.c.l.bf16 %v526_v14  ;;  %v1278_v14 = vunpack.c.l.bf16 %v535_v34 }
 0x269   : > { %5999 = vmatmul.mubr.bf16.gmra.mrb[72].mxu0 %v2969_v35  ;;  %4595 = vmatprep.mubr.bf16.mxu1 %v2975_v58  ;;  %v2997_v35 = vpack.c.bf16 %v2282_v55, %v2271_v32  ;;  %v1279_v58 = vunpack.c.h.bf16 %v535_v34  ;;  %v3592_v32 = vld [vmem:[%s11475_s1 + $0xac8] sm:$0xff]  ;;  %v3594_v55 = vld [vmem:[%s11475_s1 + $0xad8] sm:$0xff]  ;;  %v2321_v34 = vmul.f32 %v9783_v33, %v1307_v25 }
 0x26a   : > { %6008 = vmatprep.mubr.bf16.mxu0 %v2981_v61  ;;  %v1296_v61 = vunpack.c.h.bf16 %v544_v21  ;;  %v2276_v62 = vmul.f32 %v9795_v56, %v1262_v53  ;;  %v2292_v26 = vmul.f32 %v9802_v57, %v1278_v14  ;;  %v3768_v47 = vpack.c.bf16 %v3594_v55, %v3592_v32 }
 0x26b   : > { %v2293_v3 = vmul.f32 %v9778_v54, %v1279_v58  ;;  %v3013_v21 = vpack.c.bf16 %v2309_v29, %v2298_v28  ;;  %v1351_v28 = vunpack.c.h.bf16 %v574_v63  ;;  %v1362_v29 = vunpack.c.h.bf16 %v580_v1 }
 0x26c   : > { %v2310_v7 = vmul.f32 %v9783_v33, %v1296_v61  ;;  %v3002_v15 = vpack.c.bf16 %v2287_v2, %v2276_v62  ;;  %v3007_v51 = vpack.c.bf16 %v2303_v27, %v2292_v26  ;;  %6269 = vmatprep.subr.bf16.mxu0 %v3768_v47  ;;  %v2325_v61 = vmul.f32 %v9802_v57, %v1311_v44  ;;  %v589_v47 = vld [vmem:[%s8237_s7 + $0x924] sm:$0xff] }
 0x26d   : > { %v3008_v16 = vpack.c.bf16 %v2304_v0, %v2293_v3  ;;  %v2348_v2 = vmul.f32 %v9778_v54, %v1334_v20  ;;  %v3432_v3 = vld [vmem:[%s11475_s1 + $0x5c8] sm:$0xff]  ;;  %v3434_v0 = vld [vmem:[%s11475_s1 + $0x5d8] sm:$0xff] }
 0x26e   : > { %v3014_v24 = vpack.c.bf16 %v2310_v7, %v2299_v6  ;;  %v3431_v6 = vld [vmem:[%s11475_s1 + $0x5c0] sm:$0xff]  ;;  %v2343_v7 = vmul.f32 %v9783_v33, %v1329_v59  ;;  %v3688_v11 = vpack.c.bf16 %v3434_v0, %v3432_v3  ;;  %v3018_v14 = vpack.c.bf16 %v2325_v61, %v2314_v46 }
 0x26f   : > { %v595_v3 = vld [vmem:[%s8237_s7 + $0x950] sm:$0xff]  ;;  %v601_v0 = vld [vmem:[%s8237_s7 + $0x97c] sm:$0xff] }
 0x270   : > { %4596 = vmatmul.mubr.bf16.gmra.mrb[76].mxu1 %v2974_v13  ;;  %v556_v13 = vld [vmem:[%s8237_s7 + $0x834] sm:$0xff]  ;;  %4872 = vmatprep.subr.bf16.mxu1 %v3688_v11 }
 0x271   : > { %6009 = vmatmul.mubr.bf16.gmra.mrb[76].mxu0 %v2980_v19  ;;  %4605 = vmatprep.mubr.bf16.mxu1 %v2986_v23  ;;  %v1301_v19 = vunpack.c.h.bf16 %v547_v8  ;;  %v1312_v23 = vunpack.c.h.bf16 %v553_v9  ;;  %v1317_v53 = vunpack.c.l.bf16 %v556_v13  ;;  %v571_v9 = vld [vmem:[%s8237_s7 + $0x8a0] sm:$0xff] }
 0x272   : > { %6018 = vmatprep.mubr.bf16.mxu0 %v2992_v12  ;;  %v1318_v12 = vunpack.c.h.bf16 %v556_v13  ;;  %v3433_v13 = vld [vmem:[%s11475_s1 + $0x5d0] sm:$0xff]  ;;  %v1344_v43 = vunpack.c.l.bf16 %v571_v9 }
 0x273   : > { %v2315_v30 = vmul.f32 %v9778_v54, %v1301_v19  ;;  %v2326_v31 = vmul.f32 %v9778_v54, %v1312_v23  ;;  %v2331_v40 = vmul.f32 %v9795_v56, %v1317_v53  ;;  %v3687_v4 = vpack.c.bf16 %v3433_v13, %v3431_v6 }
 0x274   : > { %v2332_v39 = vmul.f32 %v9783_v33, %v1318_v12  ;;  %v1328_v19 = vunpack.c.l.bf16 %v562_v37  ;;  %v1339_v23 = vunpack.c.l.bf16 %v568_v18  ;;  %v1345_v12 = vunpack.c.h.bf16 %v571_v9  ;;  %v583_v37 = vld [vmem:[%s8237_s7 + $0x8f8] sm:$0xff] }
 0x275   : > { %4873 = vmatpush1.bf16.msra.mxu1 %v3687_v4  ;;  %v1378_v53 = vunpack.c.h.bf16 %v589_v47  ;;  %v2358_v59 = vmul.f32 %v9802_v57, %v1344_v43  ;;  %v1366_v9 = vunpack.c.l.bf16 %v583_v37  ;;  %v1400_v4 = vunpack.c.h.bf16 %v601_v0  ;;  %v616_v43 = vld [vmem:[%s8237_s7 + $0x9ec] sm:$0xff] }
 0x276   : > { %v3025_v58 = vpack.c.bf16 %v2332_v39, %v2321_v34  ;;  %v2342_v32 = vmul.f32 %v9795_v56, %v1328_v19  ;;  %v2353_v55 = vmul.f32 %v9795_v56, %v1339_v23  ;;  %v2359_v34 = vmul.f32 %v9778_v54, %v1345_v12 }
 0x277   : > { %v2380_v23 = vmul.f32 %v9802_v57, %v1366_v9 }
 0x278   : > { %4606 = vmatmul.mubr.bf16.gmra.mrb[80].mxu1 %v2985_v38  ;;  %v3767_v38 = vpack.c.bf16 %v3593_v50, %v3591_v48  ;;  %v592_v48 = vld [vmem:[%s8237_s7 + $0x93c] sm:$0xff] }
 0x279   : > { %6019 = vmatmul.mubr.bf16.gmra.mrb[80].mxu0 %v2991_v52  ;;  %4615 = vmatprep.mubr.bf16.mxu1 %v2997_v35  ;;  %v3019_v52 = vpack.c.bf16 %v2326_v31, %v2315_v30  ;;  %v1323_v35 = vunpack.c.h.bf16 %v559_v42  ;;  %v1383_v13 = vunpack.c.l.bf16 %v592_v48 }
 0x27a   : > { %6028 = vmatprep.mubr.bf16.mxu0 %v3003_v41  ;;  %v1340_v41 = vunpack.c.h.bf16 %v568_v18  ;;  %6270 = vmatpush1.bf16.msra.mxu0 %v3767_v38  ;;  %v586_v18 = vld [vmem:[%s8237_s7 + $0x910] sm:$0xff]  ;;  %v1361_v38 = vunpack.c.l.bf16 %v580_v1  ;;  %v1389_v1 = vunpack.c.h.bf16 %v595_v3 }
 0x27b   : > { %v2337_v62 = vmul.f32 %v9778_v54, %v1323_v35  ;;  %v1373_v20 = vunpack.c.h.bf16 %v586_v18  ;;  %v1372_v11 = vunpack.c.l.bf16 %v586_v18  ;;  %v2397_v12 = vmul.f32 %v9795_v56, %v1383_v13 }
 0x27c   : > { %v2354_v8 = vmul.f32 %v9783_v33, %v1340_v41  ;;  %v2375_v61 = vmul.f32 %v9795_v56, %v1361_v38 }
 0x27d   : > { %v3030_v25 = vpack.c.bf16 %v2348_v2, %v2337_v62  ;;  %v2387_v62 = vmul.f32 %v9783_v33, %v1373_v20 }
 0x27e   : > { %v3036_v27 = vpack.c.bf16 %v2354_v8, %v2343_v7  ;;  %v598_v7 = vld [vmem:[%s8237_s7 + $0x968] sm:$0xff]  ;;  %v604_v8 = vld [vmem:[%s8237_s7 + $0x994] sm:$0xff] }
 0x27f   : > { %v1406_v19 = vunpack.c.h.bf16 %v604_v8 }
 0x280   : > { %4616 = vmatmul.mubr.bf16.gmra.mrb[84].mxu1 %v2996_v10  ;;  %v577_v10 = vld [vmem:[%s8237_s7 + $0x8cc] sm:$0xff] }
 0x281   : > { %6029 = vmatmul.mubr.bf16.gmra.mrb[84].mxu0 %v3002_v15  ;;  %4625 = vmatprep.mubr.bf16.mxu1 %v3008_v16  ;;  %v1322_v15 = vunpack.c.l.bf16 %v559_v42  ;;  %v1333_v16 = vunpack.c.l.bf16 %v565_v45  ;;  %v1356_v26 = vunpack.c.h.bf16 %v577_v10  ;;  %v2365_v42 = vmul.f32 %v9783_v33, %v1351_v28  ;;  %v3436_v28 = vld [vmem:[%s11475_s1 + $0x5e8] sm:$0xff] }
 0x282   : > { %6038 = vmatprep.mubr.bf16.mxu0 %v3014_v24  ;;  %v3024_v24 = vpack.c.bf16 %v2331_v40, %v2320_v60  ;;  %v2376_v45 = vmul.f32 %v9783_v33, %v1362_v29  ;;  %v1355_v44 = vunpack.c.l.bf16 %v577_v10  ;;  %v2392_v40 = vmul.f32 %v9778_v54, %v1378_v53  ;;  %v3438_v29 = vld [vmem:[%s11475_s1 + $0x5f8] sm:$0xff] }
 0x283   : > { %v2336_v30 = vmul.f32 %v9802_v57, %v1322_v15  ;;  %v2347_v31 = vmul.f32 %v9802_v57, %v1333_v16  ;;  %v2370_v39 = vmul.f32 %v9778_v54, %v1356_v26  ;;  %v1377_v10 = vunpack.c.l.bf16 %v589_v47  ;;  %v610_v47 = vld [vmem:[%s8237_s7 + $0x9c0] sm:$0xff] }
 0x284   : > { %v3047_v35 = vpack.c.bf16 %v2376_v45, %v2365_v42  ;;  %v2369_v41 = vmul.f32 %v9802_v57, %v1355_v44  ;;  %v1395_v16 = vunpack.c.h.bf16 %v598_v7  ;;  %v2403_v26 = vmul.f32 %v9778_v54, %v1389_v1  ;;  %v3437_v42 = vld [vmem:[%s11475_s1 + $0x5f0] sm:$0xff] }
 0x285   : > { %v3029_v50 = vpack.c.bf16 %v2347_v31, %v2336_v30  ;;  %v3041_v22 = vpack.c.bf16 %v2370_v39, %v2359_v34  ;;  %v3435_v30 = vld [vmem:[%s11475_s1 + $0x5e0] sm:$0xff]  ;;  %v613_v34 = vld [vmem:[%s8237_s7 + $0x9d4] sm:$0xff]  ;;  %v3690_v39 = vpack.c.bf16 %v3438_v29, %v3436_v28  ;;  %v1388_v45 = vunpack.c.l.bf16 %v595_v3 }
 0x286   : > { %v3040_v6 = vpack.c.bf16 %v2369_v41, %v2358_v59  ;;  %v2409_v31 = vmul.f32 %v9783_v33, %v1395_v16  ;;  %v3689_v44 = vpack.c.bf16 %v3437_v42, %v3435_v30  ;;  %v1422_v38 = vunpack.c.h.bf16 %v613_v34  ;;  %v631_v28 = vld [vmem:[%s8237_s7 + $0xa58] sm:$0xff]  ;;  %v637_v29 = vld [vmem:[%s8237_s7 + $0xa84] sm:$0xff] }
 0x287   : > { %4874 = vmatprep.subr.bf16.mxu1 %v3690_v39  ;;  %v1417_v53 = vunpack.c.h.bf16 %v610_v47  ;;  %v2402_v20 = vmul.f32 %v9802_v57, %v1388_v45  ;;  %v1416_v9 = vunpack.c.l.bf16 %v610_v47  ;;  %v1455_v47 = vunpack.c.h.bf16 %v631_v28 }
 0x288   : > { %4626 = vmatmul.mubr.bf16.gmra.mrb[88].mxu1 %v3007_v51  ;;  %v3035_v51 = vpack.c.bf16 %v2353_v55, %v2342_v32  ;;  %v2420_v32 = vmul.f32 %v9783_v33, %v1406_v19  ;;  %v607_v55 = vld [vmem:[%s8237_s7 + $0x9a8] sm:$0xff] }
 0x289   : > { %6039 = vmatmul.mubr.bf16.gmra.mrb[88].mxu0 %v3013_v21  ;;  %4635 = vmatprep.mubr.bf16.mxu1 %v3019_v52  ;;  %v1350_v21 = vunpack.c.l.bf16 %v574_v63  ;;  %v1367_v52 = vunpack.c.h.bf16 %v583_v37  ;;  %v1399_v37 = vunpack.c.l.bf16 %v601_v0  ;;  %v622_v0 = vld [vmem:[%s8237_s7 + $0xa18] sm:$0xff] }
 0x28a   : > { %6048 = vmatprep.mubr.bf16.mxu0 %v3025_v58  ;;  %v1384_v58 = vunpack.c.h.bf16 %v592_v48  ;;  %4875 = vmatpush1.bf16.msra.mxu1 %v3689_v44  ;;  %v1438_v42 = vunpack.c.l.bf16 %v622_v0 }
 0x28b   : > { %v2364_v46 = vmul.f32 %v9795_v56, %v1350_v21  ;;  %v2381_v60 = vmul.f32 %v9778_v54, %v1367_v52  ;;  %v1405_v21 = vunpack.c.l.bf16 %v604_v8  ;;  %v3069_v52 = vpack.c.bf16 %v2420_v32, %v2409_v31  ;;  %v634_v32 = vld [vmem:[%s8237_s7 + $0xa70] sm:$0xff] }
 0x28c   : > { %v2398_v2 = vmul.f32 %v9783_v33, %v1384_v58  ;;  %v2413_v58 = vmul.f32 %v9802_v57, %v1399_v37  ;;  %v1421_v8 = vunpack.c.l.bf16 %v613_v34 }
 0x28d   : > { %v3052_v63 = vpack.c.bf16 %v2392_v40, %v2381_v60  ;;  %v2419_v41 = vmul.f32 %v9795_v56, %v1405_v21  ;;  %v2431_v60 = vmul.f32 %v9783_v33, %v1417_v53  ;;  %v2452_v21 = vmul.f32 %v9795_v56, %v1438_v42 }
 0x28e   : > { %v3058_v15 = vpack.c.bf16 %v2398_v2, %v2387_v62  ;;  %v619_v62 = vld [vmem:[%s8237_s7 + $0xa00] sm:$0xff]  ;;  %v625_v2 = vld [vmem:[%s8237_s7 + $0xa2c] sm:$0xff]  ;;  %v3062_v3 = vpack.c.bf16 %v2413_v58, %v2402_v20  ;;  %v2435_v19 = vmul.f32 %v9802_v57, %v1421_v8 }
 0x28f   : > { %v1432_v30 = vunpack.c.l.bf16 %v619_v62  ;;  %v1443_v31 = vunpack.c.l.bf16 %v625_v2  ;;  %v643_v20 = vld [vmem:[%s8237_s7 + $0xab0] sm:$0xff]  ;;  %v649_v58 = vld [vmem:[%s8237_s7 + $0xadc] sm:$0xff] }
 0x290   : > { %4636 = vmatmul.mubr.bf16.gmra.mrb[92].mxu1 %v3018_v14  ;;  %v3046_v14 = vpack.c.bf16 %v2375_v61, %v2364_v46  ;;  %v2436_v61 = vmul.f32 %v9778_v54, %v1422_v38  ;;  %v2469_v38 = vmul.f32 %v9778_v54, %v1455_v47 }
 0x291   : > { %6049 = vmatmul.mubr.bf16.gmra.mrb[92].mxu0 %v3024_v24  ;;  %4645 = vmatprep.mubr.bf16.mxu1 %v3030_v25  ;;  %v2391_v24 = vmul.f32 %v9802_v57, %v1377_v10  ;;  %v2386_v25 = vmul.f32 %v9795_v56, %v1372_v11  ;;  %v1427_v10 = vunpack.c.l.bf16 %v616_v43 }
 0x292   : > { %6058 = vmatprep.mubr.bf16.mxu0 %v3036_v27  ;;  %v2414_v27 = vmul.f32 %v9778_v54, %v1400_v4  ;;  %v1439_v4 = vunpack.c.h.bf16 %v622_v0  ;;  %v1477_v0 = vunpack.c.h.bf16 %v643_v20 }
 0x293   : > { %v3051_v18 = vpack.c.bf16 %v2391_v24, %v2380_v23  ;;  %v3057_v48 = vpack.c.bf16 %v2397_v12, %v2386_v25  ;;  %v2430_v23 = vmul.f32 %v9795_v56, %v1416_v9  ;;  %v2441_v24 = vmul.f32 %v9795_v56, %v1427_v10 }
 0x295   : > { %v3079_v39 = vpack.c.bf16 %v2441_v24, %v2430_v23  ;;  %v1476_v23 = vunpack.c.l.bf16 %v643_v20  ;;  %v1487_v24 = vunpack.c.l.bf16 %v649_v58 }
 0x297   : > { %v2490_v42 = vmul.f32 %v9802_v57, %v1476_v23 }
 0x298   : > { %4646 = vmatmul.mubr.bf16.gmra.mrb[96].mxu1 %v3029_v50  ;;  %v1394_v50 = vunpack.c.l.bf16 %v598_v7  ;;  %v1410_v7 = vunpack.c.l.bf16 %v607_v55 }
 0x299   : > { %6059 = vmatmul.mubr.bf16.gmra.mrb[96].mxu0 %v3035_v51  ;;  %4655 = vmatprep.mubr.bf16.mxu1 %v3041_v22  ;;  %v3063_v51 = vpack.c.bf16 %v2414_v27, %v2403_v26  ;;  %v1411_v22 = vunpack.c.h.bf16 %v607_v55  ;;  %v2453_v26 = vmul.f32 %v9783_v33, %v1439_v4  ;;  %v640_v55 = vld [vmem:[%s8237_s7 + $0xa9c] sm:$0xff] }
 0x29a   : > { %6068 = vmatprep.mubr.bf16.mxu0 %v3047_v35  ;;  %v1428_v35 = vunpack.c.h.bf16 %v616_v43  ;;  %v2408_v59 = vmul.f32 %v9795_v56, %v1394_v50  ;;  %v2424_v16 = vmul.f32 %v9802_v57, %v1410_v7  ;;  %v1466_v43 = vunpack.c.h.bf16 %v637_v29 }
 0x29b   : > { %v2425_v46 = vmul.f32 %v9778_v54, %v1411_v22  ;;  %v2446_v50 = vmul.f32 %v9802_v57, %v1432_v30 }
 0x29c   : > { %v2442_v40 = vmul.f32 %v9783_v33, %v1428_v35  ;;  %v3068_v11 = vpack.c.bf16 %v2419_v41, %v2408_v59  ;;  %v3073_v34 = vpack.c.bf16 %v2435_v19, %v2424_v16  ;;  %v646_v41 = vld [vmem:[%s8237_s7 + $0xac8] sm:$0xff]  ;;  %v661_v19 = vld [vmem:[%s8237_s7 + $0xb34] sm:$0xff] }
 0x29d   : > { %v3074_v13 = vpack.c.bf16 %v2436_v61, %v2425_v46  ;;  %v652_v46 = vld [vmem:[%s8237_s7 + $0xaf4] sm:$0xff]  ;;  %v1454_v61 = vunpack.c.l.bf16 %v631_v28  ;;  %v1483_v8 = vunpack.c.h.bf16 %v646_v41  ;;  %v655_v16 = vld [vmem:[%s8237_s7 + $0xb08] sm:$0xff]  ;;  %v1482_v28 = vunpack.c.l.bf16 %v646_v41 }
 0x29e   : > { %v3080_v1 = vpack.c.bf16 %v2442_v40, %v2431_v60  ;;  %v1465_v60 = vunpack.c.l.bf16 %v637_v29  ;;  %v1460_v40 = vunpack.c.l.bf16 %v634_v32  ;;  %v1494_v9 = vunpack.c.h.bf16 %v652_v46 }
 0x29f   : > { %v2468_v10 = vmul.f32 %v9802_v57, %v1454_v61  ;;  %v2497_v4 = vmul.f32 %v9783_v33, %v1483_v8  ;;  %v1493_v30 = vunpack.c.l.bf16 %v652_v46 }
 0x2a0   : > { %4656 = vmatmul.mubr.bf16.gmra.mrb[100].mxu1 %v3040_v6  ;;  %v628_v6 = vld [vmem:[%s8237_s7 + $0xa44] sm:$0xff] }
 0x2a1   : > { %6069 = vmatmul.mubr.bf16.gmra.mrb[100].mxu0 %v3046_v14  ;;  %4665 = vmatprep.mubr.bf16.mxu1 %v3052_v63  ;;  %v1433_v14 = vunpack.c.h.bf16 %v619_v62  ;;  %v1444_v63 = vunpack.c.h.bf16 %v625_v2  ;;  %v1449_v37 = vunpack.c.l.bf16 %v628_v6  ;;  %v1471_v62 = vunpack.c.l.bf16 %v640_v55 }
 0x2a2   : > { %6078 = vmatprep.mubr.bf16.mxu0 %v3058_v15  ;;  %v1450_v15 = vunpack.c.h.bf16 %v628_v6  ;;  %v1488_v6 = vunpack.c.h.bf16 %v649_v58  ;;  %v2507_v47 = vmul.f32 %v9795_v56, %v1493_v30 }
 0x2a3   : > { %v2447_v25 = vmul.f32 %v9778_v54, %v1433_v14  ;;  %v2458_v12 = vmul.f32 %v9778_v54, %v1444_v63  ;;  %v2463_v22 = vmul.f32 %v9795_v56, %v1449_v37  ;;  %v2485_v14 = vmul.f32 %v9795_v56, %v1471_v62 }
 0x2a4   : > { %v2464_v27 = vmul.f32 %v9783_v33, %v1450_v15  ;;  %v2491_v63 = vmul.f32 %v9778_v54, %v1477_v0  ;;  %v2508_v15 = vmul.f32 %v9783_v33, %v1494_v9  ;;  %v2496_v37 = vmul.f32 %v9795_v56, %v1482_v28 }
 0x2a5   : > { %v3085_v45 = vpack.c.bf16 %v2458_v12, %v2447_v25  ;;  %v3090_v2 = vpack.c.bf16 %v2463_v22, %v2452_v21  ;;  %v658_v25 = vld [vmem:[%s8237_s7 + $0xb20] sm:$0xff]  ;;  %v664_v12 = vld [vmem:[%s8237_s7 + $0xb4c] sm:$0xff]  ;;  %v670_v22 = vld [vmem:[%s8237_s7 + $0xb78] sm:$0xff] }
 0x2a6   : > { %v3091_v44 = vpack.c.bf16 %v2464_v27, %v2453_v26  ;;  %v1515_v20 = vunpack.c.l.bf16 %v664_v12  ;;  %v3112_v58 = vpack.c.bf16 %v2507_v47, %v2496_v37  ;;  %v694_v47 = vld [vmem:[%s8237_s7 + $0xc28] sm:$0xff] }
 0x2a8   : > { %4666 = vmatmul.mubr.bf16.gmra.mrb[104].mxu1 %v3051_v18  ;;  %v1461_v18 = vunpack.c.h.bf16 %v634_v32  ;;  %v1510_v32 = vunpack.c.h.bf16 %v661_v19  ;;  %v2529_v0 = vmul.f32 %v9795_v56, %v1515_v20 }
 0x2a9   : > { %6079 = vmatmul.mubr.bf16.gmra.mrb[104].mxu0 %v3057_v48  ;;  %4675 = vmatprep.mubr.bf16.mxu1 %v3063_v51  ;;  %v1472_v48 = vunpack.c.h.bf16 %v640_v55  ;;  %v2457_v51 = vmul.f32 %v9802_v57, %v1443_v31  ;;  %v1499_v31 = vunpack.c.h.bf16 %v655_v16  ;;  %v3113_v55 = vpack.c.bf16 %v2508_v15, %v2497_v4 }
 0x2aa   : > { %6088 = vmatprep.mubr.bf16.mxu0 %v3069_v52  ;;  %v2480_v52 = vmul.f32 %v9778_v54, %v1466_v43  ;;  %v2475_v53 = vmul.f32 %v9783_v33, %v1461_v18 }
 0x2ab   : > { %v2486_v35 = vmul.f32 %v9783_v33, %v1472_v48  ;;  %v3084_v59 = vpack.c.bf16 %v2457_v51, %v2446_v50  ;;  %v2513_v43 = vmul.f32 %v9778_v54, %v1499_v31  ;;  %v667_v50 = vld [vmem:[%s8237_s7 + $0xb60] sm:$0xff]  ;;  %v673_v51 = vld [vmem:[%s8237_s7 + $0xb8c] sm:$0xff] }
 0x2ac   : > { %v1521_v41 = vunpack.c.h.bf16 %v667_v50  ;;  %v1532_v46 = vunpack.c.h.bf16 %v673_v51 }
 0x2ad   : > { %v3102_v7 = vpack.c.bf16 %v2486_v35, %v2475_v53  ;;  %v1509_v53 = vunpack.c.l.bf16 %v661_v19  ;;  %v1504_v35 = vunpack.c.l.bf16 %v658_v25 }
 0x2b0   : > { %4676 = vmatmul.mubr.bf16.gmra.mrb[108].mxu1 %v3062_v3  ;;  %v3096_v3 = vpack.c.bf16 %v2480_v52, %v2469_v38  ;;  %v676_v38 = vld [vmem:[%s8237_s7 + $0xba4] sm:$0xff]  ;;  %v1498_v52 = vunpack.c.l.bf16 %v655_v16  ;;  %v1526_v16 = vunpack.c.l.bf16 %v670_v22 }
 0x2b1   : > { %6089 = vmatmul.mubr.bf16.gmra.mrb[108].mxu0 %v3068_v11  ;;  %4685 = vmatprep.mubr.bf16.mxu1 %v3074_v13  ;;  %v2479_v11 = vmul.f32 %v9802_v57, %v1465_v60  ;;  %v2474_v13 = vmul.f32 %v9795_v56, %v1460_v40  ;;  %v1527_v60 = vunpack.c.h.bf16 %v670_v22  ;;  %v1538_v40 = vunpack.c.h.bf16 %v676_v38 }
 0x2b2   : > { %6098 = vmatprep.mubr.bf16.mxu0 %v3080_v1  ;;  %v2502_v1 = vmul.f32 %v9778_v54, %v1488_v6  ;;  %v2512_v62 = vmul.f32 %v9802_v57, %v1498_v52  ;;  %v2535_v6 = vmul.f32 %v9778_v54, %v1521_v41  ;;  %v1537_v23 = vunpack.c.l.bf16 %v676_v38 }
 0x2b3   : > { %v3095_v26 = vpack.c.bf16 %v2479_v11, %v2468_v10  ;;  %v3101_v27 = vpack.c.bf16 %v2485_v14, %v2474_v13  ;;  %v2541_v8 = vmul.f32 %v9783_v33, %v1527_v60  ;;  %v2552_v9 = vmul.f32 %v9783_v33, %v1538_v40  ;;  %v679_v10 = vld [vmem:[%s8237_s7 + $0xbb8] sm:$0xff]  ;;  %v685_v11 = vld [vmem:[%s8237_s7 + $0xbe4] sm:$0xff] }
 0x2b4   : > { %v3107_v29 = vpack.c.bf16 %v2502_v1, %v2491_v63  ;;  %v1520_v13 = vunpack.c.l.bf16 %v667_v50  ;;  %v1531_v14 = vunpack.c.l.bf16 %v673_v51  ;;  %v682_v63 = vld [vmem:[%s8237_s7 + $0xbd0] sm:$0xff]  ;;  %v688_v1 = vld [vmem:[%s8237_s7 + $0xbfc] sm:$0xff]  ;;  %v2540_v30 = vmul.f32 %v9795_v56, %v1526_v16 }
 0x2b5   : > { %v2551_v31 = vmul.f32 %v9795_v56, %v1537_v23  ;;  %v1559_v50 = vunpack.c.l.bf16 %v688_v1 }
 0x2b6   : > { %v2534_v28 = vmul.f32 %v9802_v57, %v1520_v13 }
 0x2b7   : > { %v3134_v51 = vpack.c.bf16 %v2551_v31, %v2540_v30  ;;  %v2573_v41 = vmul.f32 %v9795_v56, %v1559_v50  ;;  %v718_v31 = vld [vmem:[%s8237_s7 + $0xcd8] sm:$0xff] }
 0x2b8   : > { %4686 = vmatmul.mubr.bf16.gmra.mrb[112].mxu1 %v3073_v34  ;;  %v1505_v34 = vunpack.c.h.bf16 %v658_v25  ;;  %v1554_v25 = vunpack.c.h.bf16 %v685_v11 }
 0x2b9   : > { %6099 = vmatmul.mubr.bf16.gmra.mrb[112].mxu0 %v3079_v39  ;;  %4695 = vmatprep.mubr.bf16.mxu1 %v3085_v45  ;;  %v1516_v39 = vunpack.c.h.bf16 %v664_v12  ;;  %v2501_v45 = vmul.f32 %v9802_v57, %v1487_v24  ;;  %v1543_v24 = vunpack.c.h.bf16 %v679_v10  ;;  %v3135_v12 = vpack.c.bf16 %v2552_v9, %v2541_v8 }
 0x2ba   : > { %6108 = vmatprep.mubr.bf16.mxu0 %v3091_v44  ;;  %v2524_v44 = vmul.f32 %v9778_v54, %v1510_v32  ;;  %v2519_v18 = vmul.f32 %v9783_v33, %v1505_v34 }
 0x2bb   : > { %v2530_v48 = vmul.f32 %v9783_v33, %v1516_v39  ;;  %v3106_v21 = vpack.c.bf16 %v2501_v45, %v2490_v42  ;;  %v2557_v32 = vmul.f32 %v9778_v54, %v1543_v24  ;;  %v691_v42 = vld [vmem:[%s8237_s7 + $0xc10] sm:$0xff]  ;;  %v697_v45 = vld [vmem:[%s8237_s7 + $0xc3c] sm:$0xff] }
 0x2bc   : > { %v1565_v22 = vunpack.c.h.bf16 %v691_v42  ;;  %v1576_v38 = vunpack.c.h.bf16 %v697_v45 }
 0x2bd   : > { %v3124_v61 = vpack.c.bf16 %v2530_v48, %v2519_v18  ;;  %v1553_v18 = vunpack.c.l.bf16 %v685_v11  ;;  %v1548_v48 = vunpack.c.l.bf16 %v682_v63 }
 0x2c0   : > { %4696 = vmatmul.mubr.bf16.gmra.mrb[116].mxu1 %v3084_v59  ;;  %v3118_v59 = vpack.c.bf16 %v2524_v44, %v2513_v43  ;;  %v700_v43 = vld [vmem:[%s8237_s7 + $0xc54] sm:$0xff]  ;;  %v1542_v44 = vunpack.c.l.bf16 %v679_v10  ;;  %v1570_v10 = vunpack.c.l.bf16 %v694_v47 }
 0x2c1   : > { %6109 = vmatmul.mubr.bf16.gmra.mrb[116].mxu0 %v3090_v2  ;;  %4705 = vmatprep.mubr.bf16.mxu1 %v3096_v3  ;;  %v2523_v2 = vmul.f32 %v9802_v57, %v1509_v53  ;;  %v2518_v3 = vmul.f32 %v9795_v56, %v1504_v35  ;;  %v1571_v53 = vunpack.c.h.bf16 %v694_v47  ;;  %v1582_v35 = vunpack.c.h.bf16 %v700_v43 }
 0x2c2   : > { %6118 = vmatprep.mubr.bf16.mxu0 %v3102_v7  ;;  %v2546_v7 = vmul.f32 %v9778_v54, %v1532_v46  ;;  %v2556_v20 = vmul.f32 %v9802_v57, %v1542_v44  ;;  %v2579_v46 = vmul.f32 %v9778_v54, %v1565_v22  ;;  %v1581_v13 = vunpack.c.l.bf16 %v700_v43 }
 0x2c3   : > { %v3117_v4 = vpack.c.bf16 %v2523_v2, %v2512_v62  ;;  %v3123_v15 = vpack.c.bf16 %v2529_v0, %v2518_v3  ;;  %v2585_v60 = vmul.f32 %v9783_v33, %v1571_v53  ;;  %v2596_v40 = vmul.f32 %v9783_v33, %v1582_v35  ;;  %v703_v62 = vld [vmem:[%s8237_s7 + $0xc68] sm:$0xff]  ;;  %v709_v2 = vld [vmem:[%s8237_s7 + $0xc94] sm:$0xff] }
 0x2c4   : > { %v3129_v19 = vpack.c.bf16 %v2546_v7, %v2535_v6  ;;  %v1564_v3 = vunpack.c.l.bf16 %v691_v42  ;;  %v1575_v0 = vunpack.c.l.bf16 %v697_v45  ;;  %v706_v6 = vld [vmem:[%s8237_s7 + $0xc80] sm:$0xff]  ;;  %v712_v7 = vld [vmem:[%s8237_s7 + $0xcac] sm:$0xff]  ;;  %v2584_v23 = vmul.f32 %v9795_v56, %v1570_v10 }
 0x2c5   : > { %v2595_v24 = vmul.f32 %v9795_v56, %v1581_v13  ;;  %v1603_v42 = vunpack.c.l.bf16 %v712_v7 }
 0x2c6   : > { %v2578_v16 = vmul.f32 %v9802_v57, %v1564_v3 }
 0x2c7   : > { %v3156_v45 = vpack.c.bf16 %v2595_v24, %v2584_v23  ;;  %v2617_v22 = vmul.f32 %v9795_v56, %v1603_v42  ;;  %v742_v24 = vld [vmem:[%s8237_s7 + $0xd88] sm:$0xff] }
 0x2c8   : > { %4706 = vmatmul.mubr.bf16.gmra.mrb[120].mxu1 %v3095_v26  ;;  %v1549_v26 = vunpack.c.h.bf16 %v682_v63  ;;  %v1598_v63 = vunpack.c.h.bf16 %v709_v2 }
 0x2c9   : > { %6119 = vmatmul.mubr.bf16.gmra.mrb[120].mxu0 %v3101_v27  ;;  %4715 = vmatprep.mubr.bf16.mxu1 %v3107_v29  ;;  %v1560_v27 = vunpack.c.h.bf16 %v688_v1  ;;  %v2545_v29 = vmul.f32 %v9802_v57, %v1531_v14  ;;  %v1587_v14 = vunpack.c.h.bf16 %v703_v62  ;;  %v3157_v1 = vpack.c.bf16 %v2596_v40, %v2585_v60 }
 0x2ca   : > { %6128 = vmatprep.mubr.bf16.mxu0 %v3113_v55  ;;  %v2568_v55 = vmul.f32 %v9778_v54, %v1554_v25  ;;  %v2563_v34 = vmul.f32 %v9783_v33, %v1549_v26 }
 0x2cb   : > { %v2574_v39 = vmul.f32 %v9783_v33, %v1560_v27  ;;  %v3128_v37 = vpack.c.bf16 %v2545_v29, %v2534_v28  ;;  %v2601_v25 = vmul.f32 %v9778_v54, %v1587_v14  ;;  %v715_v28 = vld [vmem:[%s8237_s7 + $0xcc0] sm:$0xff]  ;;  %v721_v29 = vld [vmem:[%s8237_s7 + $0xcec] sm:$0xff] }
 0x2cc   : > { %v1609_v47 = vunpack.c.h.bf16 %v715_v28  ;;  %v1620_v43 = vunpack.c.h.bf16 %v721_v29 }
 0x2cd   : > { %v3146_v52 = vpack.c.bf16 %v2574_v39, %v2563_v34  ;;  %v1597_v34 = vunpack.c.l.bf16 %v709_v2  ;;  %v1592_v39 = vunpack.c.l.bf16 %v706_v6 }
 0x2d0   : > { %4716 = vmatmul.mubr.bf16.gmra.mrb[124].mxu1 %v3106_v21  ;;  %v3140_v21 = vpack.c.bf16 %v2568_v55, %v2557_v32  ;;  %v724_v32 = vld [vmem:[%s8237_s7 + $0xd04] sm:$0xff]  ;;  %v1586_v55 = vunpack.c.l.bf16 %v703_v62  ;;  %v1614_v62 = vunpack.c.l.bf16 %v718_v31 }
 0x2d1   : > { %6129 = vmatmul.mubr.bf16.gmra.mrb[124].mxu0 %v3112_v58  ;;  %4725 = vmatprep.mubr.bf16.mxu1 %v3118_v59  ;;  %v2567_v58 = vmul.f32 %v9802_v57, %v1553_v18  ;;  %v2562_v59 = vmul.f32 %v9795_v56, %v1548_v48  ;;  %v1615_v18 = vunpack.c.h.bf16 %v718_v31  ;;  %v1626_v48 = vunpack.c.h.bf16 %v724_v32 }
 0x2d2   : > { %6138 = vmatprep.mubr.bf16.mxu0 %v3124_v61  ;;  %v2590_v61 = vmul.f32 %v9778_v54, %v1576_v38  ;;  %v2600_v50 = vmul.f32 %v9802_v57, %v1586_v55  ;;  %v2623_v38 = vmul.f32 %v9778_v54, %v1609_v47  ;;  %v1625_v3 = vunpack.c.l.bf16 %v724_v32 }
 0x2d3   : > { %v3139_v8 = vpack.c.bf16 %v2567_v58, %v2556_v20  ;;  %v3145_v9 = vpack.c.bf16 %v2573_v41, %v2562_v59  ;;  %v2629_v53 = vmul.f32 %v9783_v33, %v1615_v18  ;;  %v2640_v35 = vmul.f32 %v9783_v33, %v1626_v48  ;;  %v727_v20 = vld [vmem:[%s8237_s7 + $0xd18] sm:$0xff]  ;;  %v733_v58 = vld [vmem:[%s8237_s7 + $0xd44] sm:$0xff] }
 0x2d4   : > { %v3151_v11 = vpack.c.bf16 %v2590_v61, %v2579_v46  ;;  %v1608_v59 = vunpack.c.l.bf16 %v715_v28  ;;  %v1619_v41 = vunpack.c.l.bf16 %v721_v29  ;;  %v730_v46 = vld [vmem:[%s8237_s7 + $0xd30] sm:$0xff]  ;;  %v736_v61 = vld [vmem:[%s8237_s7 + $0xd5c] sm:$0xff]  ;;  %v2628_v13 = vmul.f32 %v9795_v56, %v1614_v62 }
 0x2d5   : > { %v2639_v14 = vmul.f32 %v9795_v56, %v1625_v3  ;;  %v1647_v28 = vunpack.c.l.bf16 %v736_v61 }
 0x2d6   : > { %v2622_v10 = vmul.f32 %v9802_v57, %v1608_v59 }
 0x2d7   : > { %v3178_v29 = vpack.c.bf16 %v2639_v14, %v2628_v13  ;;  %v2661_v47 = vmul.f32 %v9795_v56, %v1647_v28  ;;  %v766_v14 = vld [vmem:[%s8237_s7 + $0xe38] sm:$0xff] }
 0x2d8   : > { %4726 = vmatmul.mubr.bf16.gmra.mrb[128].mxu1 %v3117_v4  ;;  %v1593_v4 = vunpack.c.h.bf16 %v706_v6  ;;  %v1642_v6 = vunpack.c.h.bf16 %v733_v58 }
 0x2d9   : > { %6139 = vmatmul.mubr.bf16.gmra.mrb[128].mxu0 %v3123_v15  ;;  %4735 = vmatprep.mubr.bf16.mxu1 %v3129_v19  ;;  %v1604_v15 = vunpack.c.h.bf16 %v712_v7  ;;  %v2589_v19 = vmul.f32 %v9802_v57, %v1575_v0  ;;  %v1631_v0 = vunpack.c.h.bf16 %v727_v20  ;;  %v3179_v7 = vpack.c.bf16 %v2640_v35, %v2629_v53 }
 0x2da   : > { %6148 = vmatprep.mubr.bf16.mxu0 %v3135_v12  ;;  %v2612_v12 = vmul.f32 %v9778_v54, %v1598_v63  ;;  %v2607_v26 = vmul.f32 %v9783_v33, %v1593_v4 }
 0x2db   : > { %v2618_v27 = vmul.f32 %v9783_v33, %v1604_v15  ;;  %v3150_v30 = vpack.c.bf16 %v2589_v19, %v2578_v16  ;;  %v2645_v63 = vmul.f32 %v9778_v54, %v1631_v0  ;;  %v739_v16 = vld [vmem:[%s8237_s7 + $0xd70] sm:$0xff]  ;;  %v745_v19 = vld [vmem:[%s8237_s7 + $0xd9c] sm:$0xff] }
 0x2dc   : > { %v1653_v31 = vunpack.c.h.bf16 %v739_v16  ;;  %v1664_v32 = vunpack.c.h.bf16 %v745_v19 }
 0x2dd   : > { %v3168_v44 = vpack.c.bf16 %v2618_v27, %v2607_v26  ;;  %v1641_v26 = vunpack.c.l.bf16 %v733_v58  ;;  %v1636_v27 = vunpack.c.l.bf16 %v730_v46 }
 0x2e0   : > { %4736 = vmatmul.mubr.bf16.gmra.mrb[132].mxu1 %v3128_v37  ;;  %v3162_v37 = vpack.c.bf16 %v2612_v12, %v2601_v25  ;;  %v748_v25 = vld [vmem:[%s8237_s7 + $0xdb4] sm:$0xff]  ;;  %v1630_v12 = vunpack.c.l.bf16 %v727_v20  ;;  %v1658_v20 = vunpack.c.l.bf16 %v742_v24 }
 0x2e1   : > { %6149 = vmatmul.mubr.bf16.gmra.mrb[132].mxu0 %v3134_v51  ;;  %4745 = vmatprep.mubr.bf16.mxu1 %v3140_v21  ;;  %v2611_v51 = vmul.f32 %v9802_v57, %v1597_v34  ;;  %v2606_v21 = vmul.f32 %v9795_v56, %v1592_v39  ;;  %v1659_v34 = vunpack.c.h.bf16 %v742_v24  ;;  %v1670_v39 = vunpack.c.h.bf16 %v748_v25 }
 0x2e2   : > { %6158 = vmatprep.mubr.bf16.mxu0 %v3146_v52  ;;  %v2634_v52 = vmul.f32 %v9778_v54, %v1620_v43  ;;  %v2644_v42 = vmul.f32 %v9802_v57, %v1630_v12  ;;  %v2667_v43 = vmul.f32 %v9778_v54, %v1653_v31  ;;  %v1669_v59 = vunpack.c.l.bf16 %v748_v25 }
 0x2e3   : > { %v3161_v60 = vpack.c.bf16 %v2611_v51, %v2600_v50  ;;  %v3167_v40 = vpack.c.bf16 %v2617_v22, %v2606_v21  ;;  %v2673_v18 = vmul.f32 %v9783_v33, %v1659_v34  ;;  %v2684_v48 = vmul.f32 %v9783_v33, %v1670_v39  ;;  %v751_v50 = vld [vmem:[%s8237_s7 + $0xdc8] sm:$0xff]  ;;  %v757_v51 = vld [vmem:[%s8237_s7 + $0xdf4] sm:$0xff] }
 0x2e4   : > { %v3173_v2 = vpack.c.bf16 %v2634_v52, %v2623_v38  ;;  %v1652_v21 = vunpack.c.l.bf16 %v739_v16  ;;  %v1663_v22 = vunpack.c.l.bf16 %v745_v19  ;;  %v754_v38 = vld [vmem:[%s8237_s7 + $0xde0] sm:$0xff]  ;;  %v760_v52 = vld [vmem:[%s8237_s7 + $0xe0c] sm:$0xff]  ;;  %v2672_v3 = vmul.f32 %v9795_v56, %v1658_v20 }
 0x2e5   : > { %v2683_v0 = vmul.f32 %v9795_v56, %v1669_v59  ;;  %v1691_v16 = vunpack.c.l.bf16 %v760_v52 }
 0x2e6   : > { %v2666_v62 = vmul.f32 %v9802_v57, %v1652_v21 }
 0x2e7   : > { %v3200_v19 = vpack.c.bf16 %v2683_v0, %v2672_v3  ;;  %v2705_v31 = vmul.f32 %v9795_v56, %v1691_v16  ;;  %v790_v3 = vld [vmem:[%s8237_s7 + $0xee8] sm:$0xff] }
 0x2e8   : > { %4746 = vmatmul.mubr.bf16.gmra.mrb[136].mxu1 %v3139_v8  ;;  %v1637_v8 = vunpack.c.h.bf16 %v730_v46  ;;  %v1686_v46 = vunpack.c.h.bf16 %v757_v51 }
 0x2e9   : > { %6159 = vmatmul.mubr.bf16.gmra.mrb[136].mxu0 %v3145_v9  ;;  %4755 = vmatprep.mubr.bf16.mxu1 %v3151_v11  ;;  %v1648_v9 = vunpack.c.h.bf16 %v736_v61  ;;  %v2633_v11 = vmul.f32 %v9802_v57, %v1619_v41  ;;  %v1675_v41 = vunpack.c.h.bf16 %v751_v50  ;;  %v3201_v61 = vpack.c.bf16 %v2684_v48, %v2673_v18 }
 0x2ea   : > { %6168 = vmatprep.mubr.bf16.mxu0 %v3157_v1  ;;  %v2656_v1 = vmul.f32 %v9778_v54, %v1642_v6  ;;  %v2651_v4 = vmul.f32 %v9783_v33, %v1637_v8 }
 0x2eb   : > { %v2662_v15 = vmul.f32 %v9783_v33, %v1648_v9  ;;  %v3172_v23 = vpack.c.bf16 %v2633_v11, %v2622_v10  ;;  %v2689_v6 = vmul.f32 %v9778_v54, %v1675_v41  ;;  %v763_v10 = vld [vmem:[%s8237_s7 + $0xe20] sm:$0xff]  ;;  %v769_v11 = vld [vmem:[%s8237_s7 + $0xe4c] sm:$0xff] }
 0x2ec   : > { %v1697_v24 = vunpack.c.h.bf16 %v763_v10  ;;  %v1708_v25 = vunpack.c.h.bf16 %v769_v11 }
 0x2ed   : > { %v3190_v55 = vpack.c.bf16 %v2662_v15, %v2651_v4  ;;  %v1685_v4 = vunpack.c.l.bf16 %v757_v51  ;;  %v1680_v15 = vunpack.c.l.bf16 %v754_v38 }
 0x2f0   : > { %4756 = vmatmul.mubr.bf16.gmra.mrb[140].mxu1 %v3150_v30  ;;  %v3184_v30 = vpack.c.bf16 %v2656_v1, %v2645_v63  ;;  %v772_v63 = vld [vmem:[%s8237_s7 + $0xe64] sm:$0xff]  ;;  %v1674_v1 = vunpack.c.l.bf16 %v751_v50  ;;  %v1702_v50 = vunpack.c.l.bf16 %v766_v14 }
 0x2f1   : > { %6169 = vmatmul.mubr.bf16.gmra.mrb[140].mxu0 %v3156_v45  ;;  %4765 = vmatprep.mubr.bf16.mxu1 %v3162_v37  ;;  %v2655_v45 = vmul.f32 %v9802_v57, %v1641_v26  ;;  %v2650_v37 = vmul.f32 %v9795_v56, %v1636_v27  ;;  %v1703_v26 = vunpack.c.h.bf16 %v766_v14  ;;  %v1714_v27 = vunpack.c.h.bf16 %v772_v63 }
 0x2f2   : > { %6178 = vmatprep.mubr.bf16.mxu0 %v3168_v44  ;;  %v2678_v44 = vmul.f32 %v9778_v54, %v1664_v32  ;;  %v2688_v28 = vmul.f32 %v9802_v57, %v1674_v1  ;;  %v2711_v32 = vmul.f32 %v9778_v54, %v1697_v24  ;;  %v1713_v21 = vunpack.c.l.bf16 %v772_v63  ;;  %v272_v24 = vld [vmem:[%s8237_s7 + $0x10] sm:$0xff] }
 0x2f3   : > { %v3183_v53 = vpack.c.bf16 %v2655_v45, %v2644_v42  ;;  %v3189_v35 = vpack.c.bf16 %v2661_v47, %v2650_v37  ;;  %v2717_v34 = vmul.f32 %v9783_v33, %v1703_v26  ;;  %v2728_v39 = vmul.f32 %v9783_v33, %v1714_v27  ;;  %v775_v42 = vld [vmem:[%s8237_s7 + $0xe78] sm:$0xff]  ;;  %v781_v45 = vld [vmem:[%s8237_s7 + $0xea4] sm:$0xff] }
 0x2f4   : > { %v3195_v58 = vpack.c.bf16 %v2678_v44, %v2667_v43  ;;  %v1696_v37 = vunpack.c.l.bf16 %v763_v10  ;;  %v1707_v47 = vunpack.c.l.bf16 %v769_v11  ;;  %v778_v43 = vld [vmem:[%s8237_s7 + $0xe90] sm:$0xff]  ;;  %v784_v44 = vld [vmem:[%s8237_s7 + $0xebc] sm:$0xff]  ;;  %v2716_v59 = vmul.f32 %v9795_v56, %v1702_v50 }
 0x2f5   : > { %v2727_v41 = vmul.f32 %v9795_v56, %v1713_v21  ;;  %v1718_v0 = vunpack.c.l.bf16 %v775_v42  ;;  %v1747_v14 = vunpack.c.h.bf16 %v790_v3  ;;  %v1746_v26 = vunpack.c.l.bf16 %v790_v3 }
 0x2f6   : > { %v2710_v20 = vmul.f32 %v9802_v57, %v1696_v37  ;;  %v284_v37 = vld [vmem:[%s8237_s7 + $0x68] sm:$0xff] }
 0x2f7   : > { %v2732_v63 = vmul.f32 %v9802_v57, %v1718_v0 }
 0x2f8   : > { %4766 = vmatmul.mubr.bf16.gmra.mrb[144].mxu1 %v3161_v60  ;;  %v1681_v60 = vunpack.c.h.bf16 %v754_v38  ;;  %v1730_v38 = vunpack.c.h.bf16 %v781_v45 }
 0x2f9   : > { %6179 = vmatmul.mubr.bf16.gmra.mrb[144].mxu0 %v3167_v40  ;;  %4775 = vmatprep.mubr.bf16.mxu1 %v3173_v2  ;;  %v1692_v40 = vunpack.c.h.bf16 %v760_v52  ;;  %v2677_v2 = vmul.f32 %v9802_v57, %v1663_v22  ;;  %v1719_v22 = vunpack.c.h.bf16 %v775_v42  ;;  %v3223_v52 = vpack.c.bf16 %v2728_v39, %v2717_v34 }
 0x2fa   : > { %6188 = vmatprep.mubr.bf16.mxu0 %v3179_v7  ;;  %v2700_v7 = vmul.f32 %v9778_v54, %v1686_v46  ;;  %v2695_v8 = vmul.f32 %v9783_v33, %v1681_v60  ;;  %v1769_v34 = vsub.s32 4, %v8636_v5 }
 0x2fb   : > { %v2706_v9 = vmul.f32 %v9783_v33, %v1692_v40  ;;  %v3194_v13 = vpack.c.bf16 %v2677_v2, %v2666_v62  ;;  %v2733_v46 = vmul.f32 %v9778_v54, %v1719_v22  ;;  %v787_v62 = vld [vmem:[%s8237_s7 + $0xed0] sm:$0xff]  ;;  %v819_v22 = vunpack.c.h.bf16 %v284_v37 }
 0x2fc   : > { %v1741_v11 = vunpack.c.h.bf16 %v787_v62 }
 0x2fd   : > { %v3212_v12 = vpack.c.bf16 %v2706_v9, %v2695_v8  ;;  %v1735_v8 = vunpack.c.l.bf16 %v784_v44  ;;  %v3222_v9 = vpack.c.bf16 %v2727_v41, %v2716_v59  ;;  %v302_v59 = vld [vmem:[%s8237_s7 + $0xec] sm:$0xff]  ;;  %v818_v41 = vunpack.c.l.bf16 %v284_v37 }
 0x2fe   : > { %v2755_v16 = vmul.f32 %v9778_v54, %v1741_v11  ;;  %v852_v0 = vunpack.c.h.bf16 %v302_v59 }
 0x300   : > { %4776 = vmatmul.mubr.bf16.gmra.mrb[148].mxu1 %v3172_v23  ;;  %v3206_v23 = vpack.c.bf16 %v2700_v7, %v2689_v6  ;;  %v1729_v6 = vunpack.c.l.bf16 %v781_v45  ;;  %v1724_v7 = vunpack.c.l.bf16 %v778_v43  ;;  %v275_v45 = vld [vmem:[%s8237_s7 + $0x28] ss:$44 sps:$4 sm:$0xff]  }
 0x301   : > { %6189 = vmatmul.mubr.bf16.gmra.mrb[148].mxu0 %v3178_v29  ;;  %4785 = vmatprep.mubr.bf16.mxu1 %v3184_v30  ;;  %v2699_v29 = vmul.f32 %v9802_v57, %v1685_v4  ;;  %v2694_v30 = vmul.f32 %v9795_v56, %v1680_v15  ;;  %v2749_v15 = vmul.f32 %v9795_v56, %v1735_v8  ;;  %v802_v50 = vunpack.c.l.bf16 %v275_v45 }
 0x302   : > { %6198 = vmatprep.mubr.bf16.mxu0 %v3190_v55  ;;  %v2722_v55 = vmul.f32 %v9778_v54, %v1708_v25  ;;  %v2743_v1 = vmul.f32 %v9802_v57, %v1729_v6  ;;  %v2738_v4 = vmul.f32 %v9795_v56, %v1724_v7  ;;  %v278_v25 = vld [vmem:[%s8237_s7 + $0x3c] sm:$0xff]  ;;  %v813_v21 = vunpack.c.h.bf16 %v275_v45 }
 0x303   : > { %v3205_v18 = vpack.c.bf16 %v2699_v29, %v2688_v28  ;;  %v3211_v48 = vpack.c.bf16 %v2705_v31, %v2694_v30  ;;  %v3239_v29 = vpack.c.bf16 %v2755_v16, %v2755_v16  ;;  %v797_v30 = vunpack.c.h.bf16 %v272_v24 }
 0x304   : > { %v3217_v51 = vpack.c.bf16 %v2722_v55, %v2711_v32  ;;  %v3227_v27 = vpack.c.bf16 %v2743_v1, %v2732_v63  ;;  %v3233_v28 = vpack.c.bf16 %v2749_v15, %v2738_v4  ;;  %v808_v31 = vunpack.c.h.bf16 %v278_v25  ;;  %v314_v63 = vld [vmem:[%s8237_s7 + $0x144] sm:$0xff] }
 0x305   : > { %v851_v16 = vunpack.c.l.bf16 %v302_v59 }
 0x308   : > { %4786 = vmatmul.mubr.bf16.gmra.mrb[152].mxu1 %v3183_v53  ;;  %v1725_v53 = vunpack.c.h.bf16 %v778_v43  ;;  %v10671_v43 = vrot.slane %v9773_v17, %v1761_v36 }
 0x309   : > { %6199 = vmatmul.mubr.bf16.gmra.mrb[152].mxu0 %v3189_v35  ;;  %4795 = vmatprep.mubr.bf16.mxu1 %v3195_v58  ;;  %v1736_v35 = vunpack.c.h.bf16 %v784_v44  ;;  %v2721_v58 = vmul.f32 %v9802_v57, %v1707_v47  ;;  %v290_v47 = vld [vmem:[%s8237_s7 + $0x94] sm:$0xff]  ;;  %v796_v44 = vunpack.c.l.bf16 %v272_v24 }
 0x30a   : > { %6208 = vmatprep.mubr.bf16.mxu0 %v3201_v61  ;;  %v2744_v61 = vmul.f32 %v9778_v54, %v1730_v38  ;;  %v2739_v60 = vmul.f32 %v9783_v33, %v1725_v53  ;;  %v830_v38 = vunpack.c.h.bf16 %v290_v47  ;;  %v1816_v36 = vmul.f32 %v10671_v43, %v802_v50 }
 0x30b   : > { %v2750_v40 = vmul.f32 %v9783_v33, %v1736_v35  ;;  %v3216_v2 = vpack.c.bf16 %v2721_v58, %v2710_v20  ;;  %v287_v35 = vld [vmem:[%s8237_s7 + $0x80] ss:$44 sps:$4 sm:$0xff]   ;;  %v8123_v20 = vmov 0  }
 0x30c   : > { %v3228_v10 = vpack.c.bf16 %v2744_v61, %v2733_v46  ;;  %v296_v58 = vld [vmem:[%s8237_s7 + $0xc0] sm:$0xff]  ;;  %v829_v46 = vunpack.c.l.bf16 %v290_v47 }
 0x30d   : > { %v841_v3 = vunpack.c.h.bf16 %v296_v58  ;;  %v840_v15 = vunpack.c.l.bf16 %v296_v58 }
 0x310   : > { %4796 = vmatmul.mubr.bf16.gmra.mrb[156].mxu1 %v3194_v13  ;;  %v3234_v13 = vpack.c.bf16 %v2750_v40, %v2739_v60  ;;  %v824_v60 = vunpack.c.l.bf16 %v287_v35  ;;  %v835_v40 = vunpack.c.h.bf16 %v287_v35 }
 0x311   : > { %6209 = vmatmul.mubr.bf16.gmra.mrb[156].mxu0 %v3200_v19  ;;  %4805 = vmatprep.mubr.bf16.mxu1 %v3206_v23  ;;  %v1773_v19 = vsub.s32 5, %v8636_v5  ;;  %v2761_v23 = vmul.f32 %v9783_v33, %v1747_v14  ;;  %v2760_v33 = vmul.f32 %v9795_v56, %v1746_v26  ;;  %v308_v14 = vld [vmem:[%s8237_s7 + $0x118] sm:$0xff] }
 0x312   : > { %6218 = vmatprep.mubr.bf16.mxu0 %v3212_v12  ;;  %v1740_v12 = vunpack.c.l.bf16 %v787_v62  ;;  %v1838_v8 = vmul.f32 %v10671_v43, %v824_v60 }
 0x313   : > { %v10658_v32 = vrot.slane %v8731_v49, %v1773_v19  ;;  %v3245_v54 = vpack.c.bf16 %v2761_v23, %v2761_v23  ;;  %v3244_v56 = vpack.c.bf16 %v2760_v33, %v2760_v33  ;;  %v326_v33 = vld [vmem:[%s8237_s7 + $0x19c] sm:$0xff] }
 0x314   : > { %v2754_v55 = vmul.f32 %v9802_v57, %v1740_v12  ;;  %v874_v12 = vunpack.c.h.bf16 %v314_v63  ;;  %v895_v35 = vunpack.c.l.bf16 %v326_v33 }
 0x315   : > { %v1811_v39 = vmul.f32 %v10658_v32, %v797_v30  ;;  %v1822_v42 = vmul.f32 %v10658_v32, %v808_v31  ;;  %v1844_v53 = vmul.f32 %v10658_v32, %v830_v38  ;;  %v1866_v11 = vmul.f32 %v10658_v32, %v852_v0 }
 0x316   : > { %v3238_v57 = vpack.c.bf16 %v2754_v55, %v2754_v55  ;;  %v1888_v31 = vmul.f32 %v10658_v32, %v874_v12  ;;  %v320_v55 = vld [vmem:[%s8237_s7 + $0x170] sm:$0xff] }
 0x318   : > { %4806 = vmatmul.mubr.bf16.gmra.mrb[160].mxu1 %v3205_v18  ;;  %v807_v18 = vunpack.c.l.bf16 %v278_v25  ;;  %v863_v25 = vunpack.c.h.bf16 %v308_v14 }
 0x319   : > { %6219 = vmatmul.mubr.bf16.gmra.mrb[160].mxu0 %v3211_v48  ;;  %4815 = vmatprep.mubr.bf16.mxu1 %v3217_v51  ;;  %v10674_v48 = vrot.slane %v8731_v49, %v1769_v34  ;;  %v2768_v51 = vpack.c.bf16 %v1822_v42, %v1811_v39  ;;  %v1833_v49 = vmul.f32 %v10658_v32, %v819_v22  ;;  %v862_v34 = vunpack.c.l.bf16 %v308_v14 }
 0x31a   : > { %6228 = vmatprep.mubr.bf16.mxu0 %v3223_v52  ;;  %v1827_v52 = vmul.f32 %v10671_v43, %v813_v21  ;;  %v1877_v30 = vmul.f32 %v10658_v32, %v863_v25  ;;  %v873_v39 = vunpack.c.l.bf16 %v314_v63 }
 0x31b   : > { %v1810_v5 = vmul.f32 %v10674_v48, %v796_v44  ;;  %v1821_v17 = vmul.f32 %v10674_v48, %v807_v18  ;;  %v1832_v6 = vmul.f32 %v10674_v48, %v818_v41  ;;  %v1843_v7 = vmul.f32 %v10674_v48, %v829_v46 }
 0x31c   : > { %v2773_v62 = vpack.c.bf16 %v1827_v52, %v1816_v36  ;;  %v1854_v26 = vmul.f32 %v10674_v48, %v840_v15  ;;  %v896_v44 = vunpack.c.h.bf16 %v326_v33  ;;  %v1876_v18 = vmul.f32 %v10674_v48, %v862_v34  ;;  %v338_v36 = vld [vmem:[%s8237_s7 + $0x1f4] sm:$0xff] }
 0x31d   : > { %v2767_v61 = vpack.c.bf16 %v1821_v17, %v1810_v5  ;;  %v2778_v1 = vpack.c.bf16 %v1843_v7, %v1832_v6  ;;  %v1887_v50 = vmul.f32 %v10674_v48, %v873_v39  ;;  %v323_v5 = vld [vmem:[%s8237_s7 + $0x188] ss:$44 sps:$4 sm:$0xff]   ;;  %v335_v6 = vld [vmem:[%s8237_s7 + $0x1e0] ss:$44 sps:$4 sm:$0xff]  }
 0x31e   : > { %v1910_v38 = vmul.f32 %v10658_v32, %v896_v44  ;;  %v332_v17 = vld [vmem:[%s8237_s7 + $0x1c8] sm:$0xff]  ;;  %v890_v58 = vunpack.c.l.bf16 %v323_v5  ;;  %v901_v41 = vunpack.c.h.bf16 %v323_v5  ;;  %v344_v7 = vld [vmem:[%s8237_s7 + $0x220] sm:$0xff]  ;;  %v923_v14 = vunpack.c.h.bf16 %v335_v6 }
 0x31f   : > { %v2800_v52 = vpack.c.bf16 %v1887_v50, %v1876_v18  ;;  %v907_v46 = vunpack.c.h.bf16 %v332_v17  ;;  %v359_v18 = vld [vmem:[%s8237_s7 + $0x290] ss:$44 sps:$4 sm:$0xff]  }
 0x320   : > { %4816 = vmatmul.mubr.bf16.gmra.mrb[164].mxu1 %v3216_v2  ;;  %v2779_v2 = vpack.c.bf16 %v1844_v53, %v1833_v49  ;;  %v884_v53 = vunpack.c.l.bf16 %v320_v55  ;;  %v368_v50 = vld [vmem:[%s8237_s7 + $0x2d0] sm:$0xff]  ;;  %v956_v5 = vunpack.c.l.bf16 %v359_v18 }
 0x321   : > { %6229 = vmatmul.mubr.bf16.gmra.mrb[164].mxu0 %v3222_v9  ;;  %4825 = vmatprep.mubr.bf16.mxu1 %v3228_v10  ;;  %v1849_v9 = vmul.f32 %v10671_v43, %v835_v40  ;;  %v1855_v10 = vmul.f32 %v10658_v32, %v841_v3  ;;  %v1909_v40 = vmul.f32 %v10674_v48, %v895_v35 }
 0x322   : > { %6238 = vmatprep.mubr.bf16.mxu0 %v3234_v13  ;;  %v299_v13 = vld [vmem:[%s8237_s7 + $0xd8] ss:$44 sps:$4 sm:$0xff]   ;;  %v1898_v60 = vmul.f32 %v10674_v48, %v884_v53  ;;  %v1921_v3 = vmul.f32 %v10658_v32, %v907_v46 }
 0x323   : > { %v2784_v4 = vpack.c.bf16 %v1849_v9, %v1838_v8  ;;  %v846_v19 = vunpack.c.l.bf16 %v299_v13  ;;  %v2790_v23 = vpack.c.bf16 %v1866_v11, %v1855_v10  ;;  %v857_v24 = vunpack.c.h.bf16 %v299_v13  ;;  %v350_v8 = vld [vmem:[%s8237_s7 + $0x24c] sm:$0xff] }
 0x324   : > { %v906_v9 = vunpack.c.l.bf16 %v332_v17  ;;  %v917_v10 = vunpack.c.l.bf16 %v338_v36  ;;  %v2811_v11 = vpack.c.bf16 %v1909_v40, %v1898_v60  ;;  %v912_v13 = vunpack.c.l.bf16 %v335_v6  ;;  %v371_v60 = vld [vmem:[%s8237_s7 + $0x2e8] ss:$44 sps:$4 sm:$0xff]  }
 0x325   : > { %v940_v15 = vunpack.c.h.bf16 %v350_v8  ;;  %v967_v17 = vunpack.c.h.bf16 %v359_v18  ;;  %v380_v40 = vld [vmem:[%s8237_s7 + $0x328] sm:$0xff] }
 0x327   : > { %v1954_v12 = vmul.f32 %v10658_v32, %v940_v15 }
 0x328   : > { %4826 = vmatmul.mubr.bf16.gmra.mrb[168].mxu1 %v3227_v27  ;;  %v1865_v27 = vmul.f32 %v10674_v48, %v851_v16  ;;  %v1920_v16 = vmul.f32 %v10674_v48, %v906_v9  ;;  %v989_v9 = vunpack.c.h.bf16 %v371_v60 }
 0x329   : > { %6239 = vmatmul.mubr.bf16.gmra.mrb[168].mxu0 %v3233_v28  ;;  %4835 = vmatprep.mubr.bf16.mxu1 %v3239_v29  ;;  %v1860_v28 = vmul.f32 %v10671_v43, %v846_v19  ;;  %v1871_v29 = vmul.f32 %v10671_v43, %v857_v24  ;;  %v1931_v19 = vmul.f32 %v10674_v48, %v917_v10  ;;  %v995_v10 = vunpack.c.h.bf16 %v380_v40 }
 0x32a   : > { %6248 = vmatprep.mubr.bf16.mxu0 %v3245_v54  ;;  %v311_v54 = vld [vmem:[%s8237_s7 + $0x130] ss:$44 sps:$4 sm:$0xff]   ;;  %v2789_v42 = vpack.c.bf16 %v1865_v27, %v1854_v26  ;;  %v1937_v24 = vmul.f32 %v10671_v43, %v923_v14  ;;  %v347_v26 = vld [vmem:[%s8237_s7 + $0x238] ss:$44 sps:$4 sm:$0xff]  }
 0x32b   : > { %v868_v45 = vunpack.c.l.bf16 %v311_v54  ;;  %v879_v37 = vunpack.c.h.bf16 %v311_v54  ;;  %v2795_v47 = vpack.c.bf16 %v1871_v29, %v1860_v28  ;;  %v356_v27 = vld [vmem:[%s8237_s7 + $0x278] sm:$0xff]  ;;  %v362_v28 = vld [vmem:[%s8237_s7 + $0x2a4] sm:$0xff]  ;;  %v2822_v29 = vpack.c.bf16 %v1931_v19, %v1920_v16  ;;  %v383_v16 = vld [vmem:[%s8237_s7 + $0x340] ss:$44 sps:$4 sm:$0xff]  }
 0x32c   : > { %v939_v54 = vunpack.c.l.bf16 %v350_v8  ;;  %v945_v34 = vunpack.c.h.bf16 %v347_v26  ;;  %v951_v39 = vunpack.c.h.bf16 %v356_v27  ;;  %v392_v19 = vld [vmem:[%s8237_s7 + $0x380] sm:$0xff] }
 0x32d   : > { %v1893_v21 = vmul.f32 %v10671_v43, %v879_v37 }
 0x32e   : > { %v1953_v37 = vmul.f32 %v10674_v48, %v939_v54 }
 0x330   : > { %4836 = vmatmul.mubr.bf16.gmra.mrb[172].mxu1 %v3238_v57  ;;  %v2801_v57 = vpack.c.bf16 %v1888_v31, %v1877_v30  ;;  %v928_v31 = vunpack.c.l.bf16 %v344_v7 }
 0x331   : > { %6249 = vmatmul.mubr.bf16.gmra.mrb[172].mxu0 %v3244_v56  ;;  %4876 = vmatprep.mubr.bf16.mxu1 %v2768_v51  ;;  %v885_v56 = vunpack.c.h.bf16 %v320_v55  ;;  %v1882_v51 = vmul.f32 %v10671_v43, %v868_v45  ;;  %v934_v55 = vunpack.c.l.bf16 %v347_v26  ;;  %v1000_v26 = vunpack.c.l.bf16 %v383_v16 }
 0x332   : > { %6289 = vmatprep.mubr.bf16.mxu0 %v8123_v20  ;;  %v1942_v45 = vmul.f32 %v10674_v48, %v928_v31 }
 0x333   : > { %v1899_v22 = vmul.f32 %v10658_v32, %v885_v56  ;;  %v2806_v49 = vpack.c.bf16 %v1893_v21, %v1882_v51  ;;  %v1965_v56 = vmul.f32 %v10658_v32, %v951_v39  ;;  %v374_v51 = vld [vmem:[%s8237_s7 + $0x2fc] sm:$0xff]  ;;  %v950_v21 = vunpack.c.l.bf16 %v356_v27 }
 0x334   : > { %v984_v53 = vunpack.c.h.bf16 %v374_v51  ;;  %v983_v6 = vunpack.c.l.bf16 %v374_v51  ;;  %v1011_v27 = vunpack.c.h.bf16 %v383_v16 }
 0x335   : > { %v2812_v59 = vpack.c.bf16 %v1910_v38, %v1899_v22  ;;  %v961_v22 = vunpack.c.l.bf16 %v362_v28  ;;  %v2833_v38 = vpack.c.bf16 %v1953_v37, %v1942_v45  ;;  %v1964_v35 = vmul.f32 %v10674_v48, %v950_v21  ;;  %v395_v45 = vld [vmem:[%s8237_s7 + $0x398] ss:$44 sps:$4 sm:$0xff]  }
 0x336   : > { %v1997_v14 = vmul.f32 %v10674_v48, %v983_v6  ;;  %v404_v37 = vld [vmem:[%s8237_s7 + $0x3d8] sm:$0xff]  ;;  %v1033_v21 = vunpack.c.h.bf16 %v395_v45 }
 0x338   : > { %4877 = vmatmul.mubr.bf16.vlgmr.msra.gmra.mrb[0].mxu1 %v2767_v61  ;;  %v918_v61 = vunpack.c.h.bf16 %v338_v36 }
 0x339   : > { %7043 = vmatmul.mubr.msk.bf16.vlgmr.msra.gmra.mrb[0].mxu0 %vm3769_vm0, %v2773_v62  ;;  %4886 = vmatprep.mubr.bf16.mxu1 %v2779_v2  ;;  %v1904_v62 = vmul.f32 %v10671_v43, %v890_v58  ;;  %v1915_v2 = vmul.f32 %v10671_v43, %v901_v41  ;;  %v1975_v58 = vmul.f32 %v10674_v48, %v961_v22  ;;  %v1039_v22 = vunpack.c.h.bf16 %v404_v37 }
 0x33a   : > { %6299 = vmatprep.mubr.bf16.mxu0 %v8123_v20  ;;  %v1932_v0 = vmul.f32 %v10658_v32, %v918_v61  ;;  %v1981_v41 = vmul.f32 %v10671_v43, %v967_v17  ;;  %v1998_v61 = vmul.f32 %v10658_v32, %v984_v53 }
 0x33b   : > { %v2817_v63 = vpack.c.bf16 %v1915_v2, %v1904_v62  ;;  %v386_v62 = vld [vmem:[%s8237_s7 + $0x354] sm:$0xff]  ;;  %v2844_v2 = vpack.c.bf16 %v1975_v58, %v1964_v35  ;;  %v407_v35 = vld [vmem:[%s8237_s7 + $0x3f0] ss:$44 sps:$4 sm:$0xff]  }
 0x33c   : > { %v416_v58 = vld [vmem:[%s8237_s7 + $0x430] sm:$0xff] }
 0x340   : > { %4887 = vmatmul.mubr.bf16.gmra.mrb[4].mxu1 %v2778_v1  ;;  %v2823_v1 = vpack.c.bf16 %v1932_v0, %v1921_v3  ;;  %v972_v0 = vunpack.c.l.bf16 %v368_v50 }
 0x341   : > { %7044 = vmatmul.mubr.msk.bf16.gmra.mrb[4].mxu0 %vm3769_vm0, %v2784_v4  ;;  %4896 = vmatprep.mubr.bf16.mxu1 %v2790_v23  ;;  %v929_v4 = vunpack.c.h.bf16 %v344_v7  ;;  %v1926_v23 = vmul.f32 %v10671_v43, %v912_v13  ;;  %v978_v7 = vunpack.c.l.bf16 %v371_v60  ;;  %v1044_v60 = vunpack.c.l.bf16 %v407_v35 }
 0x342   : > { %6309 = vmatprep.mubr.bf16.mxu0 %v8123_v20  ;;  %v1986_v13 = vmul.f32 %v10674_v48, %v972_v0 }
 0x343   : > { %v1943_v25 = vmul.f32 %v10658_v32, %v929_v4  ;;  %v2828_v30 = vpack.c.bf16 %v1937_v24, %v1926_v23  ;;  %v2009_v4 = vmul.f32 %v10658_v32, %v995_v10  ;;  %v398_v23 = vld [vmem:[%s8237_s7 + $0x3ac] sm:$0xff]  ;;  %v994_v24 = vunpack.c.l.bf16 %v380_v40 }
 0x344   : > { %v1028_v31 = vunpack.c.h.bf16 %v398_v23  ;;  %v1027_v18 = vunpack.c.l.bf16 %v398_v23  ;;  %v1055_v40 = vunpack.c.h.bf16 %v407_v35 }
 0x345   : > { %v2834_v33 = vpack.c.bf16 %v1954_v12, %v1943_v25  ;;  %v1005_v25 = vunpack.c.l.bf16 %v386_v62  ;;  %v2855_v12 = vpack.c.bf16 %v1997_v14, %v1986_v13  ;;  %v2008_v54 = vmul.f32 %v10674_v48, %v994_v24  ;;  %v419_v13 = vld [vmem:[%s8237_s7 + $0x448] ss:$44 sps:$4 sm:$0xff]  }
 0x346   : > { %v2041_v17 = vmul.f32 %v10674_v48, %v1027_v18  ;;  %v428_v14 = vld [vmem:[%s8237_s7 + $0x488] sm:$0xff]  ;;  %v1077_v24 = vunpack.c.h.bf16 %v419_v13 }
 0x348   : > { %4897 = vmatmul.mubr.bf16.gmra.mrb[8].mxu1 %v2789_v42  ;;  %v962_v42 = vunpack.c.h.bf16 %v362_v28 }
 0x349   : > { %7045 = vmatmul.mubr.msk.bf16.gmra.mrb[8].mxu0 %vm3769_vm0, %v2795_v47  ;;  %4906 = vmatprep.mubr.bf16.mxu1 %v2801_v57  ;;  %v1948_v47 = vmul.f32 %v10671_v43, %v934_v55  ;;  %v1959_v57 = vmul.f32 %v10671_v43, %v945_v34  ;;  %v2019_v55 = vmul.f32 %v10674_v48, %v1005_v25  ;;  %v1083_v25 = vunpack.c.h.bf16 %v428_v14 }
 0x34a   : > { %6319 = vmatprep.mubr.bf16.mxu0 %v8123_v20  ;;  %v1976_v44 = vmul.f32 %v10658_v32, %v962_v42  ;;  %v2025_v34 = vmul.f32 %v10671_v43, %v1011_v27  ;;  %v2042_v42 = vmul.f32 %v10658_v32, %v1028_v31 }
 0x34b   : > { %v2839_v36 = vpack.c.bf16 %v1959_v57, %v1948_v47  ;;  %v410_v47 = vld [vmem:[%s8237_s7 + $0x404] sm:$0xff]  ;;  %v2866_v57 = vpack.c.bf16 %v2019_v55, %v2008_v54  ;;  %v431_v54 = vld [vmem:[%s8237_s7 + $0x4a0] ss:$44 sps:$4 sm:$0xff]  }
 0x34c   : > { %v440_v55 = vld [vmem:[%s8237_s7 + $0x4e0] sm:$0xff] }
 0x350   : > { %4907 = vmatmul.mubr.bf16.gmra.mrb[12].mxu1 %v2800_v52  ;;  %v2845_v52 = vpack.c.bf16 %v1976_v44, %v1965_v56  ;;  %v1016_v44 = vunpack.c.l.bf16 %v392_v19 }
 0x351   : > { %7046 = vmatmul.mubr.msk.bf16.gmra.mrb[12].mxu0 %vm3769_vm0, %v2806_v49  ;;  %4916 = vmatprep.mubr.bf16.mxu1 %v2812_v59  ;;  %v973_v49 = vunpack.c.h.bf16 %v368_v50  ;;  %v1970_v59 = vmul.f32 %v10671_v43, %v956_v5  ;;  %v1022_v50 = vunpack.c.l.bf16 %v395_v45  ;;  %v1088_v45 = vunpack.c.l.bf16 %v431_v54 }
 0x352   : > { %6329 = vmatprep.mubr.bf16.mxu0 %v8123_v20  ;;  %v2030_v5 = vmul.f32 %v10674_v48, %v1016_v44 }
 0x353   : > { %v1987_v46 = vmul.f32 %v10658_v32, %v973_v49  ;;  %v2850_v3 = vpack.c.bf16 %v1981_v41, %v1970_v59  ;;  %v2053_v49 = vmul.f32 %v10658_v32, %v1039_v22  ;;  %v422_v59 = vld [vmem:[%s8237_s7 + $0x45c] sm:$0xff]  ;;  %v1038_v41 = vunpack.c.l.bf16 %v404_v37 }
 0x354   : > { %v1072_v0 = vunpack.c.h.bf16 %v422_v59  ;;  %v1071_v16 = vunpack.c.l.bf16 %v422_v59  ;;  %v1099_v37 = vunpack.c.h.bf16 %v431_v54 }
 0x355   : > { %v2856_v8 = vpack.c.bf16 %v1998_v61, %v1987_v46  ;;  %v1049_v46 = vunpack.c.l.bf16 %v410_v47  ;;  %v2877_v61 = vpack.c.bf16 %v2041_v17, %v2030_v5  ;;  %v2052_v6 = vmul.f32 %v10674_v48, %v1038_v41  ;;  %v443_v5 = vld [vmem:[%s8237_s7 + $0x4f8] ss:$44 sps:$4 sm:$0xff]  }
 0x356   : > { %v2085_v27 = vmul.f32 %v10674_v48, %v1071_v16  ;;  %v452_v17 = vld [vmem:[%s8237_s7 + $0x538] sm:$0xff]  ;;  %v1121_v41 = vunpack.c.h.bf16 %v443_v5 }
 0x358   : > { %4917 = vmatmul.mubr.bf16.gmra.mrb[16].mxu1 %v2811_v11  ;;  %v1006_v11 = vunpack.c.h.bf16 %v386_v62 }
 0x359   : > { %7047 = vmatmul.mubr.msk.bf16.gmra.mrb[16].mxu0 %vm3769_vm0, %v2817_v63  ;;  %4926 = vmatprep.mubr.bf16.mxu1 %v2823_v1  ;;  %v1992_v63 = vmul.f32 %v10671_v43, %v978_v7  ;;  %v2003_v1 = vmul.f32 %v10671_v43, %v989_v9  ;;  %v2063_v7 = vmul.f32 %v10674_v48, %v1049_v46  ;;  %v1127_v46 = vunpack.c.h.bf16 %v452_v17 }
 0x35a   : > { %6339 = vmatprep.mubr.bf16.mxu0 %v8123_v20  ;;  %v2020_v15 = vmul.f32 %v10658_v32, %v1006_v11  ;;  %v2069_v9 = vmul.f32 %v10671_v43, %v1055_v40  ;;  %v2086_v11 = vmul.f32 %v10658_v32, %v1072_v0 }
 0x35b   : > { %v2861_v28 = vpack.c.bf16 %v2003_v1, %v1992_v63  ;;  %v434_v63 = vld [vmem:[%s8237_s7 + $0x4b4] sm:$0xff]  ;;  %v2888_v1 = vpack.c.bf16 %v2063_v7, %v2052_v6  ;;  %v455_v6 = vld [vmem:[%s8237_s7 + $0x550] ss:$44 sps:$4 sm:$0xff]  }
 0x35c   : > { %v464_v7 = vld [vmem:[%s8237_s7 + $0x590] sm:$0xff] }
 0x360   : > { %4927 = vmatmul.mubr.bf16.gmra.mrb[20].mxu1 %v2822_v29  ;;  %v2867_v29 = vpack.c.bf16 %v2020_v15, %v2009_v4  ;;  %v1060_v15 = vunpack.c.l.bf16 %v416_v58 }
 0x361   : > { %7048 = vmatmul.mubr.msk.bf16.gmra.mrb[20].mxu0 %vm3769_vm0, %v2828_v30  ;;  %4936 = vmatprep.mubr.bf16.mxu1 %v2834_v33  ;;  %v1017_v30 = vunpack.c.h.bf16 %v392_v19  ;;  %v2014_v33 = vmul.f32 %v10671_v43, %v1000_v26  ;;  %v1066_v19 = vunpack.c.l.bf16 %v419_v13  ;;  %v1132_v13 = vunpack.c.l.bf16 %v455_v6 }
 0x362   : > { %6349 = vmatprep.mubr.bf16.mxu0 %v8123_v20  ;;  %v2074_v26 = vmul.f32 %v10674_v48, %v1060_v15 }
 0x363   : > { %v2031_v39 = vmul.f32 %v10658_v32, %v1017_v30  ;;  %v2872_v56 = vpack.c.bf16 %v2025_v34, %v2014_v33  ;;  %v2097_v30 = vmul.f32 %v10658_v32, %v1083_v25  ;;  %v446_v33 = vld [vmem:[%s8237_s7 + $0x50c] sm:$0xff]  ;;  %v1082_v34 = vunpack.c.l.bf16 %v428_v14 }
 0x364   : > { %v1116_v44 = vunpack.c.h.bf16 %v446_v33  ;;  %v1115_v35 = vunpack.c.l.bf16 %v446_v33  ;;  %v1143_v14 = vunpack.c.h.bf16 %v455_v6 }
 0x365   : > { %v2878_v51 = vpack.c.bf16 %v2042_v42, %v2031_v39  ;;  %v1093_v39 = vunpack.c.l.bf16 %v434_v63  ;;  %v2899_v42 = vpack.c.bf16 %v2085_v27, %v2074_v26  ;;  %v2096_v18 = vmul.f32 %v10674_v48, %v1082_v34  ;;  %v467_v26 = vld [vmem:[%s8237_s7 + $0x5a8] ss:$44 sps:$4 sm:$0xff]  }
 0x366   : > { %v2129_v40 = vmul.f32 %v10674_v48, %v1115_v35  ;;  %v476_v27 = vld [vmem:[%s8237_s7 + $0x5e8] sm:$0xff]  ;;  %v1165_v34 = vunpack.c.h.bf16 %v467_v26 }
 0x368   : > { %4937 = vmatmul.mubr.bf16.gmra.mrb[24].mxu1 %v2833_v38  ;;  %v1050_v38 = vunpack.c.h.bf16 %v410_v47 }
 0x369   : > { %7049 = vmatmul.mubr.msk.bf16.gmra.mrb[24].mxu0 %vm3769_vm0, %v2839_v36  ;;  %4946 = vmatprep.mubr.bf16.mxu1 %v2845_v52  ;;  %v2036_v36 = vmul.f32 %v10671_v43, %v1022_v50  ;;  %v2047_v52 = vmul.f32 %v10671_v43, %v1033_v21  ;;  %v2107_v50 = vmul.f32 %v10674_v48, %v1093_v39  ;;  %v1171_v39 = vunpack.c.h.bf16 %v476_v27 }
 0x36a   : > { %6359 = vmatprep.mubr.bf16.mxu0 %v8123_v20  ;;  %v2064_v53 = vmul.f32 %v10658_v32, %v1050_v38  ;;  %v2113_v21 = vmul.f32 %v10671_v43, %v1099_v37  ;;  %v2130_v38 = vmul.f32 %v10658_v32, %v1116_v44 }
 0x36b   : > { %v2883_v62 = vpack.c.bf16 %v2047_v52, %v2036_v36  ;;  %v458_v36 = vld [vmem:[%s8237_s7 + $0x564] sm:$0xff]  ;;  %v2910_v52 = vpack.c.bf16 %v2107_v50, %v2096_v18  ;;  %v479_v18 = vld [vmem:[%s8237_s7 + $0x600] ss:$44 sps:$4 sm:$0xff]  }
 0x36c   : > { %v488_v50 = vld [vmem:[%s8237_s7 + $0x640] sm:$0xff] }
 0x370   : > { %4947 = vmatmul.mubr.bf16.gmra.mrb[28].mxu1 %v2844_v2  ;;  %v2889_v2 = vpack.c.bf16 %v2064_v53, %v2053_v49  ;;  %v1104_v53 = vunpack.c.l.bf16 %v440_v55 }
 0x371   : > { %7050 = vmatmul.mubr.msk.bf16.gmra.mrb[28].mxu0 %vm3769_vm0, %v2850_v3  ;;  %4956 = vmatprep.mubr.bf16.mxu1 %v2856_v8  ;;  %v1061_v3 = vunpack.c.h.bf16 %v416_v58  ;;  %v2058_v8 = vmul.f32 %v10671_v43, %v1044_v60  ;;  %v1110_v58 = vunpack.c.l.bf16 %v443_v5  ;;  %v1176_v5 = vunpack.c.l.bf16 %v479_v18 }
 0x372   : > { %6369 = vmatprep.mubr.bf16.mxu0 %v8123_v20  ;;  %v2118_v60 = vmul.f32 %v10674_v48, %v1104_v53 }
 0x373   : > { %v2075_v10 = vmul.f32 %v10658_v32, %v1061_v3  ;;  %v2894_v4 = vpack.c.bf16 %v2069_v9, %v2058_v8  ;;  %v2141_v3 = vmul.f32 %v10658_v32, %v1127_v46  ;;  %v470_v8 = vld [vmem:[%s8237_s7 + $0x5bc] sm:$0xff]  ;;  %v1126_v9 = vunpack.c.l.bf16 %v452_v17 }
 0x374   : > { %v1160_v15 = vunpack.c.h.bf16 %v470_v8  ;;  %v1159_v54 = vunpack.c.l.bf16 %v470_v8  ;;  %v1187_v17 = vunpack.c.h.bf16 %v479_v18 }
 0x375   : > { %v2900_v23 = vpack.c.bf16 %v2086_v11, %v2075_v10  ;;  %v1137_v10 = vunpack.c.l.bf16 %v458_v36  ;;  %v2921_v11 = vpack.c.bf16 %v2129_v40, %v2118_v60  ;;  %v2140_v16 = vmul.f32 %v10674_v48, %v1126_v9  ;;  %v491_v60 = vld [vmem:[%s8237_s7 + $0x658] ss:$44 sps:$4 sm:$0xff]  }
 0x376   : > { %v2173_v37 = vmul.f32 %v10674_v48, %v1159_v54  ;;  %v500_v40 = vld [vmem:[%s8237_s7 + $0x698] sm:$0xff]  ;;  %v1209_v9 = vunpack.c.h.bf16 %v491_v60 }
 0x378   : > { %4957 = vmatmul.mubr.bf16.gmra.mrb[32].mxu1 %v2855_v12  ;;  %v1094_v12 = vunpack.c.h.bf16 %v434_v63 }
 0x379   : > { %7051 = vmatmul.mubr.msk.bf16.gmra.mrb[32].mxu0 %vm3769_vm0, %v2861_v28  ;;  %4966 = vmatprep.mubr.bf16.mxu1 %v2867_v29  ;;  %v2080_v28 = vmul.f32 %v10671_v43, %v1066_v19  ;;  %v2091_v29 = vmul.f32 %v10671_v43, %v1077_v24  ;;  %v2151_v19 = vmul.f32 %v10674_v48, %v1137_v10  ;;  %v1215_v10 = vunpack.c.h.bf16 %v500_v40 }
 0x37a   : > { %6379 = vmatprep.mubr.bf16.mxu0 %v8123_v20  ;;  %v2108_v31 = vmul.f32 %v10658_v32, %v1094_v12  ;;  %v2157_v24 = vmul.f32 %v10671_v43, %v1143_v14  ;;  %v2174_v12 = vmul.f32 %v10658_v32, %v1160_v15 }
 0x37b   : > { %v2905_v47 = vpack.c.bf16 %v2091_v29, %v2080_v28  ;;  %v482_v28 = vld [vmem:[%s8237_s7 + $0x614] sm:$0xff]  ;;  %v2932_v29 = vpack.c.bf16 %v2151_v19, %v2140_v16  ;;  %v503_v16 = vld [vmem:[%s8237_s7 + $0x6b0] ss:$44 sps:$4 sm:$0xff]  }
 0x37c   : > { %v512_v19 = vld [vmem:[%s8237_s7 + $0x6f0] sm:$0xff] }
 0x380   : > { %4967 = vmatmul.mubr.bf16.gmra.mrb[36].mxu1 %v2866_v57  ;;  %v2911_v57 = vpack.c.bf16 %v2108_v31, %v2097_v30  ;;  %v1148_v31 = vunpack.c.l.bf16 %v464_v7 }
 0x381   : > { %7052 = vmatmul.mubr.msk.bf16.gmra.mrb[36].mxu0 %vm3769_vm0, %v2872_v56  ;;  %4976 = vmatprep.mubr.bf16.mxu1 %v2878_v51  ;;  %v1105_v56 = vunpack.c.h.bf16 %v440_v55  ;;  %v2102_v51 = vmul.f32 %v10671_v43, %v1088_v45  ;;  %v1154_v55 = vunpack.c.l.bf16 %v467_v26  ;;  %v1220_v26 = vunpack.c.l.bf16 %v503_v16 }
 0x382   : > { %6389 = vmatprep.mubr.bf16.mxu0 %v8123_v20  ;;  %v2162_v45 = vmul.f32 %v10674_v48, %v1148_v31 }
 0x383   : > { %v2119_v22 = vmul.f32 %v10658_v32, %v1105_v56  ;;  %v2916_v49 = vpack.c.bf16 %v2113_v21, %v2102_v51  ;;  %v2185_v56 = vmul.f32 %v10658_v32, %v1171_v39  ;;  %v494_v51 = vld [vmem:[%s8237_s7 + $0x66c] sm:$0xff]  ;;  %v1170_v21 = vunpack.c.l.bf16 %v476_v27 }
 0x384   : > { %v1204_v53 = vunpack.c.h.bf16 %v494_v51  ;;  %v1203_v6 = vunpack.c.l.bf16 %v494_v51  ;;  %v1231_v27 = vunpack.c.h.bf16 %v503_v16 }
 0x385   : > { %v2922_v59 = vpack.c.bf16 %v2130_v38, %v2119_v22  ;;  %v1181_v22 = vunpack.c.l.bf16 %v482_v28  ;;  %v2943_v38 = vpack.c.bf16 %v2173_v37, %v2162_v45  ;;  %v2184_v35 = vmul.f32 %v10674_v48, %v1170_v21  ;;  %v515_v45 = vld [vmem:[%s8237_s7 + $0x708] ss:$44 sps:$4 sm:$0xff]  }
 0x386   : > { %v2217_v14 = vmul.f32 %v10674_v48, %v1203_v6  ;;  %v524_v37 = vld [vmem:[%s8237_s7 + $0x748] sm:$0xff]  ;;  %v1253_v21 = vunpack.c.h.bf16 %v515_v45 }
 0x388   : > { %4977 = vmatmul.mubr.bf16.gmra.mrb[40].mxu1 %v2877_v61  ;;  %v1138_v61 = vunpack.c.h.bf16 %v458_v36 }
 0x389   : > { %7053 = vmatmul.mubr.msk.bf16.gmra.mrb[40].mxu0 %vm3769_vm0, %v2883_v62  ;;  %4986 = vmatprep.mubr.bf16.mxu1 %v2889_v2  ;;  %v2124_v62 = vmul.f32 %v10671_v43, %v1110_v58  ;;  %v2135_v2 = vmul.f32 %v10671_v43, %v1121_v41  ;;  %v2195_v58 = vmul.f32 %v10674_v48, %v1181_v22  ;;  %v1259_v22 = vunpack.c.h.bf16 %v524_v37 }
 0x38a   : > { %6399 = vmatprep.mubr.bf16.mxu0 %v8123_v20  ;;  %v2152_v0 = vmul.f32 %v10658_v32, %v1138_v61  ;;  %v2201_v41 = vmul.f32 %v10671_v43, %v1187_v17  ;;  %v2218_v61 = vmul.f32 %v10658_v32, %v1204_v53 }
 0x38b   : > { %v2927_v63 = vpack.c.bf16 %v2135_v2, %v2124_v62  ;;  %v506_v62 = vld [vmem:[%s8237_s7 + $0x6c4] sm:$0xff]  ;;  %v2954_v2 = vpack.c.bf16 %v2195_v58, %v2184_v35  ;;  %v527_v35 = vld [vmem:[%s8237_s7 + $0x760] ss:$44 sps:$4 sm:$0xff]  }
 0x38c   : > { %v536_v58 = vld [vmem:[%s8237_s7 + $0x7a0] sm:$0xff] }
 0x390   : > { %4987 = vmatmul.mubr.bf16.gmra.mrb[44].mxu1 %v2888_v1  ;;  %v2933_v1 = vpack.c.bf16 %v2152_v0, %v2141_v3  ;;  %v1192_v0 = vunpack.c.l.bf16 %v488_v50 }
 0x391   : > { %7054 = vmatmul.mubr.msk.bf16.gmra.mrb[44].mxu0 %vm3769_vm0, %v2894_v4  ;;  %4996 = vmatprep.mubr.bf16.mxu1 %v2900_v23  ;;  %v1149_v4 = vunpack.c.h.bf16 %v464_v7  ;;  %v2146_v23 = vmul.f32 %v10671_v43, %v1132_v13  ;;  %v1198_v7 = vunpack.c.l.bf16 %v491_v60  ;;  %v1264_v60 = vunpack.c.l.bf16 %v527_v35 }
 0x392   : > { %6409 = vmatprep.mubr.bf16.mxu0 %v8123_v20  ;;  %v2206_v13 = vmul.f32 %v10674_v48, %v1192_v0 }
 0x393   : > { %v2163_v25 = vmul.f32 %v10658_v32, %v1149_v4  ;;  %v2938_v30 = vpack.c.bf16 %v2157_v24, %v2146_v23  ;;  %v2229_v4 = vmul.f32 %v10658_v32, %v1215_v10  ;;  %v518_v23 = vld [vmem:[%s8237_s7 + $0x71c] sm:$0xff]  ;;  %v1214_v24 = vunpack.c.l.bf16 %v500_v40 }
 0x394   : > { %v1248_v31 = vunpack.c.h.bf16 %v518_v23  ;;  %v1247_v18 = vunpack.c.l.bf16 %v518_v23  ;;  %v1275_v40 = vunpack.c.h.bf16 %v527_v35 }
 0x395   : > { %v2944_v33 = vpack.c.bf16 %v2174_v12, %v2163_v25  ;;  %v1225_v25 = vunpack.c.l.bf16 %v506_v62  ;;  %v2965_v12 = vpack.c.bf16 %v2217_v14, %v2206_v13  ;;  %v2228_v54 = vmul.f32 %v10674_v48, %v1214_v24  ;;  %v539_v13 = vld [vmem:[%s8237_s7 + $0x7b8] ss:$44 sps:$4 sm:$0xff]  }
 0x396   : > { %v2261_v17 = vmul.f32 %v10674_v48, %v1247_v18  ;;  %v548_v14 = vld [vmem:[%s8237_s7 + $0x7f8] sm:$0xff]  ;;  %v1297_v24 = vunpack.c.h.bf16 %v539_v13 }
 0x398   : > { %4997 = vmatmul.mubr.bf16.gmra.mrb[48].mxu1 %v2899_v42  ;;  %v1182_v42 = vunpack.c.h.bf16 %v482_v28 }
 0x399   : > { %7055 = vmatmul.mubr.msk.bf16.gmra.mrb[48].mxu0 %vm3769_vm0, %v2905_v47  ;;  %5006 = vmatprep.mubr.bf16.mxu1 %v2911_v57  ;;  %v2168_v47 = vmul.f32 %v10671_v43, %v1154_v55  ;;  %v2179_v57 = vmul.f32 %v10671_v43, %v1165_v34  ;;  %v2239_v55 = vmul.f32 %v10674_v48, %v1225_v25  ;;  %v1303_v25 = vunpack.c.h.bf16 %v548_v14 }
 0x39a   : > { %6419 = vmatprep.mubr.bf16.mxu0 %v8123_v20  ;;  %v2196_v44 = vmul.f32 %v10658_v32, %v1182_v42  ;;  %v2245_v34 = vmul.f32 %v10671_v43, %v1231_v27  ;;  %v2262_v42 = vmul.f32 %v10658_v32, %v1248_v31 }
 0x39b   : > { %v2949_v36 = vpack.c.bf16 %v2179_v57, %v2168_v47  ;;  %v530_v47 = vld [vmem:[%s8237_s7 + $0x774] sm:$0xff]  ;;  %v2976_v57 = vpack.c.bf16 %v2239_v55, %v2228_v54  ;;  %v551_v54 = vld [vmem:[%s8237_s7 + $0x810] ss:$44 sps:$4 sm:$0xff]  }
 0x39c   : > { %v560_v55 = vld [vmem:[%s8237_s7 + $0x850] sm:$0xff] }
 0x3a0   : > { %5007 = vmatmul.mubr.bf16.gmra.mrb[52].mxu1 %v2910_v52  ;;  %v2955_v52 = vpack.c.bf16 %v2196_v44, %v2185_v56  ;;  %v1236_v44 = vunpack.c.l.bf16 %v512_v19 }
 0x3a1   : > { %7056 = vmatmul.mubr.msk.bf16.gmra.mrb[52].mxu0 %vm3769_vm0, %v2916_v49  ;;  %5016 = vmatprep.mubr.bf16.mxu1 %v2922_v59  ;;  %v1193_v49 = vunpack.c.h.bf16 %v488_v50  ;;  %v2190_v59 = vmul.f32 %v10671_v43, %v1176_v5  ;;  %v1242_v50 = vunpack.c.l.bf16 %v515_v45  ;;  %v1308_v45 = vunpack.c.l.bf16 %v551_v54 }
 0x3a2   : > { %6429 = vmatprep.mubr.bf16.mxu0 %v8123_v20  ;;  %v2250_v5 = vmul.f32 %v10674_v48, %v1236_v44 }
 0x3a3   : > { %v2207_v46 = vmul.f32 %v10658_v32, %v1193_v49  ;;  %v2960_v3 = vpack.c.bf16 %v2201_v41, %v2190_v59  ;;  %v2273_v49 = vmul.f32 %v10658_v32, %v1259_v22  ;;  %v542_v59 = vld [vmem:[%s8237_s7 + $0x7cc] sm:$0xff]  ;;  %v1258_v41 = vunpack.c.l.bf16 %v524_v37 }
 0x3a4   : > { %v1292_v0 = vunpack.c.h.bf16 %v542_v59  ;;  %v1291_v16 = vunpack.c.l.bf16 %v542_v59  ;;  %v1319_v37 = vunpack.c.h.bf16 %v551_v54 }
 0x3a5   : > { %v2966_v8 = vpack.c.bf16 %v2218_v61, %v2207_v46  ;;  %v1269_v46 = vunpack.c.l.bf16 %v530_v47  ;;  %v2987_v61 = vpack.c.bf16 %v2261_v17, %v2250_v5  ;;  %v2272_v6 = vmul.f32 %v10674_v48, %v1258_v41  ;;  %v563_v5 = vld [vmem:[%s8237_s7 + $0x868] ss:$44 sps:$4 sm:$0xff]  }
 0x3a6   : > { %v2305_v27 = vmul.f32 %v10674_v48, %v1291_v16  ;;  %v572_v17 = vld [vmem:[%s8237_s7 + $0x8a8] sm:$0xff]  ;;  %v1341_v41 = vunpack.c.h.bf16 %v563_v5 }
 0x3a8   : > { %5017 = vmatmul.mubr.bf16.gmra.mrb[56].mxu1 %v2921_v11  ;;  %v1226_v11 = vunpack.c.h.bf16 %v506_v62 }
 0x3a9   : > { %7057 = vmatmul.mubr.msk.bf16.gmra.mrb[56].mxu0 %vm3769_vm0, %v2927_v63  ;;  %5026 = vmatprep.mubr.bf16.mxu1 %v2933_v1  ;;  %v2212_v63 = vmul.f32 %v10671_v43, %v1198_v7  ;;  %v2223_v1 = vmul.f32 %v10671_v43, %v1209_v9  ;;  %v2283_v7 = vmul.f32 %v10674_v48, %v1269_v46  ;;  %v1347_v46 = vunpack.c.h.bf16 %v572_v17 }
 0x3aa   : > { %6439 = vmatprep.mubr.bf16.mxu0 %v8123_v20  ;;  %v2240_v15 = vmul.f32 %v10658_v32, %v1226_v11  ;;  %v2289_v9 = vmul.f32 %v10671_v43, %v1275_v40  ;;  %v2306_v11 = vmul.f32 %v10658_v32, %v1292_v0 }
 0x3ab   : > { %v2971_v28 = vpack.c.bf16 %v2223_v1, %v2212_v63  ;;  %v554_v63 = vld [vmem:[%s8237_s7 + $0x824] sm:$0xff]  ;;  %v2998_v1 = vpack.c.bf16 %v2283_v7, %v2272_v6  ;;  %v575_v6 = vld [vmem:[%s8237_s7 + $0x8c0] ss:$44 sps:$4 sm:$0xff]  }
 0x3ac   : > { %v584_v7 = vld [vmem:[%s8237_s7 + $0x900] sm:$0xff] }
 0x3b0   : > { %5027 = vmatmul.mubr.bf16.gmra.mrb[60].mxu1 %v2932_v29  ;;  %v2977_v29 = vpack.c.bf16 %v2240_v15, %v2229_v4  ;;  %v1280_v15 = vunpack.c.l.bf16 %v536_v58 }
 0x3b1   : > { %7058 = vmatmul.mubr.msk.bf16.gmra.mrb[60].mxu0 %vm3769_vm0, %v2938_v30  ;;  %5036 = vmatprep.mubr.bf16.mxu1 %v2944_v33  ;;  %v1237_v30 = vunpack.c.h.bf16 %v512_v19  ;;  %v2234_v33 = vmul.f32 %v10671_v43, %v1220_v26  ;;  %v1286_v19 = vunpack.c.l.bf16 %v539_v13  ;;  %v1352_v13 = vunpack.c.l.bf16 %v575_v6 }
 0x3b2   : > { %6449 = vmatprep.mubr.bf16.mxu0 %v8123_v20  ;;  %v2294_v26 = vmul.f32 %v10674_v48, %v1280_v15 }
 0x3b3   : > { %v2251_v39 = vmul.f32 %v10658_v32, %v1237_v30  ;;  %v2982_v56 = vpack.c.bf16 %v2245_v34, %v2234_v33  ;;  %v2317_v30 = vmul.f32 %v10658_v32, %v1303_v25  ;;  %v566_v33 = vld [vmem:[%s8237_s7 + $0x87c] sm:$0xff]  ;;  %v1302_v34 = vunpack.c.l.bf16 %v548_v14 }
 0x3b4   : > { %v1336_v44 = vunpack.c.h.bf16 %v566_v33  ;;  %v1335_v35 = vunpack.c.l.bf16 %v566_v33  ;;  %v1363_v14 = vunpack.c.h.bf16 %v575_v6 }
 0x3b5   : > { %v2988_v51 = vpack.c.bf16 %v2262_v42, %v2251_v39  ;;  %v1313_v39 = vunpack.c.l.bf16 %v554_v63  ;;  %v3009_v42 = vpack.c.bf16 %v2305_v27, %v2294_v26  ;;  %v2316_v18 = vmul.f32 %v10674_v48, %v1302_v34  ;;  %v587_v26 = vld [vmem:[%s8237_s7 + $0x918] ss:$44 sps:$4 sm:$0xff]  }
 0x3b6   : > { %v2349_v40 = vmul.f32 %v10674_v48, %v1335_v35  ;;  %v596_v27 = vld [vmem:[%s8237_s7 + $0x958] sm:$0xff]  ;;  %v1385_v34 = vunpack.c.h.bf16 %v587_v26 }
 0x3b8   : > { %5037 = vmatmul.mubr.bf16.gmra.mrb[64].mxu1 %v2943_v38  ;;  %v1270_v38 = vunpack.c.h.bf16 %v530_v47 }
 0x3b9   : > { %7059 = vmatmul.mubr.msk.bf16.gmra.mrb[64].mxu0 %vm3769_vm0, %v2949_v36  ;;  %5046 = vmatprep.mubr.bf16.mxu1 %v2955_v52  ;;  %v2256_v36 = vmul.f32 %v10671_v43, %v1242_v50  ;;  %v2267_v52 = vmul.f32 %v10671_v43, %v1253_v21  ;;  %v2327_v50 = vmul.f32 %v10674_v48, %v1313_v39  ;;  %v1391_v39 = vunpack.c.h.bf16 %v596_v27 }
 0x3ba   : > { %6459 = vmatprep.mubr.bf16.mxu0 %v8123_v20  ;;  %v2284_v53 = vmul.f32 %v10658_v32, %v1270_v38  ;;  %v2333_v21 = vmul.f32 %v10671_v43, %v1319_v37  ;;  %v2350_v38 = vmul.f32 %v10658_v32, %v1336_v44 }
 0x3bb   : > { %v2993_v62 = vpack.c.bf16 %v2267_v52, %v2256_v36  ;;  %v578_v36 = vld [vmem:[%s8237_s7 + $0x8d4] sm:$0xff]  ;;  %v3020_v52 = vpack.c.bf16 %v2327_v50, %v2316_v18  ;;  %v599_v18 = vld [vmem:[%s8237_s7 + $0x970] ss:$44 sps:$4 sm:$0xff]  }
 0x3bc   : > { %v608_v50 = vld [vmem:[%s8237_s7 + $0x9b0] sm:$0xff] }
 0x3c0   : > { %5047 = vmatmul.mubr.bf16.gmra.mrb[68].mxu1 %v2954_v2  ;;  %v2999_v2 = vpack.c.bf16 %v2284_v53, %v2273_v49  ;;  %v1324_v53 = vunpack.c.l.bf16 %v560_v55 }
 0x3c1   : > { %7060 = vmatmul.mubr.msk.bf16.gmra.mrb[68].mxu0 %vm3769_vm0, %v2960_v3  ;;  %5056 = vmatprep.mubr.bf16.mxu1 %v2966_v8  ;;  %v1281_v3 = vunpack.c.h.bf16 %v536_v58  ;;  %v2278_v8 = vmul.f32 %v10671_v43, %v1264_v60  ;;  %v1330_v58 = vunpack.c.l.bf16 %v563_v5  ;;  %v1396_v5 = vunpack.c.l.bf16 %v599_v18 }
 0x3c2   : > { %6469 = vmatprep.mubr.bf16.mxu0 %v8123_v20  ;;  %v2338_v60 = vmul.f32 %v10674_v48, %v1324_v53 }
 0x3c3   : > { %v2295_v10 = vmul.f32 %v10658_v32, %v1281_v3  ;;  %v3004_v4 = vpack.c.bf16 %v2289_v9, %v2278_v8  ;;  %v2361_v3 = vmul.f32 %v10658_v32, %v1347_v46  ;;  %v590_v8 = vld [vmem:[%s8237_s7 + $0x92c] sm:$0xff]  ;;  %v1346_v9 = vunpack.c.l.bf16 %v572_v17 }
 0x3c4   : > { %v1380_v15 = vunpack.c.h.bf16 %v590_v8  ;;  %v1379_v54 = vunpack.c.l.bf16 %v590_v8  ;;  %v1407_v17 = vunpack.c.h.bf16 %v599_v18 }
 0x3c5   : > { %v3010_v23 = vpack.c.bf16 %v2306_v11, %v2295_v10  ;;  %v1357_v10 = vunpack.c.l.bf16 %v578_v36  ;;  %v3031_v11 = vpack.c.bf16 %v2349_v40, %v2338_v60  ;;  %v2360_v16 = vmul.f32 %v10674_v48, %v1346_v9  ;;  %v611_v60 = vld [vmem:[%s8237_s7 + $0x9c8] ss:$44 sps:$4 sm:$0xff]  }
 0x3c6   : > { %v2393_v37 = vmul.f32 %v10674_v48, %v1379_v54  ;;  %v10983_v40 = vld [vmem:[%s8237_s7 + $0xa08] sm:$0xff] }
 0x3c7   : > { %v623_v54 = vld [vmem:[%s8237_s7 + $0xa20] ss:$44 sps:$4 sm:$0xff]  }
 0x3c8   : > { %5057 = vmatmul.mubr.bf16.gmra.mrb[72].mxu1 %v2965_v12  ;;  %v1314_v12 = vunpack.c.h.bf16 %v554_v63 }
 0x3c9   : > { %7061 = vmatmul.mubr.msk.bf16.gmra.mrb[72].mxu0 %vm3769_vm0, %v2971_v28  ;;  %5066 = vmatprep.mubr.bf16.mxu1 %v2977_v29  ;;  %v2300_v28 = vmul.f32 %v10671_v43, %v1286_v19  ;;  %v2311_v29 = vmul.f32 %v10671_v43, %v1297_v24  ;;  %v2371_v19 = vmul.f32 %v10674_v48, %v1357_v10  ;;  %v1418_v10 = vunpack.c.l.bf16 %v611_v60 }
 0x3ca   : > { %6479 = vmatprep.mubr.bf16.mxu0 %v8123_v20  ;;  %v2328_v31 = vmul.f32 %v10658_v32, %v1314_v12  ;;  %v2377_v24 = vmul.f32 %v10671_v43, %v1363_v14  ;;  %v2394_v12 = vmul.f32 %v10658_v32, %v1380_v15 }
 0x3cb   : > { %v3015_v47 = vpack.c.bf16 %v2311_v29, %v2300_v28  ;;  %v602_v28 = vld [vmem:[%s8237_s7 + $0x984] sm:$0xff]  ;;  %v3042_v29 = vpack.c.bf16 %v2371_v19, %v2360_v16 }
 0x3d0   : > { %5067 = vmatmul.mubr.bf16.gmra.mrb[76].mxu1 %v2976_v57  ;;  %v3021_v57 = vpack.c.bf16 %v2328_v31, %v2317_v30  ;;  %v1368_v31 = vunpack.c.l.bf16 %v584_v7 }
 0x3d1   : > { %7062 = vmatmul.mubr.msk.bf16.gmra.mrb[76].mxu0 %vm3769_vm0, %v2982_v56  ;;  %5076 = vmatprep.mubr.bf16.mxu1 %v2988_v51  ;;  %v1325_v56 = vunpack.c.h.bf16 %v560_v55  ;;  %v2322_v51 = vmul.f32 %v10671_v43, %v1308_v45  ;;  %v1374_v55 = vunpack.c.l.bf16 %v587_v26 }
 0x3d2   : > { %6489 = vmatprep.mubr.bf16.mxu0 %v8123_v20  ;;  %v2382_v45 = vmul.f32 %v10674_v48, %v1368_v31 }
 0x3d3   : > { %v2339_v22 = vmul.f32 %v10658_v32, %v1325_v56  ;;  %v3026_v49 = vpack.c.bf16 %v2333_v21, %v2322_v51  ;;  %v2405_v56 = vmul.f32 %v10658_v32, %v1391_v39  ;;  %v614_v51 = vld [vmem:[%s8237_s7 + $0x9dc] sm:$0xff]  ;;  %v1390_v21 = vunpack.c.l.bf16 %v596_v27 }
 0x3d4   : > { %v1424_v53 = vunpack.c.h.bf16 %v614_v51  ;;  %v1423_v9 = vunpack.c.l.bf16 %v614_v51  ;;  %v1434_v39 = vunpack.c.l.bf16 %v10983_v40 }
 0x3d5   : > { %v3032_v59 = vpack.c.bf16 %v2350_v38, %v2339_v22  ;;  %v1401_v22 = vunpack.c.l.bf16 %v602_v28  ;;  %v3053_v38 = vpack.c.bf16 %v2393_v37, %v2382_v45  ;;  %v2404_v35 = vmul.f32 %v10674_v48, %v1390_v21 }
 0x3d6   : > { %v2437_v27 = vmul.f32 %v10674_v48, %v1423_v9 }
 0x3d8   : > { %5077 = vmatmul.mubr.bf16.gmra.mrb[80].mxu1 %v2987_v61  ;;  %v1358_v61 = vunpack.c.h.bf16 %v578_v36 }
 0x3d9   : > { %7063 = vmatmul.mubr.msk.bf16.gmra.mrb[80].mxu0 %vm3769_vm0, %v2993_v62  ;;  %5086 = vmatprep.mubr.bf16.mxu1 %v2999_v2  ;;  %v2344_v62 = vmul.f32 %v10671_v43, %v1330_v58  ;;  %v2355_v2 = vmul.f32 %v10671_v43, %v1341_v41  ;;  %v2415_v58 = vmul.f32 %v10674_v48, %v1401_v22 }
 0x3da   : > { %6499 = vmatprep.mubr.bf16.mxu0 %v8123_v20  ;;  %v2372_v0 = vmul.f32 %v10658_v32, %v1358_v61  ;;  %v2421_v41 = vmul.f32 %v10671_v43, %v1407_v17  ;;  %v2438_v61 = vmul.f32 %v10658_v32, %v1424_v53  ;;  %v2448_v53 = vmul.f32 %v10674_v48, %v1434_v39 }
 0x3db   : > { %v3037_v63 = vpack.c.bf16 %v2355_v2, %v2344_v62  ;;  %v10986_v62 = vld [vmem:[%s8237_s7 + $0xa34] sm:$0xff] }
 0x3dc   : > { %v1446_v15 = vunpack.c.h.bf16 %v10986_v62 }
 0x3de   : > { %v2460_v31 = vmul.f32 %v10658_v32, %v1446_v15 }
 0x3e0   : > { %5087 = vmatmul.mubr.bf16.gmra.mrb[84].mxu1 %v2998_v1  ;;  %v3043_v1 = vpack.c.bf16 %v2372_v0, %v2361_v3  ;;  %v3064_v3 = vpack.c.bf16 %v2415_v58, %v2404_v35  ;;  %v1412_v0 = vunpack.c.l.bf16 %v608_v50 }
 0x3e1   : > { %7064 = vmatmul.mubr.msk.bf16.gmra.mrb[84].mxu0 %vm3769_vm0, %v3004_v4  ;;  %5096 = vmatprep.mubr.bf16.mxu1 %v3010_v23  ;;  %v1369_v4 = vunpack.c.h.bf16 %v584_v7  ;;  %v2366_v23 = vmul.f32 %v10671_v43, %v1352_v13 }
 0x3e2   : > { %6509 = vmatprep.mubr.bf16.mxu0 %v8123_v20 }
 0x3e3   : > { %v2383_v25 = vmul.f32 %v10658_v32, %v1369_v4  ;;  %v3048_v30 = vpack.c.bf16 %v2377_v24, %v2366_v23  ;;  %v1435_v4 = vunpack.c.h.bf16 %v10983_v40  ;;  %v644_v40 = vld [vmem:[%s8237_s7 + $0xab8] sm:$0xff] }
 0x3e4   : > { %v1478_v39 = vunpack.c.l.bf16 %v644_v40 }
 0x3e5   : > { %v3054_v33 = vpack.c.bf16 %v2394_v12, %v2383_v25  ;;  %v2426_v12 = vmul.f32 %v10674_v48, %v1412_v0 }
 0x3e8   : > { %5097 = vmatmul.mubr.bf16.gmra.mrb[88].mxu1 %v3009_v42  ;;  %v1402_v42 = vunpack.c.h.bf16 %v602_v28  ;;  %v2432_v28 = vmul.f32 %v10671_v43, %v1418_v10 }
 0x3e9   : > { %7065 = vmatmul.mubr.msk.bf16.gmra.mrb[88].mxu0 %vm3769_vm0, %v3015_v47  ;;  %5106 = vmatprep.mubr.bf16.mxu1 %v3021_v57  ;;  %v2388_v47 = vmul.f32 %v10671_v43, %v1374_v55  ;;  %v2399_v57 = vmul.f32 %v10671_v43, %v1385_v34  ;;  %v632_v55 = vld [vmem:[%s8237_s7 + $0xa60] sm:$0xff] }
 0x3ea   : > { %6519 = vmatprep.mubr.bf16.mxu0 %v8123_v20  ;;  %v2416_v44 = vmul.f32 %v10658_v32, %v1402_v42  ;;  %v1445_v42 = vunpack.c.l.bf16 %v10986_v62  ;;  %v1457_v22 = vunpack.c.h.bf16 %v632_v55  ;;  %v650_v62 = vld [vmem:[%s8237_s7 + $0xae4] sm:$0xff]  ;;  %v1456_v0 = vunpack.c.l.bf16 %v632_v55  ;;  %v656_v55 = vld [vmem:[%s8237_s7 + $0xb10] sm:$0xff] }
 0x3eb   : > { %v3059_v36 = vpack.c.bf16 %v2399_v57, %v2388_v47  ;;  %v3075_v47 = vpack.c.bf16 %v2437_v27, %v2426_v12  ;;  %v1490_v15 = vunpack.c.h.bf16 %v650_v62 }
 0x3ec   : > { %v2459_v35 = vmul.f32 %v10674_v48, %v1445_v42  ;;  %v2470_v12 = vmul.f32 %v10674_v48, %v1456_v0  ;;  %v1489_v42 = vunpack.c.l.bf16 %v650_v62  ;;  %v674_v62 = vld [vmem:[%s8237_s7 + $0xb94] sm:$0xff]  ;;  %v1500_v0 = vunpack.c.l.bf16 %v656_v55 }
 0x3f0   : > { %5107 = vmatmul.mubr.bf16.gmra.mrb[92].mxu1 %v3020_v52  ;;  %v3065_v52 = vpack.c.bf16 %v2416_v44, %v2405_v56  ;;  %v1440_v56 = vunpack.c.l.bf16 %v623_v54  ;;  %v1451_v44 = vunpack.c.h.bf16 %v623_v54  ;;  %v647_v54 = vld [vmem:[%s8237_s7 + $0xad0] ss:$44 sps:$4 sm:$0xff]  }
 0x3f1   : > { %7066 = vmatmul.mubr.msk.bf16.gmra.mrb[92].mxu0 %vm3769_vm0, %v3026_v49  ;;  %5116 = vmatprep.mubr.bf16.mxu1 %v3032_v59  ;;  %v1413_v49 = vunpack.c.h.bf16 %v608_v50  ;;  %v2410_v59 = vmul.f32 %v10671_v43, %v1396_v5 }
 0x3f2   : > { %6529 = vmatprep.mubr.bf16.mxu0 %v8123_v20 }
 0x3f3   : > { %v2427_v46 = vmul.f32 %v10658_v32, %v1413_v49  ;;  %v3070_v8 = vpack.c.bf16 %v2421_v41, %v2410_v59  ;;  %v2454_v59 = vmul.f32 %v10671_v43, %v1440_v56  ;;  %v2465_v41 = vmul.f32 %v10671_v43, %v1451_v44 }
 0x3f4   : > { %v1484_v56 = vunpack.c.l.bf16 %v647_v54  ;;  %v1495_v44 = vunpack.c.h.bf16 %v647_v54  ;;  %v671_v54 = vld [vmem:[%s8237_s7 + $0xb80] ss:$44 sps:$4 sm:$0xff]  }
 0x3f8   : > { %5117 = vmatmul.mubr.bf16.gmra.mrb[96].mxu1 %v3031_v11  ;;  %v1429_v11 = vunpack.c.h.bf16 %v611_v60  ;;  %v635_v60 = vld [vmem:[%s8237_s7 + $0xa78] ss:$44 sps:$4 sm:$0xff]  }
 0x3f9   : > { %7067 = vmatmul.mubr.msk.bf16.gmra.mrb[96].mxu0 %vm3769_vm0, %v3037_v63  ;;  %5126 = vmatprep.mubr.bf16.mxu1 %v3043_v1  ;;  %v3076_v1 = vpack.c.bf16 %v2438_v61, %v2427_v46  ;;  %v2471_v46 = vmul.f32 %v10658_v32, %v1457_v22  ;;  %v1462_v10 = vunpack.c.l.bf16 %v635_v60  ;;  %v1501_v22 = vunpack.c.h.bf16 %v656_v55  ;;  %v680_v55 = vld [vmem:[%s8237_s7 + $0xbc0] sm:$0xff] }
 0x3fa   : > { %6539 = vmatprep.mubr.bf16.mxu0 %v8123_v20 }
 0x400   : > { %5127 = vmatmul.mubr.bf16.gmra.mrb[100].mxu1 %v3042_v29  ;;  %v2443_v29 = vmul.f32 %v10671_v43, %v1429_v11  ;;  %v1473_v11 = vunpack.c.h.bf16 %v635_v60  ;;  %v659_v60 = vld [vmem:[%s8237_s7 + $0xb28] ss:$44 sps:$4 sm:$0xff]  }
 0x401   : > { %7068 = vmatmul.mubr.msk.bf16.gmra.mrb[100].mxu0 %vm3769_vm0, %v3048_v30  ;;  %5136 = vmatprep.mubr.bf16.mxu1 %v3054_v33  ;;  %v2449_v30 = vmul.f32 %v10658_v32, %v1435_v4  ;;  %v11012_v33 = vld [vmem:[%s8237_s7 + $0xa8c] sm:$0xff]  ;;  %v1479_v4 = vunpack.c.h.bf16 %v644_v40 }
 0x402   : > { %6549 = vmatprep.mubr.bf16.mxu0 %v8123_v20  ;;  %v3081_v57 = vpack.c.bf16 %v2443_v29, %v2432_v28  ;;  %v1467_v9 = vunpack.c.l.bf16 %v11012_v33  ;;  %v2476_v28 = vmul.f32 %v10671_v43, %v1462_v10  ;;  %v2487_v29 = vmul.f32 %v10671_v43, %v1473_v11  ;;  %v668_v40 = vld [vmem:[%s8237_s7 + $0xb68] sm:$0xff] }
 0x403   : > { %v3087_v21 = vpack.c.bf16 %v2460_v31, %v2449_v30  ;;  %v2493_v30 = vmul.f32 %v10658_v32, %v1479_v4  ;;  %v2504_v31 = vmul.f32 %v10658_v32, %v1490_v15  ;;  %v1506_v10 = vunpack.c.l.bf16 %v659_v60 }
 0x404   : > { %v2481_v27 = vmul.f32 %v10674_v48, %v1467_v9  ;;  %v1517_v11 = vunpack.c.h.bf16 %v659_v60  ;;  %v1523_v4 = vunpack.c.h.bf16 %v668_v40  ;;  %v1534_v15 = vunpack.c.h.bf16 %v674_v62  ;;  %v683_v60 = vld [vmem:[%s8237_s7 + $0xbd8] ss:$44 sps:$4 sm:$0xff]  }
 0x408   : > { %5137 = vmatmul.mubr.bf16.gmra.mrb[104].mxu1 %v3053_v38  ;;  %v1468_v38 = vunpack.c.h.bf16 %v11012_v33  ;;  %v11052_v33 = vld [vmem:[%s8237_s7 + $0xb3c] sm:$0xff] }
 0x409   : > { %7069 = vmatmul.mubr.msk.bf16.gmra.mrb[104].mxu0 %vm3769_vm0, %v3059_v36  ;;  %5146 = vmatprep.mubr.bf16.mxu1 %v3065_v52  ;;  %v1511_v9 = vunpack.c.l.bf16 %v11052_v33 }
 0x40a   : > { %6559 = vmatprep.mubr.bf16.mxu0 %v8123_v20  ;;  %v2482_v61 = vmul.f32 %v10658_v32, %v1468_v38  ;;  %v1512_v38 = vunpack.c.h.bf16 %v11052_v33  ;;  %v11090_v33 = vld [vmem:[%s8237_s7 + $0xbec] sm:$0xff] }
 0x40b   : > { %v4878_v2 = vpop.f32.mrb[0].mxu1 }
 0x40c   : > { %v6291_v6 = vpop.f32.mrb[0].mxu0  ;;  %v4880_v7 = vpop.f32.mrb[1].mxu1 }
 0x40d   : > { %v7090_v13 = vadd.f32 %v6291_v6, %v4878_v2  ;;  %v6293_v14 = vpop.f32.mrb[1].mxu0  ;;  %v4882_v63 = vpop.f32.mrb[2].mxu1 }
 0x40e   : > { %v7091_v16 = vadd.f32 %v6293_v14, %v4880_v7  ;;  %v6295_v19 = vpop.f32.mrb[2].mxu0  ;;  %v4884_v23 = vpop.f32.mrb[3].mxu1 }
 0x40f   : > { %6728 = vst [vmem:[%s10991_s8] sm:$0xff] %v7090_v13  ;;  %v7092_v24 = vadd.f32 %v6295_v19, %v4882_v63  ;;  %v6297_v25 = vpop.f32.mrb[3].mxu0 }
 0x410   : > { %6730 = vst.msk [vmem:[%s10991_s8 + $0x8] sm:$0xff] %vm6729_vm1, %v7091_v16  ;;  %v7093_v26 = vadd.f32 %v6297_v25, %v4884_v23  ;;  %5147 = vmatmul.mubr.bf16.gmra.mrb[108].mxu1 %v3064_v3  ;;  %v3086_v3 = vpack.c.bf16 %v2459_v35, %v2448_v53  ;;  %v2492_v53 = vmul.f32 %v10674_v48, %v1478_v39  ;;  %v1522_v39 = vunpack.c.l.bf16 %v668_v40  ;;  %v692_v40 = vld [vmem:[%s8237_s7 + $0xc18] sm:$0xff] }
 0x411   : > { %6731 = vst [vmem:[%s10991_s8 + $0x10] sm:$0xff] %v7092_v24  ;;  %7070 = vmatmul.mubr.msk.bf16.gmra.mrb[108].mxu0 %vm3769_vm0, %v3070_v8  ;;  %5156 = vmatprep.mubr.bf16.mxu1 %v3076_v1  ;;  %v3092_v8 = vpack.c.bf16 %v2465_v41, %v2454_v59  ;;  %v3098_v1 = vpack.c.bf16 %v2482_v61, %v2471_v46 }
 0x412   : > { %6732 = vst.msk [vmem:[%s10991_s8 + $0x18] sm:$0xff] %vm6729_vm1, %v7093_v26  ;;  %6569 = vmatprep.mubr.bf16.mxu0 %v8123_v20  ;;  %v2503_v35 = vmul.f32 %v10674_v48, %v1489_v42  ;;  %v2498_v59 = vmul.f32 %v10671_v43, %v1484_v56  ;;  %v2509_v41 = vmul.f32 %v10671_v43, %v1495_v44  ;;  %v1533_v42 = vunpack.c.l.bf16 %v674_v62  ;;  %v698_v62 = vld [vmem:[%s8237_s7 + $0xc44] sm:$0xff] }
 0x413   : > { %v4888_v34 = vpop.f32.mrb[4].mxu1  ;;  %v2515_v46 = vmul.f32 %v10658_v32, %v1501_v22  ;;  %v2526_v61 = vmul.f32 %v10658_v32, %v1512_v38  ;;  %v1528_v56 = vunpack.c.l.bf16 %v671_v54  ;;  %v1539_v44 = vunpack.c.h.bf16 %v671_v54  ;;  %v695_v54 = vld [vmem:[%s8237_s7 + $0xc30] ss:$44 sps:$4 sm:$0xff]  }
 0x414   : > { %v6301_v45 = vpop.f32.mrb[4].mxu0  ;;  %v4890_v37 = vpop.f32.mrb[5].mxu1  ;;  %v1545_v22 = vunpack.c.h.bf16 %v680_v55  ;;  %v1556_v38 = vunpack.c.h.bf16 %v11090_v33 }
 0x415   : > { %v7094_v18 = vadd.f32 %v6301_v45, %v4888_v34  ;;  %v6303_v50 = vpop.f32.mrb[5].mxu0  ;;  %v4892_v51 = vpop.f32.mrb[6].mxu1 }
 0x416   : > { %v7095_v5 = vadd.f32 %v6303_v50, %v4890_v37  ;;  %v6305_v17 = vpop.f32.mrb[6].mxu0  ;;  %v4894_v36 = vpop.f32.mrb[7].mxu1 }
 0x417   : > { %6733 = vst [vmem:[%s10991_s8 + $0x20] sm:$0xff] %v7094_v18  ;;  %v7096_v52 = vadd.f32 %v6305_v17, %v4892_v51  ;;  %v6307_v49 = vpop.f32.mrb[7].mxu0 }
 0x418   : > { %6734 = vst.msk [vmem:[%s10991_s8 + $0x28] sm:$0xff] %vm6729_vm1, %v7095_v5  ;;  %v7097_v58 = vadd.f32 %v6307_v49, %v4894_v36  ;;  %5157 = vmatmul.mubr.bf16.gmra.mrb[112].mxu1 %v3075_v47  ;;  %v3097_v47 = vpack.c.bf16 %v2481_v27, %v2470_v12  ;;  %v2514_v12 = vmul.f32 %v10674_v48, %v1500_v0  ;;  %v1544_v0 = vunpack.c.l.bf16 %v680_v55  ;;  %v704_v55 = vld [vmem:[%s8237_s7 + $0xc70] sm:$0xff] }
 0x419   : > { %6735 = vst [vmem:[%s10991_s8 + $0x30] sm:$0xff] %v7096_v52  ;;  %7071 = vmatmul.mubr.msk.bf16.gmra.mrb[112].mxu0 %vm3769_vm0, %v3081_v57  ;;  %5166 = vmatprep.mubr.bf16.mxu1 %v3087_v21  ;;  %v3103_v57 = vpack.c.bf16 %v2487_v29, %v2476_v28  ;;  %v3109_v21 = vpack.c.bf16 %v2504_v31, %v2493_v30 }
 0x41a   : > { %6736 = vst.msk [vmem:[%s10991_s8 + $0x38] sm:$0xff] %vm6729_vm1, %v7097_v58  ;;  %6579 = vmatprep.mubr.bf16.mxu0 %v8123_v20  ;;  %v2525_v27 = vmul.f32 %v10674_v48, %v1511_v9  ;;  %v2520_v28 = vmul.f32 %v10671_v43, %v1506_v10  ;;  %v2531_v29 = vmul.f32 %v10671_v43, %v1517_v11  ;;  %v1555_v9 = vunpack.c.l.bf16 %v11090_v33  ;;  %v11128_v33 = vld [vmem:[%s8237_s7 + $0xc9c] sm:$0xff] }
 0x41b   : > { %v4898_v2 = vpop.f32.mrb[8].mxu1  ;;  %v2537_v30 = vmul.f32 %v10658_v32, %v1523_v4  ;;  %v2548_v31 = vmul.f32 %v10658_v32, %v1534_v15  ;;  %v1550_v10 = vunpack.c.l.bf16 %v683_v60  ;;  %v1561_v11 = vunpack.c.h.bf16 %v683_v60  ;;  %v707_v60 = vld [vmem:[%s8237_s7 + $0xc88] ss:$44 sps:$4 sm:$0xff]  }
 0x41c   : > { %v6311_v6 = vpop.f32.mrb[8].mxu0  ;;  %v4900_v7 = vpop.f32.mrb[9].mxu1  ;;  %v1567_v4 = vunpack.c.h.bf16 %v692_v40  ;;  %v1578_v15 = vunpack.c.h.bf16 %v698_v62 }
 0x41d   : > { %v7098_v13 = vadd.f32 %v6311_v6, %v4898_v2  ;;  %v6313_v14 = vpop.f32.mrb[9].mxu0  ;;  %v4902_v63 = vpop.f32.mrb[10].mxu1 }
 0x41e   : > { %v7099_v16 = vadd.f32 %v6313_v14, %v4900_v7  ;;  %v6315_v19 = vpop.f32.mrb[10].mxu0  ;;  %v4904_v23 = vpop.f32.mrb[11].mxu1 }
 0x41f   : > { %6737 = vst [vmem:[%s10991_s8 + $0x40] sm:$0xff] %v7098_v13  ;;  %v7100_v24 = vadd.f32 %v6315_v19, %v4902_v63  ;;  %v6317_v25 = vpop.f32.mrb[11].mxu0 }
 0x420   : > { %6738 = vst.msk [vmem:[%s10991_s8 + $0x48] sm:$0xff] %vm6729_vm1, %v7099_v16  ;;  %v7101_v26 = vadd.f32 %v6317_v25, %v4904_v23  ;;  %5167 = vmatmul.mubr.bf16.gmra.mrb[116].mxu1 %v3086_v3  ;;  %v3108_v3 = vpack.c.bf16 %v2503_v35, %v2492_v53  ;;  %v2536_v53 = vmul.f32 %v10674_v48, %v1522_v39  ;;  %v1566_v39 = vunpack.c.l.bf16 %v692_v40  ;;  %v716_v40 = vld [vmem:[%s8237_s7 + $0xcc8] sm:$0xff] }
 0x421   : > { %6739 = vst [vmem:[%s10991_s8 + $0x50] sm:$0xff] %v7100_v24  ;;  %7072 = vmatmul.mubr.msk.bf16.gmra.mrb[116].mxu0 %vm3769_vm0, %v3092_v8  ;;  %5176 = vmatprep.mubr.bf16.mxu1 %v3098_v1  ;;  %v3114_v8 = vpack.c.bf16 %v2509_v41, %v2498_v59  ;;  %v3120_v1 = vpack.c.bf16 %v2526_v61, %v2515_v46 }
 0x422   : > { %6740 = vst.msk [vmem:[%s10991_s8 + $0x58] sm:$0xff] %vm6729_vm1, %v7101_v26  ;;  %6589 = vmatprep.mubr.bf16.mxu0 %v8123_v20  ;;  %v2547_v35 = vmul.f32 %v10674_v48, %v1533_v42  ;;  %v2542_v59 = vmul.f32 %v10671_v43, %v1528_v56  ;;  %v2553_v41 = vmul.f32 %v10671_v43, %v1539_v44  ;;  %v1577_v42 = vunpack.c.l.bf16 %v698_v62  ;;  %v722_v62 = vld [vmem:[%s8237_s7 + $0xcf4] sm:$0xff] }
 0x423   : > { %v4908_v34 = vpop.f32.mrb[12].mxu1  ;;  %v2559_v46 = vmul.f32 %v10658_v32, %v1545_v22  ;;  %v2570_v61 = vmul.f32 %v10658_v32, %v1556_v38  ;;  %v1572_v56 = vunpack.c.l.bf16 %v695_v54  ;;  %v1583_v44 = vunpack.c.h.bf16 %v695_v54  ;;  %v719_v54 = vld [vmem:[%s8237_s7 + $0xce0] ss:$44 sps:$4 sm:$0xff]  }
 0x424   : > { %v6321_v45 = vpop.f32.mrb[12].mxu0  ;;  %v4910_v37 = vpop.f32.mrb[13].mxu1  ;;  %v1589_v22 = vunpack.c.h.bf16 %v704_v55  ;;  %v1600_v38 = vunpack.c.h.bf16 %v11128_v33 }
 0x425   : > { %v7102_v18 = vadd.f32 %v6321_v45, %v4908_v34  ;;  %v6323_v50 = vpop.f32.mrb[13].mxu0  ;;  %v4912_v51 = vpop.f32.mrb[14].mxu1 }
 0x426   : > { %v7103_v5 = vadd.f32 %v6323_v50, %v4910_v37  ;;  %v6325_v17 = vpop.f32.mrb[14].mxu0  ;;  %v4914_v36 = vpop.f32.mrb[15].mxu1 }
 0x427   : > { %6741 = vst [vmem:[%s10991_s8 + $0x60] sm:$0xff] %v7102_v18  ;;  %v7104_v52 = vadd.f32 %v6325_v17, %v4912_v51  ;;  %v6327_v49 = vpop.f32.mrb[15].mxu0 }
 0x428   : > { %6742 = vst.msk [vmem:[%s10991_s8 + $0x68] sm:$0xff] %vm6729_vm1, %v7103_v5  ;;  %v7105_v58 = vadd.f32 %v6327_v49, %v4914_v36  ;;  %5177 = vmatmul.mubr.bf16.gmra.mrb[120].mxu1 %v3097_v47  ;;  %v3119_v47 = vpack.c.bf16 %v2525_v27, %v2514_v12  ;;  %v2558_v12 = vmul.f32 %v10674_v48, %v1544_v0  ;;  %v1588_v0 = vunpack.c.l.bf16 %v704_v55  ;;  %v728_v55 = vld [vmem:[%s8237_s7 + $0xd20] sm:$0xff] }
 0x429   : > { %6743 = vst [vmem:[%s10991_s8 + $0x70] sm:$0xff] %v7104_v52  ;;  %7073 = vmatmul.mubr.msk.bf16.gmra.mrb[120].mxu0 %vm3769_vm0, %v3103_v57  ;;  %5186 = vmatprep.mubr.bf16.mxu1 %v3109_v21  ;;  %v3125_v57 = vpack.c.bf16 %v2531_v29, %v2520_v28  ;;  %v3131_v21 = vpack.c.bf16 %v2548_v31, %v2537_v30 }
 0x42a   : > { %6744 = vst.msk [vmem:[%s10991_s8 + $0x78] sm:$0xff] %vm6729_vm1, %v7105_v58  ;;  %6599 = vmatprep.mubr.bf16.mxu0 %v8123_v20  ;;  %v2569_v27 = vmul.f32 %v10674_v48, %v1555_v9  ;;  %v2564_v28 = vmul.f32 %v10671_v43, %v1550_v10  ;;  %v2575_v29 = vmul.f32 %v10671_v43, %v1561_v11  ;;  %v1599_v9 = vunpack.c.l.bf16 %v11128_v33  ;;  %v11166_v33 = vld [vmem:[%s8237_s7 + $0xd4c] sm:$0xff] }
 0x42b   : > { %v4918_v2 = vpop.f32.mrb[16].mxu1  ;;  %v2581_v30 = vmul.f32 %v10658_v32, %v1567_v4  ;;  %v2592_v31 = vmul.f32 %v10658_v32, %v1578_v15  ;;  %v1594_v10 = vunpack.c.l.bf16 %v707_v60  ;;  %v1605_v11 = vunpack.c.h.bf16 %v707_v60  ;;  %v731_v60 = vld [vmem:[%s8237_s7 + $0xd38] ss:$44 sps:$4 sm:$0xff]  }
 0x42c   : > { %v6331_v6 = vpop.f32.mrb[16].mxu0  ;;  %v4920_v7 = vpop.f32.mrb[17].mxu1  ;;  %v1611_v4 = vunpack.c.h.bf16 %v716_v40  ;;  %v1622_v15 = vunpack.c.h.bf16 %v722_v62 }
 0x42d   : > { %v7106_v13 = vadd.f32 %v6331_v6, %v4918_v2  ;;  %v6333_v14 = vpop.f32.mrb[17].mxu0  ;;  %v4922_v63 = vpop.f32.mrb[18].mxu1 }
 0x42e   : > { %v7107_v16 = vadd.f32 %v6333_v14, %v4920_v7  ;;  %v6335_v19 = vpop.f32.mrb[18].mxu0  ;;  %v4924_v23 = vpop.f32.mrb[19].mxu1 }
 0x42f   : > { %6745 = vst [vmem:[%s10991_s8 + $0x80] sm:$0xff] %v7106_v13  ;;  %v7108_v24 = vadd.f32 %v6335_v19, %v4922_v63  ;;  %v6337_v25 = vpop.f32.mrb[19].mxu0 }
 0x430   : > { %6746 = vst.msk [vmem:[%s10991_s8 + $0x88] sm:$0xff] %vm6729_vm1, %v7107_v16  ;;  %v7109_v26 = vadd.f32 %v6337_v25, %v4924_v23  ;;  %5187 = vmatmul.mubr.bf16.gmra.mrb[124].mxu1 %v3108_v3  ;;  %v3130_v3 = vpack.c.bf16 %v2547_v35, %v2536_v53  ;;  %v2580_v53 = vmul.f32 %v10674_v48, %v1566_v39  ;;  %v1610_v39 = vunpack.c.l.bf16 %v716_v40  ;;  %v740_v40 = vld [vmem:[%s8237_s7 + $0xd78] sm:$0xff] }
 0x431   : > { %6747 = vst [vmem:[%s10991_s8 + $0x90] sm:$0xff] %v7108_v24  ;;  %7074 = vmatmul.mubr.msk.bf16.gmra.mrb[124].mxu0 %vm3769_vm0, %v3114_v8  ;;  %5196 = vmatprep.mubr.bf16.mxu1 %v3120_v1  ;;  %v3136_v8 = vpack.c.bf16 %v2553_v41, %v2542_v59  ;;  %v3142_v1 = vpack.c.bf16 %v2570_v61, %v2559_v46 }
 0x432   : > { %6748 = vst.msk [vmem:[%s10991_s8 + $0x98] sm:$0xff] %vm6729_vm1, %v7109_v26  ;;  %6609 = vmatprep.mubr.bf16.mxu0 %v8123_v20  ;;  %v2591_v35 = vmul.f32 %v10674_v48, %v1577_v42  ;;  %v2586_v59 = vmul.f32 %v10671_v43, %v1572_v56  ;;  %v2597_v41 = vmul.f32 %v10671_v43, %v1583_v44  ;;  %v1621_v42 = vunpack.c.l.bf16 %v722_v62  ;;  %v746_v62 = vld [vmem:[%s8237_s7 + $0xda4] sm:$0xff] }
 0x433   : > { %v4928_v34 = vpop.f32.mrb[20].mxu1  ;;  %v2603_v46 = vmul.f32 %v10658_v32, %v1589_v22  ;;  %v2614_v61 = vmul.f32 %v10658_v32, %v1600_v38  ;;  %v1616_v56 = vunpack.c.l.bf16 %v719_v54  ;;  %v1627_v44 = vunpack.c.h.bf16 %v719_v54  ;;  %v743_v54 = vld [vmem:[%s8237_s7 + $0xd90] ss:$44 sps:$4 sm:$0xff]  }
 0x434   : > { %v6341_v45 = vpop.f32.mrb[20].mxu0  ;;  %v4930_v37 = vpop.f32.mrb[21].mxu1  ;;  %v1633_v22 = vunpack.c.h.bf16 %v728_v55  ;;  %v1644_v38 = vunpack.c.h.bf16 %v11166_v33 }
 0x435   : > { %v7110_v18 = vadd.f32 %v6341_v45, %v4928_v34  ;;  %v6343_v50 = vpop.f32.mrb[21].mxu0  ;;  %v4932_v51 = vpop.f32.mrb[22].mxu1 }
 0x436   : > { %v7111_v5 = vadd.f32 %v6343_v50, %v4930_v37  ;;  %v6345_v17 = vpop.f32.mrb[22].mxu0  ;;  %v4934_v36 = vpop.f32.mrb[23].mxu1 }
 0x437   : > { %6749 = vst [vmem:[%s10991_s8 + $0xa0] sm:$0xff] %v7110_v18  ;;  %v7112_v52 = vadd.f32 %v6345_v17, %v4932_v51  ;;  %v6347_v49 = vpop.f32.mrb[23].mxu0 }
 0x438   : > { %6750 = vst.msk [vmem:[%s10991_s8 + $0xa8] sm:$0xff] %vm6729_vm1, %v7111_v5  ;;  %v7113_v58 = vadd.f32 %v6347_v49, %v4934_v36  ;;  %5197 = vmatmul.mubr.bf16.gmra.mrb[128].mxu1 %v3119_v47  ;;  %v3141_v47 = vpack.c.bf16 %v2569_v27, %v2558_v12  ;;  %v2602_v12 = vmul.f32 %v10674_v48, %v1588_v0  ;;  %v1632_v0 = vunpack.c.l.bf16 %v728_v55  ;;  %v752_v55 = vld [vmem:[%s8237_s7 + $0xdd0] sm:$0xff] }
 0x439   : > { %6751 = vst [vmem:[%s10991_s8 + $0xb0] sm:$0xff] %v7112_v52  ;;  %7075 = vmatmul.mubr.msk.bf16.gmra.mrb[128].mxu0 %vm3769_vm0, %v3125_v57  ;;  %5206 = vmatprep.mubr.bf16.mxu1 %v3131_v21  ;;  %v3147_v57 = vpack.c.bf16 %v2575_v29, %v2564_v28  ;;  %v3153_v21 = vpack.c.bf16 %v2592_v31, %v2581_v30 }
 0x43a   : > { %6752 = vst.msk [vmem:[%s10991_s8 + $0xb8] sm:$0xff] %vm6729_vm1, %v7113_v58  ;;  %6619 = vmatprep.mubr.bf16.mxu0 %v8123_v20  ;;  %v2613_v27 = vmul.f32 %v10674_v48, %v1599_v9  ;;  %v2608_v28 = vmul.f32 %v10671_v43, %v1594_v10  ;;  %v2619_v29 = vmul.f32 %v10671_v43, %v1605_v11  ;;  %v1643_v9 = vunpack.c.l.bf16 %v11166_v33  ;;  %v11204_v33 = vld [vmem:[%s8237_s7 + $0xdfc] sm:$0xff] }
 0x43b   : > { %v4938_v2 = vpop.f32.mrb[24].mxu1  ;;  %v2625_v30 = vmul.f32 %v10658_v32, %v1611_v4  ;;  %v2636_v31 = vmul.f32 %v10658_v32, %v1622_v15  ;;  %v1638_v10 = vunpack.c.l.bf16 %v731_v60  ;;  %v1649_v11 = vunpack.c.h.bf16 %v731_v60  ;;  %v755_v60 = vld [vmem:[%s8237_s7 + $0xde8] ss:$44 sps:$4 sm:$0xff]  }
 0x43c   : > { %v6351_v6 = vpop.f32.mrb[24].mxu0  ;;  %v4940_v7 = vpop.f32.mrb[25].mxu1  ;;  %v1655_v4 = vunpack.c.h.bf16 %v740_v40  ;;  %v1666_v15 = vunpack.c.h.bf16 %v746_v62 }
 0x43d   : > { %v7114_v13 = vadd.f32 %v6351_v6, %v4938_v2  ;;  %v6353_v14 = vpop.f32.mrb[25].mxu0  ;;  %v4942_v63 = vpop.f32.mrb[26].mxu1 }
 0x43e   : > { %v7115_v16 = vadd.f32 %v6353_v14, %v4940_v7  ;;  %v6355_v19 = vpop.f32.mrb[26].mxu0  ;;  %v4944_v23 = vpop.f32.mrb[27].mxu1 }
 0x43f   : > { %6753 = vst [vmem:[%s10991_s8 + $0xc0] sm:$0xff] %v7114_v13  ;;  %v7116_v24 = vadd.f32 %v6355_v19, %v4942_v63  ;;  %v6357_v25 = vpop.f32.mrb[27].mxu0 }
 0x440   : > { %6754 = vst.msk [vmem:[%s10991_s8 + $0xc8] sm:$0xff] %vm6729_vm1, %v7115_v16  ;;  %v7117_v26 = vadd.f32 %v6357_v25, %v4944_v23  ;;  %5207 = vmatmul.mubr.bf16.gmra.mrb[132].mxu1 %v3130_v3  ;;  %v3152_v3 = vpack.c.bf16 %v2591_v35, %v2580_v53  ;;  %v2624_v53 = vmul.f32 %v10674_v48, %v1610_v39  ;;  %v1654_v39 = vunpack.c.l.bf16 %v740_v40  ;;  %v764_v40 = vld [vmem:[%s8237_s7 + $0xe28] sm:$0xff] }
 0x441   : > { %6755 = vst [vmem:[%s10991_s8 + $0xd0] sm:$0xff] %v7116_v24  ;;  %7076 = vmatmul.mubr.msk.bf16.gmra.mrb[132].mxu0 %vm3769_vm0, %v3136_v8  ;;  %5216 = vmatprep.mubr.bf16.mxu1 %v3142_v1  ;;  %v3158_v8 = vpack.c.bf16 %v2597_v41, %v2586_v59  ;;  %v3164_v1 = vpack.c.bf16 %v2614_v61, %v2603_v46 }
 0x442   : > { %6756 = vst.msk [vmem:[%s10991_s8 + $0xd8] sm:$0xff] %vm6729_vm1, %v7117_v26  ;;  %6629 = vmatprep.mubr.bf16.mxu0 %v8123_v20  ;;  %v2635_v35 = vmul.f32 %v10674_v48, %v1621_v42  ;;  %v2630_v59 = vmul.f32 %v10671_v43, %v1616_v56  ;;  %v2641_v41 = vmul.f32 %v10671_v43, %v1627_v44  ;;  %v1665_v42 = vunpack.c.l.bf16 %v746_v62  ;;  %v770_v62 = vld [vmem:[%s8237_s7 + $0xe54] sm:$0xff] }
 0x443   : > { %v4948_v34 = vpop.f32.mrb[28].mxu1  ;;  %v2647_v46 = vmul.f32 %v10658_v32, %v1633_v22  ;;  %v2658_v61 = vmul.f32 %v10658_v32, %v1644_v38  ;;  %v1660_v56 = vunpack.c.l.bf16 %v743_v54  ;;  %v1671_v44 = vunpack.c.h.bf16 %v743_v54  ;;  %v767_v54 = vld [vmem:[%s8237_s7 + $0xe40] ss:$44 sps:$4 sm:$0xff]  }
 0x444   : > { %v6361_v45 = vpop.f32.mrb[28].mxu0  ;;  %v4950_v37 = vpop.f32.mrb[29].mxu1  ;;  %v1677_v22 = vunpack.c.h.bf16 %v752_v55  ;;  %v1688_v38 = vunpack.c.h.bf16 %v11204_v33 }
 0x445   : > { %v7118_v18 = vadd.f32 %v6361_v45, %v4948_v34  ;;  %v6363_v50 = vpop.f32.mrb[29].mxu0  ;;  %v4952_v51 = vpop.f32.mrb[30].mxu1 }
 0x446   : > { %v7119_v5 = vadd.f32 %v6363_v50, %v4950_v37  ;;  %v6365_v17 = vpop.f32.mrb[30].mxu0  ;;  %v4954_v36 = vpop.f32.mrb[31].mxu1 }
 0x447   : > { %6757 = vst [vmem:[%s10991_s8 + $0xe0] sm:$0xff] %v7118_v18  ;;  %v7120_v52 = vadd.f32 %v6365_v17, %v4952_v51  ;;  %v6367_v49 = vpop.f32.mrb[31].mxu0 }
 0x448   : > { %6758 = vst.msk [vmem:[%s10991_s8 + $0xe8] sm:$0xff] %vm6729_vm1, %v7119_v5  ;;  %v7121_v58 = vadd.f32 %v6367_v49, %v4954_v36  ;;  %5217 = vmatmul.mubr.bf16.gmra.mrb[136].mxu1 %v3141_v47  ;;  %v3163_v47 = vpack.c.bf16 %v2613_v27, %v2602_v12  ;;  %v2646_v12 = vmul.f32 %v10674_v48, %v1632_v0  ;;  %v1676_v0 = vunpack.c.l.bf16 %v752_v55  ;;  %v11241_v55 = vld [vmem:[%s8237_s7 + $0xe80] sm:$0xff] }
 0x449   : > { %6759 = vst [vmem:[%s10991_s8 + $0xf0] sm:$0xff] %v7120_v52  ;;  %7077 = vmatmul.mubr.msk.bf16.gmra.mrb[136].mxu0 %vm3769_vm0, %v3147_v57  ;;  %5226 = vmatprep.mubr.bf16.mxu1 %v3153_v21  ;;  %v3169_v57 = vpack.c.bf16 %v2619_v29, %v2608_v28  ;;  %v3175_v21 = vpack.c.bf16 %v2636_v31, %v2625_v30 }
 0x44a   : > { %6760 = vst.msk [vmem:[%s10991_s8 + $0xf8] sm:$0xff] %vm6729_vm1, %v7121_v58  ;;  %6639 = vmatprep.mubr.bf16.mxu0 %v8123_v20  ;;  %v2657_v27 = vmul.f32 %v10674_v48, %v1643_v9  ;;  %v2652_v28 = vmul.f32 %v10671_v43, %v1638_v10  ;;  %v2663_v29 = vmul.f32 %v10671_v43, %v1649_v11  ;;  %v1687_v9 = vunpack.c.l.bf16 %v11204_v33  ;;  %v11244_v33 = vld [vmem:[%s8237_s7 + $0xeac] sm:$0xff] }
 0x44b   : > { %v4958_v2 = vpop.f32.mrb[32].mxu1  ;;  %v2669_v30 = vmul.f32 %v10658_v32, %v1655_v4  ;;  %v2680_v31 = vmul.f32 %v10658_v32, %v1666_v15  ;;  %v1682_v10 = vunpack.c.l.bf16 %v755_v60  ;;  %v1693_v11 = vunpack.c.h.bf16 %v755_v60  ;;  %v779_v60 = vld [vmem:[%s8237_s7 + $0xe98] ss:$44 sps:$4 sm:$0xff]  }
 0x44c   : > { %v6371_v6 = vpop.f32.mrb[32].mxu0  ;;  %v4960_v7 = vpop.f32.mrb[33].mxu1  ;;  %v1699_v4 = vunpack.c.h.bf16 %v764_v40  ;;  %v1710_v15 = vunpack.c.h.bf16 %v770_v62 }
 0x44d   : > { %v7122_v13 = vadd.f32 %v6371_v6, %v4958_v2  ;;  %v6373_v14 = vpop.f32.mrb[33].mxu0  ;;  %v4962_v63 = vpop.f32.mrb[34].mxu1 }
 0x44e   : > { %v7123_v16 = vadd.f32 %v6373_v14, %v4960_v7  ;;  %v6375_v19 = vpop.f32.mrb[34].mxu0  ;;  %v4964_v23 = vpop.f32.mrb[35].mxu1 }
 0x44f   : > { %6761 = vst [vmem:[%s10991_s8 + $0x100] sm:$0xff] %v7122_v13  ;;  %v7124_v24 = vadd.f32 %v6375_v19, %v4962_v63  ;;  %v6377_v25 = vpop.f32.mrb[35].mxu0 }
 0x450   : > { %6762 = vst.msk [vmem:[%s10991_s8 + $0x108] sm:$0xff] %vm6729_vm1, %v7123_v16  ;;  %v7125_v26 = vadd.f32 %v6377_v25, %v4964_v23  ;;  %5227 = vmatmul.mubr.bf16.gmra.mrb[140].mxu1 %v3152_v3  ;;  %v3174_v3 = vpack.c.bf16 %v2635_v35, %v2624_v53  ;;  %v2668_v53 = vmul.f32 %v10674_v48, %v1654_v39  ;;  %v1698_v39 = vunpack.c.l.bf16 %v764_v40  ;;  %v788_v40 = vld [vmem:[%s8237_s7 + $0xed8] sm:$0xff] }
 0x451   : > { %6763 = vst [vmem:[%s10991_s8 + $0x110] sm:$0xff] %v7124_v24  ;;  %7078 = vmatmul.mubr.msk.bf16.gmra.mrb[140].mxu0 %vm3769_vm0, %v3158_v8  ;;  %5236 = vmatprep.mubr.bf16.mxu1 %v3164_v1  ;;  %v3180_v8 = vpack.c.bf16 %v2641_v41, %v2630_v59  ;;  %v3186_v1 = vpack.c.bf16 %v2658_v61, %v2647_v46 }
 0x452   : > { %6764 = vst.msk [vmem:[%s10991_s8 + $0x118] sm:$0xff] %vm6729_vm1, %v7125_v26  ;;  %6649 = vmatprep.mubr.bf16.mxu0 %v8123_v20  ;;  %v2679_v35 = vmul.f32 %v10674_v48, %v1665_v42  ;;  %v2674_v59 = vmul.f32 %v10671_v43, %v1660_v56  ;;  %v2685_v41 = vmul.f32 %v10671_v43, %v1671_v44  ;;  %v1709_v42 = vunpack.c.l.bf16 %v770_v62 }
 0x453   : > { %v4968_v34 = vpop.f32.mrb[36].mxu1  ;;  %v2691_v46 = vmul.f32 %v10658_v32, %v1677_v22  ;;  %v2702_v61 = vmul.f32 %v10658_v32, %v1688_v38  ;;  %v1704_v56 = vunpack.c.l.bf16 %v767_v54  ;;  %v1715_v44 = vunpack.c.h.bf16 %v767_v54 }
 0x454   : > { %v6381_v45 = vpop.f32.mrb[36].mxu0  ;;  %v4970_v37 = vpop.f32.mrb[37].mxu1  ;;  %v1721_v22 = vunpack.c.h.bf16 %v11241_v55  ;;  %v1732_v38 = vunpack.c.h.bf16 %v11244_v33 }
 0x455   : > { %v7126_v18 = vadd.f32 %v6381_v45, %v4968_v34  ;;  %v6383_v50 = vpop.f32.mrb[37].mxu0  ;;  %v4972_v51 = vpop.f32.mrb[38].mxu1 }
 0x456   : > { %v7127_v5 = vadd.f32 %v6383_v50, %v4970_v37  ;;  %v6385_v17 = vpop.f32.mrb[38].mxu0  ;;  %v4974_v36 = vpop.f32.mrb[39].mxu1 }
 0x457   : > { %6765 = vst [vmem:[%s10991_s8 + $0x120] sm:$0xff] %v7126_v18  ;;  %v7128_v52 = vadd.f32 %v6385_v17, %v4972_v51  ;;  %v6387_v49 = vpop.f32.mrb[39].mxu0 }
 0x458   : > { %6766 = vst.msk [vmem:[%s10991_s8 + $0x128] sm:$0xff] %vm6729_vm1, %v7127_v5  ;;  %v7129_v58 = vadd.f32 %v6387_v49, %v4974_v36  ;;  %5237 = vmatmul.mubr.bf16.gmra.mrb[144].mxu1 %v3163_v47  ;;  %v3185_v47 = vpack.c.bf16 %v2657_v27, %v2646_v12  ;;  %v2690_v12 = vmul.f32 %v10674_v48, %v1676_v0 }
 0x459   : > { %6767 = vst [vmem:[%s10991_s8 + $0x130] sm:$0xff] %v7128_v52  ;;  %7079 = vmatmul.mubr.msk.bf16.gmra.mrb[144].mxu0 %vm3769_vm0, %v3169_v57  ;;  %5246 = vmatprep.mubr.bf16.mxu1 %v3175_v21  ;;  %v3191_v57 = vpack.c.bf16 %v2663_v29, %v2652_v28  ;;  %v3197_v21 = vpack.c.bf16 %v2680_v31, %v2669_v30 }
 0x45a   : > { %6768 = vst.msk [vmem:[%s10991_s8 + $0x138] sm:$0xff] %vm6729_vm1, %v7129_v58  ;;  %6659 = vmatprep.mubr.bf16.mxu0 %v8123_v20  ;;  %v2701_v27 = vmul.f32 %v10674_v48, %v1687_v9  ;;  %v2696_v28 = vmul.f32 %v10671_v43, %v1682_v10  ;;  %v2707_v29 = vmul.f32 %v10671_v43, %v1693_v11  ;;  %v1726_v9 = vunpack.c.l.bf16 %v779_v60 }
 0x45b   : > { %v4978_v2 = vpop.f32.mrb[40].mxu1  ;;  %v2713_v30 = vmul.f32 %v10658_v32, %v1699_v4  ;;  %v2724_v31 = vmul.f32 %v10658_v32, %v1710_v15 }
 0x45c   : > { %v6391_v6 = vpop.f32.mrb[40].mxu0  ;;  %v4980_v7 = vpop.f32.mrb[41].mxu1 }
 0x45d   : > { %v7130_v13 = vadd.f32 %v6391_v6, %v4978_v2  ;;  %v6393_v14 = vpop.f32.mrb[41].mxu0  ;;  %v4982_v63 = vpop.f32.mrb[42].mxu1 }
 0x45e   : > { %v7131_v16 = vadd.f32 %v6393_v14, %v4980_v7  ;;  %v6395_v19 = vpop.f32.mrb[42].mxu0  ;;  %v4984_v23 = vpop.f32.mrb[43].mxu1 }
 0x45f   : > { %6769 = vst [vmem:[%s10991_s8 + $0x140] sm:$0xff] %v7130_v13  ;;  %v7132_v24 = vadd.f32 %v6395_v19, %v4982_v63  ;;  %v6397_v25 = vpop.f32.mrb[43].mxu0 }
 0x460   : > { %6770 = vst.msk [vmem:[%s10991_s8 + $0x148] sm:$0xff] %vm6729_vm1, %v7131_v16  ;;  %v7133_v26 = vadd.f32 %v6397_v25, %v4984_v23  ;;  %5247 = vmatmul.mubr.bf16.gmra.mrb[148].mxu1 %v3174_v3  ;;  %v3196_v3 = vpack.c.bf16 %v2679_v35, %v2668_v53  ;;  %v2712_v53 = vmul.f32 %v10674_v48, %v1698_v39 }
 0x461   : > { %6771 = vst [vmem:[%s10991_s8 + $0x150] sm:$0xff] %v7132_v24  ;;  %7080 = vmatmul.mubr.msk.bf16.gmra.mrb[148].mxu0 %vm3769_vm0, %v3180_v8  ;;  %5256 = vmatprep.mubr.bf16.mxu1 %v3186_v1  ;;  %v3202_v8 = vpack.c.bf16 %v2685_v41, %v2674_v59  ;;  %v3208_v1 = vpack.c.bf16 %v2702_v61, %v2691_v46 }
 0x462   : > { %6772 = vst.msk [vmem:[%s10991_s8 + $0x158] sm:$0xff] %vm6729_vm1, %v7133_v26  ;;  %6669 = vmatprep.mubr.bf16.mxu0 %v8123_v20  ;;  %v2723_v35 = vmul.f32 %v10674_v48, %v1709_v42  ;;  %v2718_v59 = vmul.f32 %v10671_v43, %v1704_v56  ;;  %v2729_v41 = vmul.f32 %v10671_v43, %v1715_v44 }
 0x463   : > { %v4988_v34 = vpop.f32.mrb[44].mxu1  ;;  %v2735_v46 = vmul.f32 %v10658_v32, %v1721_v22  ;;  %v2746_v61 = vmul.f32 %v10658_v32, %v1732_v38 }
 0x464   : > { %v6401_v45 = vpop.f32.mrb[44].mxu0  ;;  %v4990_v37 = vpop.f32.mrb[45].mxu1 }
 0x465   : > { %v7134_v18 = vadd.f32 %v6401_v45, %v4988_v34  ;;  %v6403_v50 = vpop.f32.mrb[45].mxu0  ;;  %v4992_v51 = vpop.f32.mrb[46].mxu1 }
 0x466   : > { %v7135_v5 = vadd.f32 %v6403_v50, %v4990_v37  ;;  %v6405_v17 = vpop.f32.mrb[46].mxu0  ;;  %v4994_v36 = vpop.f32.mrb[47].mxu1 }
 0x467   : > { %6773 = vst [vmem:[%s10991_s8 + $0x160] sm:$0xff] %v7134_v18  ;;  %v7136_v52 = vadd.f32 %v6405_v17, %v4992_v51  ;;  %v6407_v49 = vpop.f32.mrb[47].mxu0 }
 0x468   : > { %6774 = vst.msk [vmem:[%s10991_s8 + $0x168] sm:$0xff] %vm6729_vm1, %v7135_v5  ;;  %v7137_v58 = vadd.f32 %v6407_v49, %v4994_v36  ;;  %5257 = vmatmul.mubr.bf16.gmra.mrb[152].mxu1 %v3185_v47  ;;  %v3207_v47 = vpack.c.bf16 %v2701_v27, %v2690_v12 }
 0x469   : > { %6775 = vst [vmem:[%s10991_s8 + $0x170] sm:$0xff] %v7136_v52  ;;  %7081 = vmatmul.mubr.msk.bf16.gmra.mrb[152].mxu0 %vm3769_vm0, %v3191_v57  ;;  %5266 = vmatprep.mubr.bf16.mxu1 %v3197_v21  ;;  %v3213_v57 = vpack.c.bf16 %v2707_v29, %v2696_v28  ;;  %v3219_v21 = vpack.c.bf16 %v2724_v31, %v2713_v30  ;;  %v791_v29 = vld [vmem:[%s8237_s7 + $0xef0] sm:$0xf] }
 0x46a   : > { %6776 = vst.msk [vmem:[%s10991_s8 + $0x178] sm:$0xff] %vm6729_vm1, %v7137_v58  ;;  %6679 = vmatprep.mubr.bf16.mxu0 %v8123_v20 }
 0x46b   : > { %v4998_v2 = vpop.f32.mrb[48].mxu1 }
 0x46c   : > { %v6411_v6 = vpop.f32.mrb[48].mxu0  ;;  %v5000_v7 = vpop.f32.mrb[49].mxu1 }
 0x46d   : > { %v7138_v13 = vadd.f32 %v6411_v6, %v4998_v2  ;;  %v6413_v14 = vpop.f32.mrb[49].mxu0  ;;  %v5002_v63 = vpop.f32.mrb[50].mxu1  ;;  %v3218_v2 = vpack.c.bf16 %v2723_v35, %v2712_v53  ;;  %v3224_v6 = vpack.c.bf16 %v2729_v41, %v2718_v59 }
 0x46e   : > { %v7139_v16 = vadd.f32 %v6413_v14, %v5000_v7  ;;  %v6415_v19 = vpop.f32.mrb[50].mxu0  ;;  %v5004_v23 = vpop.f32.mrb[51].mxu1  ;;  %v1720_v7 = vunpack.c.l.bf16 %v11241_v55  ;;  %v3230_v14 = vpack.c.bf16 %v2746_v61, %v2735_v46 }
 0x46f   : > { %6777 = vst [vmem:[%s10991_s8 + $0x180] sm:$0xff] %v7138_v13  ;;  %v7140_v24 = vadd.f32 %v6415_v19, %v5002_v63  ;;  %v6417_v25 = vpop.f32.mrb[51].mxu0  ;;  %v1737_v63 = vunpack.c.h.bf16 %v779_v60 }
 0x470   : > { %6778 = vst.msk [vmem:[%s10991_s8 + $0x188] sm:$0xff] %vm6729_vm1, %v7139_v16  ;;  %v7141_v26 = vadd.f32 %v6417_v25, %v5004_v23  ;;  %5267 = vmatmul.mubr.bf16.gmra.mrb[156].mxu1 %v3196_v3  ;;  %v2734_v25 = vmul.f32 %v10674_v48, %v1720_v7 }
 0x471   : > { %6779 = vst [vmem:[%s10991_s8 + $0x190] sm:$0xff] %v7140_v24  ;;  %7082 = vmatmul.mubr.msk.bf16.gmra.mrb[156].mxu0 %vm3769_vm0, %v3202_v8  ;;  %5276 = vmatprep.mubr.bf16.mxu1 %v3208_v1  ;;  %v1731_v8 = vunpack.c.l.bf16 %v11244_v33  ;;  %v1743_v1 = vunpack.c.h.bf16 %v788_v40  ;;  %v2751_v27 = vmul.f32 %v10671_v43, %v1737_v63  ;;  %v1742_v33 = vunpack.c.l.bf16 %v788_v40 }
 0x472   : > { %6780 = vst.msk [vmem:[%s10991_s8 + $0x198] sm:$0xff] %vm6729_vm1, %v7141_v26  ;;  %6689 = vmatprep.mubr.bf16.mxu0 %v8123_v20  ;;  %v2740_v26 = vmul.f32 %v10671_v43, %v1726_v9 }
 0x473   : > { %v5008_v34 = vpop.f32.mrb[52].mxu1  ;;  %v2745_v12 = vmul.f32 %v10674_v48, %v1731_v8  ;;  %v2757_v28 = vmul.f32 %v10658_v32, %v1743_v1  ;;  %v1748_v32 = vunpack.c.l.bf16 %v791_v29 }
 0x474   : > { %v6421_v45 = vpop.f32.mrb[52].mxu0  ;;  %v5010_v37 = vpop.f32.mrb[53].mxu1 }
 0x475   : > { %v7142_v18 = vadd.f32 %v6421_v45, %v5008_v34  ;;  %v6423_v50 = vpop.f32.mrb[53].mxu0  ;;  %v5012_v51 = vpop.f32.mrb[54].mxu1  ;;  %v3229_v55 = vpack.c.bf16 %v2745_v12, %v2734_v25  ;;  %v3235_v45 = vpack.c.bf16 %v2751_v27, %v2740_v26 }
 0x476   : > { %v7143_v5 = vadd.f32 %v6423_v50, %v5010_v37  ;;  %v6425_v17 = vpop.f32.mrb[54].mxu0  ;;  %v5014_v36 = vpop.f32.mrb[55].mxu1  ;;  %v3241_v37 = vpack.c.bf16 %v2757_v28, %v2757_v28 }
 0x477   : > { %6781 = vst [vmem:[%s10991_s8 + $0x1a0] sm:$0xff] %v7142_v18  ;;  %v7144_v52 = vadd.f32 %v6425_v17, %v5012_v51  ;;  %v6427_v49 = vpop.f32.mrb[55].mxu0  ;;  %v2756_v51 = vmul.f32 %v10674_v48, %v1742_v33 }
 0x478   : > { %6782 = vst.msk [vmem:[%s10991_s8 + $0x1a8] sm:$0xff] %vm6729_vm1, %v7143_v5  ;;  %v7145_v58 = vadd.f32 %v6427_v49, %v5014_v36  ;;  %5277 = vmatmul.mubr.bf16.gmra.mrb[160].mxu1 %v3207_v47 }
 0x479   : > { %6783 = vst [vmem:[%s10991_s8 + $0x1b0] sm:$0xff] %v7144_v52  ;;  %7083 = vmatmul.mubr.msk.bf16.gmra.mrb[160].mxu0 %vm3769_vm0, %v3213_v57  ;;  %5286 = vmatprep.mubr.bf16.mxu1 %v3219_v21  ;;  %v2762_v21 = vmul.f32 %v10671_v43, %v1748_v32  ;;  %v3240_v17 = vpack.c.bf16 %v2756_v51, %v2756_v51 }
 0x47a   : > { %6784 = vst.msk [vmem:[%s10991_s8 + $0x1b8] sm:$0xff] %vm6729_vm1, %v7145_v58  ;;  %6699 = vmatprep.mubr.bf16.mxu0 %v8123_v20 }
 0x47b   : > { %v5018_v62 = vpop.f32.mrb[56].mxu1  ;;  %v3246_v49 = vpack.c.bf16 %v2762_v21, %v2762_v21 }
 0x47c   : > { %v6431_v3 = vpop.f32.mrb[56].mxu0  ;;  %v5020_v0 = vpop.f32.mrb[57].mxu1 }
 0x47d   : > { %v7146_v10 = vadd.f32 %v6431_v3, %v5018_v62  ;;  %v6433_v11 = vpop.f32.mrb[57].mxu0  ;;  %v5022_v13 = vpop.f32.mrb[58].mxu1 }
 0x47e   : > { %v7147_v4 = vadd.f32 %v6433_v11, %v5020_v0  ;;  %v6435_v15 = vpop.f32.mrb[58].mxu0  ;;  %v5024_v16 = vpop.f32.mrb[59].mxu1 }
 0x47f   : > { %6785 = vst [vmem:[%s10991_s8 + $0x1c0] sm:$0xff] %v7146_v10  ;;  %v7148_v19 = vadd.f32 %v6435_v15, %v5022_v13  ;;  %v6437_v23 = vpop.f32.mrb[59].mxu0 }
 0x480   : > { %6786 = vst.msk [vmem:[%s10991_s8 + $0x1c8] sm:$0xff] %vm6729_vm1, %v7147_v4  ;;  %v7149_v24 = vadd.f32 %v6437_v23, %v5024_v16  ;;  %5287 = vmatmul.mubr.bf16.gmra.mrb[164].mxu1 %v3218_v2 }
 0x481   : > { %6787 = vst [vmem:[%s10991_s8 + $0x1d0] sm:$0xff] %v7148_v19  ;;  %7084 = vmatmul.mubr.msk.bf16.gmra.mrb[164].mxu0 %vm3769_vm0, %v3224_v6  ;;  %5296 = vmatprep.mubr.bf16.mxu1 %v3230_v14 }
 0x482   : > { %6788 = vst.msk [vmem:[%s10991_s8 + $0x1d8] sm:$0xff] %vm6729_vm1, %v7149_v24  ;;  %6709 = vmatprep.mubr.bf16.mxu0 %v8123_v20 }
 0x483   : > { %v5028_v30 = vpop.f32.mrb[60].mxu1 }
 0x484   : > { %v6441_v31 = vpop.f32.mrb[60].mxu0  ;;  %v5030_v54 = vpop.f32.mrb[61].mxu1 }
 0x485   : > { %v7150_v34 = vadd.f32 %v6441_v31, %v5028_v30  ;;  %v6443_v39 = vpop.f32.mrb[61].mxu0  ;;  %v5032_v42 = vpop.f32.mrb[62].mxu1 }
 0x486   : > { %v7151_v47 = vadd.f32 %v6443_v39, %v5030_v54  ;;  %v6445_v57 = vpop.f32.mrb[62].mxu0  ;;  %v5034_v56 = vpop.f32.mrb[63].mxu1 }
 0x487   : > { %6789 = vst [vmem:[%s10991_s8 + $0x1e0] sm:$0xff] %v7150_v34  ;;  %v7152_v44 = vadd.f32 %v6445_v57, %v5032_v42  ;;  %v6447_v18 = vpop.f32.mrb[63].mxu0 }
 0x488   : > { %6790 = vst.msk [vmem:[%s10991_s8 + $0x1e8] sm:$0xff] %vm6729_vm1, %v7151_v47  ;;  %v7153_v50 = vadd.f32 %v6447_v18, %v5034_v56  ;;  %5297 = vmatmul.mubr.bf16.gmra.mrb[168].mxu1 %v3229_v55 }
 0x489   : > { %6791 = vst [vmem:[%s10991_s8 + $0x1f0] sm:$0xff] %v7152_v44  ;;  %7085 = vmatmul.mubr.msk.bf16.gmra.mrb[168].mxu0 %vm3769_vm0, %v3235_v45  ;;  %5306 = vmatprep.mubr.bf16.mxu1 %v3241_v37 }
 0x48a   : > { %6792 = vst.msk [vmem:[%s10991_s8 + $0x1f8] sm:$0xff] %vm6729_vm1, %v7153_v50  ;;  %6719 = vmatprep.mubr.bf16.mxu0 %v8123_v20 }
 0x48b   : > { %v5038_v22 = vpop.f32.mrb[64].mxu1 }
 0x48c   : > { %v6451_v38 = vpop.f32.mrb[64].mxu0  ;;  %v5040_v5 = vpop.f32.mrb[65].mxu1 }
 0x48d   : > { %v7154_v36 = vadd.f32 %v6451_v38, %v5038_v22  ;;  %v6453_v48 = vpop.f32.mrb[65].mxu0  ;;  %v5042_v52 = vpop.f32.mrb[66].mxu1 }
 0x48e   : > { %v7155_v53 = vadd.f32 %v6453_v48, %v5040_v5  ;;  %v6455_v35 = vpop.f32.mrb[66].mxu0  ;;  %v5044_v58 = vpop.f32.mrb[67].mxu1 }
 0x48f   : > { %6793 = vst [vmem:[%s10991_s8 + $0x200] sm:$0xff] %v7154_v36  ;;  %v7156_v43 = vadd.f32 %v6455_v35, %v5042_v52  ;;  %v6457_v59 = vpop.f32.mrb[67].mxu0 }
 0x490   : > { %6794 = vst.msk [vmem:[%s10991_s8 + $0x208] sm:$0xff] %vm6729_vm1, %v7155_v53  ;;  %v7157_v20 = vadd.f32 %v6457_v59, %v5044_v58  ;;  %5307 = vmatmul.mubr.bf16.gmra.mrb[172].mxu1 %v3240_v17 }
 0x491   : > { %6795 = vst [vmem:[%s10991_s8 + $0x210] sm:$0xff] %v7156_v43  ;;  %7086 = vmatmul.mubr.msk.bf16.gmra.mrb[172].mxu0 %vm3769_vm0, %v3246_v49 }
 0x492   : > { %6796 = vst.msk [vmem:[%s10991_s8 + $0x218] sm:$0xff] %vm6729_vm1, %v7157_v20 }
 0x493   : > { %v5048_v41 = vpop.f32.mrb[68].mxu1 }
 0x494   : > { %v6461_v46 = vpop.f32.mrb[68].mxu0  ;;  %v5050_v61 = vpop.f32.mrb[69].mxu1 }
 0x495   : > { %v7158_v60 = vadd.f32 %v6461_v46, %v5048_v41  ;;  %v6463_v40 = vpop.f32.mrb[69].mxu0  ;;  %v5052_v62 = vpop.f32.mrb[70].mxu1 }
 0x496   : > { %v7159_v2 = vadd.f32 %v6463_v40, %v5050_v61  ;;  %v6465_v3 = vpop.f32.mrb[70].mxu0  ;;  %v5054_v0 = vpop.f32.mrb[71].mxu1 }
 0x497   : > { %6797 = vst [vmem:[%s10991_s8 + $0x220] sm:$0xff] %v7158_v60  ;;  %v7160_v6 = vadd.f32 %v6465_v3, %v5052_v62  ;;  %v6467_v7 = vpop.f32.mrb[71].mxu0 }
 0x498   : > { %6798 = vst.msk [vmem:[%s10991_s8 + $0x228] sm:$0xff] %vm6729_vm1, %v7159_v2  ;;  %v7161_v8 = vadd.f32 %v6467_v7, %v5054_v0 }
 0x499   : > { %6799 = vst [vmem:[%s10991_s8 + $0x230] sm:$0xff] %v7160_v6 }
 0x49a   : > { %6800 = vst.msk [vmem:[%s10991_s8 + $0x238] sm:$0xff] %vm6729_vm1, %v7161_v8 }
 0x49b   : > { %v5058_v9 = vpop.f32.mrb[72].mxu1 }
 0x49c   : > { %v6471_v10 = vpop.f32.mrb[72].mxu0  ;;  %v5060_v11 = vpop.f32.mrb[73].mxu1 }
 0x49d   : > { %v7162_v13 = vadd.f32 %v6471_v10, %v5058_v9  ;;  %v6473_v14 = vpop.f32.mrb[73].mxu0  ;;  %v5062_v63 = vpop.f32.mrb[74].mxu1 }
 0x49e   : > { %v7163_v1 = vadd.f32 %v6473_v14, %v5060_v11  ;;  %v6475_v4 = vpop.f32.mrb[74].mxu0  ;;  %v5064_v15 = vpop.f32.mrb[75].mxu1 }
 0x49f   : > { %6801 = vst [vmem:[%s10991_s8 + $0x240] sm:$0xff] %v7162_v13  ;;  %v7164_v16 = vadd.f32 %v6475_v4, %v5062_v63  ;;  %v6477_v19 = vpop.f32.mrb[75].mxu0 }
 0x4a0   : > { %6802 = vst.msk [vmem:[%s10991_s8 + $0x248] sm:$0xff] %vm6729_vm1, %v7163_v1  ;;  %v7165_v23 = vadd.f32 %v6477_v19, %v5064_v15 }
 0x4a1   : > { %6803 = vst [vmem:[%s10991_s8 + $0x250] sm:$0xff] %v7164_v16 }
 0x4a2   : > { %6804 = vst.msk [vmem:[%s10991_s8 + $0x258] sm:$0xff] %vm6729_vm1, %v7165_v23 }
 0x4a3   : > { %v5068_v24 = vpop.f32.mrb[76].mxu1 }
 0x4a4   : > { %v6481_v25 = vpop.f32.mrb[76].mxu0  ;;  %v5070_v12 = vpop.f32.mrb[77].mxu1 }
 0x4a5   : > { %v7166_v26 = vadd.f32 %v6481_v25, %v5068_v24  ;;  %v6483_v27 = vpop.f32.mrb[77].mxu0  ;;  %v5072_v28 = vpop.f32.mrb[78].mxu1 }
 0x4a6   : > { %v7167_v29 = vadd.f32 %v6483_v27, %v5070_v12  ;;  %v6485_v30 = vpop.f32.mrb[78].mxu0  ;;  %v5074_v31 = vpop.f32.mrb[79].mxu1 }
 0x4a7   : > { %6805 = vst [vmem:[%s10991_s8 + $0x260] sm:$0xff] %v7166_v26  ;;  %v7168_v54 = vadd.f32 %v6485_v30, %v5072_v28  ;;  %v6487_v55 = vpop.f32.mrb[79].mxu0 }
 0x4a8   : > { %6806 = vst.msk [vmem:[%s10991_s8 + $0x268] sm:$0xff] %vm6729_vm1, %v7167_v29  ;;  %v7169_v33 = vadd.f32 %v6487_v55, %v5074_v31 }
 0x4a9   : > { %6807 = vst [vmem:[%s10991_s8 + $0x270] sm:$0xff] %v7168_v54 }
 0x4aa   : > { %6808 = vst.msk [vmem:[%s10991_s8 + $0x278] sm:$0xff] %vm6729_vm1, %v7169_v33 }
 0x4ab   : > { %v5078_v34 = vpop.f32.mrb[80].mxu1 }
 0x4ac   : > { %v6491_v39 = vpop.f32.mrb[80].mxu0  ;;  %v5080_v42 = vpop.f32.mrb[81].mxu1 }
 0x4ad   : > { %v7170_v45 = vadd.f32 %v6491_v39, %v5078_v34  ;;  %v6493_v37 = vpop.f32.mrb[81].mxu0  ;;  %v5082_v32 = vpop.f32.mrb[82].mxu1 }
 0x4ae   : > { %v7171_v47 = vadd.f32 %v6493_v37, %v5080_v42  ;;  %v6495_v57 = vpop.f32.mrb[82].mxu0  ;;  %v5084_v56 = vpop.f32.mrb[83].mxu1 }
 0x4af   : > { %6809 = vst [vmem:[%s10991_s8 + $0x280] sm:$0xff] %v7170_v45  ;;  %v7172_v44 = vadd.f32 %v6495_v57, %v5082_v32  ;;  %v6497_v18 = vpop.f32.mrb[83].mxu0 }
 0x4b0   : > { %6810 = vst.msk [vmem:[%s10991_s8 + $0x288] sm:$0xff] %vm6729_vm1, %v7171_v47  ;;  %v7173_v50 = vadd.f32 %v6497_v18, %v5084_v56 }
 0x4b1   : > { %6811 = vst [vmem:[%s10991_s8 + $0x290] sm:$0xff] %v7172_v44 }
 0x4b2   : > { %6812 = vst.msk [vmem:[%s10991_s8 + $0x298] sm:$0xff] %vm6729_vm1, %v7173_v50 }
 0x4b3   : > { %v5088_v51 = vpop.f32.mrb[84].mxu1 }
 0x4b4   : > { %v6501_v21 = vpop.f32.mrb[84].mxu0  ;;  %v5090_v22 = vpop.f32.mrb[85].mxu1 }
 0x4b5   : > { %v7174_v38 = vadd.f32 %v6501_v21, %v5088_v51  ;;  %v6503_v5 = vpop.f32.mrb[85].mxu0  ;;  %v5092_v17 = vpop.f32.mrb[86].mxu1 }
 0x4b6   : > { %v7175_v36 = vadd.f32 %v6503_v5, %v5090_v22  ;;  %v6505_v48 = vpop.f32.mrb[86].mxu0  ;;  %v5094_v52 = vpop.f32.mrb[87].mxu1 }
 0x4b7   : > { %6813 = vst [vmem:[%s10991_s8 + $0x2a0] sm:$0xff] %v7174_v38  ;;  %v7176_v49 = vadd.f32 %v6505_v48, %v5092_v17  ;;  %v6507_v53 = vpop.f32.mrb[87].mxu0 }
 0x4b8   : > { %6814 = vst.msk [vmem:[%s10991_s8 + $0x2a8] sm:$0xff] %vm6729_vm1, %v7175_v36  ;;  %v7177_v35 = vadd.f32 %v6507_v53, %v5094_v52 }
 0x4b9   : > { %6815 = vst [vmem:[%s10991_s8 + $0x2b0] sm:$0xff] %v7176_v49 }
 0x4ba   : > { %6816 = vst.msk [vmem:[%s10991_s8 + $0x2b8] sm:$0xff] %vm6729_vm1, %v7177_v35 }
 0x4bb   : > { %v5098_v58 = vpop.f32.mrb[88].mxu1 }
 0x4bc   : > { %v6511_v43 = vpop.f32.mrb[88].mxu0  ;;  %v5100_v59 = vpop.f32.mrb[89].mxu1 }
 0x4bd   : > { %v7178_v20 = vadd.f32 %v6511_v43, %v5098_v58  ;;  %v6513_v41 = vpop.f32.mrb[89].mxu0  ;;  %v5102_v46 = vpop.f32.mrb[90].mxu1 }
 0x4be   : > { %v7179_v61 = vadd.f32 %v6513_v41, %v5100_v59  ;;  %v6515_v60 = vpop.f32.mrb[90].mxu0  ;;  %v5104_v40 = vpop.f32.mrb[91].mxu1 }
 0x4bf   : > { %6817 = vst [vmem:[%s10991_s8 + $0x2c0] sm:$0xff] %v7178_v20  ;;  %v7180_v62 = vadd.f32 %v6515_v60, %v5102_v46  ;;  %v6517_v2 = vpop.f32.mrb[91].mxu0 }
 0x4c0   : > { %6818 = vst.msk [vmem:[%s10991_s8 + $0x2c8] sm:$0xff] %vm6729_vm1, %v7179_v61  ;;  %v7181_v3 = vadd.f32 %v6517_v2, %v5104_v40 }
 0x4c1   : > { %6819 = vst [vmem:[%s10991_s8 + $0x2d0] sm:$0xff] %v7180_v62 }
 0x4c2   : > { %6820 = vst.msk [vmem:[%s10991_s8 + $0x2d8] sm:$0xff] %vm6729_vm1, %v7181_v3 }
 0x4c3   : > { %v5108_v0 = vpop.f32.mrb[92].mxu1 }
 0x4c4   : > { %v6521_v6 = vpop.f32.mrb[92].mxu0  ;;  %v5110_v7 = vpop.f32.mrb[93].mxu1 }
 0x4c5   : > { %v7182_v8 = vadd.f32 %v6521_v6, %v5108_v0  ;;  %v6523_v9 = vpop.f32.mrb[93].mxu0  ;;  %v5112_v10 = vpop.f32.mrb[94].mxu1 }
 0x4c6   : > { %v7183_v11 = vadd.f32 %v6523_v9, %v5110_v7  ;;  %v6525_v13 = vpop.f32.mrb[94].mxu0  ;;  %v5114_v14 = vpop.f32.mrb[95].mxu1 }
 0x4c7   : > { %6821 = vst [vmem:[%s10991_s8 + $0x2e0] sm:$0xff] %v7182_v8  ;;  %v7184_v63 = vadd.f32 %v6525_v13, %v5112_v10  ;;  %v6527_v1 = vpop.f32.mrb[95].mxu0 }
 0x4c8   : > { %6822 = vst.msk [vmem:[%s10991_s8 + $0x2e8] sm:$0xff] %vm6729_vm1, %v7183_v11  ;;  %v7185_v4 = vadd.f32 %v6527_v1, %v5114_v14 }
 0x4c9   : > { %6823 = vst [vmem:[%s10991_s8 + $0x2f0] sm:$0xff] %v7184_v63 }
 0x4ca   : > { %6824 = vst.msk [vmem:[%s10991_s8 + $0x2f8] sm:$0xff] %vm6729_vm1, %v7185_v4 }
 0x4cb   : > { %v5118_v15 = vpop.f32.mrb[96].mxu1 }
 0x4cc   : > { %v6531_v16 = vpop.f32.mrb[96].mxu0  ;;  %v5120_v19 = vpop.f32.mrb[97].mxu1 }
 0x4cd   : > { %v7186_v23 = vadd.f32 %v6531_v16, %v5118_v15  ;;  %v6533_v24 = vpop.f32.mrb[97].mxu0  ;;  %v5122_v25 = vpop.f32.mrb[98].mxu1 }
 0x4ce   : > { %v7187_v12 = vadd.f32 %v6533_v24, %v5120_v19  ;;  %v6535_v26 = vpop.f32.mrb[98].mxu0  ;;  %v5124_v27 = vpop.f32.mrb[99].mxu1 }
 0x4cf   : > { %6825 = vst [vmem:[%s10991_s8 + $0x300] sm:$0xff] %v7186_v23  ;;  %v7188_v28 = vadd.f32 %v6535_v26, %v5122_v25  ;;  %v6537_v29 = vpop.f32.mrb[99].mxu0 }
 0x4d0   : > { %6826 = vst.msk [vmem:[%s10991_s8 + $0x308] sm:$0xff] %vm6729_vm1, %v7187_v12  ;;  %v7189_v30 = vadd.f32 %v6537_v29, %v5124_v27 }
 0x4d1   : > { %6827 = vst [vmem:[%s10991_s8 + $0x310] sm:$0xff] %v7188_v28 }
 0x4d2   : > { %6828 = vst.msk [vmem:[%s10991_s8 + $0x318] sm:$0xff] %vm6729_vm1, %v7189_v30 }
 0x4d3   : > { %v5128_v31 = vpop.f32.mrb[100].mxu1 }
 0x4d4   : > { %v6541_v54 = vpop.f32.mrb[100].mxu0  ;;  %v5130_v55 = vpop.f32.mrb[101].mxu1 }
 0x4d5   : > { %v7190_v33 = vadd.f32 %v6541_v54, %v5128_v31  ;;  %v6543_v34 = vpop.f32.mrb[101].mxu0  ;;  %v5132_v39 = vpop.f32.mrb[102].mxu1 }
 0x4d6   : > { %v7191_v42 = vadd.f32 %v6543_v34, %v5130_v55  ;;  %v6545_v45 = vpop.f32.mrb[102].mxu0  ;;  %v5134_v37 = vpop.f32.mrb[103].mxu1 }
 0x4d7   : > { %6829 = vst [vmem:[%s10991_s8 + $0x320] sm:$0xff] %v7190_v33  ;;  %v7192_v32 = vadd.f32 %v6545_v45, %v5132_v39  ;;  %v6547_v47 = vpop.f32.mrb[103].mxu0 }
 0x4d8   : > { %6830 = vst.msk [vmem:[%s10991_s8 + $0x328] sm:$0xff] %vm6729_vm1, %v7191_v42  ;;  %v7193_v57 = vadd.f32 %v6547_v47, %v5134_v37 }
 0x4d9   : > { %6831 = vst [vmem:[%s10991_s8 + $0x330] sm:$0xff] %v7192_v32 }
 0x4da   : > { %6832 = vst.msk [vmem:[%s10991_s8 + $0x338] sm:$0xff] %vm6729_vm1, %v7193_v57 }
 0x4db   : > { %v5138_v56 = vpop.f32.mrb[104].mxu1 }
 0x4dc   : > { %v6551_v44 = vpop.f32.mrb[104].mxu0  ;;  %v5140_v18 = vpop.f32.mrb[105].mxu1 }
 0x4dd   : > { %v7194_v50 = vadd.f32 %v6551_v44, %v5138_v56  ;;  %v6553_v51 = vpop.f32.mrb[105].mxu0  ;;  %v5142_v21 = vpop.f32.mrb[106].mxu1 }
 0x4de   : > { %v7195_v22 = vadd.f32 %v6553_v51, %v5140_v18  ;;  %v6555_v38 = vpop.f32.mrb[106].mxu0  ;;  %v5144_v5 = vpop.f32.mrb[107].mxu1 }
 0x4df   : > { %6833 = vst [vmem:[%s10991_s8 + $0x340] sm:$0xff] %v7194_v50  ;;  %v7196_v17 = vadd.f32 %v6555_v38, %v5142_v21  ;;  %v6557_v36 = vpop.f32.mrb[107].mxu0 }
 0x4e0   : > { %6834 = vst.msk [vmem:[%s10991_s8 + $0x348] sm:$0xff] %vm6729_vm1, %v7195_v22  ;;  %v7197_v48 = vadd.f32 %v6557_v36, %v5144_v5 }
 0x4e1   : > { %6835 = vst [vmem:[%s10991_s8 + $0x350] sm:$0xff] %v7196_v17 }
 0x4e2   : > { %6836 = vst.msk [vmem:[%s10991_s8 + $0x358] sm:$0xff] %vm6729_vm1, %v7197_v48 }
 0x4e3   : > { %v5148_v52 = vpop.f32.mrb[108].mxu1 }
 0x4e4   : > { %v6561_v49 = vpop.f32.mrb[108].mxu0  ;;  %v5150_v53 = vpop.f32.mrb[109].mxu1 }
 0x4e5   : > { %v7198_v35 = vadd.f32 %v6561_v49, %v5148_v52  ;;  %v6563_v58 = vpop.f32.mrb[109].mxu0  ;;  %v5152_v43 = vpop.f32.mrb[110].mxu1 }
 0x4e6   : > { %v7199_v59 = vadd.f32 %v6563_v58, %v5150_v53  ;;  %v6565_v20 = vpop.f32.mrb[110].mxu0  ;;  %v5154_v41 = vpop.f32.mrb[111].mxu1 }
 0x4e7   : > { %6837 = vst [vmem:[%s10991_s8 + $0x360] sm:$0xff] %v7198_v35  ;;  %v7200_v46 = vadd.f32 %v6565_v20, %v5152_v43  ;;  %v6567_v61 = vpop.f32.mrb[111].mxu0 }
 0x4e8   : > { %6838 = vst.msk [vmem:[%s10991_s8 + $0x368] sm:$0xff] %vm6729_vm1, %v7199_v59  ;;  %v7201_v60 = vadd.f32 %v6567_v61, %v5154_v41 }
 0x4e9   : > { %6839 = vst [vmem:[%s10991_s8 + $0x370] sm:$0xff] %v7200_v46 }
 0x4ea   : > { %6840 = vst.msk [vmem:[%s10991_s8 + $0x378] sm:$0xff] %vm6729_vm1, %v7201_v60 }
 0x4eb   : > { %v5158_v40 = vpop.f32.mrb[112].mxu1 }
 0x4ec   : > { %v6571_v62 = vpop.f32.mrb[112].mxu0  ;;  %v5160_v2 = vpop.f32.mrb[113].mxu1 }
 0x4ed   : > { %v7202_v3 = vadd.f32 %v6571_v62, %v5158_v40  ;;  %v6573_v0 = vpop.f32.mrb[113].mxu0  ;;  %v5162_v6 = vpop.f32.mrb[114].mxu1 }
 0x4ee   : > { %v7203_v7 = vadd.f32 %v6573_v0, %v5160_v2  ;;  %v6575_v8 = vpop.f32.mrb[114].mxu0  ;;  %v5164_v9 = vpop.f32.mrb[115].mxu1 }
 0x4ef   : > { %6841 = vst [vmem:[%s10991_s8 + $0x380] sm:$0xff] %v7202_v3  ;;  %v7204_v10 = vadd.f32 %v6575_v8, %v5162_v6  ;;  %v6577_v11 = vpop.f32.mrb[115].mxu0 }
 0x4f0   : > { %6842 = vst.msk [vmem:[%s10991_s8 + $0x388] sm:$0xff] %vm6729_vm1, %v7203_v7  ;;  %v7205_v13 = vadd.f32 %v6577_v11, %v5164_v9 }
 0x4f1   : > { %6843 = vst [vmem:[%s10991_s8 + $0x390] sm:$0xff] %v7204_v10 }
 0x4f2   : > { %6844 = vst.msk [vmem:[%s10991_s8 + $0x398] sm:$0xff] %vm6729_vm1, %v7205_v13 }
 0x4f3   : > { %v5168_v14 = vpop.f32.mrb[116].mxu1 }
 0x4f4   : > { %v6581_v63 = vpop.f32.mrb[116].mxu0  ;;  %v5170_v1 = vpop.f32.mrb[117].mxu1 }
 0x4f5   : > { %v7206_v4 = vadd.f32 %v6581_v63, %v5168_v14  ;;  %v6583_v15 = vpop.f32.mrb[117].mxu0  ;;  %v5172_v16 = vpop.f32.mrb[118].mxu1 }
 0x4f6   : > { %v7207_v19 = vadd.f32 %v6583_v15, %v5170_v1  ;;  %v6585_v23 = vpop.f32.mrb[118].mxu0  ;;  %v5174_v24 = vpop.f32.mrb[119].mxu1 }
 0x4f7   : > { %6845 = vst [vmem:[%s10991_s8 + $0x3a0] sm:$0xff] %v7206_v4  ;;  %v7208_v25 = vadd.f32 %v6585_v23, %v5172_v16  ;;  %v6587_v12 = vpop.f32.mrb[119].mxu0 }
 0x4f8   : > { %6846 = vst.msk [vmem:[%s10991_s8 + $0x3a8] sm:$0xff] %vm6729_vm1, %v7207_v19  ;;  %v7209_v26 = vadd.f32 %v6587_v12, %v5174_v24 }
 0x4f9   : > { %6847 = vst [vmem:[%s10991_s8 + $0x3b0] sm:$0xff] %v7208_v25 }
 0x4fa   : > { %6848 = vst.msk [vmem:[%s10991_s8 + $0x3b8] sm:$0xff] %vm6729_vm1, %v7209_v26 }
 0x4fb   : > { %v5178_v27 = vpop.f32.mrb[120].mxu1 }
 0x4fc   : > { %v6591_v28 = vpop.f32.mrb[120].mxu0  ;;  %v5180_v29 = vpop.f32.mrb[121].mxu1 }
 0x4fd   : > { %v7210_v30 = vadd.f32 %v6591_v28, %v5178_v27  ;;  %v6593_v31 = vpop.f32.mrb[121].mxu0  ;;  %v5182_v54 = vpop.f32.mrb[122].mxu1 }
 0x4fe   : > { %v7211_v55 = vadd.f32 %v6593_v31, %v5180_v29  ;;  %v6595_v33 = vpop.f32.mrb[122].mxu0  ;;  %v5184_v34 = vpop.f32.mrb[123].mxu1 }
 0x4ff   : > { %6849 = vst [vmem:[%s10991_s8 + $0x3c0] sm:$0xff] %v7210_v30  ;;  %v7212_v39 = vadd.f32 %v6595_v33, %v5182_v54  ;;  %v6597_v42 = vpop.f32.mrb[123].mxu0 }
 0x500   : > { %6850 = vst.msk [vmem:[%s10991_s8 + $0x3c8] sm:$0xff] %vm6729_vm1, %v7211_v55  ;;  %v7213_v45 = vadd.f32 %v6597_v42, %v5184_v34 }
 0x501   : > { %6851 = vst [vmem:[%s10991_s8 + $0x3d0] sm:$0xff] %v7212_v39 }
 0x502   : > { %6852 = vst.msk [vmem:[%s10991_s8 + $0x3d8] sm:$0xff] %vm6729_vm1, %v7213_v45 }
 0x503   : > { %v5188_v37 = vpop.f32.mrb[124].mxu1 }
 0x504   : > { %v6601_v32 = vpop.f32.mrb[124].mxu0  ;;  %v5190_v47 = vpop.f32.mrb[125].mxu1 }
 0x505   : > { %v7214_v57 = vadd.f32 %v6601_v32, %v5188_v37  ;;  %v6603_v56 = vpop.f32.mrb[125].mxu0  ;;  %v5192_v44 = vpop.f32.mrb[126].mxu1 }
 0x506   : > { %v7215_v18 = vadd.f32 %v6603_v56, %v5190_v47  ;;  %v6605_v50 = vpop.f32.mrb[126].mxu0  ;;  %v5194_v51 = vpop.f32.mrb[127].mxu1 }
 0x507   : > { %6853 = vst [vmem:[%s10991_s8 + $0x3e0] sm:$0xff] %v7214_v57  ;;  %v7216_v21 = vadd.f32 %v6605_v50, %v5192_v44  ;;  %v6607_v22 = vpop.f32.mrb[127].mxu0 }
 0x508   : > { %6854 = vst.msk [vmem:[%s10991_s8 + $0x3e8] sm:$0xff] %vm6729_vm1, %v7215_v18  ;;  %v7217_v38 = vadd.f32 %v6607_v22, %v5194_v51 }
 0x509   : > { %6855 = vst [vmem:[%s10991_s8 + $0x3f0] sm:$0xff] %v7216_v21 }
 0x50a   : > { %6856 = vst.msk [vmem:[%s10991_s8 + $0x3f8] sm:$0xff] %vm6729_vm1, %v7217_v38 }
 0x50b   : > { %v5198_v5 = vpop.f32.mrb[128].mxu1 }
 0x50c   : > { %v6611_v17 = vpop.f32.mrb[128].mxu0  ;;  %v5200_v36 = vpop.f32.mrb[129].mxu1 }
 0x50d   : > { %v7218_v48 = vadd.f32 %v6611_v17, %v5198_v5  ;;  %v6613_v52 = vpop.f32.mrb[129].mxu0  ;;  %v5202_v49 = vpop.f32.mrb[130].mxu1 }
 0x50e   : > { %v7219_v53 = vadd.f32 %v6613_v52, %v5200_v36  ;;  %v6615_v35 = vpop.f32.mrb[130].mxu0  ;;  %v5204_v58 = vpop.f32.mrb[131].mxu1 }
 0x50f   : > { %6857 = vst [vmem:[%s10991_s8 + $0x400] sm:$0xff] %v7218_v48  ;;  %v7220_v43 = vadd.f32 %v6615_v35, %v5202_v49  ;;  %v6617_v59 = vpop.f32.mrb[131].mxu0 }
 0x510   : > { %6858 = vst.msk [vmem:[%s10991_s8 + $0x408] sm:$0xff] %vm6729_vm1, %v7219_v53  ;;  %v7221_v20 = vadd.f32 %v6617_v59, %v5204_v58 }
 0x511   : > { %6859 = vst [vmem:[%s10991_s8 + $0x410] sm:$0xff] %v7220_v43 }
 0x512   : > { %6860 = vst.msk [vmem:[%s10991_s8 + $0x418] sm:$0xff] %vm6729_vm1, %v7221_v20 }
 0x513   : > { %v5208_v41 = vpop.f32.mrb[132].mxu1 }
 0x514   : > { %v6621_v46 = vpop.f32.mrb[132].mxu0  ;;  %v5210_v61 = vpop.f32.mrb[133].mxu1 }
 0x515   : > { %v7222_v60 = vadd.f32 %v6621_v46, %v5208_v41  ;;  %v6623_v40 = vpop.f32.mrb[133].mxu0  ;;  %v5212_v62 = vpop.f32.mrb[134].mxu1 }
 0x516   : > { %v7223_v2 = vadd.f32 %v6623_v40, %v5210_v61  ;;  %v6625_v3 = vpop.f32.mrb[134].mxu0  ;;  %v5214_v0 = vpop.f32.mrb[135].mxu1 }
 0x517   : > { %6861 = vst [vmem:[%s10991_s8 + $0x420] sm:$0xff] %v7222_v60  ;;  %v7224_v6 = vadd.f32 %v6625_v3, %v5212_v62  ;;  %v6627_v7 = vpop.f32.mrb[135].mxu0 }
 0x518   : > { %6862 = vst.msk [vmem:[%s10991_s8 + $0x428] sm:$0xff] %vm6729_vm1, %v7223_v2  ;;  %v7225_v8 = vadd.f32 %v6627_v7, %v5214_v0 }
 0x519   : > { %6863 = vst [vmem:[%s10991_s8 + $0x430] sm:$0xff] %v7224_v6 }
 0x51a   : > { %6864 = vst.msk [vmem:[%s10991_s8 + $0x438] sm:$0xff] %vm6729_vm1, %v7225_v8 }
 0x51b   : > { %v5218_v9 = vpop.f32.mrb[136].mxu1 }
 0x51c   : > { %v6631_v10 = vpop.f32.mrb[136].mxu0  ;;  %v5220_v11 = vpop.f32.mrb[137].mxu1 }
 0x51d   : > { %v7226_v13 = vadd.f32 %v6631_v10, %v5218_v9  ;;  %v6633_v14 = vpop.f32.mrb[137].mxu0  ;;  %v5222_v63 = vpop.f32.mrb[138].mxu1 }
 0x51e   : > { %v7227_v1 = vadd.f32 %v6633_v14, %v5220_v11  ;;  %v6635_v4 = vpop.f32.mrb[138].mxu0  ;;  %v5224_v15 = vpop.f32.mrb[139].mxu1 }
 0x51f   : > { %6865 = vst [vmem:[%s10991_s8 + $0x440] sm:$0xff] %v7226_v13  ;;  %v7228_v16 = vadd.f32 %v6635_v4, %v5222_v63  ;;  %v6637_v19 = vpop.f32.mrb[139].mxu0 }
 0x520   : > { %6866 = vst.msk [vmem:[%s10991_s8 + $0x448] sm:$0xff] %vm6729_vm1, %v7227_v1  ;;  %v7229_v23 = vadd.f32 %v6637_v19, %v5224_v15 }
 0x521   : > { %6867 = vst [vmem:[%s10991_s8 + $0x450] sm:$0xff] %v7228_v16 }
 0x522   : > { %6868 = vst.msk [vmem:[%s10991_s8 + $0x458] sm:$0xff] %vm6729_vm1, %v7229_v23 }
 0x523   : > { %v5228_v24 = vpop.f32.mrb[140].mxu1 }
 0x524   : > { %v6641_v25 = vpop.f32.mrb[140].mxu0  ;;  %v5230_v12 = vpop.f32.mrb[141].mxu1 }
 0x525   : > { %v7230_v26 = vadd.f32 %v6641_v25, %v5228_v24  ;;  %v6643_v27 = vpop.f32.mrb[141].mxu0  ;;  %v5232_v28 = vpop.f32.mrb[142].mxu1 }
 0x526   : > { %v7231_v29 = vadd.f32 %v6643_v27, %v5230_v12  ;;  %v6645_v30 = vpop.f32.mrb[142].mxu0  ;;  %v5234_v31 = vpop.f32.mrb[143].mxu1 }
 0x527   : > { %6869 = vst [vmem:[%s10991_s8 + $0x460] sm:$0xff] %v7230_v26  ;;  %v7232_v54 = vadd.f32 %v6645_v30, %v5232_v28  ;;  %v6647_v55 = vpop.f32.mrb[143].mxu0 }
 0x528   : > { %6870 = vst.msk [vmem:[%s10991_s8 + $0x468] sm:$0xff] %vm6729_vm1, %v7231_v29  ;;  %v7233_v33 = vadd.f32 %v6647_v55, %v5234_v31 }
 0x529   : > { %6871 = vst [vmem:[%s10991_s8 + $0x470] sm:$0xff] %v7232_v54 }
 0x52a   : > { %6872 = vst.msk [vmem:[%s10991_s8 + $0x478] sm:$0xff] %vm6729_vm1, %v7233_v33 }
 0x52b   : > { %v5238_v34 = vpop.f32.mrb[144].mxu1 }
 0x52c   : > { %v6651_v39 = vpop.f32.mrb[144].mxu0  ;;  %v5240_v42 = vpop.f32.mrb[145].mxu1 }
 0x52d   : > { %v7234_v45 = vadd.f32 %v6651_v39, %v5238_v34  ;;  %v6653_v37 = vpop.f32.mrb[145].mxu0  ;;  %v5242_v32 = vpop.f32.mrb[146].mxu1 }
 0x52e   : > { %v7235_v47 = vadd.f32 %v6653_v37, %v5240_v42  ;;  %v6655_v57 = vpop.f32.mrb[146].mxu0  ;;  %v5244_v56 = vpop.f32.mrb[147].mxu1 }
 0x52f   : > { %6873 = vst [vmem:[%s10991_s8 + $0x480] sm:$0xff] %v7234_v45  ;;  %v7236_v44 = vadd.f32 %v6655_v57, %v5242_v32  ;;  %v6657_v18 = vpop.f32.mrb[147].mxu0 }
 0x530   : > { %6874 = vst.msk [vmem:[%s10991_s8 + $0x488] sm:$0xff] %vm6729_vm1, %v7235_v47  ;;  %v7237_v50 = vadd.f32 %v6657_v18, %v5244_v56 }
 0x531   : > { %6875 = vst [vmem:[%s10991_s8 + $0x490] sm:$0xff] %v7236_v44 }
 0x532   : > { %6876 = vst.msk [vmem:[%s10991_s8 + $0x498] sm:$0xff] %vm6729_vm1, %v7237_v50 }
 0x533   : > { %v5248_v51 = vpop.f32.mrb[148].mxu1 }
 0x534   : > { %v6661_v21 = vpop.f32.mrb[148].mxu0  ;;  %v5250_v22 = vpop.f32.mrb[149].mxu1 }
 0x535   : > { %v7238_v38 = vadd.f32 %v6661_v21, %v5248_v51  ;;  %v6663_v5 = vpop.f32.mrb[149].mxu0  ;;  %v5252_v17 = vpop.f32.mrb[150].mxu1 }
 0x536   : > { %v7239_v36 = vadd.f32 %v6663_v5, %v5250_v22  ;;  %v6665_v48 = vpop.f32.mrb[150].mxu0  ;;  %v5254_v52 = vpop.f32.mrb[151].mxu1 }
 0x537   : > { %6877 = vst [vmem:[%s10991_s8 + $0x4a0] sm:$0xff] %v7238_v38  ;;  %v7240_v49 = vadd.f32 %v6665_v48, %v5252_v17  ;;  %v6667_v53 = vpop.f32.mrb[151].mxu0 }
 0x538   : > { %6878 = vst.msk [vmem:[%s10991_s8 + $0x4a8] sm:$0xff] %vm6729_vm1, %v7239_v36  ;;  %v7241_v35 = vadd.f32 %v6667_v53, %v5254_v52 }
 0x539   : > { %6879 = vst [vmem:[%s10991_s8 + $0x4b0] sm:$0xff] %v7240_v49 }
 0x53a   : > { %6880 = vst.msk [vmem:[%s10991_s8 + $0x4b8] sm:$0xff] %vm6729_vm1, %v7241_v35 }
 0x53b   : > { %v5258_v58 = vpop.f32.mrb[152].mxu1 }
 0x53c   : > { %v6671_v43 = vpop.f32.mrb[152].mxu0  ;;  %v5260_v59 = vpop.f32.mrb[153].mxu1 }
 0x53d   : > { %v7242_v20 = vadd.f32 %v6671_v43, %v5258_v58  ;;  %v6673_v41 = vpop.f32.mrb[153].mxu0  ;;  %v5262_v46 = vpop.f32.mrb[154].mxu1 }
 0x53e   : > { %v7243_v61 = vadd.f32 %v6673_v41, %v5260_v59  ;;  %v6675_v60 = vpop.f32.mrb[154].mxu0  ;;  %v5264_v40 = vpop.f32.mrb[155].mxu1 }
 0x53f   : > { %6881 = vst [vmem:[%s10991_s8 + $0x4c0] sm:$0xff] %v7242_v20  ;;  %v7244_v62 = vadd.f32 %v6675_v60, %v5262_v46  ;;  %v6677_v2 = vpop.f32.mrb[155].mxu0 }
 0x540   : > { %6882 = vst.msk [vmem:[%s10991_s8 + $0x4c8] sm:$0xff] %vm6729_vm1, %v7243_v61  ;;  %v7245_v3 = vadd.f32 %v6677_v2, %v5264_v40 }
 0x541   : > { %6883 = vst [vmem:[%s10991_s8 + $0x4d0] sm:$0xff] %v7244_v62 }
 0x542   : > { %6884 = vst.msk [vmem:[%s10991_s8 + $0x4d8] sm:$0xff] %vm6729_vm1, %v7245_v3 }
 0x543   : > { %v5268_v0 = vpop.f32.mrb[156].mxu1 }
 0x544   : > { %v6681_v6 = vpop.f32.mrb[156].mxu0  ;;  %v5270_v7 = vpop.f32.mrb[157].mxu1 }
 0x545   : > { %v7246_v8 = vadd.f32 %v6681_v6, %v5268_v0  ;;  %v6683_v9 = vpop.f32.mrb[157].mxu0  ;;  %v5272_v10 = vpop.f32.mrb[158].mxu1 }
 0x546   : > { %v7247_v11 = vadd.f32 %v6683_v9, %v5270_v7  ;;  %v6685_v13 = vpop.f32.mrb[158].mxu0  ;;  %v5274_v14 = vpop.f32.mrb[159].mxu1 }
 0x547   : > { %6885 = vst [vmem:[%s10991_s8 + $0x4e0] sm:$0xff] %v7246_v8  ;;  %v7248_v63 = vadd.f32 %v6685_v13, %v5272_v10  ;;  %v6687_v1 = vpop.f32.mrb[159].mxu0 }
 0x548   : > { %6886 = vst.msk [vmem:[%s10991_s8 + $0x4e8] sm:$0xff] %vm6729_vm1, %v7247_v11  ;;  %v7249_v4 = vadd.f32 %v6687_v1, %v5274_v14 }
 0x549   : > { %6887 = vst [vmem:[%s10991_s8 + $0x4f0] sm:$0xff] %v7248_v63 }
 0x54a   : > { %6888 = vst.msk [vmem:[%s10991_s8 + $0x4f8] sm:$0xff] %vm6729_vm1, %v7249_v4 }
 0x54b   : > { %v5278_v15 = vpop.f32.mrb[160].mxu1 }
 0x54c   : > { %v6691_v16 = vpop.f32.mrb[160].mxu0  ;;  %v5280_v19 = vpop.f32.mrb[161].mxu1 }
 0x54d   : > { %v7250_v23 = vadd.f32 %v6691_v16, %v5278_v15  ;;  %v6693_v24 = vpop.f32.mrb[161].mxu0  ;;  %v5282_v25 = vpop.f32.mrb[162].mxu1 }
 0x54e   : > { %v7251_v12 = vadd.f32 %v6693_v24, %v5280_v19  ;;  %v6695_v26 = vpop.f32.mrb[162].mxu0  ;;  %v5284_v27 = vpop.f32.mrb[163].mxu1 }
 0x54f   : > { %6889 = vst [vmem:[%s10991_s8 + $0x500] sm:$0xff] %v7250_v23  ;;  %v7252_v28 = vadd.f32 %v6695_v26, %v5282_v25  ;;  %v6697_v29 = vpop.f32.mrb[163].mxu0 }
 0x550   : > { %6890 = vst.msk [vmem:[%s10991_s8 + $0x508] sm:$0xff] %vm6729_vm1, %v7251_v12  ;;  %v7253_v30 = vadd.f32 %v6697_v29, %v5284_v27 }
 0x551   : > { %6891 = vst [vmem:[%s10991_s8 + $0x510] sm:$0xff] %v7252_v28 }
 0x552   : > { %6892 = vst.msk [vmem:[%s10991_s8 + $0x518] sm:$0xff] %vm6729_vm1, %v7253_v30 }
 0x553   : > { %v5288_v31 = vpop.f32.mrb[164].mxu1 }
 0x554   : > { %v6701_v54 = vpop.f32.mrb[164].mxu0  ;;  %v5290_v55 = vpop.f32.mrb[165].mxu1 }
 0x555   : > { %v7254_v33 = vadd.f32 %v6701_v54, %v5288_v31  ;;  %v6703_v34 = vpop.f32.mrb[165].mxu0  ;;  %v5292_v39 = vpop.f32.mrb[166].mxu1 }
 0x556   : > { %v7255_v42 = vadd.f32 %v6703_v34, %v5290_v55  ;;  %v6705_v45 = vpop.f32.mrb[166].mxu0  ;;  %v5294_v37 = vpop.f32.mrb[167].mxu1 }
 0x557   : > { %6893 = vst [vmem:[%s10991_s8 + $0x520] sm:$0xff] %v7254_v33  ;;  %v7256_v32 = vadd.f32 %v6705_v45, %v5292_v39  ;;  %v6707_v47 = vpop.f32.mrb[167].mxu0 }
 0x558   : > { %6894 = vst.msk [vmem:[%s10991_s8 + $0x528] sm:$0xff] %vm6729_vm1, %v7255_v42  ;;  %v7257_v57 = vadd.f32 %v6707_v47, %v5294_v37 }
 0x559   : > { %6895 = vst [vmem:[%s10991_s8 + $0x530] sm:$0xff] %v7256_v32 }
 0x55a   : > { %6896 = vst.msk [vmem:[%s10991_s8 + $0x538] sm:$0xff] %vm6729_vm1, %v7257_v57 }
 0x55b   : > { %v5298_v56 = vpop.f32.mrb[168].mxu1 }
 0x55c   : > { %v6711_v44 = vpop.f32.mrb[168].mxu0  ;;  %v5300_v18 = vpop.f32.mrb[169].mxu1 }
 0x55d   : > { %v7258_v50 = vadd.f32 %v6711_v44, %v5298_v56  ;;  %v6713_v51 = vpop.f32.mrb[169].mxu0  ;;  %v5302_v21 = vpop.f32.mrb[170].mxu1 }
 0x55e   : > { %v7259_v22 = vadd.f32 %v6713_v51, %v5300_v18  ;;  %v6715_v38 = vpop.f32.mrb[170].mxu0  ;;  %v5304_v5 = vpop.f32.mrb[171].mxu1 }
 0x55f   : > { %6897 = vst [vmem:[%s10991_s8 + $0x540] sm:$0xff] %v7258_v50  ;;  %v7260_v17 = vadd.f32 %v6715_v38, %v5302_v21  ;;  %v6717_v36 = vpop.f32.mrb[171].mxu0 }
 0x560   : > { %6898 = vst.msk [vmem:[%s10991_s8 + $0x548] sm:$0xff] %vm6729_vm1, %v7259_v22  ;;  %v7261_v48 = vadd.f32 %v6717_v36, %v5304_v5 }
 0x561   : > { %6899 = vst [vmem:[%s10991_s8 + $0x550] sm:$0xff] %v7260_v17 }
 0x562   : > { %6900 = vst.msk [vmem:[%s10991_s8 + $0x558] sm:$0xff] %vm6729_vm1, %v7261_v48 }
 0x563   : > { %v5308_v52 = vpop.f32.mrb[172].mxu1 }
 0x564   : > { %v6721_v49 = vpop.f32.mrb[172].mxu0  ;;  %v5310_v53 = vpop.f32.mrb[173].mxu1 }
 0x565   : > { %v7262_v35 = vadd.f32 %v6721_v49, %v5308_v52  ;;  %v6723_v58 = vpop.f32.mrb[173].mxu0  ;;  %v5312_v43 = vpop.f32.mrb[174].mxu1 }
 0x566   : > { %v7263_v59 = vadd.f32 %v6723_v58, %v5310_v53  ;;  %v6725_v20 = vpop.f32.mrb[174].mxu0  ;;  %v5313_v41 = vpop.f32.mrb[175].mxu1 }
 0x567   : > { %6901 = vst [vmem:[%s10991_s8 + $0x560] sm:$0xff] %v7262_v35  ;;  %v6726_v46 = vpop.f32.mrb[175].mxu0 }
 0x568   : > { %6902 = vst.msk [vmem:[%s10991_s8 + $0x568] sm:$0xff] %vm6729_vm1, %v7263_v59 }
 0x569 PF: > { %s16_s17 = sadd.s32 1, %s8118_s17   ;;  %s11481_s12 = smov %s8102_s13 }
 0x56a   : > { %p13_p9 = scmp.ge.s32.totalorder %s16_s17, 4   ;;  %s11482_s13 = smov %s8106_s14 }
 0x56b   : > { %s11483_s14 = smov %s8189_s23  ;;  %s11484_s15 = smov %s8114_s16 }
 0x56c   : > { %s11485_s16 = smov %s11487_s19  ;;  %15 = sbr.rel (!%p13_p9) target bundleno = 4 (0x4), region = 78 }
 0x573   :  { %6935 = vsyncpa [#allocation3], 1 }
 0x574   :  { %6937 = vsyncpa [#allocation3 + $0x1], 1 }

</bundles_post_ra>
